<compile_context>
chip_gen: v5e
topology: v5e:2x2
jax: 0.10.0
libtpu: 0.0.40
codegen_flags: <defaults>
</compile_context>

<pallas_src>
import functools

import jax
import jax.numpy as jnp
from jax.experimental import pallas as pl
from jax.experimental.pallas import tpu as pltpu

LRELU_SLOPE = 0.01
BN_EPS = 1e-5
K_TILE = 512  # K tile for the matmul reduction axis


def _choose_tm(m):
    """M tile: prefer 256 (v6e/v7x MXU width) while keeping >= 2 parallel grid steps."""
    if m % 256 == 0 and m // 256 >= 2:
        return 256
    if m % 128 == 0 and m >= 128:
        return 128
    return 128


# ----------------------------------------------------------------------------
# Pallas kernels
# ----------------------------------------------------------------------------
def _mm_kernel(a_ref, b_ref, o_ref, acc_ref):
    @pl.when(pl.program_id(1) == 0)
    def _():
        acc_ref[...] = jnp.zeros_like(acc_ref)

    acc_ref[...] += jnp.dot(a_ref[...], b_ref[...], preferred_element_type=jnp.float32)

    @pl.when(pl.program_id(1) == pl.num_programs(1) - 1)
    def _():
        o_ref[...] = acc_ref[...]


def _mm_stats_kernel(a_ref, b_ref, o_ref, st_ref, acc_ref):
    @pl.when(pl.program_id(1) == 0)
    def _():
        acc_ref[...] = jnp.zeros_like(acc_ref)

    acc_ref[...] += jnp.dot(a_ref[...], b_ref[...], preferred_element_type=jnp.float32)

    @pl.when(pl.program_id(1) == pl.num_programs(1) - 1)
    def _():
        y = acc_ref[...]
        o_ref[...] = y
        s = jnp.sum(y, axis=0, keepdims=True)        # (1, N) per-tile column sum
        ss = jnp.sum(y * y, axis=0, keepdims=True)   # (1, N) per-tile column sum of squares
        st_ref[0] = jnp.concatenate([s, ss], axis=0)


def pallas_matmul(a, b, want_stats=False):
    """(M, K) @ (K, N) -> f32 (M, N), optionally + per-column (sum, sum-of-squares).

    bf16 operands on the MXU, f32 accumulation. M tiled ("parallel"), K tiled with a VMEM
    accumulator ("arbitrary"); N kept whole so stores stay lane-dense.
    """
    m, k = a.shape
    k2, n = b.shape
    assert k == k2
    a16 = a.astype(jnp.bfloat16)
    b16 = b.astype(jnp.bfloat16)

    tm = _choose_tm(m)
    mp = pl.cdiv(m, tm) * tm
    if mp != m:
        a16 = jnp.pad(a16, ((0, mp - m), (0, 0)))

    if k <= K_TILE:
        tk, kp = k, k
    else:
        tk = K_TILE
        kp = pl.cdiv(k, tk) * tk
        if kp != k:
            a16 = jnp.pad(a16, ((0, 0), (0, kp - k)))
            b16 = jnp.pad(b16, ((0, kp - k), (0, 0)))

    grid = (mp // tm, kp // tk)
    a_spec = pl.BlockSpec((tm, tk), lambda i, kk: (i, kk))
    b_spec = pl.BlockSpec((tk, n), lambda i, kk: (kk, 0))
    y_spec = pl.BlockSpec((tm, n), lambda i, kk: (i, 0))
    cparams = pltpu.CompilerParams(dimension_semantics=("parallel", "arbitrary"))
    scratch = [pltpu.VMEM((tm, n), jnp.float32)]

    if want_stats:
        st_spec = pl.BlockSpec((1, 2, n), lambda i, kk: (i, 0, 0))
        y, st = pl.pallas_call(
            _mm_stats_kernel,
            out_shape=(jax.ShapeDtypeStruct((mp, n), jnp.float32),
                       jax.ShapeDtypeStruct((grid[0], 2, n), jnp.float32)),
            grid=grid,
            in_specs=[a_spec, b_spec],
            out_specs=(y_spec, st_spec),
            scratch_shapes=scratch,
            compiler_params=cparams,
        )(a16, b16)
        if mp != m:
            y = y[:m]
        return y, jnp.sum(st[:, 0, :], axis=0), jnp.sum(st[:, 1, :], axis=0)

    y = pl.pallas_call(
        _mm_kernel,
        out_shape=jax.ShapeDtypeStruct((mp, n), jnp.float32),
        grid=grid,
        in_specs=[a_spec, b_spec],
        out_specs=y_spec,
        scratch_shapes=scratch,
        compiler_params=cparams,
    )(a16, b16)
    return y[:m] if mp != m else y


def _affine_lrelu_kernel(x_ref, s_ref, b_ref, o_ref, *, slope):
    y = x_ref[...] * s_ref[...] + b_ref[...]
    o_ref[...] = jnp.where(y >= 0, y, slope * y)


def pallas_affine_lrelu(x2d, scale, bias, slope=LRELU_SLOPE):
    """Per-channel affine + LeakyReLU on (M, C)."""
    m, c = x2d.shape
    tm = _choose_tm(m)
    mp = pl.cdiv(m, tm) * tm
    xp = x2d if mp == m else jnp.pad(x2d, ((0, mp - m), (0, 0)))
    out = pl.pallas_call(
        functools.partial(_affine_lrelu_kernel, slope=slope),
        out_shape=jax.ShapeDtypeStruct((mp, c), jnp.float32),
        grid=(mp // tm,),
        in_specs=[pl.BlockSpec((tm, c), lambda i: (i, 0)),
                  pl.BlockSpec((1, c), lambda i: (0, 0)),
                  pl.BlockSpec((1, c), lambda i: (0, 0))],
        out_specs=pl.BlockSpec((tm, c), lambda i: (i, 0)),
        compiler_params=pltpu.CompilerParams(dimension_semantics=("parallel",)),
    )(xp.astype(jnp.float32),
      scale.reshape(1, c).astype(jnp.float32),
      bias.reshape(1, c).astype(jnp.float32))
    return out if mp == m else out[:m]


def _contrast_kernel(l_ref, c_ref, sc_ref, bc_ref, o_ref, *, slope):
    ctx = c_ref[...] * sc_ref[...] + bc_ref[...]
    ctx = jnp.where(ctx >= 0, ctx, slope * ctx)
    o_ref[...] = l_ref[...] - ctx


def pallas_contrast(local_act, ctx_raw, ctx_scale, ctx_bias, slope=LRELU_SLOPE):
    """Fused ContextContrasted combine for all 4 branches: local_act - ABN(ctx_raw)."""
    m, c = local_act.shape
    tm = _choose_tm(m)
    mp = pl.cdiv(m, tm) * tm
    la = local_act if mp == m else jnp.pad(local_act, ((0, mp - m), (0, 0)))
    cr = ctx_raw if mp == m else jnp.pad(ctx_raw, ((0, mp - m), (0, 0)))
    out = pl.pallas_call(
        functools.partial(_contrast_kernel, slope=slope),
        out_shape=jax.ShapeDtypeStruct((mp, c), jnp.float32),
        grid=(mp // tm,),
        in_specs=[pl.BlockSpec((tm, c), lambda i: (i, 0)),
                  pl.BlockSpec((tm, c), lambda i: (i, 0)),
                  pl.BlockSpec((1, c), lambda i: (0, 0)),
                  pl.BlockSpec((1, c), lambda i: (0, 0))],
        out_specs=pl.BlockSpec((tm, c), lambda i: (i, 0)),
        compiler_params=pltpu.CompilerParams(dimension_semantics=("parallel",)),
    )(la.astype(jnp.float32), cr.astype(jnp.float32),
      ctx_scale.reshape(1, c).astype(jnp.float32),
      ctx_bias.reshape(1, c).astype(jnp.float32))
    return out if mp == m else out[:m]


def _attn_kernel(k_ref, v_ref, s_ref, b_ref, o_ref, *, sm_scale, slope):
    # fused InPlaceABN (affine + LeakyReLU) prologue for the shared key/query projection
    k = k_ref[0] * s_ref[...] + b_ref[...]
    k = jnp.where(k >= 0, k, slope * k)
    q = (k * sm_scale).astype(jnp.bfloat16)          # fold key_dim**-0.5 into the query side
    kb = k.astype(jnp.bfloat16)
    sim = jax.lax.dot_general(q, kb, (((1,), (1,)), ((), ())),
                              preferred_element_type=jnp.float32)   # (L, L), no transpose op
    sim = sim - jnp.max(sim, axis=-1, keepdims=True)
    p = jnp.exp(sim)
    p = p * pl.reciprocal(jnp.sum(p, axis=-1, keepdims=True), approx=True)
    o_ref[0] = jnp.dot(p.astype(jnp.bfloat16), v_ref[0],
                       preferred_element_type=jnp.float32)
    # TODO(synk): for large L switch to a KV-tiled online-softmax (flash-style) accumulator
    # instead of forming the full (L, L) score matrix in one block.


def pallas_self_attention(k_raw, v, k_scale, k_bias, key_dim, slope=LRELU_SLOPE):
    """softmax(key_dim**-0.5 * k k^T) @ v per batch element, with the key ABN fused in."""
    bsz, seq, kd = k_raw.shape
    _, _, vd = v.shape
    kern = functools.partial(_attn_kernel, sm_scale=float(key_dim) ** (-0.5), slope=slope)
    return pl.pallas_call(
        kern,
        out_shape=jax.ShapeDtypeStruct((bsz, seq, vd), jnp.float32),
        grid=(bsz,),
        in_specs=[pl.BlockSpec((1, seq, kd), lambda b: (b, 0, 0)),
                  pl.BlockSpec((1, seq, vd), lambda b: (b, 0, 0)),
                  pl.BlockSpec((1, kd), lambda b: (0, 0)),
                  pl.BlockSpec((1, kd), lambda b: (0, 0))],
        out_specs=pl.BlockSpec((1, seq, vd), lambda b: (b, 0, 0)),
        compiler_params=pltpu.CompilerParams(dimension_semantics=("parallel",)),
    )(k_raw.astype(jnp.float32), v.astype(jnp.bfloat16),
      k_scale.reshape(1, kd).astype(jnp.float32),
      k_bias.reshape(1, kd).astype(jnp.float32))


# ----------------------------------------------------------------------------
# JAX glue around the Pallas kernels
# ----------------------------------------------------------------------------
def bn_scale_bias(col_sum, col_sumsq, count, gamma, beta, eps=BN_EPS):
    mean = col_sum / count
    var = jnp.maximum(col_sumsq / count - mean * mean, 0.0)
    scale = gamma * jax.lax.rsqrt(var + eps)
    bias = beta - mean * scale
    return scale, bias


def abn_from_stats(y2d, col_sum, col_sumsq, count, gamma, beta):
    """InPlaceABNSync: BN (batch stats from the matmul kernel) + LeakyReLU(0.01)."""
    scale, bias = bn_scale_bias(col_sum, col_sumsq, count, gamma, beta)
    return pallas_affine_lrelu(y2d, scale, bias)


def im2col3x3(x, rate):
    """im2col for a 3x3 conv, padding=rate, dilation=rate (same spatial size)."""
    # TODO(synk): at production channel counts, accumulate the 9 taps inside the matmul kernel
    # (grid over taps / manual DMA of shifted windows) to avoid this 9x HBM materialization.
    n, h, w, ci = x.shape
    xp = jnp.pad(x, ((0, 0), (rate, rate), (rate, rate), (0, 0)))
    taps = [xp[:, ky * rate:ky * rate + h, kx * rate:kx * rate + w, :]
            for ky in range(3) for kx in range(3)]
    return jnp.concatenate(taps, axis=-1).reshape(n * h * w, 9 * ci)


def maxpool(x, s):
    if s <= 1:
        return x
    n, h, w, c = x.shape
    return x.reshape(n, h // s, s, w // s, s, c).max(axis=(2, 4))


def bilinear_resize_ac(x, h_out, w_out):
    """Bilinear resize, align_corners=True (matches F.interpolate)."""
    n, h, w, c = x.shape
    if h_out == h and w_out == w:
        return x
    ys = jnp.linspace(0.0, h - 1, h_out)
    xs = jnp.linspace(0.0, w - 1, w_out)
    y0 = jnp.floor(ys).astype(jnp.int32)
    x0 = jnp.floor(xs).astype(jnp.int32)
    y1 = jnp.minimum(y0 + 1, h - 1)
    x1 = jnp.minimum(x0 + 1, w - 1)
    wy = (ys - y0)[None, :, None, None]
    wx = (xs - x0)[None, None, :, None]
    top = x[:, y0][:, :, x0] * (1 - wx) + x[:, y0][:, :, x1] * wx
    bot = x[:, y1][:, :, x0] * (1 - wx) + x[:, y1][:, :, x1] * wx
    return top * (1 - wy) + bot * wy


def se_gate(z, p):
    """Squeeze-excitation gate (reduction=16). M = batch (tiny) -> plain jnp.dot."""
    h1 = jnp.maximum(z @ p["w1"] + p["b1"], 0.0)
    return jax.nn.sigmoid(h1 @ p["w2"] + p["b2"])


def self_attention_module(x, p, scale, key_dim, value_dim):
    n, h, w, c = x.shape
    xs = maxpool(x, scale)
    _, hs, ws, _ = xs.shape
    seq = hs * ws
    ms = n * seq

    # fused value + key 1x1 convs -> one lane-fused matmul (Vd + Kd output columns)
    w_vk = jnp.concatenate([p["w_value"], p["w_key"]], axis=1)
    y, col_sum, col_sumsq = pallas_matmul(xs.reshape(ms, c), w_vk, want_stats=True)
    value = (y[:, :value_dim] + p["b_value"][None, :]).reshape(n, seq, value_dim)
    k_raw = y[:, value_dim:].reshape(n, seq, key_dim)
    k_scale, k_bias = bn_scale_bias(col_sum[value_dim:], col_sumsq[value_dim:], ms,
                                    p["g_key"], p["b_key"])

    ctx = pallas_self_attention(k_raw, value, k_scale, k_bias, key_dim)   # (n, seq, Vd)
    ctx = ctx.reshape(n, hs, ws, value_dim)

    # zero-initialized "weights" 1x1 conv (with bias)
    w_dim = p["w_weights"].shape[1]
    ctx = (pallas_matmul(ctx.reshape(ms, value_dim), p["w_weights"])
           + p["b_weights"][None, :]).reshape(n, hs, ws, w_dim)
    if scale > 1:
        ctx = bilinear_resize_ac(ctx, h, w)

    # refine: 1x1 conv (no bias) + InPlaceABN
    mr = n * h * w
    yr, sr, ssr = pallas_matmul(ctx.reshape(mr, w_dim), p["w_refine"], want_stats=True)
    out = abn_from_stats(yr, sr, ssr, mr, p["g_ref"], p["b_ref"])
    return out.reshape(n, h, w, -1)


# ----------------------------------------------------------------------------
# MagicModule
# ----------------------------------------------------------------------------
def init_params(key, in_dim, out_dim):
    keys = iter(jax.random.split(key, 64))

    def nrm(shape, s=0.05):
        return jax.random.normal(next(keys), shape, jnp.float32) * s

    ones = lambda c: jnp.ones((c,), jnp.float32)
    zeros = lambda c: jnp.zeros((c,), jnp.float32)
    red = max(out_dim // 16, 1)
    key_dim = out_dim // 2

    def se_params():
        return {"w1": nrm((out_dim, red)), "b1": zeros(red),
                "w2": nrm((red, out_dim)), "b2": zeros(out_dim)}

    def ccm_params():
        return {"w_local": nrm((3, 3, in_dim, out_dim)), "g_l": ones(out_dim), "b_l": zeros(out_dim),
                "w_ctx": nrm((3, 3, in_dim, out_dim)), "g_c": ones(out_dim), "b_c": zeros(out_dim)}

    attn = {
        "w_key": nrm((out_dim, key_dim)), "g_key": ones(key_dim), "b_key": zeros(key_dim),
        "w_value": nrm((out_dim, out_dim)), "b_value": zeros(out_dim),
        # nn.init.constant_(weights.{weight,bias}, 0) in the reference:
        "w_weights": jnp.zeros((out_dim, out_dim), jnp.float32),
        "b_weights": jnp.zeros((out_dim,), jnp.float32),
        "w_refine": nrm((out_dim, out_dim)), "g_ref": ones(out_dim), "b_ref": zeros(out_dim),
    }
    return {
        "atte": {"w_conv3": nrm((3, 3, in_dim, out_dim)), "g": ones(out_dim), "b": zeros(out_dim),
                 "attn": attn},
        "dil_x": {"w": nrm((in_dim, out_dim)), "g": ones(out_dim), "b": zeros(out_dim),
                  "se": se_params()},
        "dil_0": {"ccm": ccm_params(), "se": se_params()},
        "dil_1": {"ccm": ccm_params(), "se": se_params()},
        "dil_2": {"ccm": ccm_params(), "se": se_params()},
        "dil_3": {"ccm": ccm_params(), "se": se_params()},
        "head": {"w1": nrm((6 * out_dim, out_dim)), "g1": ones(out_dim), "b1": zeros(out_dim),
                 "w3": nrm((3, 3, out_dim, out_dim)), "g2": ones(out_dim), "b2": zeros(out_dim)},
    }


def magic_module_forward(params, x, *, out_dim, scale):
    n, h, w, ci = x.shape
    m = n * h * w
    key_dim = out_dim // 2
    value_dim = out_dim
    rates = (6, 12, 18, 24)
    dil_names = ("dil_0", "dil_1", "dil_2", "dil_3")

    # --- fused rate-1 3x3 convs: atte conv3 + the four ccm "local" convs (one lane-dense matmul)
    patches1 = im2col3x3(x, 1)
    w_loc5 = jnp.concatenate(
        [params["atte"]["w_conv3"].reshape(9 * ci, out_dim)]
        + [params[nm]["ccm"]["w_local"].reshape(9 * ci, out_dim) for nm in dil_names], axis=1)
    g5 = jnp.concatenate([params["atte"]["g"]] + [params[nm]["ccm"]["g_l"] for nm in dil_names])
    b5 = jnp.concatenate([params["atte"]["b"]] + [params[nm]["ccm"]["b_l"] for nm in dil_names])
    y5, s5, ss5 = pallas_matmul(patches1, w_loc5, want_stats=True)       # (m, 5*out_dim)
    act5 = abn_from_stats(y5, s5, ss5, m, g5, b5)                        # fused ABN, lane-dense

    a = act5[:, :out_dim].reshape(n, h, w, out_dim)                      # atte-branch activation
    local_act = act5[:, out_dim:]                                        # (m, 4*out_dim)

    # --- attention branch
    feat0 = self_attention_module(a, params["atte"]["attn"], scale, key_dim, value_dim)

    # --- four context-contrasted branches: dilated "context" convs + fused contrast + SE
    ctx_raw, ctx_scale, ctx_bias = [], [], []
    for rate, nm in zip(rates, dil_names):
        pc = params[nm]["ccm"]
        yc, sc, ssc = pallas_matmul(im2col3x3(x, rate), pc["w_ctx"].reshape(9 * ci, out_dim),
                                    want_stats=True)
        scl, bia = bn_scale_bias(sc, ssc, m, pc["g_c"], pc["b_c"])
        ctx_raw.append(yc)
        ctx_scale.append(scl)
        ctx_bias.append(bia)
    f_all = pallas_contrast(local_act, jnp.concatenate(ctx_raw, axis=1),
                            jnp.concatenate(ctx_scale), jnp.concatenate(ctx_bias))
    f_img = f_all.reshape(n, h, w, 4 * out_dim)
    z_all = jnp.mean(f_img, axis=(1, 2))                                 # (n, 4*out_dim)
    gates = jnp.concatenate(
        [se_gate(z_all[:, i * out_dim:(i + 1) * out_dim], params[nm]["se"])
         for i, nm in enumerate(dil_names)], axis=1)
    feats_ccm = f_img * gates[:, None, None, :]                          # feat1..feat4 concat

    # --- dilation_x branch: 1x1 conv + ABN + SE
    px = params["dil_x"]
    yx, sx, ssx = pallas_matmul(x.reshape(m, ci), px["w"], want_stats=True)
    hx = abn_from_stats(yx, sx, ssx, m, px["g"], px["b"]).reshape(n, h, w, out_dim)
    featx = hx * se_gate(jnp.mean(hx, axis=(1, 2)), px["se"])[:, None, None, :]

    # --- head: concat + 1x1 conv + ABN + 3x3 conv + ABN
    # TODO(synk): the concat could be folded into the head matmul via a K-grid over branches.
    concat = jnp.concatenate([feat0, feats_ccm, featx], axis=-1)         # (n, h, w, 6*out_dim)
    ph = params["head"]
    y1, s1, ss1 = pallas_matmul(concat.reshape(m, 6 * out_dim), ph["w1"], want_stats=True)
    hid = abn_from_stats(y1, s1, ss1, m, ph["g1"], ph["b1"]).reshape(n, h, w, out_dim)
    y2, s2, ss2 = pallas_matmul(im2col3x3(hid, 1), ph["w3"].reshape(9 * out_dim, out_dim),
                                want_stats=True)
    out = abn_from_stats(y2, s2, ss2, m, ph["g2"], ph["b2"])
    return out.reshape(n, h, w, out_dim)


if __name__ == "__main__":
    BATCH, IN_DIM, OUT_DIM, H, W, SCALE = 2, 8, 32, 16, 16, 2

    root = jax.random.PRNGKey(0)
    pkey, xkey = jax.random.split(root)
    params = init_params(pkey, IN_DIM, OUT_DIM)
    # NHWC input (equivalent NCHW PyTorch input: (2, 8, 16, 16))
    x = jax.random.normal(xkey, (BATCH, H, W, IN_DIM), jnp.float32)

    fwd = jax.jit(functools.partial(magic_module_forward, out_dim=OUT_DIM, scale=SCALE))
    out = jax.block_until_ready(fwd(params, x))

    assert out.shape == (BATCH, H, W, OUT_DIM), out.shape
    assert bool(jnp.all(jnp.isfinite(out)))
    print("KERNEL_OK")
</pallas_src>

<mosaic_0001>
module attributes {stable_mosaic.version = 11 : i64} {
  func.func @_mm_stats_kernel(%arg0: i32, %arg1: i32, %arg2: memref<256x72xbf16, #tpu.memory_space<vmem>>, %arg3: memref<72x160xbf16, #tpu.memory_space<vmem>>, %arg4: memref<256x160xf32, #tpu.memory_space<vmem>>, %arg5: memref<1x2x160xf32, #tpu.memory_space<vmem>>, %arg6: memref<256x160xf32, #tpu.memory_space<vmem>>) attributes {dimension_semantics = [#tpu.dimension_semantics<parallel>, #tpu.dimension_semantics<arbitrary>], iteration_bounds = array<i64: 2, 1>, scalar_prefetch = 0 : i64, scratch_operands = 1 : i64, tpu.core_type = #tpu.core_type<tc>, window_params = [{transform_indices = @transform_0, window_bounds = array<i64: 256, 72>}, {transform_indices = @transform_1, window_bounds = array<i64: 72, 160>}, {transform_indices = @transform_2, window_bounds = array<i64: 256, 160>}, {transform_indices = @transform_3, window_bounds = array<i64: 1, 2, 160>}]} {
    %c0_i32 = arith.constant 0 : i32
    %0 = arith.cmpi eq, %arg1, %c0_i32 : i32
    %1 = arith.extui %0 : i1 to i32
    %c0_i32_0 = arith.constant 0 : i32
    %2 = arith.cmpi ne, %1, %c0_i32_0 : i32
    scf.if %2 {
      %cst_10 = arith.constant 0.000000e+00 : f32
      %12 = vector.broadcast %cst_10 : f32 to vector<256x160xf32>
      %c0_11 = arith.constant 0 : index
      %c0_12 = arith.constant 0 : index
      %13 = vector.load %arg6[%c0_11, %c0_12] : memref<256x160xf32, #tpu.memory_space<vmem>>, vector<256x160xf32>
      tpu.vector_store %arg6[%c0_11, %c0_12], %12 {strides = array<i32>} : memref<256x160xf32, #tpu.memory_space<vmem>>, vector<256x160xf32>,
    } else {
    }
    %c0 = arith.constant 0 : index
    %c0_1 = arith.constant 0 : index
    %3 = vector.load %arg6[%c0, %c0_1] : memref<256x160xf32, #tpu.memory_space<vmem>>, vector<256x160xf32>
    %c0_2 = arith.constant 0 : index
    %c0_3 = arith.constant 0 : index
    %4 = vector.load %arg2[%c0_2, %c0_3] : memref<256x72xbf16, #tpu.memory_space<vmem>>, vector<256x72xbf16>
    %c0_4 = arith.constant 0 : index
    %c0_5 = arith.constant 0 : index
    %5 = vector.load %arg3[%c0_4, %c0_5] : memref<72x160xbf16, #tpu.memory_space<vmem>>, vector<72x160xbf16>
    %cst = arith.constant dense<0.000000e+00> : vector<256x160xf32>
    %6 = tpu.matmul %4, %5, %cst {dimension_numbers = #tpu.dot_dimension_numbers<[1], [0], [0], [1], [0, 0, 1, 1], [], []>} : vector<256x72xbf16>, vector<72x160xbf16>, vector<256x160xf32> -> vector<256x160xf32>
    %7 = arith.addf %3, %6 : vector<256x160xf32>
    %c0_6 = arith.constant 0 : index
    %c0_7 = arith.constant 0 : index
    %8 = vector.load %arg6[%c0_6, %c0_7] : memref<256x160xf32, #tpu.memory_space<vmem>>, vector<256x160xf32>
    tpu.vector_store %arg6[%c0_6, %c0_7], %7 {strides = array<i32>} : memref<256x160xf32, #tpu.memory_space<vmem>>, vector<256x160xf32>,
    %c0_i32_8 = arith.constant 0 : i32
    %9 = arith.cmpi eq, %arg1, %c0_i32_8 : i32
    %10 = arith.extui %9 : i1 to i32
    %c0_i32_9 = arith.constant 0 : i32
    %11 = arith.cmpi ne, %10, %c0_i32_9 : i32
    scf.if %11 {
      %c0_10 = arith.constant 0 : index
      %c0_11 = arith.constant 0 : index
      %12 = vector.load %arg6[%c0_10, %c0_11] : memref<256x160xf32, #tpu.memory_space<vmem>>, vector<256x160xf32>
      %c0_12 = arith.constant 0 : index
      %c0_13 = arith.constant 0 : index
      %13 = vector.load %arg4[%c0_12, %c0_13] : memref<256x160xf32, #tpu.memory_space<vmem>>, vector<256x160xf32>
      tpu.vector_store %arg4[%c0_12, %c0_13], %12 {strides = array<i32>} : memref<256x160xf32, #tpu.memory_space<vmem>>, vector<256x160xf32>,
      %cst_14 = arith.constant dense<0.000000e+00> : vector<160xf32>
      %14 = vector.multi_reduction <add>, %12, %cst_14 [0] : vector<256x160xf32> to vector<160xf32>
      %15 = vector.shape_cast %14 : vector<160xf32> to vector<1x160xf32>
      %16 = arith.mulf %12, %12 : vector<256x160xf32>
      %cst_15 = arith.constant dense<0.000000e+00> : vector<160xf32>
      %17 = vector.multi_reduction <add>, %16, %cst_15 [0] : vector<256x160xf32> to vector<160xf32>
      %18 = vector.shape_cast %17 : vector<160xf32> to vector<1x160xf32>
      %19 = tpu.concatenate %15, %18 in 0 : vector<1x160xf32>, vector<1x160xf32> -> vector<2x160xf32>
      %c0_16 = arith.constant 0 : index
      %c0_17 = arith.constant 0 : index
      %c0_18 = arith.constant 0 : index
      %20 = vector.load %arg5[%c0_16, %c0_17, %c0_18] : memref<1x2x160xf32, #tpu.memory_space<vmem>>, vector<1x2x160xf32>
      %21 = vector.shape_cast %20 : vector<1x2x160xf32> to vector<2x160xf32>
      %22 = vector.shape_cast %19 : vector<2x160xf32> to vector<1x2x160xf32>
      tpu.vector_store %arg5[%c0_16, %c0_17, %c0_18], %22 {strides = array<i32>} : memref<1x2x160xf32, #tpu.memory_space<vmem>>, vector<1x2x160xf32>,
    } else {
    }
    return
  }
  func.func @transform_0(%arg0: i32, %arg1: i32) -> (i32, i32) {
    %c0_i32 = arith.constant 0 : i32
    return %arg0, %arg1 : i32, i32
  }
  func.func @transform_1(%arg0: i32, %arg1: i32) -> (i32, i32) {
    %c0_i32 = arith.constant 0 : i32
    %c0_i32_0 = arith.constant 0 : i32
    return %arg1, %c0_i32 : i32, i32
  }
  func.func @transform_2(%arg0: i32, %arg1: i32) -> (i32, i32) {
    %c0_i32 = arith.constant 0 : i32
    %c0_i32_0 = arith.constant 0 : i32
    return %arg0, %c0_i32 : i32, i32
  }
  func.func @transform_3(%arg0: i32, %arg1: i32) -> (i32, i32, i32) {
    %c0_i32 = arith.constant 0 : i32
    %c0_i32_0 = arith.constant 0 : i32
    %c0_i32_1 = arith.constant 0 : i32
    return %arg0, %c0_i32, %c0_i32_0 : i32, i32, i32
  }
}

module attributes {stable_mosaic.version = 11 : i64} {
  func.func @_affine_lrelu_kernel(%arg0: i32, %arg1: memref<256x160xf32, #tpu.memory_space<vmem>>, %arg2: memref<1x160xf32, #tpu.memory_space<vmem>>, %arg3: memref<1x160xf32, #tpu.memory_space<vmem>>, %arg4: memref<256x160xf32, #tpu.memory_space<vmem>>) attributes {dimension_semantics = [#tpu.dimension_semantics<parallel>], iteration_bounds = array<i64: 2>, scalar_prefetch = 0 : i64, scratch_operands = 0 : i64, tpu.core_type = #tpu.core_type<tc>, window_params = [{transform_indices = @transform_0, window_bounds = array<i64: 256, 160>}, {pipeline_mode = #tpu.pipeline_mode<synchronous>, transform_indices = @transform_1, window_bounds = array<i64: 1, 160>}, {pipeline_mode = #tpu.pipeline_mode<synchronous>, transform_indices = @transform_2, window_bounds = array<i64: 1, 160>}, {transform_indices = @transform_3, window_bounds = array<i64: 256, 160>}]} {
    %c0 = arith.constant 0 : index
    %c0_0 = arith.constant 0 : index
    %0 = vector.load %arg1[%c0, %c0_0] : memref<256x160xf32, #tpu.memory_space<vmem>>, vector<256x160xf32>
    %c0_1 = arith.constant 0 : index
    %c0_2 = arith.constant 0 : index
    %1 = vector.load %arg2[%c0_1, %c0_2] : memref<1x160xf32, #tpu.memory_space<vmem>>, vector<1x160xf32>
    %2 = vector.broadcast %1 : vector<1x160xf32> to vector<256x160xf32>
    %3 = arith.mulf %0, %2 : vector<256x160xf32>
    %c0_3 = arith.constant 0 : index
    %c0_4 = arith.constant 0 : index
    %4 = vector.load %arg3[%c0_3, %c0_4] : memref<1x160xf32, #tpu.memory_space<vmem>>, vector<1x160xf32>
    %5 = vector.broadcast %4 : vector<1x160xf32> to vector<256x160xf32>
    %6 = arith.addf %3, %5 : vector<256x160xf32>
    %cst = arith.constant 0.000000e+00 : f32
    %7 = vector.broadcast %cst : f32 to vector<256x160xf32>
    %8 = arith.cmpf oge, %6, %7 : vector<256x160xf32>
    %cst_5 = arith.constant 0.00999999977 : f32
    %9 = vector.broadcast %cst_5 : f32 to vector<256x160xf32>
    %10 = arith.mulf %9, %6 : vector<256x160xf32>
    %11 = arith.select %8, %6, %10 : vector<256x160xi1>, vector<256x160xf32>
    %c0_6 = arith.constant 0 : index
    %c0_7 = arith.constant 0 : index
    %12 = vector.load %arg4[%c0_6, %c0_7] : memref<256x160xf32, #tpu.memory_space<vmem>>, vector<256x160xf32>
    tpu.vector_store %arg4[%c0_6, %c0_7], %11 {strides = array<i32>} : memref<256x160xf32, #tpu.memory_space<vmem>>, vector<256x160xf32>,
    return
  }
  func.func @transform_0(%arg0: i32) -> (i32, i32) {
    %c0_i32 = arith.constant 0 : i32
    %c0_i32_0 = arith.constant 0 : i32
    return %arg0, %c0_i32 : i32, i32
  }
  func.func @transform_1(%arg0: i32) -> (i32, i32) {
    %c0_i32 = arith.constant 0 : i32
    %c0_i32_0 = arith.constant 0 : i32
    %c0_i32_1 = arith.constant 0 : i32
    return %c0_i32, %c0_i32_0 : i32, i32
  }
  func.func @transform_2(%arg0: i32) -> (i32, i32) {
    %c0_i32 = arith.constant 0 : i32
    %c0_i32_0 = arith.constant 0 : i32
    %c0_i32_1 = arith.constant 0 : i32
    return %c0_i32, %c0_i32_0 : i32, i32
  }
  func.func @transform_3(%arg0: i32) -> (i32, i32) {
    %c0_i32 = arith.constant 0 : i32
    %c0_i32_0 = arith.constant 0 : i32
    return %arg0, %c0_i32 : i32, i32
  }
}

module attributes {stable_mosaic.version = 11 : i64} {
  func.func @_mm_stats_kernel(%arg0: i32, %arg1: i32, %arg2: memref<128x32xbf16, #tpu.memory_space<vmem>>, %arg3: memref<32x48xbf16, #tpu.memory_space<vmem>>, %arg4: memref<128x48xf32, #tpu.memory_space<vmem>>, %arg5: memref<1x2x48xf32, #tpu.memory_space<vmem>>, %arg6: memref<128x48xf32, #tpu.memory_space<vmem>>) attributes {dimension_semantics = [#tpu.dimension_semantics<parallel>, #tpu.dimension_semantics<arbitrary>], iteration_bounds = array<i64: 1, 1>, scalar_prefetch = 0 : i64, scratch_operands = 1 : i64, tpu.core_type = #tpu.core_type<tc>, window_params = [{transform_indices = @transform_0, window_bounds = array<i64: 128, 32>}, {transform_indices = @transform_1, window_bounds = array<i64: 32, 48>}, {transform_indices = @transform_2, window_bounds = array<i64: 128, 48>}, {transform_indices = @transform_3, window_bounds = array<i64: 1, 2, 48>}]} {
    %c0_i32 = arith.constant 0 : i32
    %0 = arith.cmpi eq, %arg1, %c0_i32 : i32
    %1 = arith.extui %0 : i1 to i32
    %c0_i32_0 = arith.constant 0 : i32
    %2 = arith.cmpi ne, %1, %c0_i32_0 : i32
    scf.if %2 {
      %cst_10 = arith.constant 0.000000e+00 : f32
      %12 = vector.broadcast %cst_10 : f32 to vector<128x48xf32>
      %c0_11 = arith.constant 0 : index
      %c0_12 = arith.constant 0 : index
      %13 = vector.load %arg6[%c0_11, %c0_12] : memref<128x48xf32, #tpu.memory_space<vmem>>, vector<128x48xf32>
      tpu.vector_store %arg6[%c0_11, %c0_12], %12 {strides = array<i32>} : memref<128x48xf32, #tpu.memory_space<vmem>>, vector<128x48xf32>,
    } else {
    }
    %c0 = arith.constant 0 : index
    %c0_1 = arith.constant 0 : index
    %3 = vector.load %arg6[%c0, %c0_1] : memref<128x48xf32, #tpu.memory_space<vmem>>, vector<128x48xf32>
    %c0_2 = arith.constant 0 : index
    %c0_3 = arith.constant 0 : index
    %4 = vector.load %arg2[%c0_2, %c0_3] : memref<128x32xbf16, #tpu.memory_space<vmem>>, vector<128x32xbf16>
    %c0_4 = arith.constant 0 : index
    %c0_5 = arith.constant 0 : index
    %5 = vector.load %arg3[%c0_4, %c0_5] : memref<32x48xbf16, #tpu.memory_space<vmem>>, vector<32x48xbf16>
    %cst = arith.constant dense<0.000000e+00> : vector<128x48xf32>
    %6 = tpu.matmul %4, %5, %cst {dimension_numbers = #tpu.dot_dimension_numbers<[1], [0], [0], [1], [0, 0, 1, 1], [], []>} : vector<128x32xbf16>, vector<32x48xbf16>, vector<128x48xf32> -> vector<128x48xf32>
    %7 = arith.addf %3, %6 : vector<128x48xf32>
    %c0_6 = arith.constant 0 : index
    %c0_7 = arith.constant 0 : index
    %8 = vector.load %arg6[%c0_6, %c0_7] : memref<128x48xf32, #tpu.memory_space<vmem>>, vector<128x48xf32>
    tpu.vector_store %arg6[%c0_6, %c0_7], %7 {strides = array<i32>} : memref<128x48xf32, #tpu.memory_space<vmem>>, vector<128x48xf32>,
    %c0_i32_8 = arith.constant 0 : i32
    %9 = arith.cmpi eq, %arg1, %c0_i32_8 : i32
    %10 = arith.extui %9 : i1 to i32
    %c0_i32_9 = arith.constant 0 : i32
    %11 = arith.cmpi ne, %10, %c0_i32_9 : i32
    scf.if %11 {
      %c0_10 = arith.constant 0 : index
      %c0_11 = arith.constant 0 : index
      %12 = vector.load %arg6[%c0_10, %c0_11] : memref<128x48xf32, #tpu.memory_space<vmem>>, vector<128x48xf32>
      %c0_12 = arith.constant 0 : index
      %c0_13 = arith.constant 0 : index
      %13 = vector.load %arg4[%c0_12, %c0_13] : memref<128x48xf32, #tpu.memory_space<vmem>>, vector<128x48xf32>
      tpu.vector_store %arg4[%c0_12, %c0_13], %12 {strides = array<i32>} : memref<128x48xf32, #tpu.memory_space<vmem>>, vector<128x48xf32>,
      %cst_14 = arith.constant dense<0.000000e+00> : vector<48xf32>
      %14 = vector.multi_reduction <add>, %12, %cst_14 [0] : vector<128x48xf32> to vector<48xf32>
      %15 = vector.shape_cast %14 : vector<48xf32> to vector<1x48xf32>
      %16 = arith.mulf %12, %12 : vector<128x48xf32>
      %cst_15 = arith.constant dense<0.000000e+00> : vector<48xf32>
      %17 = vector.multi_reduction <add>, %16, %cst_15 [0] : vector<128x48xf32> to vector<48xf32>
      %18 = vector.shape_cast %17 : vector<48xf32> to vector<1x48xf32>
      %19 = tpu.concatenate %15, %18 in 0 : vector<1x48xf32>, vector<1x48xf32> -> vector<2x48xf32>
      %c0_16 = arith.constant 0 : index
      %c0_17 = arith.constant 0 : index
      %c0_18 = arith.constant 0 : index
      %20 = vector.load %arg5[%c0_16, %c0_17, %c0_18] : memref<1x2x48xf32, #tpu.memory_space<vmem>>, vector<1x2x48xf32>
      %21 = vector.shape_cast %20 : vector<1x2x48xf32> to vector<2x48xf32>
      %22 = vector.shape_cast %19 : vector<2x48xf32> to vector<1x2x48xf32>
      tpu.vector_store %arg5[%c0_16, %c0_17, %c0_18], %22 {strides = array<i32>} : memref<1x2x48xf32, #tpu.memory_space<vmem>>, vector<1x2x48xf32>,
    } else {
    }
    return
  }
  func.func @transform_0(%arg0: i32, %arg1: i32) -> (i32, i32) {
    %c0_i32 = arith.constant 0 : i32
    return %arg0, %arg1 : i32, i32
  }
  func.func @transform_1(%arg0: i32, %arg1: i32) -> (i32, i32) {
    %c0_i32 = arith.constant 0 : i32
    %c0_i32_0 = arith.constant 0 : i32
    return %arg1, %c0_i32 : i32, i32
  }
  func.func @transform_2(%arg0: i32, %arg1: i32) -> (i32, i32) {
    %c0_i32 = arith.constant 0 : i32
    %c0_i32_0 = arith.constant 0 : i32
    return %arg0, %c0_i32 : i32, i32
  }
  func.func @transform_3(%arg0: i32, %arg1: i32) -> (i32, i32, i32) {
    %c0_i32 = arith.constant 0 : i32
    %c0_i32_0 = arith.constant 0 : i32
    %c0_i32_1 = arith.constant 0 : i32
    return %arg0, %c0_i32, %c0_i32_0 : i32, i32, i32
  }
}

module attributes {stable_mosaic.version = 11 : i64} {
  func.func @_attn_kernel(%arg0: i32, %arg1: memref<1x64x16xf32, #tpu.memory_space<vmem>>, %arg2: memref<1x64x32xbf16, #tpu.memory_space<vmem>>, %arg3: memref<1x16xf32, #tpu.memory_space<vmem>>, %arg4: memref<1x16xf32, #tpu.memory_space<vmem>>, %arg5: memref<1x64x32xf32, #tpu.memory_space<vmem>>) attributes {dimension_semantics = [#tpu.dimension_semantics<parallel>], iteration_bounds = array<i64: 2>, scalar_prefetch = 0 : i64, scratch_operands = 0 : i64, tpu.core_type = #tpu.core_type<tc>, window_params = [{transform_indices = @transform_0, window_bounds = array<i64: 1, 64, 16>}, {transform_indices = @transform_1, window_bounds = array<i64: 1, 64, 32>}, {pipeline_mode = #tpu.pipeline_mode<synchronous>, transform_indices = @transform_2, window_bounds = array<i64: 1, 16>}, {pipeline_mode = #tpu.pipeline_mode<synchronous>, transform_indices = @transform_3, window_bounds = array<i64: 1, 16>}, {transform_indices = @transform_4, window_bounds = array<i64: 1, 64, 32>}]} {
    %c0 = arith.constant 0 : index
    %c0_0 = arith.constant 0 : index
    %c0_1 = arith.constant 0 : index
    %0 = vector.load %arg1[%c0, %c0_0, %c0_1] : memref<1x64x16xf32, #tpu.memory_space<vmem>>, vector<1x64x16xf32>
    %1 = vector.shape_cast %0 : vector<1x64x16xf32> to vector<64x16xf32>
    %c0_2 = arith.constant 0 : index
    %c0_3 = arith.constant 0 : index
    %2 = vector.load %arg3[%c0_2, %c0_3] : memref<1x16xf32, #tpu.memory_space<vmem>>, vector<1x16xf32>
    %3 = vector.broadcast %2 : vector<1x16xf32> to vector<64x16xf32>
    %4 = arith.mulf %1, %3 : vector<64x16xf32>
    %c0_4 = arith.constant 0 : index
    %c0_5 = arith.constant 0 : index
    %5 = vector.load %arg4[%c0_4, %c0_5] : memref<1x16xf32, #tpu.memory_space<vmem>>, vector<1x16xf32>
    %6 = vector.broadcast %5 : vector<1x16xf32> to vector<64x16xf32>
    %7 = arith.addf %4, %6 : vector<64x16xf32>
    %cst = arith.constant 0.000000e+00 : f32
    %8 = vector.broadcast %cst : f32 to vector<64x16xf32>
    %9 = arith.cmpf oge, %7, %8 : vector<64x16xf32>
    %cst_6 = arith.constant 0.00999999977 : f32
    %10 = vector.broadcast %cst_6 : f32 to vector<64x16xf32>
    %11 = arith.mulf %10, %7 : vector<64x16xf32>
    %12 = arith.select %9, %7, %11 : vector<64x16xi1>, vector<64x16xf32>
    %cst_7 = arith.constant 2.500000e-01 : f32
    %13 = vector.broadcast %cst_7 : f32 to vector<64x16xf32>
    %14 = arith.mulf %12, %13 : vector<64x16xf32>
    %15 = arith.truncf %14 : vector<64x16xf32> to vector<64x16xbf16>
    %16 = arith.truncf %12 : vector<64x16xf32> to vector<64x16xbf16>
    %cst_8 = arith.constant dense<0.000000e+00> : vector<64x64xf32>
    %17 = tpu.matmul %15, %16, %cst_8 {dimension_numbers = #tpu.dot_dimension_numbers<[1], [1], [0], [0], [0, 0, 1, 0], [], []>} : vector<64x16xbf16>, vector<64x16xbf16>, vector<64x64xf32> -> vector<64x64xf32>
    %cst_9 = arith.constant dense<0xFF800000> : vector<64xf32>
    %18 = vector.multi_reduction <maximumf>, %17, %cst_9 [1] : vector<64x64xf32> to vector<64xf32>
    %19 = vector.shape_cast %18 : vector<64xf32> to vector<64x1xf32>
    %20 = vector.broadcast %19 : vector<64x1xf32> to vector<64x64xf32>
    %21 = arith.subf %17, %20 : vector<64x64xf32>
    %22 = math.exp %21 : vector<64x64xf32>
    %cst_10 = arith.constant dense<0.000000e+00> : vector<64xf32>
    %23 = vector.multi_reduction <add>, %22, %cst_10 [1] : vector<64x64xf32> to vector<64xf32>
    %24 = vector.shape_cast %23 : vector<64xf32> to vector<64x1xf32>
    %25 = tpu.reciprocal %24 {approx = true} : vector<64x1xf32> -> vector<64x1xf32>
    %26 = vector.broadcast %25 : vector<64x1xf32> to vector<64x64xf32>
    %27 = arith.mulf %22, %26 : vector<64x64xf32>
    %28 = arith.truncf %27 : vector<64x64xf32> to vector<64x64xbf16>
    %c0_11 = arith.constant 0 : index
    %c0_12 = arith.constant 0 : index
    %c0_13 = arith.constant 0 : index
    %29 = vector.load %arg2[%c0_11, %c0_12, %c0_13] : memref<1x64x32xbf16, #tpu.memory_space<vmem>>, vector<1x64x32xbf16>
    %30 = vector.shape_cast %29 : vector<1x64x32xbf16> to vector<64x32xbf16>
    %cst_14 = arith.constant dense<0.000000e+00> : vector<64x32xf32>
    %31 = tpu.matmul %28, %30, %cst_14 {dimension_numbers = #tpu.dot_dimension_numbers<[1], [0], [0], [1], [0, 0, 1, 1], [], []>} : vector<64x64xbf16>, vector<64x32xbf16>, vector<64x32xf32> -> vector<64x32xf32>
    %c0_15 = arith.constant 0 : index
    %c0_16 = arith.constant 0 : index
    %c0_17 = arith.constant 0 : index
    %32 = vector.load %arg5[%c0_15, %c0_16, %c0_17] : memref<1x64x32xf32, #tpu.memory_space<vmem>>, vector<1x64x32xf32>
    %33 = vector.shape_cast %32 : vector<1x64x32xf32> to vector<64x32xf32>
    %34 = vector.shape_cast %31 : vector<64x32xf32> to vector<1x64x32xf32>
    tpu.vector_store %arg5[%c0_15, %c0_16, %c0_17], %34 {strides = array<i32>} : memref<1x64x32xf32, #tpu.memory_space<vmem>>, vector<1x64x32xf32>,
    return
  }
  func.func @transform_0(%arg0: i32) -> (i32, i32, i32) {
    %c0_i32 = arith.constant 0 : i32
    %c0_i32_0 = arith.constant 0 : i32
    %c0_i32_1 = arith.constant 0 : i32
    return %arg0, %c0_i32, %c0_i32_0 : i32, i32, i32
  }
  func.func @transform_1(%arg0: i32) -> (i32, i32, i32) {
    %c0_i32 = arith.constant 0 : i32
    %c0_i32_0 = arith.constant 0 : i32
    %c0_i32_1 = arith.constant 0 : i32
    return %arg0, %c0_i32, %c0_i32_0 : i32, i32, i32
  }
  func.func @transform_2(%arg0: i32) -> (i32, i32) {
    %c0_i32 = arith.constant 0 : i32
    %c0_i32_0 = arith.constant 0 : i32
    %c0_i32_1 = arith.constant 0 : i32
    return %c0_i32, %c0_i32_0 : i32, i32
  }
  func.func @transform_3(%arg0: i32) -> (i32, i32) {
    %c0_i32 = arith.constant 0 : i32
    %c0_i32_0 = arith.constant 0 : i32
    %c0_i32_1 = arith.constant 0 : i32
    return %c0_i32, %c0_i32_0 : i32, i32
  }
  func.func @transform_4(%arg0: i32) -> (i32, i32, i32) {
    %c0_i32 = arith.constant 0 : i32
    %c0_i32_0 = arith.constant 0 : i32
    %c0_i32_1 = arith.constant 0 : i32
    return %arg0, %c0_i32, %c0_i32_0 : i32, i32, i32
  }
}

module attributes {stable_mosaic.version = 11 : i64} {
  func.func @_mm_kernel(%arg0: i32, %arg1: i32, %arg2: memref<128x32xbf16, #tpu.memory_space<vmem>>, %arg3: memref<32x32xbf16, #tpu.memory_space<vmem>>, %arg4: memref<128x32xf32, #tpu.memory_space<vmem>>, %arg5: memref<128x32xf32, #tpu.memory_space<vmem>>) attributes {dimension_semantics = [#tpu.dimension_semantics<parallel>, #tpu.dimension_semantics<arbitrary>], iteration_bounds = array<i64: 1, 1>, scalar_prefetch = 0 : i64, scratch_operands = 1 : i64, tpu.core_type = #tpu.core_type<tc>, window_params = [{transform_indices = @transform_0, window_bounds = array<i64: 128, 32>}, {transform_indices = @transform_1, window_bounds = array<i64: 32, 32>}, {transform_indices = @transform_2, window_bounds = array<i64: 128, 32>}]} {
    %c0_i32 = arith.constant 0 : i32
    %0 = arith.cmpi eq, %arg1, %c0_i32 : i32
    %1 = arith.extui %0 : i1 to i32
    %c0_i32_0 = arith.constant 0 : i32
    %2 = arith.cmpi ne, %1, %c0_i32_0 : i32
    scf.if %2 {
      %cst_10 = arith.constant 0.000000e+00 : f32
      %12 = vector.broadcast %cst_10 : f32 to vector<128x32xf32>
      %c0_11 = arith.constant 0 : index
      %c0_12 = arith.constant 0 : index
      %13 = vector.load %arg5[%c0_11, %c0_12] : memref<128x32xf32, #tpu.memory_space<vmem>>, vector<128x32xf32>
      tpu.vector_store %arg5[%c0_11, %c0_12], %12 {strides = array<i32>} : memref<128x32xf32, #tpu.memory_space<vmem>>, vector<128x32xf32>,
    } else {
    }
    %c0 = arith.constant 0 : index
    %c0_1 = arith.constant 0 : index
    %3 = vector.load %arg5[%c0, %c0_1] : memref<128x32xf32, #tpu.memory_space<vmem>>, vector<128x32xf32>
    %c0_2 = arith.constant 0 : index
    %c0_3 = arith.constant 0 : index
    %4 = vector.load %arg2[%c0_2, %c0_3] : memref<128x32xbf16, #tpu.memory_space<vmem>>, vector<128x32xbf16>
    %c0_4 = arith.constant 0 : index
    %c0_5 = arith.constant 0 : index
    %5 = vector.load %arg3[%c0_4, %c0_5] : memref<32x32xbf16, #tpu.memory_space<vmem>>, vector<32x32xbf16>
    %cst = arith.constant dense<0.000000e+00> : vector<128x32xf32>
    %6 = tpu.matmul %4, %5, %cst {dimension_numbers = #tpu.dot_dimension_numbers<[1], [0], [0], [1], [0, 0, 1, 1], [], []>} : vector<128x32xbf16>, vector<32x32xbf16>, vector<128x32xf32> -> vector<128x32xf32>
    %7 = arith.addf %3, %6 : vector<128x32xf32>
    %c0_6 = arith.constant 0 : index
    %c0_7 = arith.constant 0 : index
    %8 = vector.load %arg5[%c0_6, %c0_7] : memref<128x32xf32, #tpu.memory_space<vmem>>, vector<128x32xf32>
    tpu.vector_store %arg5[%c0_6, %c0_7], %7 {strides = array<i32>} : memref<128x32xf32, #tpu.memory_space<vmem>>, vector<128x32xf32>,
    %c0_i32_8 = arith.constant 0 : i32
    %9 = arith.cmpi eq, %arg1, %c0_i32_8 : i32
    %10 = arith.extui %9 : i1 to i32
    %c0_i32_9 = arith.constant 0 : i32
    %11 = arith.cmpi ne, %10, %c0_i32_9 : i32
    scf.if %11 {
      %c0_10 = arith.constant 0 : index
      %c0_11 = arith.constant 0 : index
      %12 = vector.load %arg5[%c0_10, %c0_11] : memref<128x32xf32, #tpu.memory_space<vmem>>, vector<128x32xf32>
      %c0_12 = arith.constant 0 : index
      %c0_13 = arith.constant 0 : index
      %13 = vector.load %arg4[%c0_12, %c0_13] : memref<128x32xf32, #tpu.memory_space<vmem>>, vector<128x32xf32>
      tpu.vector_store %arg4[%c0_12, %c0_13], %12 {strides = array<i32>} : memref<128x32xf32, #tpu.memory_space<vmem>>, vector<128x32xf32>,
    } else {
    }
    return
  }
  func.func @transform_0(%arg0: i32, %arg1: i32) -> (i32, i32) {
    %c0_i32 = arith.constant 0 : i32
    return %arg0, %arg1 : i32, i32
  }
  func.func @transform_1(%arg0: i32, %arg1: i32) -> (i32, i32) {
    %c0_i32 = arith.constant 0 : i32
    %c0_i32_0 = arith.constant 0 : i32
    return %arg1, %c0_i32 : i32, i32
  }
  func.func @transform_2(%arg0: i32, %arg1: i32) -> (i32, i32) {
    %c0_i32 = arith.constant 0 : i32
    %c0_i32_0 = arith.constant 0 : i32
    return %arg0, %c0_i32 : i32, i32
  }
}

module attributes {stable_mosaic.version = 11 : i64} {
  func.func @_mm_stats_kernel(%arg0: i32, %arg1: i32, %arg2: memref<256x32xbf16, #tpu.memory_space<vmem>>, %arg3: memref<32x32xbf16, #tpu.memory_space<vmem>>, %arg4: memref<256x32xf32, #tpu.memory_space<vmem>>, %arg5: memref<1x2x32xf32, #tpu.memory_space<vmem>>, %arg6: memref<256x32xf32, #tpu.memory_space<vmem>>) attributes {dimension_semantics = [#tpu.dimension_semantics<parallel>, #tpu.dimension_semantics<arbitrary>], iteration_bounds = array<i64: 2, 1>, scalar_prefetch = 0 : i64, scratch_operands = 1 : i64, tpu.core_type = #tpu.core_type<tc>, window_params = [{transform_indices = @transform_0, window_bounds = array<i64: 256, 32>}, {transform_indices = @transform_1, window_bounds = array<i64: 32, 32>}, {transform_indices = @transform_2, window_bounds = array<i64: 256, 32>}, {transform_indices = @transform_3, window_bounds = array<i64: 1, 2, 32>}]} {
    %c0_i32 = arith.constant 0 : i32
    %0 = arith.cmpi eq, %arg1, %c0_i32 : i32
    %1 = arith.extui %0 : i1 to i32
    %c0_i32_0 = arith.constant 0 : i32
    %2 = arith.cmpi ne, %1, %c0_i32_0 : i32
    scf.if %2 {
      %cst_10 = arith.constant 0.000000e+00 : f32
      %12 = vector.broadcast %cst_10 : f32 to vector<256x32xf32>
      %c0_11 = arith.constant 0 : index
      %c0_12 = arith.constant 0 : index
      %13 = vector.load %arg6[%c0_11, %c0_12] : memref<256x32xf32, #tpu.memory_space<vmem>>, vector<256x32xf32>
      tpu.vector_store %arg6[%c0_11, %c0_12], %12 {strides = array<i32>} : memref<256x32xf32, #tpu.memory_space<vmem>>, vector<256x32xf32>,
    } else {
    }
    %c0 = arith.constant 0 : index
    %c0_1 = arith.constant 0 : index
    %3 = vector.load %arg6[%c0, %c0_1] : memref<256x32xf32, #tpu.memory_space<vmem>>, vector<256x32xf32>
    %c0_2 = arith.constant 0 : index
    %c0_3 = arith.constant 0 : index
    %4 = vector.load %arg2[%c0_2, %c0_3] : memref<256x32xbf16, #tpu.memory_space<vmem>>, vector<256x32xbf16>
    %c0_4 = arith.constant 0 : index
    %c0_5 = arith.constant 0 : index
    %5 = vector.load %arg3[%c0_4, %c0_5] : memref<32x32xbf16, #tpu.memory_space<vmem>>, vector<32x32xbf16>
    %cst = arith.constant dense<0.000000e+00> : vector<256x32xf32>
    %6 = tpu.matmul %4, %5, %cst {dimension_numbers = #tpu.dot_dimension_numbers<[1], [0], [0], [1], [0, 0, 1, 1], [], []>} : vector<256x32xbf16>, vector<32x32xbf16>, vector<256x32xf32> -> vector<256x32xf32>
    %7 = arith.addf %3, %6 : vector<256x32xf32>
    %c0_6 = arith.constant 0 : index
    %c0_7 = arith.constant 0 : index
    %8 = vector.load %arg6[%c0_6, %c0_7] : memref<256x32xf32, #tpu.memory_space<vmem>>, vector<256x32xf32>
    tpu.vector_store %arg6[%c0_6, %c0_7], %7 {strides = array<i32>} : memref<256x32xf32, #tpu.memory_space<vmem>>, vector<256x32xf32>,
    %c0_i32_8 = arith.constant 0 : i32
    %9 = arith.cmpi eq, %arg1, %c0_i32_8 : i32
    %10 = arith.extui %9 : i1 to i32
    %c0_i32_9 = arith.constant 0 : i32
    %11 = arith.cmpi ne, %10, %c0_i32_9 : i32
    scf.if %11 {
      %c0_10 = arith.constant 0 : index
      %c0_11 = arith.constant 0 : index
      %12 = vector.load %arg6[%c0_10, %c0_11] : memref<256x32xf32, #tpu.memory_space<vmem>>, vector<256x32xf32>
      %c0_12 = arith.constant 0 : index
      %c0_13 = arith.constant 0 : index
      %13 = vector.load %arg4[%c0_12, %c0_13] : memref<256x32xf32, #tpu.memory_space<vmem>>, vector<256x32xf32>
      tpu.vector_store %arg4[%c0_12, %c0_13], %12 {strides = array<i32>} : memref<256x32xf32, #tpu.memory_space<vmem>>, vector<256x32xf32>,
      %cst_14 = arith.constant dense<0.000000e+00> : vector<32xf32>
      %14 = vector.multi_reduction <add>, %12, %cst_14 [0] : vector<256x32xf32> to vector<32xf32>
      %15 = vector.shape_cast %14 : vector<32xf32> to vector<1x32xf32>
      %16 = arith.mulf %12, %12 : vector<256x32xf32>
      %cst_15 = arith.constant dense<0.000000e+00> : vector<32xf32>
      %17 = vector.multi_reduction <add>, %16, %cst_15 [0] : vector<256x32xf32> to vector<32xf32>
      %18 = vector.shape_cast %17 : vector<32xf32> to vector<1x32xf32>
      %19 = tpu.concatenate %15, %18 in 0 : vector<1x32xf32>, vector<1x32xf32> -> vector<2x32xf32>
      %c0_16 = arith.constant 0 : index
      %c0_17 = arith.constant 0 : index
      %c0_18 = arith.constant 0 : index
      %20 = vector.load %arg5[%c0_16, %c0_17, %c0_18] : memref<1x2x32xf32, #tpu.memory_space<vmem>>, vector<1x2x32xf32>
      %21 = vector.shape_cast %20 : vector<1x2x32xf32> to vector<2x32xf32>
      %22 = vector.shape_cast %19 : vector<2x32xf32> to vector<1x2x32xf32>
      tpu.vector_store %arg5[%c0_16, %c0_17, %c0_18], %22 {strides = array<i32>} : memref<1x2x32xf32, #tpu.memory_space<vmem>>, vector<1x2x32xf32>,
    } else {
    }
    return
  }
  func.func @transform_0(%arg0: i32, %arg1: i32) -> (i32, i32) {
    %c0_i32 = arith.constant 0 : i32
    return %arg0, %arg1 : i32, i32
  }
  func.func @transform_1(%arg0: i32, %arg1: i32) -> (i32, i32) {
    %c0_i32 = arith.constant 0 : i32
    %c0_i32_0 = arith.constant 0 : i32
    return %arg1, %c0_i32 : i32, i32
  }
  func.func @transform_2(%arg0: i32, %arg1: i32) -> (i32, i32) {
    %c0_i32 = arith.constant 0 : i32
    %c0_i32_0 = arith.constant 0 : i32
    return %arg0, %c0_i32 : i32, i32
  }
  func.func @transform_3(%arg0: i32, %arg1: i32) -> (i32, i32, i32) {
    %c0_i32 = arith.constant 0 : i32
    %c0_i32_0 = arith.constant 0 : i32
    %c0_i32_1 = arith.constant 0 : i32
    return %arg0, %c0_i32, %c0_i32_0 : i32, i32, i32
  }
}

module attributes {stable_mosaic.version = 11 : i64} {
  func.func @_affine_lrelu_kernel(%arg0: i32, %arg1: memref<256x32xf32, #tpu.memory_space<vmem>>, %arg2: memref<1x32xf32, #tpu.memory_space<vmem>>, %arg3: memref<1x32xf32, #tpu.memory_space<vmem>>, %arg4: memref<256x32xf32, #tpu.memory_space<vmem>>) attributes {dimension_semantics = [#tpu.dimension_semantics<parallel>], iteration_bounds = array<i64: 2>, scalar_prefetch = 0 : i64, scratch_operands = 0 : i64, tpu.core_type = #tpu.core_type<tc>, window_params = [{transform_indices = @transform_0, window_bounds = array<i64: 256, 32>}, {pipeline_mode = #tpu.pipeline_mode<synchronous>, transform_indices = @transform_1, window_bounds = array<i64: 1, 32>}, {pipeline_mode = #tpu.pipeline_mode<synchronous>, transform_indices = @transform_2, window_bounds = array<i64: 1, 32>}, {transform_indices = @transform_3, window_bounds = array<i64: 256, 32>}]} {
    %c0 = arith.constant 0 : index
    %c0_0 = arith.constant 0 : index
    %0 = vector.load %arg1[%c0, %c0_0] : memref<256x32xf32, #tpu.memory_space<vmem>>, vector<256x32xf32>
    %c0_1 = arith.constant 0 : index
    %c0_2 = arith.constant 0 : index
    %1 = vector.load %arg2[%c0_1, %c0_2] : memref<1x32xf32, #tpu.memory_space<vmem>>, vector<1x32xf32>
    %2 = vector.broadcast %1 : vector<1x32xf32> to vector<256x32xf32>
    %3 = arith.mulf %0, %2 : vector<256x32xf32>
    %c0_3 = arith.constant 0 : index
    %c0_4 = arith.constant 0 : index
    %4 = vector.load %arg3[%c0_3, %c0_4] : memref<1x32xf32, #tpu.memory_space<vmem>>, vector<1x32xf32>
    %5 = vector.broadcast %4 : vector<1x32xf32> to vector<256x32xf32>
    %6 = arith.addf %3, %5 : vector<256x32xf32>
    %cst = arith.constant 0.000000e+00 : f32
    %7 = vector.broadcast %cst : f32 to vector<256x32xf32>
    %8 = arith.cmpf oge, %6, %7 : vector<256x32xf32>
    %cst_5 = arith.constant 0.00999999977 : f32
    %9 = vector.broadcast %cst_5 : f32 to vector<256x32xf32>
    %10 = arith.mulf %9, %6 : vector<256x32xf32>
    %11 = arith.select %8, %6, %10 : vector<256x32xi1>, vector<256x32xf32>
    %c0_6 = arith.constant 0 : index
    %c0_7 = arith.constant 0 : index
    %12 = vector.load %arg4[%c0_6, %c0_7] : memref<256x32xf32, #tpu.memory_space<vmem>>, vector<256x32xf32>
    tpu.vector_store %arg4[%c0_6, %c0_7], %11 {strides = array<i32>} : memref<256x32xf32, #tpu.memory_space<vmem>>, vector<256x32xf32>,
    return
  }
  func.func @transform_0(%arg0: i32) -> (i32, i32) {
    %c0_i32 = arith.constant 0 : i32
    %c0_i32_0 = arith.constant 0 : i32
    return %arg0, %c0_i32 : i32, i32
  }
  func.func @transform_1(%arg0: i32) -> (i32, i32) {
    %c0_i32 = arith.constant 0 : i32
    %c0_i32_0 = arith.constant 0 : i32
    %c0_i32_1 = arith.constant 0 : i32
    return %c0_i32, %c0_i32_0 : i32, i32
  }
  func.func @transform_2(%arg0: i32) -> (i32, i32) {
    %c0_i32 = arith.constant 0 : i32
    %c0_i32_0 = arith.constant 0 : i32
    %c0_i32_1 = arith.constant 0 : i32
    return %c0_i32, %c0_i32_0 : i32, i32
  }
  func.func @transform_3(%arg0: i32) -> (i32, i32) {
    %c0_i32 = arith.constant 0 : i32
    %c0_i32_0 = arith.constant 0 : i32
    return %arg0, %c0_i32 : i32, i32
  }
}

module attributes {stable_mosaic.version = 11 : i64} {
  func.func @_mm_stats_kernel(%arg0: i32, %arg1: i32, %arg2: memref<256x72xbf16, #tpu.memory_space<vmem>>, %arg3: memref<72x32xbf16, #tpu.memory_space<vmem>>, %arg4: memref<256x32xf32, #tpu.memory_space<vmem>>, %arg5: memref<1x2x32xf32, #tpu.memory_space<vmem>>, %arg6: memref<256x32xf32, #tpu.memory_space<vmem>>) attributes {dimension_semantics = [#tpu.dimension_semantics<parallel>, #tpu.dimension_semantics<arbitrary>], iteration_bounds = array<i64: 2, 1>, scalar_prefetch = 0 : i64, scratch_operands = 1 : i64, tpu.core_type = #tpu.core_type<tc>, window_params = [{transform_indices = @transform_0, window_bounds = array<i64: 256, 72>}, {transform_indices = @transform_1, window_bounds = array<i64: 72, 32>}, {transform_indices = @transform_2, window_bounds = array<i64: 256, 32>}, {transform_indices = @transform_3, window_bounds = array<i64: 1, 2, 32>}]} {
    %c0_i32 = arith.constant 0 : i32
    %0 = arith.cmpi eq, %arg1, %c0_i32 : i32
    %1 = arith.extui %0 : i1 to i32
    %c0_i32_0 = arith.constant 0 : i32
    %2 = arith.cmpi ne, %1, %c0_i32_0 : i32
    scf.if %2 {
      %cst_10 = arith.constant 0.000000e+00 : f32
      %12 = vector.broadcast %cst_10 : f32 to vector<256x32xf32>
      %c0_11 = arith.constant 0 : index
      %c0_12 = arith.constant 0 : index
      %13 = vector.load %arg6[%c0_11, %c0_12] : memref<256x32xf32, #tpu.memory_space<vmem>>, vector<256x32xf32>
      tpu.vector_store %arg6[%c0_11, %c0_12], %12 {strides = array<i32>} : memref<256x32xf32, #tpu.memory_space<vmem>>, vector<256x32xf32>,
    } else {
    }
    %c0 = arith.constant 0 : index
    %c0_1 = arith.constant 0 : index
    %3 = vector.load %arg6[%c0, %c0_1] : memref<256x32xf32, #tpu.memory_space<vmem>>, vector<256x32xf32>
    %c0_2 = arith.constant 0 : index
    %c0_3 = arith.constant 0 : index
    %4 = vector.load %arg2[%c0_2, %c0_3] : memref<256x72xbf16, #tpu.memory_space<vmem>>, vector<256x72xbf16>
    %c0_4 = arith.constant 0 : index
    %c0_5 = arith.constant 0 : index
    %5 = vector.load %arg3[%c0_4, %c0_5] : memref<72x32xbf16, #tpu.memory_space<vmem>>, vector<72x32xbf16>
    %cst = arith.constant dense<0.000000e+00> : vector<256x32xf32>
    %6 = tpu.matmul %4, %5, %cst {dimension_numbers = #tpu.dot_dimension_numbers<[1], [0], [0], [1], [0, 0, 1, 1], [], []>} : vector<256x72xbf16>, vector<72x32xbf16>, vector<256x32xf32> -> vector<256x32xf32>
    %7 = arith.addf %3, %6 : vector<256x32xf32>
    %c0_6 = arith.constant 0 : index
    %c0_7 = arith.constant 0 : index
    %8 = vector.load %arg6[%c0_6, %c0_7] : memref<256x32xf32, #tpu.memory_space<vmem>>, vector<256x32xf32>
    tpu.vector_store %arg6[%c0_6, %c0_7], %7 {strides = array<i32>} : memref<256x32xf32, #tpu.memory_space<vmem>>, vector<256x32xf32>,
    %c0_i32_8 = arith.constant 0 : i32
    %9 = arith.cmpi eq, %arg1, %c0_i32_8 : i32
    %10 = arith.extui %9 : i1 to i32
    %c0_i32_9 = arith.constant 0 : i32
    %11 = arith.cmpi ne, %10, %c0_i32_9 : i32
    scf.if %11 {
      %c0_10 = arith.constant 0 : index
      %c0_11 = arith.constant 0 : index
      %12 = vector.load %arg6[%c0_10, %c0_11] : memref<256x32xf32, #tpu.memory_space<vmem>>, vector<256x32xf32>
      %c0_12 = arith.constant 0 : index
      %c0_13 = arith.constant 0 : index
      %13 = vector.load %arg4[%c0_12, %c0_13] : memref<256x32xf32, #tpu.memory_space<vmem>>, vector<256x32xf32>
      tpu.vector_store %arg4[%c0_12, %c0_13], %12 {strides = array<i32>} : memref<256x32xf32, #tpu.memory_space<vmem>>, vector<256x32xf32>,
      %cst_14 = arith.constant dense<0.000000e+00> : vector<32xf32>
      %14 = vector.multi_reduction <add>, %12, %cst_14 [0] : vector<256x32xf32> to vector<32xf32>
      %15 = vector.shape_cast %14 : vector<32xf32> to vector<1x32xf32>
      %16 = arith.mulf %12, %12 : vector<256x32xf32>
      %cst_15 = arith.constant dense<0.000000e+00> : vector<32xf32>
      %17 = vector.multi_reduction <add>, %16, %cst_15 [0] : vector<256x32xf32> to vector<32xf32>
      %18 = vector.shape_cast %17 : vector<32xf32> to vector<1x32xf32>
      %19 = tpu.concatenate %15, %18 in 0 : vector<1x32xf32>, vector<1x32xf32> -> vector<2x32xf32>
      %c0_16 = arith.constant 0 : index
      %c0_17 = arith.constant 0 : index
      %c0_18 = arith.constant 0 : index
      %20 = vector.load %arg5[%c0_16, %c0_17, %c0_18] : memref<1x2x32xf32, #tpu.memory_space<vmem>>, vector<1x2x32xf32>
      %21 = vector.shape_cast %20 : vector<1x2x32xf32> to vector<2x32xf32>
      %22 = vector.shape_cast %19 : vector<2x32xf32> to vector<1x2x32xf32>
      tpu.vector_store %arg5[%c0_16, %c0_17, %c0_18], %22 {strides = array<i32>} : memref<1x2x32xf32, #tpu.memory_space<vmem>>, vector<1x2x32xf32>,
    } else {
    }
    return
  }
  func.func @transform_0(%arg0: i32, %arg1: i32) -> (i32, i32) {
    %c0_i32 = arith.constant 0 : i32
    return %arg0, %arg1 : i32, i32
  }
  func.func @transform_1(%arg0: i32, %arg1: i32) -> (i32, i32) {
    %c0_i32 = arith.constant 0 : i32
    %c0_i32_0 = arith.constant 0 : i32
    return %arg1, %c0_i32 : i32, i32
  }
  func.func @transform_2(%arg0: i32, %arg1: i32) -> (i32, i32) {
    %c0_i32 = arith.constant 0 : i32
    %c0_i32_0 = arith.constant 0 : i32
    return %arg0, %c0_i32 : i32, i32
  }
  func.func @transform_3(%arg0: i32, %arg1: i32) -> (i32, i32, i32) {
    %c0_i32 = arith.constant 0 : i32
    %c0_i32_0 = arith.constant 0 : i32
    %c0_i32_1 = arith.constant 0 : i32
    return %arg0, %c0_i32, %c0_i32_0 : i32, i32, i32
  }
}

module attributes {stable_mosaic.version = 11 : i64} {
  func.func @_contrast_kernel(%arg0: i32, %arg1: memref<256x128xf32, #tpu.memory_space<vmem>>, %arg2: memref<256x128xf32, #tpu.memory_space<vmem>>, %arg3: memref<1x128xf32, #tpu.memory_space<vmem>>, %arg4: memref<1x128xf32, #tpu.memory_space<vmem>>, %arg5: memref<256x128xf32, #tpu.memory_space<vmem>>) attributes {dimension_semantics = [#tpu.dimension_semantics<parallel>], iteration_bounds = array<i64: 2>, scalar_prefetch = 0 : i64, scratch_operands = 0 : i64, tpu.core_type = #tpu.core_type<tc>, window_params = [{transform_indices = @transform_0, window_bounds = array<i64: 256, 128>}, {transform_indices = @transform_1, window_bounds = array<i64: 256, 128>}, {pipeline_mode = #tpu.pipeline_mode<synchronous>, transform_indices = @transform_2, window_bounds = array<i64: 1, 128>}, {pipeline_mode = #tpu.pipeline_mode<synchronous>, transform_indices = @transform_3, window_bounds = array<i64: 1, 128>}, {transform_indices = @transform_4, window_bounds = array<i64: 256, 128>}]} {
    %c0 = arith.constant 0 : index
    %c0_0 = arith.constant 0 : index
    %0 = vector.load %arg2[%c0, %c0_0] : memref<256x128xf32, #tpu.memory_space<vmem>>, vector<256x128xf32>
    %c0_1 = arith.constant 0 : index
    %c0_2 = arith.constant 0 : index
    %1 = vector.load %arg3[%c0_1, %c0_2] : memref<1x128xf32, #tpu.memory_space<vmem>>, vector<1x128xf32>
    %2 = vector.broadcast %1 : vector<1x128xf32> to vector<256x128xf32>
    %3 = arith.mulf %0, %2 : vector<256x128xf32>
    %c0_3 = arith.constant 0 : index
    %c0_4 = arith.constant 0 : index
    %4 = vector.load %arg4[%c0_3, %c0_4] : memref<1x128xf32, #tpu.memory_space<vmem>>, vector<1x128xf32>
    %5 = vector.broadcast %4 : vector<1x128xf32> to vector<256x128xf32>
    %6 = arith.addf %3, %5 : vector<256x128xf32>
    %cst = arith.constant 0.000000e+00 : f32
    %7 = vector.broadcast %cst : f32 to vector<256x128xf32>
    %8 = arith.cmpf oge, %6, %7 : vector<256x128xf32>
    %cst_5 = arith.constant 0.00999999977 : f32
    %9 = vector.broadcast %cst_5 : f32 to vector<256x128xf32>
    %10 = arith.mulf %9, %6 : vector<256x128xf32>
    %11 = arith.select %8, %6, %10 : vector<256x128xi1>, vector<256x128xf32>
    %c0_6 = arith.constant 0 : index
    %c0_7 = arith.constant 0 : index
    %12 = vector.load %arg1[%c0_6, %c0_7] : memref<256x128xf32, #tpu.memory_space<vmem>>, vector<256x128xf32>
    %13 = arith.subf %12, %11 : vector<256x128xf32>
    %c0_8 = arith.constant 0 : index
    %c0_9 = arith.constant 0 : index
    %14 = vector.load %arg5[%c0_8, %c0_9] : memref<256x128xf32, #tpu.memory_space<vmem>>, vector<256x128xf32>
    tpu.vector_store %arg5[%c0_8, %c0_9], %13 {strides = array<i32>} : memref<256x128xf32, #tpu.memory_space<vmem>>, vector<256x128xf32>,
    return
  }
  func.func @transform_0(%arg0: i32) -> (i32, i32) {
    %c0_i32 = arith.constant 0 : i32
    %c0_i32_0 = arith.constant 0 : i32
    return %arg0, %c0_i32 : i32, i32
  }
  func.func @transform_1(%arg0: i32) -> (i32, i32) {
    %c0_i32 = arith.constant 0 : i32
    %c0_i32_0 = arith.constant 0 : i32
    return %arg0, %c0_i32 : i32, i32
  }
  func.func @transform_2(%arg0: i32) -> (i32, i32) {
    %c0_i32 = arith.constant 0 : i32
    %c0_i32_0 = arith.constant 0 : i32
    %c0_i32_1 = arith.constant 0 : i32
    return %c0_i32, %c0_i32_0 : i32, i32
  }
  func.func @transform_3(%arg0: i32) -> (i32, i32) {
    %c0_i32 = arith.constant 0 : i32
    %c0_i32_0 = arith.constant 0 : i32
    %c0_i32_1 = arith.constant 0 : i32
    return %c0_i32, %c0_i32_0 : i32, i32
  }
  func.func @transform_4(%arg0: i32) -> (i32, i32) {
    %c0_i32 = arith.constant 0 : i32
    %c0_i32_0 = arith.constant 0 : i32
    return %arg0, %c0_i32 : i32, i32
  }
}

module attributes {stable_mosaic.version = 11 : i64} {
  func.func @_mm_stats_kernel(%arg0: i32, %arg1: i32, %arg2: memref<256x8xbf16, #tpu.memory_space<vmem>>, %arg3: memref<8x32xbf16, #tpu.memory_space<vmem>>, %arg4: memref<256x32xf32, #tpu.memory_space<vmem>>, %arg5: memref<1x2x32xf32, #tpu.memory_space<vmem>>, %arg6: memref<256x32xf32, #tpu.memory_space<vmem>>) attributes {dimension_semantics = [#tpu.dimension_semantics<parallel>, #tpu.dimension_semantics<arbitrary>], iteration_bounds = array<i64: 2, 1>, scalar_prefetch = 0 : i64, scratch_operands = 1 : i64, tpu.core_type = #tpu.core_type<tc>, window_params = [{transform_indices = @transform_0, window_bounds = array<i64: 256, 8>}, {transform_indices = @transform_1, window_bounds = array<i64: 8, 32>}, {transform_indices = @transform_2, window_bounds = array<i64: 256, 32>}, {transform_indices = @transform_3, window_bounds = array<i64: 1, 2, 32>}]} {
    %c0_i32 = arith.constant 0 : i32
    %0 = arith.cmpi eq, %arg1, %c0_i32 : i32
    %1 = arith.extui %0 : i1 to i32
    %c0_i32_0 = arith.constant 0 : i32
    %2 = arith.cmpi ne, %1, %c0_i32_0 : i32
    scf.if %2 {
      %cst_10 = arith.constant 0.000000e+00 : f32
      %12 = vector.broadcast %cst_10 : f32 to vector<256x32xf32>
      %c0_11 = arith.constant 0 : index
      %c0_12 = arith.constant 0 : index
      %13 = vector.load %arg6[%c0_11, %c0_12] : memref<256x32xf32, #tpu.memory_space<vmem>>, vector<256x32xf32>
      tpu.vector_store %arg6[%c0_11, %c0_12], %12 {strides = array<i32>} : memref<256x32xf32, #tpu.memory_space<vmem>>, vector<256x32xf32>,
    } else {
    }
    %c0 = arith.constant 0 : index
    %c0_1 = arith.constant 0 : index
    %3 = vector.load %arg6[%c0, %c0_1] : memref<256x32xf32, #tpu.memory_space<vmem>>, vector<256x32xf32>
    %c0_2 = arith.constant 0 : index
    %c0_3 = arith.constant 0 : index
    %4 = vector.load %arg2[%c0_2, %c0_3] : memref<256x8xbf16, #tpu.memory_space<vmem>>, vector<256x8xbf16>
    %c0_4 = arith.constant 0 : index
    %c0_5 = arith.constant 0 : index
    %5 = vector.load %arg3[%c0_4, %c0_5] : memref<8x32xbf16, #tpu.memory_space<vmem>>, vector<8x32xbf16>
    %cst = arith.constant dense<0.000000e+00> : vector<256x32xf32>
    %6 = tpu.matmul %4, %5, %cst {dimension_numbers = #tpu.dot_dimension_numbers<[1], [0], [0], [1], [0, 0, 1, 1], [], []>} : vector<256x8xbf16>, vector<8x32xbf16>, vector<256x32xf32> -> vector<256x32xf32>
    %7 = arith.addf %3, %6 : vector<256x32xf32>
    %c0_6 = arith.constant 0 : index
    %c0_7 = arith.constant 0 : index
    %8 = vector.load %arg6[%c0_6, %c0_7] : memref<256x32xf32, #tpu.memory_space<vmem>>, vector<256x32xf32>
    tpu.vector_store %arg6[%c0_6, %c0_7], %7 {strides = array<i32>} : memref<256x32xf32, #tpu.memory_space<vmem>>, vector<256x32xf32>,
    %c0_i32_8 = arith.constant 0 : i32
    %9 = arith.cmpi eq, %arg1, %c0_i32_8 : i32
    %10 = arith.extui %9 : i1 to i32
    %c0_i32_9 = arith.constant 0 : i32
    %11 = arith.cmpi ne, %10, %c0_i32_9 : i32
    scf.if %11 {
      %c0_10 = arith.constant 0 : index
      %c0_11 = arith.constant 0 : index
      %12 = vector.load %arg6[%c0_10, %c0_11] : memref<256x32xf32, #tpu.memory_space<vmem>>, vector<256x32xf32>
      %c0_12 = arith.constant 0 : index
      %c0_13 = arith.constant 0 : index
      %13 = vector.load %arg4[%c0_12, %c0_13] : memref<256x32xf32, #tpu.memory_space<vmem>>, vector<256x32xf32>
      tpu.vector_store %arg4[%c0_12, %c0_13], %12 {strides = array<i32>} : memref<256x32xf32, #tpu.memory_space<vmem>>, vector<256x32xf32>,
      %cst_14 = arith.constant dense<0.000000e+00> : vector<32xf32>
      %14 = vector.multi_reduction <add>, %12, %cst_14 [0] : vector<256x32xf32> to vector<32xf32>
      %15 = vector.shape_cast %14 : vector<32xf32> to vector<1x32xf32>
      %16 = arith.mulf %12, %12 : vector<256x32xf32>
      %cst_15 = arith.constant dense<0.000000e+00> : vector<32xf32>
      %17 = vector.multi_reduction <add>, %16, %cst_15 [0] : vector<256x32xf32> to vector<32xf32>
      %18 = vector.shape_cast %17 : vector<32xf32> to vector<1x32xf32>
      %19 = tpu.concatenate %15, %18 in 0 : vector<1x32xf32>, vector<1x32xf32> -> vector<2x32xf32>
      %c0_16 = arith.constant 0 : index
      %c0_17 = arith.constant 0 : index
      %c0_18 = arith.constant 0 : index
      %20 = vector.load %arg5[%c0_16, %c0_17, %c0_18] : memref<1x2x32xf32, #tpu.memory_space<vmem>>, vector<1x2x32xf32>
      %21 = vector.shape_cast %20 : vector<1x2x32xf32> to vector<2x32xf32>
      %22 = vector.shape_cast %19 : vector<2x32xf32> to vector<1x2x32xf32>
      tpu.vector_store %arg5[%c0_16, %c0_17, %c0_18], %22 {strides = array<i32>} : memref<1x2x32xf32, #tpu.memory_space<vmem>>, vector<1x2x32xf32>,
    } else {
    }
    return
  }
  func.func @transform_0(%arg0: i32, %arg1: i32) -> (i32, i32) {
    %c0_i32 = arith.constant 0 : i32
    return %arg0, %arg1 : i32, i32
  }
  func.func @transform_1(%arg0: i32, %arg1: i32) -> (i32, i32) {
    %c0_i32 = arith.constant 0 : i32
    %c0_i32_0 = arith.constant 0 : i32
    return %arg1, %c0_i32 : i32, i32
  }
  func.func @transform_2(%arg0: i32, %arg1: i32) -> (i32, i32) {
    %c0_i32 = arith.constant 0 : i32
    %c0_i32_0 = arith.constant 0 : i32
    return %arg0, %c0_i32 : i32, i32
  }
  func.func @transform_3(%arg0: i32, %arg1: i32) -> (i32, i32, i32) {
    %c0_i32 = arith.constant 0 : i32
    %c0_i32_0 = arith.constant 0 : i32
    %c0_i32_1 = arith.constant 0 : i32
    return %arg0, %c0_i32, %c0_i32_0 : i32, i32, i32
  }
}

module attributes {stable_mosaic.version = 11 : i64} {
  func.func @_mm_stats_kernel(%arg0: i32, %arg1: i32, %arg2: memref<256x192xbf16, #tpu.memory_space<vmem>>, %arg3: memref<192x32xbf16, #tpu.memory_space<vmem>>, %arg4: memref<256x32xf32, #tpu.memory_space<vmem>>, %arg5: memref<1x2x32xf32, #tpu.memory_space<vmem>>, %arg6: memref<256x32xf32, #tpu.memory_space<vmem>>) attributes {dimension_semantics = [#tpu.dimension_semantics<parallel>, #tpu.dimension_semantics<arbitrary>], iteration_bounds = array<i64: 2, 1>, scalar_prefetch = 0 : i64, scratch_operands = 1 : i64, tpu.core_type = #tpu.core_type<tc>, window_params = [{transform_indices = @transform_0, window_bounds = array<i64: 256, 192>}, {transform_indices = @transform_1, window_bounds = array<i64: 192, 32>}, {transform_indices = @transform_2, window_bounds = array<i64: 256, 32>}, {transform_indices = @transform_3, window_bounds = array<i64: 1, 2, 32>}]} {
    %c0_i32 = arith.constant 0 : i32
    %0 = arith.cmpi eq, %arg1, %c0_i32 : i32
    %1 = arith.extui %0 : i1 to i32
    %c0_i32_0 = arith.constant 0 : i32
    %2 = arith.cmpi ne, %1, %c0_i32_0 : i32
    scf.if %2 {
      %cst_10 = arith.constant 0.000000e+00 : f32
      %12 = vector.broadcast %cst_10 : f32 to vector<256x32xf32>
      %c0_11 = arith.constant 0 : index
      %c0_12 = arith.constant 0 : index
      %13 = vector.load %arg6[%c0_11, %c0_12] : memref<256x32xf32, #tpu.memory_space<vmem>>, vector<256x32xf32>
      tpu.vector_store %arg6[%c0_11, %c0_12], %12 {strides = array<i32>} : memref<256x32xf32, #tpu.memory_space<vmem>>, vector<256x32xf32>,
    } else {
    }
    %c0 = arith.constant 0 : index
    %c0_1 = arith.constant 0 : index
    %3 = vector.load %arg6[%c0, %c0_1] : memref<256x32xf32, #tpu.memory_space<vmem>>, vector<256x32xf32>
    %c0_2 = arith.constant 0 : index
    %c0_3 = arith.constant 0 : index
    %4 = vector.load %arg2[%c0_2, %c0_3] : memref<256x192xbf16, #tpu.memory_space<vmem>>, vector<256x192xbf16>
    %c0_4 = arith.constant 0 : index
    %c0_5 = arith.constant 0 : index
    %5 = vector.load %arg3[%c0_4, %c0_5] : memref<192x32xbf16, #tpu.memory_space<vmem>>, vector<192x32xbf16>
    %cst = arith.constant dense<0.000000e+00> : vector<256x32xf32>
    %6 = tpu.matmul %4, %5, %cst {dimension_numbers = #tpu.dot_dimension_numbers<[1], [0], [0], [1], [0, 0, 1, 1], [], []>} : vector<256x192xbf16>, vector<192x32xbf16>, vector<256x32xf32> -> vector<256x32xf32>
    %7 = arith.addf %3, %6 : vector<256x32xf32>
    %c0_6 = arith.constant 0 : index
    %c0_7 = arith.constant 0 : index
    %8 = vector.load %arg6[%c0_6, %c0_7] : memref<256x32xf32, #tpu.memory_space<vmem>>, vector<256x32xf32>
    tpu.vector_store %arg6[%c0_6, %c0_7], %7 {strides = array<i32>} : memref<256x32xf32, #tpu.memory_space<vmem>>, vector<256x32xf32>,
    %c0_i32_8 = arith.constant 0 : i32
    %9 = arith.cmpi eq, %arg1, %c0_i32_8 : i32
    %10 = arith.extui %9 : i1 to i32
    %c0_i32_9 = arith.constant 0 : i32
    %11 = arith.cmpi ne, %10, %c0_i32_9 : i32
    scf.if %11 {
      %c0_10 = arith.constant 0 : index
      %c0_11 = arith.constant 0 : index
      %12 = vector.load %arg6[%c0_10, %c0_11] : memref<256x32xf32, #tpu.memory_space<vmem>>, vector<256x32xf32>
      %c0_12 = arith.constant 0 : index
      %c0_13 = arith.constant 0 : index
      %13 = vector.load %arg4[%c0_12, %c0_13] : memref<256x32xf32, #tpu.memory_space<vmem>>, vector<256x32xf32>
      tpu.vector_store %arg4[%c0_12, %c0_13], %12 {strides = array<i32>} : memref<256x32xf32, #tpu.memory_space<vmem>>, vector<256x32xf32>,
      %cst_14 = arith.constant dense<0.000000e+00> : vector<32xf32>
      %14 = vector.multi_reduction <add>, %12, %cst_14 [0] : vector<256x32xf32> to vector<32xf32>
      %15 = vector.shape_cast %14 : vector<32xf32> to vector<1x32xf32>
      %16 = arith.mulf %12, %12 : vector<256x32xf32>
      %cst_15 = arith.constant dense<0.000000e+00> : vector<32xf32>
      %17 = vector.multi_reduction <add>, %16, %cst_15 [0] : vector<256x32xf32> to vector<32xf32>
      %18 = vector.shape_cast %17 : vector<32xf32> to vector<1x32xf32>
      %19 = tpu.concatenate %15, %18 in 0 : vector<1x32xf32>, vector<1x32xf32> -> vector<2x32xf32>
      %c0_16 = arith.constant 0 : index
      %c0_17 = arith.constant 0 : index
      %c0_18 = arith.constant 0 : index
      %20 = vector.load %arg5[%c0_16, %c0_17, %c0_18] : memref<1x2x32xf32, #tpu.memory_space<vmem>>, vector<1x2x32xf32>
      %21 = vector.shape_cast %20 : vector<1x2x32xf32> to vector<2x32xf32>
      %22 = vector.shape_cast %19 : vector<2x32xf32> to vector<1x2x32xf32>
      tpu.vector_store %arg5[%c0_16, %c0_17, %c0_18], %22 {strides = array<i32>} : memref<1x2x32xf32, #tpu.memory_space<vmem>>, vector<1x2x32xf32>,
    } else {
    }
    return
  }
  func.func @transform_0(%arg0: i32, %arg1: i32) -> (i32, i32) {
    %c0_i32 = arith.constant 0 : i32
    return %arg0, %arg1 : i32, i32
  }
  func.func @transform_1(%arg0: i32, %arg1: i32) -> (i32, i32) {
    %c0_i32 = arith.constant 0 : i32
    %c0_i32_0 = arith.constant 0 : i32
    return %arg1, %c0_i32 : i32, i32
  }
  func.func @transform_2(%arg0: i32, %arg1: i32) -> (i32, i32) {
    %c0_i32 = arith.constant 0 : i32
    %c0_i32_0 = arith.constant 0 : i32
    return %arg0, %c0_i32 : i32, i32
  }
  func.func @transform_3(%arg0: i32, %arg1: i32) -> (i32, i32, i32) {
    %c0_i32 = arith.constant 0 : i32
    %c0_i32_0 = arith.constant 0 : i32
    %c0_i32_1 = arith.constant 0 : i32
    return %arg0, %c0_i32, %c0_i32_0 : i32, i32, i32
  }
}

module attributes {stable_mosaic.version = 11 : i64} {
  func.func @_mm_stats_kernel(%arg0: i32, %arg1: i32, %arg2: memref<256x288xbf16, #tpu.memory_space<vmem>>, %arg3: memref<288x32xbf16, #tpu.memory_space<vmem>>, %arg4: memref<256x32xf32, #tpu.memory_space<vmem>>, %arg5: memref<1x2x32xf32, #tpu.memory_space<vmem>>, %arg6: memref<256x32xf32, #tpu.memory_space<vmem>>) attributes {dimension_semantics = [#tpu.dimension_semantics<parallel>, #tpu.dimension_semantics<arbitrary>], iteration_bounds = array<i64: 2, 1>, scalar_prefetch = 0 : i64, scratch_operands = 1 : i64, tpu.core_type = #tpu.core_type<tc>, window_params = [{transform_indices = @transform_0, window_bounds = array<i64: 256, 288>}, {transform_indices = @transform_1, window_bounds = array<i64: 288, 32>}, {transform_indices = @transform_2, window_bounds = array<i64: 256, 32>}, {transform_indices = @transform_3, window_bounds = array<i64: 1, 2, 32>}]} {
    %c0_i32 = arith.constant 0 : i32
    %0 = arith.cmpi eq, %arg1, %c0_i32 : i32
    %1 = arith.extui %0 : i1 to i32
    %c0_i32_0 = arith.constant 0 : i32
    %2 = arith.cmpi ne, %1, %c0_i32_0 : i32
    scf.if %2 {
      %cst_10 = arith.constant 0.000000e+00 : f32
      %12 = vector.broadcast %cst_10 : f32 to vector<256x32xf32>
      %c0_11 = arith.constant 0 : index
      %c0_12 = arith.constant 0 : index
      %13 = vector.load %arg6[%c0_11, %c0_12] : memref<256x32xf32, #tpu.memory_space<vmem>>, vector<256x32xf32>
      tpu.vector_store %arg6[%c0_11, %c0_12], %12 {strides = array<i32>} : memref<256x32xf32, #tpu.memory_space<vmem>>, vector<256x32xf32>,
    } else {
    }
    %c0 = arith.constant 0 : index
    %c0_1 = arith.constant 0 : index
    %3 = vector.load %arg6[%c0, %c0_1] : memref<256x32xf32, #tpu.memory_space<vmem>>, vector<256x32xf32>
    %c0_2 = arith.constant 0 : index
    %c0_3 = arith.constant 0 : index
    %4 = vector.load %arg2[%c0_2, %c0_3] : memref<256x288xbf16, #tpu.memory_space<vmem>>, vector<256x288xbf16>
    %c0_4 = arith.constant 0 : index
    %c0_5 = arith.constant 0 : index
    %5 = vector.load %arg3[%c0_4, %c0_5] : memref<288x32xbf16, #tpu.memory_space<vmem>>, vector<288x32xbf16>
    %cst = arith.constant dense<0.000000e+00> : vector<256x32xf32>
    %6 = tpu.matmul %4, %5, %cst {dimension_numbers = #tpu.dot_dimension_numbers<[1], [0], [0], [1], [0, 0, 1, 1], [], []>} : vector<256x288xbf16>, vector<288x32xbf16>, vector<256x32xf32> -> vector<256x32xf32>
    %7 = arith.addf %3, %6 : vector<256x32xf32>
    %c0_6 = arith.constant 0 : index
    %c0_7 = arith.constant 0 : index
    %8 = vector.load %arg6[%c0_6, %c0_7] : memref<256x32xf32, #tpu.memory_space<vmem>>, vector<256x32xf32>
    tpu.vector_store %arg6[%c0_6, %c0_7], %7 {strides = array<i32>} : memref<256x32xf32, #tpu.memory_space<vmem>>, vector<256x32xf32>,
    %c0_i32_8 = arith.constant 0 : i32
    %9 = arith.cmpi eq, %arg1, %c0_i32_8 : i32
    %10 = arith.extui %9 : i1 to i32
    %c0_i32_9 = arith.constant 0 : i32
    %11 = arith.cmpi ne, %10, %c0_i32_9 : i32
    scf.if %11 {
      %c0_10 = arith.constant 0 : index
      %c0_11 = arith.constant 0 : index
      %12 = vector.load %arg6[%c0_10, %c0_11] : memref<256x32xf32, #tpu.memory_space<vmem>>, vector<256x32xf32>
      %c0_12 = arith.constant 0 : index
      %c0_13 = arith.constant 0 : index
      %13 = vector.load %arg4[%c0_12, %c0_13] : memref<256x32xf32, #tpu.memory_space<vmem>>, vector<256x32xf32>
      tpu.vector_store %arg4[%c0_12, %c0_13], %12 {strides = array<i32>} : memref<256x32xf32, #tpu.memory_space<vmem>>, vector<256x32xf32>,
      %cst_14 = arith.constant dense<0.000000e+00> : vector<32xf32>
      %14 = vector.multi_reduction <add>, %12, %cst_14 [0] : vector<256x32xf32> to vector<32xf32>
      %15 = vector.shape_cast %14 : vector<32xf32> to vector<1x32xf32>
      %16 = arith.mulf %12, %12 : vector<256x32xf32>
      %cst_15 = arith.constant dense<0.000000e+00> : vector<32xf32>
      %17 = vector.multi_reduction <add>, %16, %cst_15 [0] : vector<256x32xf32> to vector<32xf32>
      %18 = vector.shape_cast %17 : vector<32xf32> to vector<1x32xf32>
      %19 = tpu.concatenate %15, %18 in 0 : vector<1x32xf32>, vector<1x32xf32> -> vector<2x32xf32>
      %c0_16 = arith.constant 0 : index
      %c0_17 = arith.constant 0 : index
      %c0_18 = arith.constant 0 : index
      %20 = vector.load %arg5[%c0_16, %c0_17, %c0_18] : memref<1x2x32xf32, #tpu.memory_space<vmem>>, vector<1x2x32xf32>
      %21 = vector.shape_cast %20 : vector<1x2x32xf32> to vector<2x32xf32>
      %22 = vector.shape_cast %19 : vector<2x32xf32> to vector<1x2x32xf32>
      tpu.vector_store %arg5[%c0_16, %c0_17, %c0_18], %22 {strides = array<i32>} : memref<1x2x32xf32, #tpu.memory_space<vmem>>, vector<1x2x32xf32>,
    } else {
    }
    return
  }
  func.func @transform_0(%arg0: i32, %arg1: i32) -> (i32, i32) {
    %c0_i32 = arith.constant 0 : i32
    return %arg0, %arg1 : i32, i32
  }
  func.func @transform_1(%arg0: i32, %arg1: i32) -> (i32, i32) {
    %c0_i32 = arith.constant 0 : i32
    %c0_i32_0 = arith.constant 0 : i32
    return %arg1, %c0_i32 : i32, i32
  }
  func.func @transform_2(%arg0: i32, %arg1: i32) -> (i32, i32) {
    %c0_i32 = arith.constant 0 : i32
    %c0_i32_0 = arith.constant 0 : i32
    return %arg0, %c0_i32 : i32, i32
  }
  func.func @transform_3(%arg0: i32, %arg1: i32) -> (i32, i32, i32) {
    %c0_i32 = arith.constant 0 : i32
    %c0_i32_0 = arith.constant 0 : i32
    %c0_i32_1 = arith.constant 0 : i32
    return %arg0, %c0_i32, %c0_i32_0 : i32, i32, i32
  }
}

module attributes {stable_mosaic.version = 11 : i64} {
  func.func @_affine_lrelu_kernel(%arg0: i32, %arg1: memref<256x32xf32, #tpu.memory_space<vmem>>, %arg2: memref<1x32xf32, #tpu.memory_space<vmem>>, %arg3: memref<1x32xf32, #tpu.memory_space<vmem>>, %arg4: memref<256x32xf32, #tpu.memory_space<vmem>>) attributes {dimension_semantics = [#tpu.dimension_semantics<parallel>], iteration_bounds = array<i64: 2>, scalar_prefetch = 0 : i64, scratch_operands = 0 : i64, tpu.core_type = #tpu.core_type<tc>, window_params = [{transform_indices = @transform_0, window_bounds = array<i64: 256, 32>}, {pipeline_mode = #tpu.pipeline_mode<synchronous>, transform_indices = @transform_1, window_bounds = array<i64: 1, 32>}, {pipeline_mode = #tpu.pipeline_mode<synchronous>, transform_indices = @transform_2, window_bounds = array<i64: 1, 32>}, {transform_indices = @transform_3, window_bounds = array<i64: 256, 32>}]} {
    %c0 = arith.constant 0 : index
    %c0_0 = arith.constant 0 : index
    %0 = vector.load %arg1[%c0, %c0_0] : memref<256x32xf32, #tpu.memory_space<vmem>>, vector<256x32xf32>
    %c0_1 = arith.constant 0 : index
    %c0_2 = arith.constant 0 : index
    %1 = vector.load %arg2[%c0_1, %c0_2] : memref<1x32xf32, #tpu.memory_space<vmem>>, vector<1x32xf32>
    %2 = vector.broadcast %1 : vector<1x32xf32> to vector<256x32xf32>
    %3 = arith.mulf %0, %2 : vector<256x32xf32>
    %c0_3 = arith.constant 0 : index
    %c0_4 = arith.constant 0 : index
    %4 = vector.load %arg3[%c0_3, %c0_4] : memref<1x32xf32, #tpu.memory_space<vmem>>, vector<1x32xf32>
    %5 = vector.broadcast %4 : vector<1x32xf32> to vector<256x32xf32>
    %6 = arith.addf %3, %5 : vector<256x32xf32>
    %cst = arith.constant 0.000000e+00 : f32
    %7 = vector.broadcast %cst : f32 to vector<256x32xf32>
    %8 = arith.cmpf oge, %6, %7 : vector<256x32xf32>
    %cst_5 = arith.constant 0.00999999977 : f32
    %9 = vector.broadcast %cst_5 : f32 to vector<256x32xf32>
    %10 = arith.mulf %9, %6 : vector<256x32xf32>
    %11 = arith.select %8, %6, %10 : vector<256x32xi1>, vector<256x32xf32>
    %c0_6 = arith.constant 0 : index
    %c0_7 = arith.constant 0 : index
    %12 = vector.load %arg4[%c0_6, %c0_7] : memref<256x32xf32, #tpu.memory_space<vmem>>, vector<256x32xf32>
    tpu.vector_store %arg4[%c0_6, %c0_7], %11 {strides = array<i32>} : memref<256x32xf32, #tpu.memory_space<vmem>>, vector<256x32xf32>,
    return
  }
  func.func @transform_0(%arg0: i32) -> (i32, i32) {
    %c0_i32 = arith.constant 0 : i32
    %c0_i32_0 = arith.constant 0 : i32
    return %arg0, %c0_i32 : i32, i32
  }
  func.func @transform_1(%arg0: i32) -> (i32, i32) {
    %c0_i32 = arith.constant 0 : i32
    %c0_i32_0 = arith.constant 0 : i32
    %c0_i32_1 = arith.constant 0 : i32
    return %c0_i32, %c0_i32_0 : i32, i32
  }
  func.func @transform_2(%arg0: i32) -> (i32, i32) {
    %c0_i32 = arith.constant 0 : i32
    %c0_i32_0 = arith.constant 0 : i32
    %c0_i32_1 = arith.constant 0 : i32
    return %c0_i32, %c0_i32_0 : i32, i32
  }
  func.func @transform_3(%arg0: i32) -> (i32, i32) {
    %c0_i32 = arith.constant 0 : i32
    %c0_i32_0 = arith.constant 0 : i32
    return %arg0, %c0_i32 : i32, i32
  }
}

</mosaic_0001>

<bundles_post_ra>
// kernel: magic_module_forward.19
= control target key start
LH: loop header
LB: loop body
LE: loop exit
PB: predicated region body
PF: predicated region fallthrough
CT: control target
= control target key end

     0   :  { %s749_s12 = smov 0   ;;  %s1077_s0 = inlined_call_operand.vmem [shape: f32[512,160], index: 0, kind: input, shape index: {}]   ;;  %s1078_s1 = inlined_call_operand.vmem [shape: f32[1,160], index: 1, kind: input, shape index: {}]   ;;  %s1079_s2 = inlined_call_operand.vmem [shape: f32[1,160], index: 2, kind: input, shape index: {}]   ;;  %s1080_s3 = inlined_call_operand.vmem [shape: f32[512,160], index: 3, kind: output, shape index: {}]  }
   0x1 LB: > { %s698_s13 = sadd.s32 4294967295, %s727_s12   ;;  %p702_p0 = scmp.ge.s32.totalorder %s727_s12, 1  ;;  %s727_s12 = sphi %s749_s12, %s13_s12  }
   0x2   : > { %p139_p1 = scmp.lt.s32.totalorder %s727_s12, 3 }
   0x4   : > { %p140_p2 = pnand %p702_p0, %p139_p1 }
   0x5   : > { %s703_s14 = sshll.u32 (!%p140_p2), %s698_s13, 5 }
   0x6   : > { %143 = sbr.rel (%p140_p2) target bundleno = 100 (0x64), region = 32  ;;  %p166_p3 = scmp.lt.s32.totalorder (!%p140_p2), %s703_s14, 63 }
   0xb   : > { %v243_v0 = vld [vmem:[%s1078_s1] sm:$0x3]  ;;  %s1082_s14 = smov (!%p166_p3, %s703_s14), 63  ;;  %vm576_vm0 = vcmask 261120  }
   0xc   : > { %v313_v1 = vld [vmem:[%s1079_s2] sm:$0x3]  ;;  %v765_v2 = vperm.slane %v243_v0, 0  ;;  %v767_v3 = vperm.slane %v243_v0, 1  ;;  %s711_s19 = sshll.u32 %s1082_s14, 4 }
   0xd   : > { %s773_s22 = scalar_lea.vmem %s1077_s0, %s711_s19  ;;  %v775_v4 = vperm.slane %v313_v1, 0  ;;  %v777_v5 = vperm.slane %v313_v1, 1  ;;  %s805_s25 = scalar_lea.vmem %s1080_s3, %s711_s19 }
   0xe   : > { %v179_v6 = vld [vmem:[%s773_s22] sm:$0xff]  ;;  %v180_v7 = vld [vmem:[%s773_s22 + $0x8] sm:$0xff]  ;;  %v181_v8 = vld [vmem:[%s773_s22 + $0x10] sm:$0xff] }
   0xf   : > { %v249_v9 = vmul.f32 %v765_v2, %v179_v6  ;;  %v250_v10 = vmul.f32 %v767_v3, %v180_v7  ;;  %v251_v11 = vmul.f32 %v765_v2, %v181_v8  ;;  %v182_v12 = vld [vmem:[%s773_s22 + $0x18] sm:$0xff]  ;;  %v183_v13 = vld [vmem:[%s773_s22 + $0x20] sm:$0xff]  ;;  %v184_v14 = vld [vmem:[%s773_s22 + $0x28] sm:$0xff] }
  0x10   : > { %v252_v15 = vmul.f32 %v767_v3, %v182_v12  ;;  %v253_v16 = vmul.f32 %v765_v2, %v183_v13  ;;  %v254_v17 = vmul.f32 %v767_v3, %v184_v14  ;;  %v185_v18 = vld [vmem:[%s773_s22 + $0x30] sm:$0xff]  ;;  %v186_v19 = vld [vmem:[%s773_s22 + $0x38] sm:$0xff]  ;;  %v187_v28 = vld [vmem:[%s773_s22 + $0x40] sm:$0xff] }
  0x11   : > { %v319_v20 = vadd.f32 %v775_v4, %v249_v9  ;;  %v320_v21 = vadd.f32 %v777_v5, %v250_v10  ;;  %v321_v22 = vadd.f32 %v775_v4, %v251_v11  ;;  %v255_v23 = vmul.f32 %v765_v2, %v185_v18  ;;  %v188_v36 = vld [vmem:[%s773_s22 + $0x48] sm:$0xff]  ;;  %v189_v37 = vld [vmem:[%s773_s22 + $0x50] sm:$0xff]  ;;  %v190_v38 = vld [vmem:[%s773_s22 + $0x58] sm:$0xff] }
  0x12   : > { %v322_v24 = vadd.f32 %v777_v5, %v252_v15  ;;  %v323_v25 = vadd.f32 %v775_v4, %v253_v16  ;;  %v324_v26 = vadd.f32 %v777_v5, %v254_v17  ;;  %v256_v27 = vmul.f32 %v767_v3, %v186_v19  ;;  %v191_v50 = vld [vmem:[%s773_s22 + $0x60] sm:$0xff]  ;;  %v192_v57 = vld [vmem:[%s773_s22 + $0x68] sm:$0xff]  ;;  %v193_v61 = vld [vmem:[%s773_s22 + $0x70] sm:$0xff] }
  0x13   : > { %vm383_vm1 = vcmp.ge.f32.partialorder %v319_v20, 0.0  ;;  %v447_v29 = vmul.f32 0.01, %v319_v20  ;;  %vm384_vm2 = vcmp.ge.f32.partialorder %v320_v21, 0.0  ;;  %v448_v30 = vmul.f32 0.01, %v320_v21 }
  0x14   : > { %vm385_vm3 = vcmp.ge.f32.partialorder %v321_v22, 0.0  ;;  %v449_v31 = vmul.f32 0.01, %v321_v22  ;;  %vm386_vm4 = vcmp.ge.f32.partialorder %v322_v24, 0.0  ;;  %v450_v32 = vmul.f32 0.01, %v322_v24 }
  0x15   : > { %v511_v33 = vsel %vm383_vm1, %v319_v20, %v447_v29  ;;  %v512_v34 = vsel %vm384_vm2, %v320_v21, %v448_v30  ;;  %vm387_vm5 = vcmp.ge.f32.partialorder %v323_v25, 0.0  ;;  %v451_v35 = vmul.f32 0.01, %v323_v25  ;;  %v194_v62 = vld [vmem:[%s773_s22 + $0x78] sm:$0xff]  ;;  %v195_v1 = vld [vmem:[%s773_s22 + $0x80] sm:$0xff]  ;;  %v196_v13 = vld [vmem:[%s773_s22 + $0x88] sm:$0xff] }
  0x16   : > { %575 = vst [vmem:[%s805_s25] sm:$0xff] %v511_v33  ;;  %v513_v39 = vsel %vm385_vm3, %v321_v22, %v449_v31  ;;  %v514_v40 = vsel %vm386_vm4, %v322_v24, %v450_v32  ;;  %vm388_vm6 = vcmp.ge.f32.partialorder %v324_v26, 0.0  ;;  %v452_v41 = vmul.f32 0.01, %v324_v26  ;;  %v197_v14 = vld [vmem:[%s773_s22 + $0x90] sm:$0xff] }
  0x17   : > { %577 = vst.msk [vmem:[%s805_s25 + $0x8] sm:$0xff] %vm576_vm0, %v512_v34  ;;  %v515_v42 = vsel %vm387_vm5, %v323_v25, %v451_v35  ;;  %v325_v43 = vadd.f32 %v775_v4, %v255_v23  ;;  %v326_v44 = vadd.f32 %v777_v5, %v256_v27  ;;  %v257_v45 = vmul.f32 %v765_v2, %v187_v28  ;;  %v198_v28 = vld [vmem:[%s773_s22 + $0x98] sm:$0xff]  ;;  %v199_v35 = vld [vmem:[%s773_s22 + $0xa0] sm:$0xff] }
  0x18   : > { %578 = vst [vmem:[%s805_s25 + $0x10] sm:$0xff] %v513_v39  ;;  %v516_v46 = vsel %vm388_vm6, %v324_v26, %v452_v41  ;;  %v258_v47 = vmul.f32 %v767_v3, %v188_v36  ;;  %v259_v48 = vmul.f32 %v765_v2, %v189_v37  ;;  %v260_v49 = vmul.f32 %v767_v3, %v190_v38  ;;  %v200_v36 = vld [vmem:[%s773_s22 + $0xa8] sm:$0xff]  ;;  %v201_v37 = vld [vmem:[%s773_s22 + $0xb0] sm:$0xff]  ;;  %v202_v41 = vld [vmem:[%s773_s22 + $0xb8] sm:$0xff] }
  0x19   : > { %579 = vst.msk [vmem:[%s805_s25 + $0x18] sm:$0xff] %vm576_vm0, %v514_v40  ;;  %vm389_vm7 = vcmp.ge.f32.partialorder %v325_v43, 0.0  ;;  %v453_v51 = vmul.f32 0.01, %v325_v43  ;;  %vm390_vm8 = vcmp.ge.f32.partialorder %v326_v44, 0.0  ;;  %v327_v52 = vadd.f32 %v775_v4, %v257_v45 }
  0x1a   : > { %580 = vst [vmem:[%s805_s25 + $0x20] sm:$0xff] %v515_v42  ;;  %v454_v53 = vmul.f32 0.01, %v326_v44  ;;  %v328_v54 = vadd.f32 %v777_v5, %v258_v47  ;;  %v329_v55 = vadd.f32 %v775_v4, %v259_v48  ;;  %v330_v56 = vadd.f32 %v777_v5, %v260_v49  ;;  %v203_v42 = vld [vmem:[%s773_s22 + $0xc0] sm:$0xff] }
  0x1b   : > { %581 = vst.msk [vmem:[%s805_s25 + $0x28] sm:$0xff] %vm576_vm0, %v516_v46  ;;  %v517_v58 = vsel %vm389_vm7, %v325_v43, %v453_v51  ;;  %vm391_vm9 = vcmp.ge.f32.partialorder %v327_v52, 0.0  ;;  %v455_v59 = vmul.f32 0.01, %v327_v52  ;;  %v261_v60 = vmul.f32 %v765_v2, %v191_v50  ;;  %v204_v46 = vld [vmem:[%s773_s22 + $0xc8] sm:$0xff] }
  0x1c   : > { %582 = vst [vmem:[%s805_s25 + $0x30] sm:$0xff] %v517_v58  ;;  %v518_v63 = vsel %vm390_vm8, %v326_v44, %v454_v53  ;;  %vm392_vm10 = vcmp.ge.f32.partialorder %v328_v54, 0.0  ;;  %v456_v0 = vmul.f32 0.01, %v328_v54  ;;  %vm393_vm11 = vcmp.ge.f32.partialorder %v329_v55, 0.0 }
  0x1d   : > { %583 = vst.msk [vmem:[%s805_s25 + $0x38] sm:$0xff] %vm576_vm0, %v518_v63  ;;  %v519_v6 = vsel %vm391_vm9, %v327_v52, %v455_v59  ;;  %v457_v7 = vmul.f32 0.01, %v329_v55  ;;  %vm394_vm12 = vcmp.ge.f32.partialorder %v330_v56, 0.0  ;;  %v458_v8 = vmul.f32 0.01, %v330_v56 }
  0x1e   : > { %584 = vst [vmem:[%s805_s25 + $0x40] sm:$0xff] %v519_v6  ;;  %v520_v9 = vsel %vm392_vm10, %v328_v54, %v456_v0  ;;  %v331_v10 = vadd.f32 %v775_v4, %v261_v60  ;;  %v262_v11 = vmul.f32 %v767_v3, %v192_v57  ;;  %v263_v12 = vmul.f32 %v765_v2, %v193_v61  ;;  %v206_v63 = vld [vmem:[%s773_s22 + $0xd8] sm:$0xff] }
  0x1f   : > { %585 = vst.msk [vmem:[%s805_s25 + $0x48] sm:$0xff] %vm576_vm0, %v520_v9  ;;  %v521_v15 = vsel %vm393_vm11, %v329_v55, %v457_v7  ;;  %v522_v16 = vsel %vm394_vm12, %v330_v56, %v458_v8  ;;  %v264_v17 = vmul.f32 %v767_v3, %v194_v62  ;;  %v265_v18 = vmul.f32 %v765_v2, %v195_v1  ;;  %v205_v62 = vld [vmem:[%s773_s22 + $0xd0] sm:$0xff]  ;;  %v207_v8 = vld [vmem:[%s773_s22 + $0xe0] sm:$0xff]  ;;  %v208_v9 = vld [vmem:[%s773_s22 + $0xe8] sm:$0xff] }
  0x20   : > { %586 = vst [vmem:[%s805_s25 + $0x50] sm:$0xff] %v521_v15  ;;  %vm395_vm13 = vcmp.ge.f32.partialorder %v331_v10, 0.0  ;;  %v459_v19 = vmul.f32 0.01, %v331_v10  ;;  %v332_v20 = vadd.f32 %v777_v5, %v262_v11  ;;  %v333_v21 = vadd.f32 %v775_v4, %v263_v12 }
  0x21   : > { %587 = vst.msk [vmem:[%s805_s25 + $0x58] sm:$0xff] %vm576_vm0, %v522_v16  ;;  %v334_v22 = vadd.f32 %v777_v5, %v264_v17  ;;  %v335_v23 = vadd.f32 %v775_v4, %v265_v18  ;;  %v266_v24 = vmul.f32 %v767_v3, %v196_v13  ;;  %v267_v25 = vmul.f32 %v765_v2, %v197_v14  ;;  %v209_v17 = vld [vmem:[%s773_s22 + $0xf0] sm:$0xff] }
  0x22   : > { %v523_v26 = vsel %vm395_vm13, %v331_v10, %v459_v19  ;;  %vm396_vm14 = vcmp.ge.f32.partialorder %v332_v20, 0.0  ;;  %v460_v27 = vmul.f32 0.01, %v332_v20  ;;  %vm397_vm15 = vcmp.ge.f32.partialorder %v333_v21, 0.0 }
  0x23   : > { %588 = vst [vmem:[%s805_s25 + $0x60] sm:$0xff] %v523_v26  ;;  %v461_v29 = vmul.f32 0.01, %v333_v21  ;;  %vm398_vm1 = vcmp.ge.f32.partialorder %v334_v22, 0.0  ;;  %v462_v30 = vmul.f32 0.01, %v334_v22  ;;  %v336_v31 = vadd.f32 %v777_v5, %v266_v24 }
  0x24   : > { %v524_v32 = vsel %vm396_vm14, %v332_v20, %v460_v27  ;;  %vm399_vm2 = vcmp.ge.f32.partialorder %v335_v23, 0.0  ;;  %v463_v33 = vmul.f32 0.01, %v335_v23  ;;  %v337_v34 = vadd.f32 %v775_v4, %v267_v25 }
  0x25   : > { %589 = vst.msk [vmem:[%s805_s25 + $0x68] sm:$0xff] %vm576_vm0, %v524_v32  ;;  %v525_v38 = vsel %vm397_vm15, %v333_v21, %v461_v29  ;;  %v526_v39 = vsel %vm398_vm1, %v334_v22, %v462_v30  ;;  %vm400_vm3 = vcmp.ge.f32.partialorder %v336_v31, 0.0  ;;  %v464_v40 = vmul.f32 0.01, %v336_v31  ;;  %v210_v22 = vld [vmem:[%s773_s22 + $0xf8] sm:$0xff] }
  0x26   : > { %590 = vst [vmem:[%s805_s25 + $0x70] sm:$0xff] %v525_v38  ;;  %v527_v43 = vsel %vm399_vm2, %v335_v23, %v463_v33  ;;  %vm401_vm4 = vcmp.ge.f32.partialorder %v337_v34, 0.0  ;;  %v465_v44 = vmul.f32 0.01, %v337_v34  ;;  %v268_v45 = vmul.f32 %v767_v3, %v198_v28  ;;  %v211_v33 = vld [vmem:[%s773_s22 + $0x100] sm:$0xff] }
  0x27   : > { %591 = vst.msk [vmem:[%s805_s25 + $0x78] sm:$0xff] %vm576_vm0, %v526_v39  ;;  %v528_v47 = vsel %vm400_vm3, %v336_v31, %v464_v40  ;;  %v269_v48 = vmul.f32 %v765_v2, %v199_v35  ;;  %v270_v49 = vmul.f32 %v767_v3, %v200_v36  ;;  %v271_v50 = vmul.f32 %v765_v2, %v201_v37 }
  0x28   : > { %592 = vst [vmem:[%s805_s25 + $0x80] sm:$0xff] %v527_v43  ;;  %v529_v51 = vsel %vm401_vm4, %v337_v34, %v465_v44  ;;  %v338_v52 = vadd.f32 %v777_v5, %v268_v45  ;;  %v272_v53 = vmul.f32 %v767_v3, %v202_v41  ;;  %v273_v54 = vmul.f32 %v765_v2, %v203_v42  ;;  %v212_v34 = vld [vmem:[%s773_s22 + $0x108] sm:$0xff]  ;;  %v213_v44 = vld [vmem:[%s773_s22 + $0x110] sm:$0xff]  ;;  %v214_v45 = vld [vmem:[%s773_s22 + $0x118] sm:$0xff] }
  0x29   : > { %593 = vst.msk [vmem:[%s805_s25 + $0x88] sm:$0xff] %vm576_vm0, %v528_v47  ;;  %v339_v55 = vadd.f32 %v775_v4, %v269_v48  ;;  %v340_v56 = vadd.f32 %v777_v5, %v270_v49  ;;  %v341_v57 = vadd.f32 %v775_v4, %v271_v50  ;;  %v274_v58 = vmul.f32 %v767_v3, %v204_v46  ;;  %v215_v46 = vld [vmem:[%s773_s22 + $0x120] sm:$0xff] }
  0x2a   : > { %594 = vst [vmem:[%s805_s25 + $0x90] sm:$0xff] %v529_v51  ;;  %vm402_vm5 = vcmp.ge.f32.partialorder %v338_v52, 0.0  ;;  %v466_v59 = vmul.f32 0.01, %v338_v52  ;;  %v342_v60 = vadd.f32 %v777_v5, %v272_v53  ;;  %v343_v61 = vadd.f32 %v775_v4, %v273_v54 }
  0x2b   : > { %vm403_vm6 = vcmp.ge.f32.partialorder %v339_v55, 0.0  ;;  %v467_v0 = vmul.f32 0.01, %v339_v55  ;;  %vm404_vm7 = vcmp.ge.f32.partialorder %v340_v56, 0.0  ;;  %v468_v1 = vmul.f32 0.01, %v340_v56 }
  0x2c   : > { %v530_v6 = vsel %vm402_vm5, %v338_v52, %v466_v59  ;;  %vm405_vm8 = vcmp.ge.f32.partialorder %v341_v57, 0.0  ;;  %v469_v7 = vmul.f32 0.01, %v341_v57  ;;  %vm406_vm9 = vcmp.ge.f32.partialorder %v342_v60, 0.0  ;;  %v218_v59 = vld [vmem:[%s773_s22 + $0x138] sm:$0xff] }
  0x2d   : > { %595 = vst.msk [vmem:[%s805_s25 + $0x98] sm:$0xff] %vm576_vm0, %v530_v6  ;;  %v531_v10 = vsel %vm403_vm6, %v339_v55, %v467_v0  ;;  %v532_v11 = vsel %vm404_vm7, %v340_v56, %v468_v1  ;;  %v470_v12 = vmul.f32 0.01, %v342_v60  ;;  %vm407_vm10 = vcmp.ge.f32.partialorder %v343_v61, 0.0 }
  0x2e   : > { %596 = vst [vmem:[%s805_s25 + $0xa0] sm:$0xff] %v531_v10  ;;  %v533_v13 = vsel %vm405_vm8, %v341_v57, %v469_v7  ;;  %v471_v14 = vmul.f32 0.01, %v343_v61  ;;  %v344_v15 = vadd.f32 %v777_v5, %v274_v58  ;;  %v275_v16 = vmul.f32 %v765_v2, %v205_v62  ;;  %v216_v57 = vld [vmem:[%s773_s22 + $0x128] sm:$0xff]  ;;  %v217_v58 = vld [vmem:[%s773_s22 + $0x130] sm:$0xff]  ;;  %v219_v10 = vld [vmem:[%s773_s22 + $0x140] sm:$0xff] }
  0x2f   : > { %597 = vst.msk [vmem:[%s805_s25 + $0xa8] sm:$0xff] %vm576_vm0, %v532_v11  ;;  %v534_v18 = vsel %vm406_vm9, %v342_v60, %v470_v12  ;;  %v276_v19 = vmul.f32 %v767_v3, %v206_v63  ;;  %v277_v20 = vmul.f32 %v765_v2, %v207_v8  ;;  %v278_v21 = vmul.f32 %v767_v3, %v208_v9 }
  0x30   : > { %598 = vst [vmem:[%s805_s25 + $0xb0] sm:$0xff] %v533_v13  ;;  %v535_v23 = vsel %vm407_vm10, %v343_v61, %v471_v14  ;;  %vm408_vm11 = vcmp.ge.f32.partialorder %v344_v15, 0.0  ;;  %v472_v24 = vmul.f32 0.01, %v344_v15  ;;  %v345_v25 = vadd.f32 %v775_v4, %v275_v16 }
  0x31   : > { %599 = vst.msk [vmem:[%s805_s25 + $0xb8] sm:$0xff] %vm576_vm0, %v534_v18  ;;  %v346_v26 = vadd.f32 %v777_v5, %v276_v19  ;;  %v347_v27 = vadd.f32 %v775_v4, %v277_v20  ;;  %v348_v28 = vadd.f32 %v777_v5, %v278_v21  ;;  %v279_v29 = vmul.f32 %v765_v2, %v209_v17  ;;  %v220_v20 = vld [vmem:[%s773_s22 + $0x148] sm:$0xff]  ;;  %v221_v21 = vld [vmem:[%s773_s22 + $0x150] sm:$0xff] }
  0x32   : > { %600 = vst [vmem:[%s805_s25 + $0xc0] sm:$0xff] %v535_v23  ;;  %v536_v30 = vsel %vm408_vm11, %v344_v15, %v472_v24  ;;  %vm409_vm12 = vcmp.ge.f32.partialorder %v345_v25, 0.0  ;;  %v473_v31 = vmul.f32 0.01, %v345_v25  ;;  %v280_v32 = vmul.f32 %v767_v3, %v210_v22 }
  0x33   : > { %601 = vst.msk [vmem:[%s805_s25 + $0xc8] sm:$0xff] %vm576_vm0, %v536_v30  ;;  %vm410_vm13 = vcmp.ge.f32.partialorder %v346_v26, 0.0  ;;  %v474_v35 = vmul.f32 0.01, %v346_v26  ;;  %vm411_vm14 = vcmp.ge.f32.partialorder %v347_v27, 0.0  ;;  %vm412_vm15 = vcmp.ge.f32.partialorder %v348_v28, 0.0 }
  0x34   : > { %v537_v36 = vsel %vm409_vm12, %v345_v25, %v473_v31  ;;  %v475_v37 = vmul.f32 0.01, %v347_v27  ;;  %v476_v38 = vmul.f32 0.01, %v348_v28  ;;  %v349_v39 = vadd.f32 %v775_v4, %v279_v29  ;;  %v222_v25 = vld [vmem:[%s773_s22 + $0x158] sm:$0xff] }
  0x35   : > { %602 = vst [vmem:[%s805_s25 + $0xd0] sm:$0xff] %v537_v36  ;;  %v538_v40 = vsel %vm410_vm13, %v346_v26, %v474_v35  ;;  %v350_v41 = vadd.f32 %v777_v5, %v280_v32  ;;  %v281_v42 = vmul.f32 %v765_v2, %v211_v33  ;;  %v282_v43 = vmul.f32 %v767_v3, %v212_v34  ;;  %v224_v33 = vld [vmem:[%s773_s22 + $0x168] sm:$0xff]  ;;  %v225_v34 = vld [vmem:[%s773_s22 + $0x170] sm:$0xff] }
  0x36   : > { %603 = vst.msk [vmem:[%s805_s25 + $0xd8] sm:$0xff] %vm576_vm0, %v538_v40  ;;  %v539_v47 = vsel %vm411_vm14, %v347_v27, %v475_v37  ;;  %v540_v48 = vsel %vm412_vm15, %v348_v28, %v476_v38  ;;  %vm413_vm1 = vcmp.ge.f32.partialorder %v349_v39, 0.0  ;;  %v477_v49 = vmul.f32 0.01, %v349_v39  ;;  %v223_v28 = vld [vmem:[%s773_s22 + $0x160] sm:$0xff] }
  0x37   : > { %604 = vst [vmem:[%s805_s25 + $0xe0] sm:$0xff] %v539_v47  ;;  %vm414_vm2 = vcmp.ge.f32.partialorder %v350_v41, 0.0  ;;  %v478_v50 = vmul.f32 0.01, %v350_v41  ;;  %v351_v51 = vadd.f32 %v775_v4, %v281_v42  ;;  %v352_v52 = vadd.f32 %v777_v5, %v282_v43 }
  0x38   : > { %605 = vst.msk [vmem:[%s805_s25 + $0xe8] sm:$0xff] %vm576_vm0, %v540_v48  ;;  %v541_v53 = vsel %vm413_vm1, %v349_v39, %v477_v49  ;;  %v283_v54 = vmul.f32 %v765_v2, %v213_v44  ;;  %v284_v55 = vmul.f32 %v767_v3, %v214_v45  ;;  %v285_v56 = vmul.f32 %v765_v2, %v215_v46 }
  0x39   : > { %606 = vst [vmem:[%s805_s25 + $0xf0] sm:$0xff] %v541_v53  ;;  %v542_v60 = vsel %vm414_vm2, %v350_v41, %v478_v50  ;;  %vm415_vm3 = vcmp.ge.f32.partialorder %v351_v51, 0.0  ;;  %v479_v61 = vmul.f32 0.01, %v351_v51  ;;  %vm416_vm4 = vcmp.ge.f32.partialorder %v352_v52, 0.0 }
  0x3a   : > { %607 = vst.msk [vmem:[%s805_s25 + $0xf8] sm:$0xff] %vm576_vm0, %v542_v60  ;;  %v480_v62 = vmul.f32 0.01, %v352_v52  ;;  %v353_v63 = vadd.f32 %v775_v4, %v283_v54  ;;  %v354_v0 = vadd.f32 %v777_v5, %v284_v55  ;;  %v355_v1 = vadd.f32 %v775_v4, %v285_v56  ;;  %v227_v55 = vld [vmem:[%s773_s22 + $0x180] sm:$0xff]  ;;  %v228_v56 = vld [vmem:[%s773_s22 + $0x188] sm:$0xff] }
  0x3b   : > { %v543_v6 = vsel %vm415_vm3, %v351_v51, %v479_v61  ;;  %v286_v7 = vmul.f32 %v767_v3, %v216_v57  ;;  %v287_v8 = vmul.f32 %v765_v2, %v217_v58  ;;  %v288_v9 = vmul.f32 %v767_v3, %v218_v59  ;;  %v226_v51 = vld [vmem:[%s773_s22 + $0x178] sm:$0xff]  ;;  %v229_v57 = vld [vmem:[%s773_s22 + $0x190] sm:$0xff] }
  0x3c   : > { %608 = vst [vmem:[%s805_s25 + $0x100] sm:$0xff] %v543_v6  ;;  %v544_v11 = vsel %vm416_vm4, %v352_v52, %v480_v62  ;;  %vm417_vm5 = vcmp.ge.f32.partialorder %v353_v63, 0.0  ;;  %v481_v12 = vmul.f32 0.01, %v353_v63  ;;  %vm418_vm6 = vcmp.ge.f32.partialorder %v354_v0, 0.0  ;;  %v230_v61 = vld [vmem:[%s773_s22 + $0x198] sm:$0xff] }
  0x3d   : > { %609 = vst.msk [vmem:[%s805_s25 + $0x108] sm:$0xff] %vm576_vm0, %v544_v11  ;;  %v482_v13 = vmul.f32 0.01, %v354_v0  ;;  %vm419_vm7 = vcmp.ge.f32.partialorder %v355_v1, 0.0  ;;  %v483_v14 = vmul.f32 0.01, %v355_v1  ;;  %v356_v15 = vadd.f32 %v777_v5, %v286_v7 }
  0x3e   : > { %v545_v16 = vsel %vm417_vm5, %v353_v63, %v481_v12  ;;  %v357_v17 = vadd.f32 %v775_v4, %v287_v8  ;;  %v358_v18 = vadd.f32 %v777_v5, %v288_v9  ;;  %v289_v19 = vmul.f32 %v765_v2, %v219_v10  ;;  %v231_v62 = vld [vmem:[%s773_s22 + $0x1a0] sm:$0xff]  ;;  %v232_v6 = vld [vmem:[%s773_s22 + $0x1a8] sm:$0xff] }
  0x3f   : > { %610 = vst [vmem:[%s805_s25 + $0x110] sm:$0xff] %v545_v16  ;;  %v546_v22 = vsel %vm418_vm6, %v354_v0, %v482_v13  ;;  %v547_v23 = vsel %vm419_vm7, %v355_v1, %v483_v14  ;;  %vm420_vm8 = vcmp.ge.f32.partialorder %v356_v15, 0.0  ;;  %v484_v24 = vmul.f32 0.01, %v356_v15 }
  0x40   : > { %611 = vst.msk [vmem:[%s805_s25 + $0x118] sm:$0xff] %vm576_vm0, %v546_v22  ;;  %vm421_vm9 = vcmp.ge.f32.partialorder %v357_v17, 0.0  ;;  %v485_v26 = vmul.f32 0.01, %v357_v17  ;;  %vm422_vm10 = vcmp.ge.f32.partialorder %v358_v18, 0.0  ;;  %v359_v27 = vadd.f32 %v775_v4, %v289_v19  ;;  %v233_v22 = vld [vmem:[%s773_s22 + $0x1b0] sm:$0xff] }
  0x41   : > { %612 = vst [vmem:[%s805_s25 + $0x120] sm:$0xff] %v547_v23  ;;  %v548_v29 = vsel %vm420_vm8, %v356_v15, %v484_v24  ;;  %v486_v30 = vmul.f32 0.01, %v358_v18  ;;  %v290_v31 = vmul.f32 %v767_v3, %v220_v20  ;;  %v291_v32 = vmul.f32 %v765_v2, %v221_v21  ;;  %v234_v23 = vld [vmem:[%s773_s22 + $0x1b8] sm:$0xff] }
  0x42   : > { %613 = vst.msk [vmem:[%s805_s25 + $0x128] sm:$0xff] %vm576_vm0, %v548_v29  ;;  %v549_v35 = vsel %vm421_vm9, %v357_v17, %v485_v26  ;;  %vm423_vm11 = vcmp.ge.f32.partialorder %v359_v27, 0.0  ;;  %v487_v36 = vmul.f32 0.01, %v359_v27  ;;  %v292_v37 = vmul.f32 %v767_v3, %v222_v25  ;;  %v236_v29 = vld [vmem:[%s773_s22 + $0x1c8] sm:$0xff] }
  0x43   : > { %614 = vst [vmem:[%s805_s25 + $0x130] sm:$0xff] %v549_v35  ;;  %v550_v38 = vsel %vm422_vm10, %v358_v18, %v486_v30  ;;  %v360_v39 = vadd.f32 %v777_v5, %v290_v31  ;;  %v361_v40 = vadd.f32 %v775_v4, %v291_v32  ;;  %v293_v41 = vmul.f32 %v765_v2, %v223_v28  ;;  %v235_v28 = vld [vmem:[%s773_s22 + $0x1c0] sm:$0xff] }
  0x44   : > { %615 = vst.msk [vmem:[%s805_s25 + $0x138] sm:$0xff] %vm576_vm0, %v550_v38  ;;  %v551_v42 = vsel %vm423_vm11, %v359_v27, %v487_v36  ;;  %v362_v43 = vadd.f32 %v777_v5, %v292_v37  ;;  %v294_v44 = vmul.f32 %v767_v3, %v224_v33  ;;  %v295_v45 = vmul.f32 %v765_v2, %v225_v34  ;;  %v237_v37 = vld [vmem:[%s773_s22 + $0x1d0] sm:$0xff] }
  0x45   : > { %616 = vst [vmem:[%s805_s25 + $0x140] sm:$0xff] %v551_v42  ;;  %vm424_vm12 = vcmp.ge.f32.partialorder %v360_v39, 0.0  ;;  %v488_v46 = vmul.f32 0.01, %v360_v39  ;;  %vm425_vm13 = vcmp.ge.f32.partialorder %v361_v40, 0.0  ;;  %v363_v47 = vadd.f32 %v775_v4, %v293_v41  ;;  %v238_v42 = vld [vmem:[%s773_s22 + $0x1d8] sm:$0xff] }
  0x46   : > { %v489_v48 = vmul.f32 0.01, %v361_v40  ;;  %vm426_vm14 = vcmp.ge.f32.partialorder %v362_v43, 0.0  ;;  %v490_v49 = vmul.f32 0.01, %v362_v43  ;;  %v364_v50 = vadd.f32 %v777_v5, %v294_v44 }
  0x47   : > { %v552_v52 = vsel %vm424_vm12, %v360_v39, %v488_v46  ;;  %vm427_vm15 = vcmp.ge.f32.partialorder %v363_v47, 0.0  ;;  %v491_v53 = vmul.f32 0.01, %v363_v47  ;;  %v365_v54 = vadd.f32 %v775_v4, %v295_v45 }
  0x48   : > { %617 = vst.msk [vmem:[%s805_s25 + $0x148] sm:$0xff] %vm576_vm0, %v552_v52  ;;  %v553_v58 = vsel %vm425_vm13, %v361_v40, %v489_v48  ;;  %v554_v59 = vsel %vm426_vm14, %v362_v43, %v490_v49  ;;  %vm428_vm1 = vcmp.ge.f32.partialorder %v364_v50, 0.0  ;;  %v492_v60 = vmul.f32 0.01, %v364_v50 }
  0x49   : > { %618 = vst [vmem:[%s805_s25 + $0x150] sm:$0xff] %v553_v58  ;;  %v555_v63 = vsel %vm427_vm15, %v363_v47, %v491_v53  ;;  %vm429_vm2 = vcmp.ge.f32.partialorder %v365_v54, 0.0  ;;  %v493_v0 = vmul.f32 0.01, %v365_v54  ;;  %v296_v1 = vmul.f32 %v767_v3, %v226_v51  ;;  %v239_v53 = vld [vmem:[%s773_s22 + $0x1e0] sm:$0xff] }
  0x4a   : > { %619 = vst.msk [vmem:[%s805_s25 + $0x158] sm:$0xff] %vm576_vm0, %v554_v59  ;;  %v556_v7 = vsel %vm428_vm1, %v364_v50, %v492_v60  ;;  %v297_v8 = vmul.f32 %v765_v2, %v227_v55  ;;  %v298_v9 = vmul.f32 %v767_v3, %v228_v56  ;;  %v299_v10 = vmul.f32 %v765_v2, %v229_v57 }
  0x4b   : > { %620 = vst [vmem:[%s805_s25 + $0x160] sm:$0xff] %v555_v63  ;;  %v557_v11 = vsel %vm429_vm2, %v365_v54, %v493_v0  ;;  %v366_v12 = vadd.f32 %v777_v5, %v296_v1  ;;  %v300_v13 = vmul.f32 %v767_v3, %v230_v61  ;;  %v301_v14 = vmul.f32 %v765_v2, %v231_v62  ;;  %v240_v54 = vld [vmem:[%s773_s22 + $0x1e8] sm:$0xff]  ;;  %v241_v0 = vld [vmem:[%s773_s22 + $0x1f0] sm:$0xff]  ;;  %v242_v1 = vld [vmem:[%s773_s22 + $0x1f8] sm:$0xff] }
  0x4c   : > { %621 = vst.msk [vmem:[%s805_s25 + $0x168] sm:$0xff] %vm576_vm0, %v556_v7  ;;  %v367_v15 = vadd.f32 %v775_v4, %v297_v8  ;;  %v368_v16 = vadd.f32 %v777_v5, %v298_v9  ;;  %v369_v17 = vadd.f32 %v775_v4, %v299_v10  ;;  %v302_v18 = vmul.f32 %v767_v3, %v232_v6 }
  0x4d   : > { %622 = vst [vmem:[%s805_s25 + $0x170] sm:$0xff] %v557_v11  ;;  %vm430_vm3 = vcmp.ge.f32.partialorder %v366_v12, 0.0  ;;  %v494_v19 = vmul.f32 0.01, %v366_v12  ;;  %v370_v20 = vadd.f32 %v777_v5, %v300_v13  ;;  %v371_v21 = vadd.f32 %v775_v4, %v301_v14 }
  0x4e   : > { %vm431_vm4 = vcmp.ge.f32.partialorder %v367_v15, 0.0  ;;  %v495_v24 = vmul.f32 0.01, %v367_v15  ;;  %vm432_vm5 = vcmp.ge.f32.partialorder %v368_v16, 0.0  ;;  %v496_v25 = vmul.f32 0.01, %v368_v16 }
  0x4f   : > { %v558_v26 = vsel %vm430_vm3, %v366_v12, %v494_v19  ;;  %vm433_vm6 = vcmp.ge.f32.partialorder %v369_v17, 0.0  ;;  %v497_v27 = vmul.f32 0.01, %v369_v17  ;;  %vm434_vm7 = vcmp.ge.f32.partialorder %v370_v20, 0.0 }
  0x50   : > { %623 = vst.msk [vmem:[%s805_s25 + $0x178] sm:$0xff] %vm576_vm0, %v558_v26  ;;  %v559_v30 = vsel %vm431_vm4, %v367_v15, %v495_v24  ;;  %v560_v31 = vsel %vm432_vm5, %v368_v16, %v496_v25  ;;  %v498_v32 = vmul.f32 0.01, %v370_v20  ;;  %vm435_vm8 = vcmp.ge.f32.partialorder %v371_v21, 0.0 }
  0x51   : > { %624 = vst [vmem:[%s805_s25 + $0x180] sm:$0xff] %v559_v30  ;;  %v561_v33 = vsel %vm433_vm6, %v369_v17, %v497_v27  ;;  %v499_v34 = vmul.f32 0.01, %v371_v21  ;;  %v372_v35 = vadd.f32 %v777_v5, %v302_v18  ;;  %v303_v36 = vmul.f32 %v765_v2, %v233_v22 }
  0x52   : > { %625 = vst.msk [vmem:[%s805_s25 + $0x188] sm:$0xff] %vm576_vm0, %v560_v31  ;;  %v562_v38 = vsel %vm434_vm7, %v370_v20, %v498_v32  ;;  %v304_v39 = vmul.f32 %v767_v3, %v234_v23  ;;  %v305_v40 = vmul.f32 %v765_v2, %v235_v28  ;;  %v306_v41 = vmul.f32 %v767_v3, %v236_v29 }
  0x53   : > { %626 = vst [vmem:[%s805_s25 + $0x190] sm:$0xff] %v561_v33  ;;  %v563_v43 = vsel %vm435_vm8, %v371_v21, %v499_v34  ;;  %vm436_vm9 = vcmp.ge.f32.partialorder %v372_v35, 0.0  ;;  %v500_v44 = vmul.f32 0.01, %v372_v35  ;;  %v373_v45 = vadd.f32 %v775_v4, %v303_v36 }
  0x54   : > { %627 = vst.msk [vmem:[%s805_s25 + $0x198] sm:$0xff] %vm576_vm0, %v562_v38  ;;  %v374_v46 = vadd.f32 %v777_v5, %v304_v39  ;;  %v375_v47 = vadd.f32 %v775_v4, %v305_v40  ;;  %v376_v48 = vadd.f32 %v777_v5, %v306_v41  ;;  %v307_v49 = vmul.f32 %v765_v2, %v237_v37 }
  0x55   : > { %628 = vst [vmem:[%s805_s25 + $0x1a0] sm:$0xff] %v563_v43  ;;  %v564_v50 = vsel %vm436_vm9, %v372_v35, %v500_v44  ;;  %vm437_vm10 = vcmp.ge.f32.partialorder %v373_v45, 0.0  ;;  %v501_v51 = vmul.f32 0.01, %v373_v45  ;;  %v308_v52 = vmul.f32 %v767_v3, %v238_v42 }
  0x56   : > { %629 = vst.msk [vmem:[%s805_s25 + $0x1a8] sm:$0xff] %vm576_vm0, %v564_v50  ;;  %vm438_vm11 = vcmp.ge.f32.partialorder %v374_v46, 0.0  ;;  %v502_v55 = vmul.f32 0.01, %v374_v46  ;;  %vm439_vm12 = vcmp.ge.f32.partialorder %v375_v47, 0.0  ;;  %vm440_vm13 = vcmp.ge.f32.partialorder %v376_v48, 0.0 }
  0x57   : > { %v565_v56 = vsel %vm437_vm10, %v373_v45, %v501_v51  ;;  %v503_v57 = vmul.f32 0.01, %v375_v47  ;;  %v504_v58 = vmul.f32 0.01, %v376_v48  ;;  %v377_v59 = vadd.f32 %v775_v4, %v307_v49 }
  0x58   : > { %630 = vst [vmem:[%s805_s25 + $0x1b0] sm:$0xff] %v565_v56  ;;  %v566_v60 = vsel %vm438_vm11, %v374_v46, %v502_v55  ;;  %v378_v61 = vadd.f32 %v777_v5, %v308_v52  ;;  %v309_v62 = vmul.f32 %v765_v2, %v239_v53  ;;  %v310_v63 = vmul.f32 %v767_v3, %v240_v54 }
  0x59   : > { %631 = vst.msk [vmem:[%s805_s25 + $0x1b8] sm:$0xff] %vm576_vm0, %v566_v60  ;;  %v567_v6 = vsel %vm439_vm12, %v375_v47, %v503_v57  ;;  %v568_v7 = vsel %vm440_vm13, %v376_v48, %v504_v58  ;;  %vm441_vm14 = vcmp.ge.f32.partialorder %v377_v59, 0.0  ;;  %v505_v8 = vmul.f32 0.01, %v377_v59 }
  0x5a   : > { %632 = vst [vmem:[%s805_s25 + $0x1c0] sm:$0xff] %v567_v6  ;;  %vm442_vm15 = vcmp.ge.f32.partialorder %v378_v61, 0.0  ;;  %v506_v9 = vmul.f32 0.01, %v378_v61  ;;  %v379_v10 = vadd.f32 %v775_v4, %v309_v62  ;;  %v380_v11 = vadd.f32 %v777_v5, %v310_v63 }
  0x5b   : > { %633 = vst.msk [vmem:[%s805_s25 + $0x1c8] sm:$0xff] %vm576_vm0, %v568_v7  ;;  %v569_v12 = vsel %vm441_vm14, %v377_v59, %v505_v8  ;;  %v311_v13 = vmul.f32 %v765_v2, %v241_v0  ;;  %v312_v14 = vmul.f32 %v767_v3, %v242_v1 }
  0x5c   : > { %634 = vst [vmem:[%s805_s25 + $0x1d0] sm:$0xff] %v569_v12  ;;  %v570_v15 = vsel %vm442_vm15, %v378_v61, %v506_v9  ;;  %vm443_vm1 = vcmp.ge.f32.partialorder %v379_v10, 0.0  ;;  %v507_v16 = vmul.f32 0.01, %v379_v10  ;;  %vm444_vm2 = vcmp.ge.f32.partialorder %v380_v11, 0.0 }
  0x5d   : > { %635 = vst.msk [vmem:[%s805_s25 + $0x1d8] sm:$0xff] %vm576_vm0, %v570_v15  ;;  %v508_v17 = vmul.f32 0.01, %v380_v11  ;;  %v381_v18 = vadd.f32 %v775_v4, %v311_v13  ;;  %v382_v19 = vadd.f32 %v777_v5, %v312_v14 }
  0x5e   : > { %v571_v20 = vsel %vm443_vm1, %v379_v10, %v507_v16 }
  0x5f   : > { %636 = vst [vmem:[%s805_s25 + $0x1e0] sm:$0xff] %v571_v20  ;;  %v572_v2 = vsel %vm444_vm2, %v380_v11, %v508_v17  ;;  %vm445_vm3 = vcmp.ge.f32.partialorder %v381_v18, 0.0  ;;  %v509_v3 = vmul.f32 0.01, %v381_v18  ;;  %vm446_vm4 = vcmp.ge.f32.partialorder %v382_v19, 0.0 }
  0x60   : > { %637 = vst.msk [vmem:[%s805_s25 + $0x1e8] sm:$0xff] %vm576_vm0, %v572_v2  ;;  %v510_v21 = vmul.f32 0.01, %v382_v19 }
  0x61   : > { %v573_v22 = vsel %vm445_vm3, %v381_v18, %v509_v3 }
  0x62   : > { %638 = vst [vmem:[%s805_s25 + $0x1f0] sm:$0xff] %v573_v22  ;;  %v574_v23 = vsel %vm446_vm4, %v382_v19, %v510_v21 }
  0x63   : > { %639 = vst.msk [vmem:[%s805_s25 + $0x1f8] sm:$0xff] %vm576_vm0, %v574_v23 }
  0x64 PF: > { %s13_s12 = sadd.s32 1, %s727_s12  }
  0x65   : > { %p10_p4 = scmp.ge.s32.totalorder %s13_s12, 4  }
  0x67   :  { %12 = sbr.rel (!%p10_p4) target bundleno = 1 (0x1), region = 62 }

// kernel: magic_module_forward.18
= control target key start
LH: loop header
LB: loop body
LE: loop exit
PB: predicated region body
PF: predicated region fallthrough
CT: control target
= control target key end

     0   :  { %s1686_s12 = smov 0   ;;  %s1688_s13 = smov 0   ;;  %s2354_s0 = inlined_call_operand.vmem [shape: bf16[512,72], index: 0, kind: input, shape index: {}]   ;;  %s2355_s1 = inlined_call_operand.vmem [shape: bf16[72,160], index: 1, kind: input, shape index: {}]   ;;  %s2356_s2 = inlined_call_operand.vmem [shape: f32[512,160], index: 2, kind: output, shape index: {0}]   ;;  %s2357_s3 = inlined_call_operand.vmem [shape: f32[2,2,160], index: 3, kind: output, shape index: {1}]  }
   0x1   :  { %s1690_s14 = smov 0  }
   0x2 LB: > { %s26_s15 = sadd.s32 1, %s1659_s13  ;;  %p1442_p0 = scmp.ge.s32.totalorder %s1663_s14, 1  ;;  %s1663_s14 = sphi %s1690_s14, %s14_s14   ;;  %s1659_s13 = sphi %s1688_s13, %s2359_s13   ;;  %s1655_s12 = sphi %s1686_s12, %s2358_s12  }
   0x3   : > { %p28_p1 = scmp.ge.s32.totalorder %s26_s15, 2  ;;  %p170_p2 = scmp.lt.s32.totalorder %s1663_s14, 3 }
   0x5   : > { %s2361_s15 = smov (%p28_p1, %s26_s15), 0  ;;  %p171_p3 = pnand %p1442_p0, %p170_p2 }
   0x6   : > { %s1443_s30 = sshll.u32 (!%p171_p3), %s1655_s12, 5  ;;  %p232_p5 = scmp.lt.s32.totalorder (!%p171_p3), %s1655_s12, 1 }
   0x7   : > { %174 = sbr.rel (%p171_p3) target bundleno = 348 (0x15c), region = 28  ;;  %p210_p4 = scmp.lt.s32.totalorder (!%p171_p3), %s1443_s30, 63 }
   0xc   : > { %v411_v0 = vld [vmem:[%s2355_s1 + $0x40] sm:$0xff]  ;;  %vm586_vm0 = vcmask 1043456   ;;  %v1540_v3 = vld [vmem:[%s2355_s1 + $0x30] sm:$0xf]  ;;  %v1605_v6 = vld [vmem:[%s2355_s1 + $0x34] sm:$0xf0] }
   0xd   : > { %v517_v1 = vunpack.c.l.b16 %v411_v0  ;;  %v518_v2 = vunpack.c.h.b16 %v411_v0  ;;  %v1604_v7 = vld [vmem:[%s2355_s1 + $0x34] sm:$0xf]  ;;  %v1542_v8 = vld [vmem:[%s2355_s1 + $0x38] sm:$0xf0]  ;;  %v1541_v11 = vor.u32 %v1605_v6, %v1540_v3  ;;  %v1532_v13 = vld [vmem:[%s2355_s1 + $0x20] sm:$0xf] }
   0xe   : > { %v1545_v12 = vor.u32 %v1604_v7, %v1542_v8  ;;  %v1603_v14 = vld [vmem:[%s2355_s1 + $0x24] sm:$0xf0]  ;;  %v1602_v15 = vld [vmem:[%s2355_s1 + $0x24] sm:$0xf]  ;;  %v1534_v16 = vld [vmem:[%s2355_s1 + $0x28] sm:$0xf0] }
   0xf   : > { %v527_v4 = vpack.c.b16 %v517_v1, %v517_v1  ;;  %v528_v5 = vpack.c.b16 %v518_v2, %v518_v2  ;;  %v1533_v17 = vor.u32 %v1603_v14, %v1532_v13  ;;  %v1537_v18 = vor.u32 %v1602_v15, %v1534_v16  ;;  %v1524_v19 = vld [vmem:[%s2355_s1 + $0x10] sm:$0xf]  ;;  %v1601_v20 = vld [vmem:[%s2355_s1 + $0x14] sm:$0xf0]  ;;  %v1600_v21 = vld [vmem:[%s2355_s1 + $0x14] sm:$0xf] }
  0x10   : > { %v1526_v22 = vld [vmem:[%s2355_s1 + $0x18] sm:$0xf0]  ;;  %s2363_s30 = smov (!%p210_p4, %s1443_s30), 63  ;;  %v1525_v23 = vor.u32 %v1601_v20, %v1524_v19  ;;  %v1516_v25 = vld [vmem:[%s2355_s1] sm:$0xf]  ;;  %vm537_vm1 = vcmask 588800  }
  0x11   : > { %v588_v9 = vsel %vm586_vm0, %v527_v4, 0  ;;  %v591_v10 = vsel %vm586_vm0, %v528_v5, 0  ;;  %v1529_v24 = vor.u32 %v1600_v21, %v1526_v22  ;;  %v1599_v26 = vld [vmem:[%s2355_s1 + $0x4] sm:$0xf0]  ;;  %v1598_v27 = vld [vmem:[%s2355_s1 + $0x4] sm:$0xf] }
  0x12   : > { %596 = vmatpush.bf16.msra.mxu0 %v588_v9  ;;  %685 = vmatpush.bf16.msra.mxu1 %v591_v10  ;;  %v1518_v28 = vld [vmem:[%s2355_s1 + $0x8] sm:$0xf0]  ;;  %s1444_s28 = sshll.u32 %s2363_s30, 2  ;;  %v1517_v29 = vor.u32 %v1599_v26, %v1516_v25  ;;  %vm243_vm2 = vcmask 261120   ;;  %v1665_v43 = vmov 0.0   ;;  %s1580_s6 = sshll.u32 %s2363_s30, 4 }
  0x13   : > { %1611 = vmatpush.bf16.msra.mxu3 %v591_v10  ;;  %1606 = vmatpush.bf16.msra.mxu2 %v588_v9  ;;  %v1521_v30 = vor.u32 %v1598_v27, %v1518_v28  ;;  %s1764_s5 = scalar_lea.vmem %s2354_s0, %s1444_s28  ;;  %244 = vst.msk [vmem:[#allocation2 + $0x8] sm:$0xff] %vm243_vm2, %v1665_v43  ;;  %s1850_s9 = scalar_lea.vmem %s2356_s2, %s1580_s6  ;;  %vm1307_vm3 = vcmask 1040384   ;;  %vm1313_vm4 = vcmask 1041408   ;;  %vm1316_vm5 = vcmask 257026  }
  0x14   : > { %v1582_v31 = vld [vmem:[%s1764_s5] sm:$0xff]  ;;  %v1583_v33 = vld [vmem:[%s1764_s5 + $0x8] sm:$0xff]  ;;  %v1584_v35 = vld [vmem:[%s1764_s5 + $0x10] sm:$0xff]  ;;  %246 = vst.msk [vmem:[#allocation2 + $0x18] sm:$0xff] %vm243_vm2, %v1665_v43  ;;  %s2365_s12 = smov (!%p232_p5, %s1655_s12), 1 }
  0x15   : > { %v1590_v32 = vld [vmem:[%s1764_s5 + $0x40] sm:$0xff]  ;;  %v1591_v34 = vld [vmem:[%s1764_s5 + $0x48] sm:$0xff]  ;;  %v1592_v36 = vld [vmem:[%s1764_s5 + $0x50] sm:$0xff]  ;;  %248 = vst.msk [vmem:[#allocation2 + $0x28] sm:$0xff] %vm243_vm2, %v1665_v43  ;;  %s1581_s30 = sshll.u32 %s2365_s12, 2 }
  0x16   : > { %597 = vmatpush.bf16.msra.mxu0 %v1541_v11  ;;  %686 = vmatpush.bf16.msra.mxu1 %v1545_v12  ;;  %v1585_v37 = vld [vmem:[%s1764_s5 + $0x18] sm:$0xff]  ;;  %v1586_v39 = vld [vmem:[%s1764_s5 + $0x20] sm:$0xff]  ;;  %v1587_v41 = vld [vmem:[%s1764_s5 + $0x28] sm:$0xff]  ;;  %250 = vst.msk [vmem:[#allocation2 + $0x38] sm:$0xff] %vm243_vm2, %v1665_v43  ;;  %s236_s16 = scalar_lea.vmem %s2357_s3, %s1581_s30 }
  0x17   : > { %1612 = vmatpush.bf16.msra.mxu3 %v1545_v12  ;;  %1607 = vmatpush.bf16.msra.mxu2 %v1541_v11  ;;  %v1593_v38 = vld [vmem:[%s1764_s5 + $0x58] sm:$0xff]  ;;  %v1594_v40 = vld [vmem:[%s1764_s5 + $0x60] sm:$0xff]  ;;  %v1595_v42 = vld [vmem:[%s1764_s5 + $0x68] sm:$0xff]  ;;  %252 = vst.msk [vmem:[#allocation2 + $0x48] sm:$0xff] %vm243_vm2, %v1665_v43 }
  0x18   : > { %254 = vst.msk [vmem:[#allocation2 + $0x58] sm:$0xff] %vm243_vm2, %v1665_v43  ;;  %v1588_v44 = vld [vmem:[%s1764_s5 + $0x30] sm:$0xff]  ;;  %v1589_v46 = vld [vmem:[%s1764_s5 + $0x38] sm:$0xff]  ;;  %vm1317_vm6 = vmor %vm1316_vm5, %vm1313_vm4 }
  0x19   : > { %256 = vst.msk [vmem:[#allocation2 + $0x68] sm:$0xff] %vm243_vm2, %v1665_v43  ;;  %v1596_v45 = vld [vmem:[%s1764_s5 + $0x70] sm:$0xff]  ;;  %v1597_v47 = vld [vmem:[%s1764_s5 + $0x78] sm:$0xff] }
  0x1a   : > { %598 = vmatpush.bf16.msra.mxu0 %v1533_v17  ;;  %687 = vmatpush.bf16.msra.mxu1 %v1537_v18  ;;  %258 = vst.msk [vmem:[#allocation2 + $0x78] sm:$0xff] %vm243_vm2, %v1665_v43  ;;  %v308_v48 = vld [vmem:[#allocation2 + $0x8] sm:$0xff] }
  0x1b   : > { %1613 = vmatpush.bf16.msra.mxu3 %v1537_v18  ;;  %1608 = vmatpush.bf16.msra.mxu2 %v1533_v17  ;;  %260 = vst.msk [vmem:[#allocation2 + $0x88] sm:$0xff] %vm243_vm2, %v1665_v43  ;;  %v310_v53 = vld [vmem:[#allocation2 + $0x18] sm:$0xff] }
  0x1c   : > { %262 = vst.msk [vmem:[#allocation2 + $0x98] sm:$0xff] %vm243_vm2, %v1665_v43  ;;  %v312_v1 = vld [vmem:[#allocation2 + $0x28] sm:$0xff] }
  0x1d   : > { %264 = vst.msk [vmem:[#allocation2 + $0xa8] sm:$0xff] %vm243_vm2, %v1665_v43  ;;  %v314_v20 = vld [vmem:[#allocation2 + $0x38] sm:$0xff] }
  0x1e   : > { %599 = vmatpush.bf16.msra.mxu0 %v1525_v23  ;;  %688 = vmatpush.bf16.msra.mxu1 %v1529_v24  ;;  %266 = vst.msk [vmem:[#allocation2 + $0xb8] sm:$0xff] %vm243_vm2, %v1665_v43 }
  0x1f   : > { %1614 = vmatpush.bf16.msra.mxu3 %v1529_v24  ;;  %1609 = vmatpush.bf16.msra.mxu2 %v1525_v23  ;;  %268 = vst.msk [vmem:[#allocation2 + $0xc8] sm:$0xff] %vm243_vm2, %v1665_v43 }
  0x20   : > { %270 = vst.msk [vmem:[#allocation2 + $0xd8] sm:$0xff] %vm243_vm2, %v1665_v43 }
  0x21   : > { %272 = vst.msk [vmem:[#allocation2 + $0xe8] sm:$0xff] %vm243_vm2, %v1665_v43 }
  0x22   : > { %600 = vmatpush.bf16.msra.mxu0 %v1517_v29  ;;  %689 = vmatpush.bf16.msra.mxu1 %v1521_v30  ;;  %274 = vst.msk [vmem:[#allocation2 + $0xf8] sm:$0xff] %vm243_vm2, %v1665_v43 }
  0x23   : > { %1615 = vmatpush.bf16.msra.mxu3 %v1521_v30  ;;  %1610 = vmatpush.bf16.msra.mxu2 %v1517_v29  ;;  %276 = vst.msk [vmem:[#allocation2 + $0x108] sm:$0xff] %vm243_vm2, %v1665_v43 }
  0x24   : > { %278 = vst.msk [vmem:[#allocation2 + $0x118] sm:$0xff] %vm243_vm2, %v1665_v43 }
  0x25   : > { %1546 = vmatmul.msk.bf16.vlgmr.msra.gmra.mxu0 %vm537_vm1, %v1582_v31  ;;  %1562 = vmatmul.msk.bf16.vlgmr.msra.gmra.mxu1 %vm537_vm1, %v1582_v31  ;;  %280 = vst.msk [vmem:[#allocation2 + $0x128] sm:$0xff] %vm243_vm2, %v1665_v43 }
  0x26   : > { %1570 = vmatmul.msk.bf16.vlgmr.msra.gmra.mxu3 %vm537_vm1, %v1590_v32  ;;  %1554 = vmatmul.msk.bf16.vlgmr.msra.gmra.mxu2 %vm537_vm1, %v1590_v32  ;;  %282 = vst.msk [vmem:[#allocation2 + $0x138] sm:$0xff] %vm243_vm2, %v1665_v43 }
  0x27   : > { %284 = vst.msk [vmem:[#allocation2 + $0x148] sm:$0xff] %vm243_vm2, %v1665_v43 }
  0x28   : > { %286 = vst.msk [vmem:[#allocation2 + $0x158] sm:$0xff] %vm243_vm2, %v1665_v43 }
  0x29   : > { %288 = vst.msk [vmem:[#allocation2 + $0x168] sm:$0xff] %vm243_vm2, %v1665_v43 }
  0x2a   : > { %290 = vst.msk [vmem:[#allocation2 + $0x178] sm:$0xff] %vm243_vm2, %v1665_v43  ;;  %v340_v52 = vld [vmem:[#allocation2 + $0x108] sm:$0xff] }
  0x2b   : > { %292 = vst.msk [vmem:[#allocation2 + $0x188] sm:$0xff] %vm243_vm2, %v1665_v43  ;;  %v342_v6 = vld [vmem:[#allocation2 + $0x118] sm:$0xff] }
  0x2c   : > { %294 = vst.msk [vmem:[#allocation2 + $0x198] sm:$0xff] %vm243_vm2, %v1665_v43  ;;  %v344_v15 = vld [vmem:[#allocation2 + $0x128] sm:$0xff] }
  0x2d   : > { %296 = vst.msk [vmem:[#allocation2 + $0x1a8] sm:$0xff] %vm243_vm2, %v1665_v43 }
  0x2e   : > { %298 = vst.msk [vmem:[#allocation2 + $0x1b8] sm:$0xff] %vm243_vm2, %v1665_v43 }
  0x2f   : > { %300 = vst.msk [vmem:[#allocation2 + $0x1c8] sm:$0xff] %vm243_vm2, %v1665_v43 }
  0x30   : > { %302 = vst.msk [vmem:[#allocation2 + $0x1d8] sm:$0xff] %vm243_vm2, %v1665_v43 }
  0x31   : > { %304 = vst.msk [vmem:[#allocation2 + $0x1e8] sm:$0xff] %vm243_vm2, %v1665_v43 }
  0x32   : > { %306 = vst.msk [vmem:[#allocation2 + $0x1f8] sm:$0xff] %vm243_vm2, %v1665_v43 }
  0x35   : > { %1547 = vmatmul.msk.bf16.gmra.mxu0 %vm537_vm1, %v1583_v33  ;;  %1563 = vmatmul.msk.bf16.gmra.mxu1 %vm537_vm1, %v1583_v33 }
  0x36   : > { %1571 = vmatmul.msk.bf16.gmra.mxu3 %vm537_vm1, %v1591_v34  ;;  %1555 = vmatmul.msk.bf16.gmra.mxu2 %vm537_vm1, %v1591_v34 }
  0x45   : > { %1548 = vmatmul.msk.bf16.gmra.mxu0 %vm537_vm1, %v1584_v35  ;;  %1564 = vmatmul.msk.bf16.gmra.mxu1 %vm537_vm1, %v1584_v35 }
  0x46   : > { %1572 = vmatmul.msk.bf16.gmra.mxu3 %vm537_vm1, %v1592_v36  ;;  %1556 = vmatmul.msk.bf16.gmra.mxu2 %vm537_vm1, %v1592_v36 }
  0x55   : > { %1549 = vmatmul.msk.bf16.gmra.mxu0 %vm537_vm1, %v1585_v37  ;;  %1565 = vmatmul.msk.bf16.gmra.mxu1 %vm537_vm1, %v1585_v37  ;;  %v316_v37 = vld [vmem:[#allocation2 + $0x48] sm:$0xff] }
  0x56   : > { %1573 = vmatmul.msk.bf16.gmra.mxu3 %vm537_vm1, %v1593_v38  ;;  %1557 = vmatmul.msk.bf16.gmra.mxu2 %vm537_vm1, %v1593_v38 }
  0x65   : > { %1550 = vmatmul.msk.bf16.gmra.mxu0 %vm537_vm1, %v1586_v39  ;;  %1566 = vmatmul.msk.bf16.gmra.mxu1 %vm537_vm1, %v1586_v39 }
  0x66   : > { %1574 = vmatmul.msk.bf16.gmra.mxu3 %vm537_vm1, %v1594_v40  ;;  %1558 = vmatmul.msk.bf16.gmra.mxu2 %vm537_vm1, %v1594_v40 }
  0x75   : > { %1551 = vmatmul.msk.bf16.gmra.mxu0 %vm537_vm1, %v1587_v41  ;;  %1567 = vmatmul.msk.bf16.gmra.mxu1 %vm537_vm1, %v1587_v41 }
  0x76   : > { %1575 = vmatmul.msk.bf16.gmra.mxu3 %vm537_vm1, %v1595_v42  ;;  %1559 = vmatmul.msk.bf16.gmra.mxu2 %vm537_vm1, %v1595_v42 }
  0x85   : > { %1552 = vmatmul.msk.bf16.gmra.mxu0 %vm537_vm1, %v1588_v44  ;;  %1568 = vmatmul.msk.bf16.gmra.mxu1 %vm537_vm1, %v1588_v44 }
  0x86   : > { %1576 = vmatmul.msk.bf16.gmra.mxu3 %vm537_vm1, %v1596_v45  ;;  %1560 = vmatmul.msk.bf16.gmra.mxu2 %vm537_vm1, %v1596_v45  ;;  %v346_v45 = vld [vmem:[#allocation2 + $0x138] sm:$0xff] }
  0x95   : > { %1553 = vmatmul.msk.bf16.gmra.mxu0 %vm537_vm1, %v1589_v46  ;;  %1569 = vmatmul.msk.bf16.gmra.mxu1 %vm537_vm1, %v1589_v46 }
  0x96   : > { %1577 = vmatmul.msk.bf16.gmra.mxu3 %vm537_vm1, %v1597_v47  ;;  %1561 = vmatmul.msk.bf16.gmra.mxu2 %vm537_vm1, %v1597_v47 }
  0xa2   : > { %v602_v49 = vpop.f32.mrf.mxu0  ;;  %v691_v50 = vpop.f32.mrf.mxu1 }
  0xa3   : > { %v772_v51 = vadd.f32 %v691_v50, %v308_v48  ;;  %967 = vst [vmem:[%s1850_s9] sm:$0xff] %v602_v49  ;;  %v1137_v59 = vmul.f32 %v602_v49, %v602_v49 }
  0xa5   : > { %837 = vst.msk [vmem:[#allocation2 + $0x8] sm:$0xff] %vm243_vm2, %v772_v51 }
  0xa9   : > { %v731_v54 = vpop.f32.mrf.mxu3  ;;  %v1854_v55 = vpop.f32.mrf.mxu2 }
  0xaa   : > { %v604_v56 = vpop.f32.mrf.mxu0  ;;  %v693_v57 = vpop.f32.mrf.mxu1  ;;  %v804_v58 = vadd.f32 %v731_v54, %v340_v52  ;;  %999 = vst [vmem:[%s1850_s9 + $0x100] sm:$0xff] %v1854_v55 }
  0xab   : > { %v774_v60 = vadd.f32 %v693_v57, %v310_v53  ;;  %v1031_v61 = vadd.f32 %v604_v56, %v602_v49  ;;  %v1139_v62 = vmul.f32 %v604_v56, %v604_v56  ;;  %969 = vst [vmem:[%s1850_s9 + $0x10] sm:$0xff] %v604_v56  ;;  %v348_v53 = vld [vmem:[#allocation2 + $0x148] sm:$0xff] }
  0xac   : > { %869 = vst.msk [vmem:[#allocation2 + $0x108] sm:$0xff] %vm243_vm2, %v804_v58  ;;  %v904_v63 = vld [vmem:[#allocation2 + $0x8] sm:$0xff]  ;;  %v318_v58 = vld [vmem:[#allocation2 + $0x58] sm:$0xff] }
  0xad   : > { %968 = vst.msk [vmem:[%s1850_s9 + $0x8] sm:$0xff] %vm243_vm2, %v904_v63  ;;  %v1201_v0 = vadd.f32 %v1139_v62, %v1137_v59  ;;  %v1138_v12 = vmul.f32 %v904_v63, %v904_v63  ;;  %v1068_v16 = vsel %vm243_vm2, %v904_v63, 0.0 }
  0xae   : > { %839 = vst.msk [vmem:[#allocation2 + $0x18] sm:$0xff] %vm243_vm2, %v774_v60 }
  0xaf   : > { %v1238_v23 = vsel %vm243_vm2, %v1138_v12, 0.0  ;;  %v320_v12 = vld [vmem:[#allocation2 + $0x68] sm:$0xff] }
  0xb1   : > { %v733_v2 = vpop.f32.mrf.mxu3  ;;  %v1861_v3 = vpop.f32.mrf.mxu2 }
  0xb2   : > { %v607_v4 = vpop.f32.mrf.mxu0  ;;  %v696_v5 = vpop.f32.mrf.mxu1  ;;  %v806_v11 = vadd.f32 %v733_v2, %v342_v6  ;;  %1001 = vst [vmem:[%s1850_s9 + $0x110] sm:$0xff] %v1861_v3 }
  0xb3   : > { %v776_v7 = vadd.f32 %v696_v5, %v312_v1  ;;  %v1865_v8 = vld [vmem:[#allocation2 + $0x108] sm:$0xff]  ;;  %v1032_v9 = vadd.f32 %v1031_v61, %v607_v4  ;;  %v1141_v10 = vmul.f32 %v607_v4, %v607_v4  ;;  %971 = vst [vmem:[%s1850_s9 + $0x20] sm:$0xff] %v607_v4 }
  0xb4   : > { %1000 = vst.msk [vmem:[%s1850_s9 + $0x108] sm:$0xff] %vm243_vm2, %v1865_v8 }
  0xb5   : > { %v906_v13 = vld [vmem:[#allocation2 + $0x18] sm:$0xff]  ;;  %v1202_v14 = vadd.f32 %v1201_v0, %v1141_v10  ;;  %841 = vst.msk [vmem:[#allocation2 + $0x28] sm:$0xff] %vm243_vm2, %v776_v7 }
  0xb6   : > { %970 = vst.msk [vmem:[%s1850_s9 + $0x18] sm:$0xff] %vm243_vm2, %v906_v13  ;;  %v1069_v17 = vsel %vm243_vm2, %v906_v13, 0.0  ;;  %v1140_v18 = vmul.f32 %v906_v13, %v906_v13 }
  0xb7   : > { %v1070_v19 = vadd.f32 %v1069_v17, %v1068_v16  ;;  %871 = vst.msk [vmem:[#allocation2 + $0x118] sm:$0xff] %vm243_vm2, %v806_v11 }
  0xb8   : > { %v1239_v24 = vsel %vm243_vm2, %v1140_v18, 0.0 }
  0xb9   : > { %v736_v21 = vpop.f32.mrf.mxu3  ;;  %v1877_v22 = vpop.f32.mrf.mxu2  ;;  %v1240_v28 = vadd.f32 %v1239_v24, %v1238_v23 }
  0xba   : > { %v609_v25 = vpop.f32.mrf.mxu0  ;;  %v698_v26 = vpop.f32.mrf.mxu1  ;;  %v808_v27 = vadd.f32 %v736_v21, %v344_v15  ;;  %1003 = vst [vmem:[%s1850_s9 + $0x120] sm:$0xff] %v1877_v22 }
  0xbb   : > { %v778_v29 = vadd.f32 %v698_v26, %v314_v20  ;;  %v1033_v30 = vadd.f32 %v1032_v9, %v609_v25  ;;  %v1143_v31 = vmul.f32 %v609_v25, %v609_v25  ;;  %973 = vst [vmem:[%s1850_s9 + $0x30] sm:$0xff] %v609_v25  ;;  %v350_v20 = vld [vmem:[#allocation2 + $0x158] sm:$0xff] }
  0xbc   : > { %873 = vst.msk [vmem:[#allocation2 + $0x128] sm:$0xff] %vm243_vm2, %v808_v27  ;;  %v908_v32 = vld [vmem:[#allocation2 + $0x28] sm:$0xff] }
  0xbd   : > { %972 = vst.msk [vmem:[%s1850_s9 + $0x28] sm:$0xff] %vm243_vm2, %v908_v32  ;;  %v1071_v33 = vsel %vm243_vm2, %v908_v32, 0.0  ;;  %v1142_v34 = vmul.f32 %v908_v32, %v908_v32  ;;  %v1203_v35 = vadd.f32 %v1202_v14, %v1143_v31 }
  0xbe   : > { %v1072_v36 = vadd.f32 %v1071_v33, %v1070_v19  ;;  %843 = vst.msk [vmem:[#allocation2 + $0x38] sm:$0xff] %vm243_vm2, %v778_v29  ;;  %v1889_v38 = vld [vmem:[#allocation2 + $0x118] sm:$0xff]  ;;  %v352_v29 = vld [vmem:[#allocation2 + $0x168] sm:$0xff] }
  0xbf   : > { %v1241_v39 = vsel %vm243_vm2, %v1142_v34, 0.0  ;;  %1002 = vst.msk [vmem:[%s1850_s9 + $0x118] sm:$0xff] %vm243_vm2, %v1889_v38 }
  0xc0   : > { %v1242_v42 = vadd.f32 %v1241_v39, %v1240_v28 }
  0xc1   : > { %v738_v40 = vpop.f32.mrf.mxu3  ;;  %v1895_v41 = vpop.f32.mrf.mxu2 }
  0xc2   : > { %v612_v43 = vpop.f32.mrf.mxu0  ;;  %v701_v44 = vpop.f32.mrf.mxu1  ;;  %v810_v50 = vadd.f32 %v738_v40, %v346_v45  ;;  %1005 = vst [vmem:[%s1850_s9 + $0x130] sm:$0xff] %v1895_v41  ;;  %v324_v40 = vld [vmem:[#allocation2 + $0x88] sm:$0xff] }
  0xc3   : > { %v780_v46 = vadd.f32 %v701_v44, %v316_v37  ;;  %v1897_v47 = vld [vmem:[#allocation2 + $0x128] sm:$0xff]  ;;  %v1034_v48 = vadd.f32 %v1033_v30, %v612_v43  ;;  %v1145_v49 = vmul.f32 %v612_v43, %v612_v43  ;;  %975 = vst [vmem:[%s1850_s9 + $0x40] sm:$0xff] %v612_v43  ;;  %v322_v30 = vld [vmem:[#allocation2 + $0x78] sm:$0xff] }
  0xc4   : > { %1004 = vst.msk [vmem:[%s1850_s9 + $0x128] sm:$0xff] %vm243_vm2, %v1897_v47 }
  0xc5   : > { %v910_v51 = vld [vmem:[#allocation2 + $0x38] sm:$0xff]  ;;  %v1204_v52 = vadd.f32 %v1203_v35, %v1145_v49  ;;  %845 = vst.msk [vmem:[#allocation2 + $0x48] sm:$0xff] %vm243_vm2, %v780_v46 }
  0xc6   : > { %974 = vst.msk [vmem:[%s1850_s9 + $0x38] sm:$0xff] %vm243_vm2, %v910_v51  ;;  %v1073_v54 = vsel %vm243_vm2, %v910_v51, 0.0  ;;  %v1144_v56 = vmul.f32 %v910_v51, %v910_v51 }
  0xc7   : > { %v1074_v57 = vadd.f32 %v1073_v54, %v1072_v36  ;;  %875 = vst.msk [vmem:[#allocation2 + $0x138] sm:$0xff] %vm243_vm2, %v810_v50  ;;  %v326_v54 = vld [vmem:[#allocation2 + $0x98] sm:$0xff] }
  0xc8   : > { %v1243_v61 = vsel %vm243_vm2, %v1144_v56, 0.0 }
  0xc9   : > { %v741_v59 = vpop.f32.mrf.mxu3  ;;  %v1910_v60 = vpop.f32.mrf.mxu2  ;;  %v1244_v1 = vadd.f32 %v1243_v61, %v1242_v42 }
  0xca   : > { %v614_v62 = vpop.f32.mrf.mxu0  ;;  %v703_v63 = vpop.f32.mrf.mxu1  ;;  %v812_v0 = vadd.f32 %v741_v59, %v348_v53  ;;  %1007 = vst [vmem:[%s1850_s9 + $0x140] sm:$0xff] %v1910_v60  ;;  %v356_v53 = vld [vmem:[#allocation2 + $0x188] sm:$0xff] }
  0xcb   : > { %v782_v2 = vadd.f32 %v703_v63, %v318_v58  ;;  %v1035_v4 = vadd.f32 %v1034_v48, %v614_v62  ;;  %v1147_v5 = vmul.f32 %v614_v62, %v614_v62  ;;  %977 = vst [vmem:[%s1850_s9 + $0x50] sm:$0xff] %v614_v62  ;;  %v354_v48 = vld [vmem:[#allocation2 + $0x178] sm:$0xff] }
  0xcc   : > { %877 = vst.msk [vmem:[#allocation2 + $0x148] sm:$0xff] %vm243_vm2, %v812_v0  ;;  %v912_v6 = vld [vmem:[#allocation2 + $0x48] sm:$0xff] }
  0xcd   : > { %976 = vst.msk [vmem:[%s1850_s9 + $0x48] sm:$0xff] %vm243_vm2, %v912_v6  ;;  %v1075_v7 = vsel %vm243_vm2, %v912_v6, 0.0  ;;  %v1146_v9 = vmul.f32 %v912_v6, %v912_v6  ;;  %v1205_v10 = vadd.f32 %v1204_v52, %v1147_v5  ;;  %v328_v0 = vld [vmem:[#allocation2 + $0xa8] sm:$0xff] }
  0xce   : > { %v1920_v11 = vadd.f32 %v1075_v7, %v1074_v57  ;;  %847 = vst.msk [vmem:[#allocation2 + $0x58] sm:$0xff] %vm243_vm2, %v782_v2  ;;  %v1923_v13 = vld [vmem:[#allocation2 + $0x138] sm:$0xff] }
  0xcf   : > { %v1245_v14 = vsel %vm243_vm2, %v1146_v9, 0.0  ;;  %1006 = vst.msk [vmem:[%s1850_s9 + $0x138] sm:$0xff] %vm243_vm2, %v1923_v13  ;;  %v358_v7 = vld [vmem:[#allocation2 + $0x198] sm:$0xff] }
  0xd0   : > { %v1931_v17 = vadd.f32 %v1245_v14, %v1244_v1 }
  0xd1   : > { %v743_v15 = vpop.f32.mrf.mxu3  ;;  %v1929_v16 = vpop.f32.mrf.mxu2 }
  0xd2   : > { %v617_v18 = vpop.f32.mrf.mxu0  ;;  %v706_v19 = vpop.f32.mrf.mxu1  ;;  %v814_v26 = vadd.f32 %v743_v15, %v350_v20  ;;  %1009 = vst [vmem:[%s1850_s9 + $0x150] sm:$0xff] %v1929_v16  ;;  %v360_v15 = vld [vmem:[#allocation2 + $0x1a8] sm:$0xff] }
  0xd3   : > { %v784_v21 = vadd.f32 %v706_v19, %v320_v12  ;;  %v1933_v23 = vld [vmem:[#allocation2 + $0x148] sm:$0xff]  ;;  %v1036_v24 = vadd.f32 %v1035_v4, %v617_v18  ;;  %v1149_v25 = vmul.f32 %v617_v18, %v617_v18  ;;  %979 = vst [vmem:[%s1850_s9 + $0x60] sm:$0xff] %v617_v18  ;;  %v330_v18 = vld [vmem:[#allocation2 + $0xb8] sm:$0xff] }
  0xd4   : > { %1008 = vst.msk [vmem:[%s1850_s9 + $0x148] sm:$0xff] %vm243_vm2, %v1933_v23 }
  0xd5   : > { %v1941_v27 = vld [vmem:[#allocation2 + $0x58] sm:$0xff]  ;;  %v1943_v28 = vadd.f32 %v1205_v10, %v1149_v25  ;;  %849 = vst.msk [vmem:[#allocation2 + $0x68] sm:$0xff] %vm243_vm2, %v784_v21 }
  0xd6   : > { %978 = vst.msk [vmem:[%s1850_s9 + $0x58] sm:$0xff] %vm243_vm2, %v1941_v27 }
  0xd7   : > { %879 = vst.msk [vmem:[#allocation2 + $0x158] sm:$0xff] %vm243_vm2, %v814_v26 }
  0xd9   : > { %v746_v31 = vpop.f32.mrf.mxu3  ;;  %v1950_v32 = vpop.f32.mrf.mxu2 }
  0xda   : > { %v1952_v33 = vpop.f32.mrf.mxu0  ;;  %v708_v34 = vpop.f32.mrf.mxu1  ;;  %v816_v35 = vadd.f32 %v746_v31, %v352_v29  ;;  %1011 = vst [vmem:[%s1850_s9 + $0x160] sm:$0xff] %v1950_v32 }
  0xdb   : > { %v786_v36 = vadd.f32 %v708_v34, %v322_v30  ;;  %v1958_v37 = vadd.f32 %v1036_v24, %v1952_v33  ;;  %981 = vst [vmem:[%s1850_s9 + $0x70] sm:$0xff] %v1952_v33  ;;  %v332_v30 = vld [vmem:[#allocation2 + $0xc8] sm:$0xff] }
  0xdc   : > { %881 = vst.msk [vmem:[#allocation2 + $0x168] sm:$0xff] %vm243_vm2, %v816_v35  ;;  %v1960_v39 = vld [vmem:[#allocation2 + $0x68] sm:$0xff] }
  0xdd   : > { %980 = vst.msk [vmem:[%s1850_s9 + $0x68] sm:$0xff] %vm243_vm2, %v1960_v39 }
  0xde   : > { %851 = vst.msk [vmem:[#allocation2 + $0x78] sm:$0xff] %vm243_vm2, %v786_v36  ;;  %v1968_v42 = vld [vmem:[#allocation2 + $0x158] sm:$0xff] }
  0xdf   : > { %1010 = vst.msk [vmem:[%s1850_s9 + $0x158] sm:$0xff] %vm243_vm2, %v1968_v42 }
  0xe1   : > { %v748_v43 = vpop.f32.mrf.mxu3  ;;  %v1973_v44 = vpop.f32.mrf.mxu2 }
  0xe2   : > { %v1975_v45 = vpop.f32.mrf.mxu0  ;;  %v711_v46 = vpop.f32.mrf.mxu1  ;;  %v818_v51 = vadd.f32 %v748_v43, %v354_v48  ;;  %1013 = vst [vmem:[%s1850_s9 + $0x170] sm:$0xff] %v1973_v44  ;;  %v362_v43 = vld [vmem:[#allocation2 + $0x1b8] sm:$0xff] }
  0xe3   : > { %v788_v49 = vadd.f32 %v711_v46, %v324_v40  ;;  %v1977_v50 = vld [vmem:[#allocation2 + $0x168] sm:$0xff]  ;;  %983 = vst [vmem:[%s1850_s9 + $0x80] sm:$0xff] %v1975_v45 }
  0xe4   : > { %1012 = vst.msk [vmem:[%s1850_s9 + $0x168] sm:$0xff] %vm243_vm2, %v1977_v50 }
  0xe5   : > { %v1986_v52 = vld [vmem:[#allocation2 + $0x78] sm:$0xff]  ;;  %853 = vst.msk [vmem:[#allocation2 + $0x88] sm:$0xff] %vm243_vm2, %v788_v49 }
  0xe6   : > { %982 = vst.msk [vmem:[%s1850_s9 + $0x78] sm:$0xff] %vm243_vm2, %v1986_v52 }
  0xe7   : > { %883 = vst.msk [vmem:[#allocation2 + $0x178] sm:$0xff] %vm243_vm2, %v818_v51 }
  0xe9   : > { %v751_v56 = vpop.f32.mrf.mxu3  ;;  %v1993_v57 = vpop.f32.mrf.mxu2 }
  0xea   : > { %v1995_v58 = vpop.f32.mrf.mxu0  ;;  %v713_v59 = vpop.f32.mrf.mxu1  ;;  %v820_v61 = vadd.f32 %v751_v56, %v356_v53  ;;  %1015 = vst [vmem:[%s1850_s9 + $0x180] sm:$0xff] %v1993_v57  ;;  %v364_v53 = vld [vmem:[#allocation2 + $0x1c8] sm:$0xff] }
  0xeb   : > { %v790_v62 = vadd.f32 %v713_v59, %v326_v54  ;;  %985 = vst [vmem:[%s1850_s9 + $0x90] sm:$0xff] %v1995_v58  ;;  %v334_v54 = vld [vmem:[#allocation2 + $0xd8] sm:$0xff] }
  0xec   : > { %885 = vst.msk [vmem:[#allocation2 + $0x188] sm:$0xff] %vm243_vm2, %v820_v61  ;;  %v2000_v63 = vld [vmem:[#allocation2 + $0x88] sm:$0xff]  ;;  %v1151_v61 = vmul.f32 %v1952_v33, %v1952_v33  ;;  %v1077_v33 = vsel %vm243_vm2, %v1941_v27, 0.0 }
  0xed   : > { %984 = vst.msk [vmem:[%s1850_s9 + $0x88] sm:$0xff] %vm243_vm2, %v2000_v63 }
  0xee   : > { %855 = vst.msk [vmem:[#allocation2 + $0x98] sm:$0xff] %vm243_vm2, %v790_v62  ;;  %v2008_v1 = vld [vmem:[#allocation2 + $0x178] sm:$0xff] }
  0xef   : > { %1014 = vst.msk [vmem:[%s1850_s9 + $0x178] sm:$0xff] %vm243_vm2, %v2008_v1 }
  0xf1   : > { %v753_v2 = vpop.f32.mrf.mxu3  ;;  %v2013_v4 = vpop.f32.mrf.mxu2 }
  0xf2   : > { %v2015_v5 = vpop.f32.mrf.mxu0  ;;  %v716_v6 = vpop.f32.mrf.mxu1  ;;  %v822_v12 = vadd.f32 %v753_v2, %v358_v7  ;;  %1017 = vst [vmem:[%s1850_s9 + $0x190] sm:$0xff] %v2013_v4  ;;  %v1150_v7 = vmul.f32 %v1960_v39, %v1960_v39 }
  0xf3   : > { %v792_v9 = vadd.f32 %v716_v6, %v328_v0  ;;  %v2017_v10 = vld [vmem:[#allocation2 + $0x188] sm:$0xff]  ;;  %987 = vst [vmem:[%s1850_s9 + $0xa0] sm:$0xff] %v2015_v5  ;;  %v1148_v6 = vmul.f32 %v1941_v27, %v1941_v27  ;;  %v1078_v27 = vadd.f32 %v1077_v33, %v1920_v11  ;;  %v1083_v33 = vsel %vm243_vm2, %v2000_v63, 0.0 }
  0xf4   : > { %1016 = vst.msk [vmem:[%s1850_s9 + $0x188] sm:$0xff] %vm243_vm2, %v2017_v10 }
  0xf5   : > { %v2026_v14 = vld [vmem:[#allocation2 + $0x98] sm:$0xff]  ;;  %857 = vst.msk [vmem:[#allocation2 + $0xa8] sm:$0xff] %vm243_vm2, %v792_v9  ;;  %v1153_v9 = vmul.f32 %v1975_v45, %v1975_v45 }
  0xf6   : > { %986 = vst.msk [vmem:[%s1850_s9 + $0x98] sm:$0xff] %vm243_vm2, %v2026_v14 }
  0xf7   : > { %887 = vst.msk [vmem:[#allocation2 + $0x198] sm:$0xff] %vm243_vm2, %v822_v12 }
  0xf9   : > { %v756_v19 = vpop.f32.mrf.mxu3  ;;  %v2033_v20 = vpop.f32.mrf.mxu2 }
  0xfa   : > { %v2035_v21 = vpop.f32.mrf.mxu0  ;;  %v718_v24 = vpop.f32.mrf.mxu1  ;;  %v824_v25 = vadd.f32 %v756_v19, %v360_v15  ;;  %1019 = vst [vmem:[%s1850_s9 + $0x1a0] sm:$0xff] %v2033_v20  ;;  %v1207_v15 = vadd.f32 %v1943_v28, %v1151_v61  ;;  %v1249_v28 = vsel %vm243_vm2, %v1150_v7, 0.0  ;;  %v366_v7 = vld [vmem:[#allocation2 + $0x1d8] sm:$0xff] }
  0xfb   : > { %v794_v26 = vadd.f32 %v718_v24, %v330_v18  ;;  %989 = vst [vmem:[%s1850_s9 + $0xb0] sm:$0xff] %v2035_v21  ;;  %v1155_v18 = vmul.f32 %v1995_v58, %v1995_v58  ;;  %v1247_v24 = vsel %vm243_vm2, %v1148_v6, 0.0 }
  0xfc   : > { %889 = vst.msk [vmem:[#allocation2 + $0x1a8] sm:$0xff] %vm243_vm2, %v824_v25  ;;  %v2040_v29 = vld [vmem:[#allocation2 + $0xa8] sm:$0xff]  ;;  %v1079_v25 = vsel %vm243_vm2, %v1960_v39, 0.0  ;;  %v1081_v39 = vsel %vm243_vm2, %v1986_v52, 0.0 }
  0xfd   : > { %988 = vst.msk [vmem:[%s1850_s9 + $0xa8] sm:$0xff] %vm243_vm2, %v2040_v29 }
  0xfe   : > { %859 = vst.msk [vmem:[#allocation2 + $0xb8] sm:$0xff] %vm243_vm2, %v794_v26  ;;  %v2048_v31 = vld [vmem:[#allocation2 + $0x198] sm:$0xff]  ;;  %v1038_v26 = vadd.f32 %v1958_v37, %v1975_v45  ;;  %v1157_v45 = vmul.f32 %v2015_v5, %v2015_v5 }
  0xff   : > { %1018 = vst.msk [vmem:[%s1850_s9 + $0x198] sm:$0xff] %vm243_vm2, %v2048_v31 }
 0x100   : > { %v1039_v37 = vadd.f32 %v1038_v26, %v1995_v58  ;;  %v1156_v26 = vmul.f32 %v2026_v14, %v2026_v14 }
 0x101   : > { %v758_v34 = vpop.f32.mrf.mxu3  ;;  %v2053_v35 = vpop.f32.mrf.mxu2 }
 0x102   : > { %v2055_v36 = vpop.f32.mrf.mxu0  ;;  %v721_v40 = vpop.f32.mrf.mxu1  ;;  %v826_v49 = vadd.f32 %v758_v34, %v362_v43  ;;  %1021 = vst [vmem:[%s1850_s9 + $0x1b0] sm:$0xff] %v2053_v35  ;;  %v1208_v34 = vadd.f32 %v1207_v15, %v1153_v9  ;;  %v1040_v58 = vadd.f32 %v1039_v37, %v2015_v5 }
 0x103   : > { %v796_v46 = vadd.f32 %v721_v40, %v332_v30  ;;  %v2057_v48 = vld [vmem:[#allocation2 + $0x1a8] sm:$0xff]  ;;  %991 = vst [vmem:[%s1850_s9 + $0xc0] sm:$0xff] %v2055_v36  ;;  %v1152_v30 = vmul.f32 %v1986_v52, %v1986_v52 }
 0x104   : > { %1020 = vst.msk [vmem:[%s1850_s9 + $0x1a8] sm:$0xff] %vm243_vm2, %v2057_v48  ;;  %v336_v40 = vld [vmem:[#allocation2 + $0xe8] sm:$0xff]  ;;  %v1041_v5 = vadd.f32 %v1040_v58, %v2035_v21 }
 0x105   : > { %v2066_v51 = vld [vmem:[#allocation2 + $0xb8] sm:$0xff]  ;;  %861 = vst.msk [vmem:[#allocation2 + $0xc8] sm:$0xff] %vm243_vm2, %v796_v46 }
 0x106   : > { %990 = vst.msk [vmem:[%s1850_s9 + $0xb8] sm:$0xff] %vm243_vm2, %v2066_v51 }
 0x107   : > { %891 = vst.msk [vmem:[#allocation2 + $0x1b8] sm:$0xff] %vm243_vm2, %v826_v49  ;;  %v1248_v49 = vadd.f32 %v1247_v24, %v1931_v17  ;;  %v1251_v17 = vsel %vm243_vm2, %v1152_v30, 0.0 }
 0x109   : > { %v761_v56 = vpop.f32.mrf.mxu3  ;;  %v2073_v59 = vpop.f32.mrf.mxu2  ;;  %v1250_v9 = vadd.f32 %v1249_v28, %v1248_v49 }
 0x10a   : > { %v2077_v62 = vpop.f32.mrf.mxu0  ;;  %v723_v0 = vpop.f32.mrf.mxu1  ;;  %v828_v2 = vadd.f32 %v761_v56, %v364_v53  ;;  %v1080_v53 = vadd.f32 %v1079_v25, %v1078_v27  ;;  %v1209_v56 = vadd.f32 %v1208_v34, %v1155_v18  ;;  %v1161_v18 = vmul.f32 %v2055_v36, %v2055_v36  ;;  %1023 = vst [vmem:[%s1850_s9 + $0x1c0] sm:$0xff] %v2073_v59 }
 0x10b   : > { %v798_v12 = vadd.f32 %v723_v0, %v334_v54  ;;  %993 = vst [vmem:[%s1850_s9 + $0xd0] sm:$0xff] %v2077_v62  ;;  %v1154_v54 = vmul.f32 %v2000_v63, %v2000_v63  ;;  %v1159_v0 = vmul.f32 %v2035_v21, %v2035_v21  ;;  %v1085_v25 = vsel %vm243_vm2, %v2026_v14, 0.0 }
 0x10c   : > { %893 = vst.msk [vmem:[#allocation2 + $0x1c8] sm:$0xff] %vm243_vm2, %v828_v2  ;;  %v2093_v19 = vld [vmem:[#allocation2 + $0xc8] sm:$0xff]  ;;  %v1210_v15 = vadd.f32 %v1209_v56, %v1157_v45  ;;  %v1042_v63 = vadd.f32 %v1041_v5, %v2055_v36  ;;  %v1163_v21 = vmul.f32 %v2077_v62, %v2077_v62  ;;  %v1252_v34 = vadd.f32 %v1251_v17, %v1250_v9 }
 0x10d   : > { %992 = vst.msk [vmem:[%s1850_s9 + $0xc8] sm:$0xff] %vm243_vm2, %v2093_v19  ;;  %v1253_v24 = vsel %vm243_vm2, %v1154_v54, 0.0  ;;  %v1087_v9 = vsel %vm243_vm2, %v2040_v29, 0.0  ;;  %v1160_v17 = vmul.f32 %v2066_v51, %v2066_v51 }
 0x10e   : > { %863 = vst.msk [vmem:[#allocation2 + $0xd8] sm:$0xff] %vm243_vm2, %v798_v12  ;;  %v2110_v43 = vld [vmem:[#allocation2 + $0x1b8] sm:$0xff]  ;;  %v1082_v12 = vadd.f32 %v1081_v39, %v1080_v53  ;;  %v1211_v28 = vadd.f32 %v1210_v15, %v1159_v0  ;;  %v1158_v39 = vmul.f32 %v2040_v29, %v2040_v29  ;;  %v1043_v37 = vadd.f32 %v1042_v63, %v2077_v62  ;;  %v368_v0 = vld [vmem:[#allocation2 + $0x1e8] sm:$0xff] }
 0x10f   : > { %1022 = vst.msk [vmem:[%s1850_s9 + $0x1b8] sm:$0xff] %vm243_vm2, %v2110_v43  ;;  %v1169_v53 = vmul.f32 %v1854_v55, %v1854_v55  ;;  %v1254_v54 = vadd.f32 %v1253_v24, %v1252_v34  ;;  %v1255_v62 = vsel %vm243_vm2, %v1156_v26, 0.0  ;;  %v1089_v29 = vsel %vm243_vm2, %v2066_v51, 0.0 }
 0x110   : > { %v1212_v14 = vadd.f32 %v1211_v28, %v1161_v18  ;;  %v1162_v26 = vmul.f32 %v2093_v19, %v2093_v19  ;;  %v1173_v28 = vmul.f32 %v1877_v22, %v1877_v22  ;;  %v1091_v51 = vsel %vm243_vm2, %v2093_v19, 0.0 }
 0x111   : > { %v763_v11 = vpop.f32.mrf.mxu3  ;;  %v2120_v46 = vpop.f32.mrf.mxu2 }
 0x112   : > { %v637_v52 = vpop.f32.mrf.mxu0  ;;  %v726_v61 = vpop.f32.mrf.mxu1  ;;  %v830_v27 = vadd.f32 %v763_v11, %v366_v7  ;;  %v338_v11 = vld [vmem:[#allocation2 + $0xf8] sm:$0xff]  ;;  %1025 = vst [vmem:[%s1850_s9 + $0x1d0] sm:$0xff] %v2120_v46 }
 0x113   : > { %v800_v2 = vadd.f32 %v726_v61, %v336_v40  ;;  %v2128_v6 = vld [vmem:[#allocation2 + $0x1c8] sm:$0xff]  ;;  %995 = vst [vmem:[%s1850_s9 + $0xe0] sm:$0xff] %v637_v52  ;;  %v1084_v40 = vadd.f32 %v1083_v33, %v1082_v12  ;;  %v1165_v45 = vmul.f32 %v637_v52, %v637_v52  ;;  %v1044_v7 = vadd.f32 %v1043_v37, %v637_v52 }
 0x114   : > { %1024 = vst.msk [vmem:[%s1850_s9 + $0x1c8] sm:$0xff] %vm243_vm2, %v2128_v6  ;;  %v1257_v12 = vsel %vm243_vm2, %v1158_v39, 0.0  ;;  %v1256_v52 = vadd.f32 %v1255_v62, %v1254_v54 }
 0x115   : > { %v930_v30 = vld [vmem:[#allocation2 + $0xd8] sm:$0xff]  ;;  %865 = vst.msk [vmem:[#allocation2 + $0xe8] sm:$0xff] %vm243_vm2, %v800_v2  ;;  %v1086_v56 = vadd.f32 %v1085_v25, %v1084_v40  ;;  %v1213_v2 = vadd.f32 %v1212_v14, %v1163_v21  ;;  %v1171_v25 = vmul.f32 %v1861_v3, %v1861_v3  ;;  %v1259_v14 = vsel %vm243_vm2, %v1160_v17, 0.0 }
 0x116   : > { %994 = vst.msk [vmem:[%s1850_s9 + $0xd8] sm:$0xff] %vm243_vm2, %v930_v30  ;;  %v370_v40 = vld [vmem:[#allocation2 + $0x1f8] sm:$0xff]  ;;  %v1258_v39 = vadd.f32 %v1257_v12, %v1256_v52  ;;  %v1164_v37 = vmul.f32 %v930_v30, %v930_v30 }
 0x117   : > { %895 = vst.msk [vmem:[#allocation2 + $0x1d8] sm:$0xff] %vm243_vm2, %v830_v27  ;;  %v1214_v15 = vadd.f32 %v1213_v2, %v1165_v45  ;;  %v1088_v63 = vadd.f32 %v1087_v9, %v1086_v56 }
 0x118   : > { %v1260_v62 = vadd.f32 %v1259_v14, %v1258_v39  ;;  %v1263_v9 = vsel %vm243_vm2, %v1164_v37, 0.0  ;;  %v1099_v14 = vsel %vm243_vm2, %v1865_v8, 0.0  ;;  %v1181_v37 = vmul.f32 %v1950_v32, %v1950_v32 }
 0x119   : > { %v766_v36 = vpop.f32.mrf.mxu3  ;;  %v2156_v49 = vpop.f32.mrf.mxu2  ;;  %v1090_v45 = vadd.f32 %v1089_v29, %v1088_v63 }
 0x11a   : > { %v639_v61 = vpop.f32.mrf.mxu0  ;;  %v728_v58 = vpop.f32.mrf.mxu1  ;;  %v832_v24 = vadd.f32 %v766_v36, %v368_v0  ;;  %1027 = vst [vmem:[%s1850_s9 + $0x1e0] sm:$0xff] %v2156_v49 }
 0x11b   : > { %v802_v33 = vadd.f32 %v728_v58, %v338_v11  ;;  %v1045_v5 = vadd.f32 %v1044_v7, %v639_v61  ;;  %v1167_v18 = vmul.f32 %v639_v61, %v639_v61  ;;  %997 = vst [vmem:[%s1850_s9 + $0xf0] sm:$0xff] %v639_v61  ;;  %v1261_v61 = vsel %vm243_vm2, %v1162_v26, 0.0 }
 0x11c   : > { %v932_v27 = vld [vmem:[#allocation2 + $0xe8] sm:$0xff]  ;;  %897 = vst.msk [vmem:[#allocation2 + $0x1e8] sm:$0xff] %vm243_vm2, %v832_v24  ;;  %v1093_v58 = vsel %vm243_vm2, %v930_v30, 0.0  ;;  %v1175_v7 = vmul.f32 %v1895_v41, %v1895_v41  ;;  %v1262_v30 = vadd.f32 %v1261_v61, %v1260_v62 }
 0x11d   : > { %996 = vst.msk [vmem:[%s1850_s9 + $0xe8] sm:$0xff] %vm243_vm2, %v932_v27  ;;  %v1046_v21 = vadd.f32 %v1045_v5, %v1854_v55  ;;  %v1215_v34 = vadd.f32 %v1214_v15, %v1167_v18  ;;  %v1166_v19 = vmul.f32 %v932_v27, %v932_v27  ;;  %v1095_v12 = vsel %vm243_vm2, %v932_v27, 0.0 }
 0x11e   : > { %867 = vst.msk [vmem:[#allocation2 + $0xf8] sm:$0xff] %vm243_vm2, %v802_v33  ;;  %v2186_v54 = vld [vmem:[#allocation2 + $0x1d8] sm:$0xff]  ;;  %v1177_v5 = vmul.f32 %v1910_v60, %v1910_v60  ;;  %v1264_v24 = vadd.f32 %v1263_v9, %v1262_v30  ;;  %v1179_v27 = vmul.f32 %v1929_v16, %v1929_v16  ;;  %v1185_v9 = vmul.f32 %v1993_v57, %v1993_v57 }
 0x11f   : > { %v1047_v11 = vadd.f32 %v1046_v21, %v1861_v3  ;;  %v1216_v36 = vadd.f32 %v1215_v34, %v1169_v53  ;;  %1026 = vst.msk [vmem:[%s1850_s9 + $0x1d8] sm:$0xff] %vm243_vm2, %v2186_v54  ;;  %v1092_v3 = vadd.f32 %v1091_v51, %v1090_v45  ;;  %v1265_v18 = vsel %vm243_vm2, %v1166_v19, 0.0 }
 0x120   : > { %v1266_v34 = vadd.f32 %v1265_v18, %v1264_v24  ;;  %v1174_v51 = vmul.f32 %v1897_v47, %v1897_v47  ;;  %v1183_v19 = vmul.f32 %v1973_v44, %v1973_v44 }
 0x121   : > { %v768_v55 = vpop.f32.mrf.mxu3  ;;  %v2189_v56 = vpop.f32.mrf.mxu2  ;;  %v1048_v53 = vadd.f32 %v1047_v11, %v1877_v22  ;;  %v1217_v2 = vadd.f32 %v1216_v36, %v1171_v25  ;;  %v1094_v17 = vadd.f32 %v1093_v58, %v1092_v3  ;;  %v1170_v22 = vmul.f32 %v1865_v8, %v1865_v8 }
 0x122   : > { %v834_v0 = vadd.f32 %v768_v55, %v370_v40  ;;  %1029 = vst [vmem:[%s1850_s9 + $0x1f0] sm:$0xff] %v2189_v56  ;;  %v1101_v58 = vsel %vm243_vm2, %v1889_v38, 0.0 }
 0x123   : > { %v1049_v33 = vadd.f32 %v1048_v53, %v1895_v41  ;;  %v1218_v15 = vadd.f32 %v1217_v2, %v1173_v28  ;;  %v1096_v25 = vadd.f32 %v1095_v12, %v1094_v17  ;;  %v1172_v41 = vmul.f32 %v1889_v38, %v1889_v38  ;;  %v2220_v21 = vld [vmem:[#allocation2 + $0x1e8] sm:$0xff] }
 0x124   : > { %899 = vst.msk [vmem:[#allocation2 + $0x1f8] sm:$0xff] %vm243_vm2, %v834_v0  ;;  %v1269_v61 = vsel %vm243_vm2, %v1170_v22, 0.0  ;;  %v1273_v38 = vsel %vm243_vm2, %v1174_v51, 0.0  ;;  %v1187_v22 = vmul.f32 %v2013_v4, %v2013_v4  ;;  %v1111_v51 = vsel %vm243_vm2, %v1977_v50, 0.0 }
 0x125   : > { %v1050_v52 = vadd.f32 %v1049_v33, %v1910_v60  ;;  %v1219_v29 = vadd.f32 %v1218_v15, %v1175_v7  ;;  %v934_v26 = vld [vmem:[#allocation2 + $0xf8] sm:$0xff]  ;;  %1028 = vst.msk [vmem:[%s1850_s9 + $0x1e8] sm:$0xff] %vm243_vm2, %v2220_v21  ;;  %v1271_v8 = vsel %vm243_vm2, %v1172_v41, 0.0  ;;  %v1176_v7 = vmul.f32 %v1923_v13, %v1923_v13 }
 0x126   : > { %998 = vst.msk [vmem:[%s1850_s9 + $0xf8] sm:$0xff] %vm243_vm2, %v934_v26  ;;  %v1097_v28 = vsel %vm243_vm2, %v934_v26, 0.0  ;;  %v1168_v63 = vmul.f32 %v934_v26, %v934_v26  ;;  %v1105_v33 = vsel %vm243_vm2, %v1923_v13, 0.0  ;;  %v1178_v15 = vmul.f32 %v1933_v23, %v1933_v23 }
 0x127   : > { %v1051_v60 = vadd.f32 %v1050_v52, %v1929_v16  ;;  %v1220_v40 = vadd.f32 %v1219_v29, %v1177_v5  ;;  %v1098_v39 = vadd.f32 %v1097_v28, %v1096_v25  ;;  %v1107_v52 = vsel %vm243_vm2, %v1933_v23, 0.0 }
 0x128   : > { %v1267_v45 = vsel %vm243_vm2, %v1168_v63, 0.0  ;;  %v1182_v13 = vmul.f32 %v1977_v50, %v1977_v50  ;;  %v1189_v29 = vmul.f32 %v2033_v20, %v2033_v20  ;;  %v1277_v63 = vsel %vm243_vm2, %v1178_v15, 0.0 }
 0x129   : > { %v1221_v11 = vadd.f32 %v1220_v40, %v1179_v27  ;;  %v1100_v36 = vadd.f32 %v1099_v14, %v1098_v39  ;;  %v1268_v16 = vadd.f32 %v1267_v45, %v1266_v34  ;;  %v1052_v55 = vadd.f32 %v1051_v60, %v1950_v32 }
 0x12a   : > { %v1103_v32 = vsel %vm243_vm2, %v1897_v47, 0.0  ;;  %v1180_v47 = vmul.f32 %v1968_v42, %v1968_v42  ;;  %v1191_v23 = vmul.f32 %v2053_v35, %v2053_v35  ;;  %v1195_v50 = vmul.f32 %v2120_v46, %v2120_v46 }
 0x12b   : > { %v2240_v0 = vld [vmem:[#allocation2 + $0x1f8] sm:$0xff]  ;;  %v1102_v62 = vadd.f32 %v1101_v58, %v1100_v36  ;;  %v1270_v3 = vadd.f32 %v1269_v61, %v1268_v16  ;;  %v1053_v53 = vadd.f32 %v1052_v55, %v1973_v44  ;;  %v1222_v2 = vadd.f32 %v1221_v11, %v1181_v37 }
 0x12c   : > { %1030 = vst.msk [vmem:[%s1850_s9 + $0x1f8] sm:$0xff] %vm243_vm2, %v2240_v0  ;;  %v1279_v34 = vsel %vm243_vm2, %v1180_v47, 0.0  ;;  %v1184_v37 = vmul.f32 %v2008_v1, %v2008_v1  ;;  %v1186_v55 = vmul.f32 %v2017_v10, %v2017_v10  ;;  %v1197_v61 = vmul.f32 %v2156_v49, %v2156_v49 }
 0x12d   : > { %v1104_v12 = vadd.f32 %v1103_v32, %v1102_v62  ;;  %v1272_v30 = vadd.f32 %v1271_v8, %v1270_v3  ;;  %v1054_v17 = vadd.f32 %v1053_v53, %v1993_v57  ;;  %v1223_v44 = vadd.f32 %v1222_v2, %v1183_v19 }
 0x12e   : > { %v1275_v57 = vsel %vm243_vm2, %v1176_v7, 0.0  ;;  %v1115_v3 = vsel %vm243_vm2, %v2017_v10, 0.0  ;;  %v1199_v53 = vmul.f32 %v2189_v56, %v2189_v56  ;;  %v1119_v15 = vsel %vm243_vm2, %v2057_v48, 0.0 }
 0x12f   : > { %v1106_v5 = vadd.f32 %v1105_v33, %v1104_v12  ;;  %v1274_v18 = vadd.f32 %v1273_v38, %v1272_v30  ;;  %v1055_v24 = vadd.f32 %v1054_v17, %v2013_v4  ;;  %v1224_v25 = vadd.f32 %v1223_v44, %v1185_v9 }
 0x130   : > { %v1109_v4 = vsel %vm243_vm2, %v1968_v42, 0.0  ;;  %v1193_v42 = vmul.f32 %v2073_v59, %v2073_v59  ;;  %v1285_v9 = vsel %vm243_vm2, %v1186_v55, 0.0  ;;  %v1190_v12 = vmul.f32 %v2057_v48, %v2057_v48 }
 0x131   : > { %v1108_v26 = vadd.f32 %v1107_v52, %v1106_v5  ;;  %v1276_v41 = vadd.f32 %v1275_v57, %v1274_v18  ;;  %v1056_v27 = vadd.f32 %v1055_v24, %v2033_v20  ;;  %v1225_v28 = vadd.f32 %v1224_v25, %v1187_v22 }
 0x132   : > { %v1281_v20 = vsel %vm243_vm2, %v1182_v13, 0.0  ;;  %v1289_v18 = vsel %vm243_vm2, %v1190_v12, 0.0  ;;  %v1121_v24 = vsel %vm243_vm2, %v2110_v43, 0.0 }
 0x133   : > { %v1110_v60 = vadd.f32 %v1109_v4, %v1108_v26  ;;  %v1278_v40 = vadd.f32 %v1277_v63, %v1276_v41  ;;  %v1057_v39 = vadd.f32 %v1056_v27, %v2053_v35  ;;  %v1226_v14 = vadd.f32 %v1225_v28, %v1189_v29 }
 0x134   : > { %v1113_v35 = vsel %vm243_vm2, %v2008_v1, 0.0  ;;  %v1188_v1 = vmul.f32 %v2048_v31, %v2048_v31  ;;  %v1123_v29 = vsel %vm243_vm2, %v2128_v6, 0.0  ;;  %v1196_v26 = vmul.f32 %v2186_v54, %v2186_v54 }
 0x135   : > { %v1280_v45 = vadd.f32 %v1279_v34, %v1278_v40  ;;  %v1112_v11 = vadd.f32 %v1111_v51, %v1110_v60  ;;  %v1058_v36 = vadd.f32 %v1057_v39, %v2073_v59  ;;  %v1227_v16 = vadd.f32 %v1226_v14, %v1191_v23 }
 0x136   : > { %v1283_v59 = vsel %vm243_vm2, %v1184_v37, 0.0  ;;  %v1287_v33 = vsel %vm243_vm2, %v1188_v1, 0.0  ;;  %v1125_v4 = vsel %vm243_vm2, %v2186_v54, 0.0  ;;  %v1198_v34 = vmul.f32 %v2220_v21, %v2220_v21 }
 0x137   : > { %v1114_v58 = vadd.f32 %v1113_v35, %v1112_v11  ;;  %v1282_v8 = vadd.f32 %v1281_v20, %v1280_v45  ;;  %v1228_v19 = vadd.f32 %v1227_v16, %v1193_v42  ;;  %v1059_v62 = vadd.f32 %v1058_v36, %v2120_v46 }
 0x138   : > { %v1117_v46 = vsel %vm243_vm2, %v2048_v31, 0.0  ;;  %v1127_v14 = vsel %vm243_vm2, %v2220_v21, 0.0  ;;  %v1200_v51 = vmul.f32 %v2240_v0, %v2240_v0  ;;  %v1297_v54 = vsel %vm243_vm2, %v1198_v34, 0.0 }
 0x139   : > { %v1116_v2 = vadd.f32 %v1115_v3, %v1114_v58  ;;  %v1284_v32 = vadd.f32 %v1283_v59, %v1282_v8  ;;  %v1229_v38 = vadd.f32 %v1228_v19, %v1195_v50  ;;  %v1060_v7 = vadd.f32 %v1059_v62, %v2156_v49 }
 0x13a   : > { %v1192_v49 = vmul.f32 %v2110_v43, %v2110_v43  ;;  %v1129_v11 = vsel %vm243_vm2, %v2240_v0, 0.0  ;;  %v1299_v55 = vsel %vm243_vm2, %v1200_v51, 0.0 }
 0x13b   : > { %v1118_v10 = vadd.f32 %v1117_v46, %v1116_v2  ;;  %v1286_v30 = vadd.f32 %v1285_v9, %v1284_v32  ;;  %v1230_v17 = vadd.f32 %v1229_v38, %v1197_v61  ;;  %v1061_v44 = vadd.f32 %v1060_v7, %v2189_v56 }
 0x13c   : > { %v1194_v56 = vmul.f32 %v2128_v6, %v2128_v6  ;;  %v1291_v48 = vsel %vm243_vm2, %v1192_v49, 0.0  ;;  %v1295_v6 = vsel %vm243_vm2, %v1196_v26, 0.0 }
 0x13d   : > { %v1120_v47 = vadd.f32 %v1119_v15, %v1118_v10  ;;  %v1288_v22 = vadd.f32 %v1287_v33, %v1286_v30  ;;  %v1062_v5 = vrot.slane %v1061_v44, 4  ;;  %v1231_v31 = vadd.f32 %v1230_v17, %v1199_v53 }
 0x13e   : > { %v1293_v43 = vsel %vm243_vm2, %v1194_v56, 0.0 }
 0x13f   : > { %v1122_v25 = vadd.f32 %v1121_v24, %v1120_v47  ;;  %v1290_v57 = vadd.f32 %v1289_v18, %v1288_v22  ;;  %v1063_v52 = vadd.f32 %v1062_v5, %v1061_v44  ;;  %v1232_v13 = vrot.slane %v1231_v31, 4 }
 0x141   : > { %v1124_v41 = vadd.f32 %v1123_v29, %v1122_v25  ;;  %v1292_v27 = vadd.f32 %v1291_v48, %v1290_v57  ;;  %v1064_v28 = vrot.slane %v1063_v52, 2  ;;  %v1233_v63 = vadd.f32 %v1232_v13, %v1231_v31 }
 0x143   : > { %v1294_v23 = vadd.f32 %v1293_v43, %v1292_v27  ;;  %v1126_v60 = vadd.f32 %v1125_v4, %v1124_v41  ;;  %v1065_v40 = vadd.f32 %v1064_v28, %v1063_v52  ;;  %v1234_v39 = vrot.slane %v1233_v63, 2 }
 0x145   : > { %v1296_v20 = vadd.f32 %v1295_v6, %v1294_v23  ;;  %v1128_v37 = vadd.f32 %v1127_v14, %v1126_v60  ;;  %v1066_v42 = vrot.slane %v1065_v40, 1  ;;  %v1235_v45 = vadd.f32 %v1234_v39, %v1233_v63 }
 0x147   : > { %v1298_v36 = vadd.f32 %v1297_v54, %v1296_v20  ;;  %v1130_v16 = vadd.f32 %v1129_v11, %v1128_v37  ;;  %v1236_v35 = vrot.slane %v1235_v45, 1  ;;  %v1067_v61 = vadd.f32 %v1066_v42, %v1065_v40 }
 0x149   : > { %v1131_v21 = vrot.slane %v1130_v16, 4  ;;  %v1300_v50 = vadd.f32 %v1299_v55, %v1298_v36  ;;  %v1237_v58 = vadd.f32 %v1236_v35, %v1235_v45 }
 0x14b   : > { %v1132_v8 = vadd.f32 %v1131_v21, %v1130_v16  ;;  %v1301_v19 = vrot.slane %v1300_v50, 4  ;;  %v1308_v62 = vsel %vm1307_vm3, %v1067_v61, %v1237_v58 }
 0x14d   : > { %v1133_v59 = vrot.slane %v1132_v8, 2  ;;  %v1302_v3 = vadd.f32 %v1301_v19, %v1300_v50 }
 0x14f   : > { %v1134_v1 = vadd.f32 %v1133_v59, %v1132_v8  ;;  %v1303_v0 = vrot.slane %v1302_v3, 2 }
 0x151   : > { %v1135_v53 = vrot.slane %v1134_v1, 1  ;;  %v1304_v2 = vadd.f32 %v1303_v0, %v1302_v3 }
 0x153   : > { %v1305_v32 = vrot.slane %v1304_v2, 1  ;;  %v1136_v38 = vadd.f32 %v1135_v53, %v1134_v1 }
 0x155   : > { %v1306_v7 = vadd.f32 %v1305_v32, %v1304_v2 }
 0x157   : > { %v1309_v9 = vsel %vm1307_vm3, %v1136_v38, %v1306_v7 }
 0x158   : > { %v1312_v46 = vrot.slane %v1309_v9, 6 }
 0x15a   : > { %v1314_v12 = vsel %vm1313_vm4, %v1308_v62, %v1312_v46 }
 0x15b   : > { %1318 = vst.msk [vmem:[%s236_s16] sm:$0xf] %vm1317_vm6, %v1314_v12 }
 0x15c PF: > { %s14_s14 = sadd.s32 1, %s1663_s14   ;;  %s2358_s12 = smov %s1659_s13 }
 0x15d   : > { %p11_p6 = scmp.ge.s32.totalorder %s14_s14, 4   ;;  %s2359_s13 = smov %s2361_s15 }
 0x15f   :  { %13 = sbr.rel (!%p11_p6) target bundleno = 2 (0x2), region = 81 }

// kernel: magic_module_forward.20
= control target key start
LH: loop header
LB: loop body
LE: loop exit
PB: predicated region body
PF: predicated region fallthrough
CT: control target
= control target key end

     0   :  { %vm18_vm0 = vcmask 392192   ;;  %v432_v1 = vmov 0.0   ;;  %vm123_vm1 = vcmask 261120   ;;  %vm355_vm2 = vcmask 1040384   ;;  %s664_s1 = inlined_call_operand.vmem [shape: bf16[32,48], index: 1, kind: input, shape index: {}]   ;;  %s665_s0 = inlined_call_operand.vmem [shape: bf16[128,32], index: 0, kind: input, shape index: {}]   ;;  %s666_s2 = inlined_call_operand.vmem [shape: f32[128,48], index: 2, kind: output, shape index: {0}]   ;;  %s667_s3 = inlined_call_operand.vmem [shape: f32[1,2,48], index: 3, kind: output, shape index: {1}]  }
   0x1   :  { %v424_v0 = vld [vmem:[%s664_s1 + $0x8] sm:$0xff]  ;;  %19 = vst.msk [vmem:[#allocation2] sm:$0xff] %vm18_vm0, %v432_v1  ;;  %v423_v2 = vld [vmem:[%s664_s1] sm:$0xff]  ;;  %v417_v4 = vld [vmem:[%s665_s0 + $0x10] sm:$0xff]  ;;  %vm357_vm3 = vcmask 386048  }
   0x2   :  { %20 = vst.msk [vmem:[#allocation2 + $0x8] sm:$0xff] %vm18_vm0, %v432_v1  ;;  %154 = vmatpush.bf16.msra.mxu0 %v424_v0  ;;  %425 = vmatpush.bf16.msra.mxu1 %v424_v0  ;;  %v415_v3 = vld [vmem:[%s665_s0] sm:$0xff]  ;;  %v421_v6 = vld [vmem:[%s665_s0 + $0x30] sm:$0xff]  ;;  %v416_v7 = vld [vmem:[%s665_s0 + $0x8] sm:$0xff] }
   0x3   :  { %21 = vst.msk [vmem:[#allocation2 + $0x10] sm:$0xff] %vm18_vm0, %v432_v1  ;;  %426 = vmatpush.bf16.msra.mxu2 %v424_v0  ;;  %427 = vmatpush.bf16.msra.mxu3 %v424_v0  ;;  %v419_v5 = vld [vmem:[%s665_s0 + $0x20] sm:$0xff]  ;;  %v418_v8 = vld [vmem:[%s665_s0 + $0x18] sm:$0xff]  ;;  %v420_v9 = vld [vmem:[%s665_s0 + $0x28] sm:$0xff] }
   0x4   :  { %22 = vst.msk [vmem:[#allocation2 + $0x18] sm:$0xff] %vm18_vm0, %v432_v1  ;;  %v422_v10 = vld [vmem:[%s665_s0 + $0x38] sm:$0xff] }
   0x5   :  { %23 = vst.msk [vmem:[#allocation2 + $0x20] sm:$0xff] %vm18_vm0, %v432_v1 }
   0x6   :  { %24 = vst.msk [vmem:[#allocation2 + $0x28] sm:$0xff] %vm18_vm0, %v432_v1  ;;  %155 = vmatpush.bf16.msra.mxu0 %v423_v2  ;;  %428 = vmatpush.bf16.msra.mxu1 %v423_v2 }
   0x7   :  { %25 = vst.msk [vmem:[#allocation2 + $0x30] sm:$0xff] %vm18_vm0, %v432_v1  ;;  %429 = vmatpush.bf16.msra.mxu2 %v423_v2  ;;  %430 = vmatpush.bf16.msra.mxu3 %v423_v2 }
   0x8   :  { %26 = vst.msk [vmem:[#allocation2 + $0x38] sm:$0xff] %vm18_vm0, %v432_v1  ;;  %v35_v11 = vld [vmem:[#allocation2] sm:$0xff] }
   0x9   :  { %27 = vst.msk [vmem:[#allocation2 + $0x40] sm:$0xff] %vm18_vm0, %v432_v1  ;;  %407 = vmatmul.msk.bf16.vlgmr.msra.gmra.mxu0 %vm123_vm1, %v415_v3  ;;  %409 = vmatmul.msk.bf16.vlgmr.msra.gmra.mxu1 %vm123_vm1, %v417_v4  ;;  %v36_v18 = vld [vmem:[#allocation2 + $0x8] sm:$0xff] }
   0xa   :  { %28 = vst.msk [vmem:[#allocation2 + $0x48] sm:$0xff] %vm18_vm0, %v432_v1  ;;  %411 = vmatmul.msk.bf16.vlgmr.msra.gmra.mxu2 %vm123_vm1, %v419_v5  ;;  %413 = vmatmul.msk.bf16.vlgmr.msra.gmra.mxu3 %vm123_vm1, %v421_v6  ;;  %v37_v31 = vld [vmem:[#allocation2 + $0x10] sm:$0xff] }
   0xb   :  { %29 = vst.msk [vmem:[#allocation2 + $0x50] sm:$0xff] %vm18_vm0, %v432_v1  ;;  %v38_v48 = vld [vmem:[#allocation2 + $0x18] sm:$0xff] }
   0xc   :  { %30 = vst.msk [vmem:[#allocation2 + $0x58] sm:$0xff] %vm18_vm0, %v432_v1  ;;  %v39_v12 = vld [vmem:[#allocation2 + $0x20] sm:$0xff] }
   0xd   :  { %31 = vst.msk [vmem:[#allocation2 + $0x60] sm:$0xff] %vm18_vm0, %v432_v1  ;;  %v40_v19 = vld [vmem:[#allocation2 + $0x28] sm:$0xff] }
   0xe   :  { %32 = vst.msk [vmem:[#allocation2 + $0x68] sm:$0xff] %vm18_vm0, %v432_v1  ;;  %v41_v32 = vld [vmem:[#allocation2 + $0x30] sm:$0xff] }
   0xf   :  { %33 = vst.msk [vmem:[#allocation2 + $0x70] sm:$0xff] %vm18_vm0, %v432_v1  ;;  %v42_v49 = vld [vmem:[#allocation2 + $0x38] sm:$0xff] }
  0x10   :  { %34 = vst.msk [vmem:[#allocation2 + $0x78] sm:$0xff] %vm18_vm0, %v432_v1  ;;  %v43_v17 = vld [vmem:[#allocation2 + $0x40] sm:$0xff] }
  0x11   :  { %v44_v37 = vld [vmem:[#allocation2 + $0x48] sm:$0xff] }
  0x12   :  { %v45_v45 = vld [vmem:[#allocation2 + $0x50] sm:$0xff] }
  0x13   :  { %v46_v62 = vld [vmem:[#allocation2 + $0x58] sm:$0xff] }
  0x14   :  { %v47_v25 = vld [vmem:[#allocation2 + $0x60] sm:$0xff] }
  0x15   :  { %v48_v41 = vld [vmem:[#allocation2 + $0x68] sm:$0xff] }
  0x16   :  { %v49_v56 = vld [vmem:[#allocation2 + $0x70] sm:$0xff] }
  0x17   :  { %v50_v63 = vld [vmem:[#allocation2 + $0x78] sm:$0xff] }
  0x19   :  { %408 = vmatmul.msk.bf16.gmra.mxu0 %vm123_vm1, %v416_v7  ;;  %410 = vmatmul.msk.bf16.gmra.mxu1 %vm123_vm1, %v418_v8 }
  0x1a   :  { %412 = vmatmul.msk.bf16.gmra.mxu2 %vm123_vm1, %v420_v9  ;;  %414 = vmatmul.msk.bf16.gmra.mxu3 %vm123_vm1, %v422_v10 }
  0x86   :  { %v157_v13 = vpop.f32.mrf.mxu0  ;;  %v167_v14 = vpop.f32.mrf.mxu1 }
  0x87   :  { %v197_v15 = vadd.f32 %v157_v13, %v35_v11  ;;  %v201_v16 = vadd.f32 %v167_v14, %v39_v12 }
  0x89   :  { %214 = vst.msk [vmem:[#allocation2] sm:$0xff] %vm18_vm0, %v197_v15 }
  0x8a   :  { %218 = vst.msk [vmem:[#allocation2 + $0x20] sm:$0xff] %vm18_vm0, %v201_v16 }
  0x8d   :  { %v177_v20 = vpop.f32.mrf.mxu2  ;;  %v187_v21 = vpop.f32.mrf.mxu3 }
  0x8e   :  { %v159_v22 = vpop.f32.mrf.mxu0  ;;  %v169_v23 = vpop.f32.mrf.mxu1  ;;  %v205_v24 = vadd.f32 %v177_v20, %v43_v17  ;;  %v209_v30 = vadd.f32 %v187_v21, %v47_v25 }
  0x8f   :  { %v198_v26 = vadd.f32 %v159_v22, %v36_v18  ;;  %v202_v28 = vadd.f32 %v169_v23, %v40_v19 }
  0x90   :  { %v509_v27 = vld [vmem:[#allocation2] sm:$0xff]  ;;  %222 = vst.msk [vmem:[#allocation2 + $0x40] sm:$0xff] %vm18_vm0, %v205_v24 }
  0x91   :  { %249 = vst.msk [vmem:[%s666_s2] sm:$0xff] %vm18_vm0, %v509_v27  ;;  %v517_v29 = vld [vmem:[#allocation2 + $0x20] sm:$0xff]  ;;  %v302_v1 = vmul.f32 %v509_v27, %v509_v27  ;;  %v265_v9 = vsel %vm18_vm0, %v509_v27, 0.0 }
  0x92   :  { %253 = vst.msk [vmem:[%s666_s2 + $0x20] sm:$0xff] %vm18_vm0, %v517_v29  ;;  %v306_v19 = vmul.f32 %v517_v29, %v517_v29  ;;  %v272_v25 = vsel %vm18_vm0, %v517_v29, 0.0 }
  0x93   :  { %215 = vst.msk [vmem:[#allocation2 + $0x8] sm:$0xff] %vm18_vm0, %v198_v26  ;;  %v318_v14 = vsel %vm18_vm0, %v302_v1, 0.0 }
  0x94   :  { %219 = vst.msk [vmem:[#allocation2 + $0x28] sm:$0xff] %vm18_vm0, %v202_v28 }
  0x95   :  { %v179_v33 = vpop.f32.mrf.mxu2  ;;  %226 = vst.msk [vmem:[#allocation2 + $0x60] sm:$0xff] %vm18_vm0, %v209_v30  ;;  %v189_v34 = vpop.f32.mrf.mxu3 }
  0x96   :  { %v162_v35 = vpop.f32.mrf.mxu0  ;;  %v172_v36 = vpop.f32.mrf.mxu1  ;;  %v206_v42 = vadd.f32 %v179_v33, %v44_v37  ;;  %v210_v46 = vadd.f32 %v189_v34, %v48_v41 }
  0x97   :  { %v527_v38 = vld [vmem:[#allocation2 + $0x40] sm:$0xff]  ;;  %v199_v39 = vadd.f32 %v162_v35, %v37_v31  ;;  %v203_v40 = vadd.f32 %v172_v36, %v41_v32  ;;  %v325_v32 = vsel %vm18_vm0, %v306_v19, 0.0 }
  0x98   :  { %257 = vst.msk [vmem:[%s666_s2 + $0x40] sm:$0xff] %vm18_vm0, %v527_v38 }
  0x99   :  { %216 = vst.msk [vmem:[#allocation2 + $0x10] sm:$0xff] %vm18_vm0, %v199_v39 }
  0x9a   :  { %v234_v43 = vld [vmem:[#allocation2 + $0x8] sm:$0xff]  ;;  %220 = vst.msk [vmem:[#allocation2 + $0x30] sm:$0xff] %vm18_vm0, %v203_v40 }
  0x9b   :  { %250 = vst.msk [vmem:[%s666_s2 + $0x8] sm:$0xff] %vm18_vm0, %v234_v43  ;;  %v540_v44 = vld [vmem:[#allocation2 + $0x28] sm:$0xff]  ;;  %v303_v61 = vmul.f32 %v234_v43, %v234_v43  ;;  %v266_v2 = vsel %vm18_vm0, %v234_v43, 0.0 }
  0x9c   :  { %254 = vst.msk [vmem:[%s666_s2 + $0x28] sm:$0xff] %vm18_vm0, %v540_v44  ;;  %v547_v47 = vld [vmem:[#allocation2 + $0x60] sm:$0xff]  ;;  %v267_v13 = vadd.f32 %v266_v2, %v265_v9  ;;  %v307_v26 = vmul.f32 %v540_v44, %v540_v44  ;;  %v274_v33 = vsel %vm18_vm0, %v540_v44, 0.0  ;;  %v310_v44 = vmul.f32 %v527_v38, %v527_v38 }
  0x9d   :  { %223 = vst.msk [vmem:[#allocation2 + $0x48] sm:$0xff] %vm18_vm0, %v206_v42  ;;  %v182_v50 = vpop.f32.mrf.mxu2  ;;  %v192_v51 = vpop.f32.mrf.mxu3  ;;  %v319_v10 = vsel %vm18_vm0, %v303_v61, 0.0  ;;  %v314_v1 = vmul.f32 %v547_v47, %v547_v47 }
  0x9e   :  { %261 = vst.msk [vmem:[%s666_s2 + $0x60] sm:$0xff] %vm18_vm0, %v547_v47  ;;  %v164_v52 = vpop.f32.mrf.mxu0  ;;  %v174_v53 = vpop.f32.mrf.mxu1  ;;  %v207_v54 = vadd.f32 %v182_v50, %v45_v45  ;;  %v211_v60 = vadd.f32 %v192_v51, %v49_v56  ;;  %v320_v16 = vadd.f32 %v319_v10, %v318_v14  ;;  %v327_v37 = vsel %vm18_vm0, %v307_v26, 0.0 }
  0x9f   :  { %v200_v55 = vadd.f32 %v164_v52, %v38_v48  ;;  %227 = vst.msk [vmem:[#allocation2 + $0x68] sm:$0xff] %vm18_vm0, %v210_v46  ;;  %v204_v58 = vadd.f32 %v174_v53, %v42_v49  ;;  %v280_v50 = vsel %vm18_vm0, %v527_v38, 0.0 }
  0xa0   :  { %v235_v57 = vld [vmem:[#allocation2 + $0x10] sm:$0xff]  ;;  %224 = vst.msk [vmem:[#allocation2 + $0x50] sm:$0xff] %vm18_vm0, %v207_v54 }
  0xa1   :  { %251 = vst.msk [vmem:[%s666_s2 + $0x10] sm:$0xff] %vm18_vm0, %v235_v57  ;;  %v239_v59 = vld [vmem:[#allocation2 + $0x30] sm:$0xff]  ;;  %v304_v3 = vmul.f32 %v235_v57, %v235_v57  ;;  %v268_v11 = vsel %vm18_vm0, %v235_v57, 0.0 }
  0xa2   :  { %255 = vst.msk [vmem:[%s666_s2 + $0x30] sm:$0xff] %vm18_vm0, %v239_v59  ;;  %v269_v17 = vadd.f32 %v268_v11, %v267_v13  ;;  %v308_v34 = vmul.f32 %v239_v59, %v239_v59  ;;  %v276_v39 = vsel %vm18_vm0, %v239_v59, 0.0  ;;  %v341_v11 = vsel %vm18_vm0, %v314_v1, 0.0 }
  0xa3   :  { %217 = vst.msk [vmem:[#allocation2 + $0x18] sm:$0xff] %vm18_vm0, %v200_v55  ;;  %v321_v15 = vsel %vm18_vm0, %v304_v3, 0.0  ;;  %v333_v55 = vsel %vm18_vm0, %v310_v44, 0.0 }
  0xa4   :  { %v566_v0 = vld [vmem:[#allocation2 + $0x48] sm:$0xff]  ;;  %221 = vst.msk [vmem:[#allocation2 + $0x38] sm:$0xff] %vm18_vm0, %v204_v58  ;;  %v322_v23 = vadd.f32 %v321_v15, %v320_v16  ;;  %v329_v45 = vsel %vm18_vm0, %v308_v34, 0.0 }
  0xa5   :  { %258 = vst.msk [vmem:[%s666_s2 + $0x48] sm:$0xff] %vm18_vm0, %v566_v0  ;;  %v184_v4 = vpop.f32.mrf.mxu2  ;;  %v194_v5 = vpop.f32.mrf.mxu3  ;;  %v311_v51 = vmul.f32 %v566_v0, %v566_v0  ;;  %v282_v56 = vsel %vm18_vm0, %v566_v0, 0.0  ;;  %v288_v0 = vsel %vm18_vm0, %v547_v47, 0.0 }
  0xa6   :  { %v577_v6 = vld [vmem:[#allocation2 + $0x68] sm:$0xff]  ;;  %v208_v7 = vadd.f32 %v184_v4, %v46_v62  ;;  %228 = vst.msk [vmem:[#allocation2 + $0x70] sm:$0xff] %vm18_vm0, %v211_v60  ;;  %v212_v8 = vadd.f32 %v194_v5, %v50_v63 }
  0xa7   :  { %v243_v12 = vld [vmem:[#allocation2 + $0x50] sm:$0xff]  ;;  %262 = vst.msk [vmem:[%s666_s2 + $0x68] sm:$0xff] %vm18_vm0, %v577_v6  ;;  %v335_v60 = vsel %vm18_vm0, %v311_v51, 0.0 }
  0xa8   :  { %259 = vst.msk [vmem:[%s666_s2 + $0x50] sm:$0xff] %vm18_vm0, %v243_v12  ;;  %v312_v57 = vmul.f32 %v243_v12, %v243_v12  ;;  %v284_v61 = vsel %vm18_vm0, %v243_v12, 0.0  ;;  %v290_v12 = vsel %vm18_vm0, %v577_v6, 0.0 }
  0xa9   :  { %225 = vst.msk [vmem:[#allocation2 + $0x58] sm:$0xff] %vm18_vm0, %v208_v7  ;;  %v315_v7 = vmul.f32 %v577_v6, %v577_v6 }
  0xaa   :  { %v236_v18 = vld [vmem:[#allocation2 + $0x18] sm:$0xff]  ;;  %229 = vst.msk [vmem:[#allocation2 + $0x78] sm:$0xff] %vm18_vm0, %v212_v8  ;;  %v337_v2 = vsel %vm18_vm0, %v312_v57, 0.0 }
  0xab   :  { %252 = vst.msk [vmem:[%s666_s2 + $0x18] sm:$0xff] %vm18_vm0, %v236_v18  ;;  %v270_v20 = vsel %vm18_vm0, %v236_v18, 0.0  ;;  %v305_v21 = vmul.f32 %v236_v18, %v236_v18  ;;  %v240_v22 = vld [vmem:[#allocation2 + $0x38] sm:$0xff]  ;;  %v343_v16 = vsel %vm18_vm0, %v315_v7, 0.0 }
  0xac   :  { %v271_v24 = vadd.f32 %v270_v20, %v269_v17  ;;  %256 = vst.msk [vmem:[%s666_s2 + $0x38] sm:$0xff] %vm18_vm0, %v240_v22  ;;  %v309_v40 = vmul.f32 %v240_v22, %v240_v22  ;;  %v278_v46 = vsel %vm18_vm0, %v240_v22, 0.0 }
  0xad   :  { %v323_v27 = vsel %vm18_vm0, %v305_v21, 0.0  ;;  %v247_v28 = vld [vmem:[#allocation2 + $0x70] sm:$0xff] }
  0xae   :  { %v273_v30 = vadd.f32 %v272_v25, %v271_v24  ;;  %v324_v31 = vadd.f32 %v323_v27, %v322_v23  ;;  %263 = vst.msk [vmem:[%s666_s2 + $0x70] sm:$0xff] %vm18_vm0, %v247_v28  ;;  %v331_v52 = vsel %vm18_vm0, %v309_v40, 0.0  ;;  %v316_v13 = vmul.f32 %v247_v28, %v247_v28 }
  0xaf   :  { %v292_v17 = vsel %vm18_vm0, %v247_v28, 0.0 }
  0xb0   :  { %v326_v29 = vadd.f32 %v325_v32, %v324_v31  ;;  %v275_v35 = vadd.f32 %v274_v33, %v273_v30  ;;  %v244_v36 = vld [vmem:[#allocation2 + $0x58] sm:$0xff]  ;;  %v345_v20 = vsel %vm18_vm0, %v316_v13, 0.0 }
  0xb1   :  { %260 = vst.msk [vmem:[%s666_s2 + $0x58] sm:$0xff] %vm18_vm0, %v244_v36  ;;  %v248_v41 = vld [vmem:[#allocation2 + $0x78] sm:$0xff]  ;;  %v313_v38 = vmul.f32 %v244_v36, %v244_v36  ;;  %v286_v3 = vsel %vm18_vm0, %v244_v36, 0.0 }
  0xb2   :  { %v277_v42 = vadd.f32 %v276_v39, %v275_v35  ;;  %v328_v43 = vadd.f32 %v327_v37, %v326_v29  ;;  %264 = vst.msk [vmem:[%s666_s2 + $0x78] sm:$0xff] %vm18_vm0, %v248_v41  ;;  %v317_v47 = vmul.f32 %v248_v41, %v248_v41  ;;  %v294_v21 = vsel %vm18_vm0, %v248_v41, 0.0 }
  0xb3   :  { %v339_v8 = vsel %vm18_vm0, %v313_v38, 0.0 }
  0xb4   :  { %v279_v48 = vadd.f32 %v278_v46, %v277_v42  ;;  %v330_v49 = vadd.f32 %v329_v45, %v328_v43  ;;  %v347_v24 = vsel %vm18_vm0, %v317_v47, 0.0 }
  0xb6   :  { %v281_v53 = vadd.f32 %v280_v50, %v279_v48  ;;  %v332_v54 = vadd.f32 %v331_v52, %v330_v49 }
  0xb8   :  { %v334_v58 = vadd.f32 %v333_v55, %v332_v54  ;;  %v283_v59 = vadd.f32 %v282_v56, %v281_v53 }
  0xba   :  { %v285_v62 = vadd.f32 %v284_v61, %v283_v59  ;;  %v336_v63 = vadd.f32 %v335_v60, %v334_v58 }
  0xbc   :  { %v338_v4 = vadd.f32 %v337_v2, %v336_v63  ;;  %v287_v5 = vadd.f32 %v286_v3, %v285_v62 }
  0xbe   :  { %v289_v9 = vadd.f32 %v288_v0, %v287_v5  ;;  %v340_v10 = vadd.f32 %v339_v8, %v338_v4 }
  0xc0   :  { %v342_v14 = vadd.f32 %v341_v11, %v340_v10  ;;  %v291_v15 = vadd.f32 %v290_v12, %v289_v9 }
  0xc2   :  { %v293_v18 = vadd.f32 %v292_v17, %v291_v15  ;;  %v344_v19 = vadd.f32 %v343_v16, %v342_v14 }
  0xc4   :  { %v346_v22 = vadd.f32 %v345_v20, %v344_v19  ;;  %v295_v23 = vadd.f32 %v294_v21, %v293_v18 }
  0xc6   :  { %v296_v25 = vrot.slane %v295_v23, 4  ;;  %v348_v6 = vadd.f32 %v347_v24, %v346_v22 }
  0xc8   :  { %v297_v26 = vadd.f32 %v296_v25, %v295_v23  ;;  %v349_v27 = vrot.slane %v348_v6, 4 }
  0xca   :  { %v298_v30 = vrot.slane %v297_v26, 2  ;;  %v350_v31 = vadd.f32 %v349_v27, %v348_v6 }
  0xcc   :  { %v299_v32 = vadd.f32 %v298_v30, %v297_v26  ;;  %v351_v33 = vrot.slane %v350_v31, 2 }
  0xce   :  { %v300_v28 = vrot.slane %v299_v32, 1  ;;  %v352_v34 = vadd.f32 %v351_v33, %v350_v31 }
  0xd0   :  { %v353_v29 = vrot.slane %v352_v34, 1  ;;  %v301_v35 = vadd.f32 %v300_v28, %v299_v32 }
  0xd2   :  { %v354_v36 = vadd.f32 %v353_v29, %v352_v34 }
  0xd4   :  { %v356_v37 = vsel %vm355_vm2, %v301_v35, %v354_v36 }
  0xd5   :  { %358 = vst.msk [vmem:[%s667_s3] sm:$0x3] %vm357_vm3, %v356_v37 }

// kernel: magic_module_forward.21
= control target key start
LH: loop header
LB: loop body
LE: loop exit
PB: predicated region body
PF: predicated region fallthrough
CT: control target
= control target key end

     0   :  { %s714_s15 = smov 0   ;;  %s810_s0 = inlined_call_operand.vmem [shape: f32[2,64,16], index: 0, kind: input, shape index: {}]   ;;  %s811_s1 = inlined_call_operand.vmem [shape: bf16[2,64,32], index: 1, kind: input, shape index: {}]   ;;  %s812_s2 = inlined_call_operand.vmem [shape: f32[1,16], index: 2, kind: input, shape index: {}]   ;;  %s813_s3 = inlined_call_operand.vmem [shape: f32[1,16], index: 3, kind: input, shape index: {}]   ;;  %s814_s4 = inlined_call_operand.vmem [shape: f32[2,64,32], index: 4, kind: output, shape index: {}]  }
   0x1 LB: > { %s587_s16 = sadd.s32 4294967295, %s687_s15   ;;  %p591_p0 = scmp.ge.s32.totalorder %s687_s15, 1  ;;  %s687_s15 = sphi %s714_s15, %s14_s15  }
   0x2   : > { %p172_p1 = scmp.lt.s32.totalorder %s687_s15, 3 }
   0x4   : > { %p173_p2 = pnand %p591_p0, %p172_p1 }
   0x5   : > { %p203_p3 = scmp.lt.s32.totalorder (!%p173_p2), %s587_s16, 1 }
   0x6   : > { %176 = sbr.rel (%p173_p2) target bundleno = 635 (0x27b), region = 36 }
   0xb   : > { %s816_s16 = smov (!%p203_p3, %s587_s16), 1  ;;  %v647_v0 = vld [vmem:[%s812_s2] ss:$0 sm:$0xff]  ;;  %vm291_vm4 = vcmask 130048   ;;  %vm345_vm9 = vcmask 523264   ;;  %vm511_vm10 = vcmask 261120  }
   0xc   : > { %s624_s19 = sshll.u32 %s816_s16, 6  ;;  %v648_v1 = vld [vmem:[%s813_s3] ss:$0 sm:$0xff]  ;;  %s625_s25 = sshll.u32 %s816_s16, 5 }
   0xd   : > { %s733_s22 = scalar_lea.vmem %s810_s0, %s624_s19  ;;  %s212_s28 = scalar_lea.vmem %s811_s1, %s625_s25 }
   0xe   : > { %v225_v2 = vld [vmem:[%s733_s22 + $0x30] sm:$0xff]  ;;  %v226_v3 = vld [vmem:[%s733_s22 + $0x38] sm:$0xff]  ;;  %v223_v4 = vld [vmem:[%s733_s22 + $0x20] sm:$0xff]  ;;  %s217_s5 = scalar_lea.vmem %s814_s4, %s624_s19 }
   0xf   : > { %v237_v5 = vmul.f32 %v647_v0, %v225_v2  ;;  %v238_v6 = vmul.f32 %v647_v0, %v226_v3  ;;  %v224_v7 = vld [vmem:[%s733_s22 + $0x28] sm:$0xff]  ;;  %v235_v8 = vmul.f32 %v647_v0, %v223_v4  ;;  %v221_v9 = vld [vmem:[%s733_s22 + $0x10] sm:$0xff]  ;;  %v222_v10 = vld [vmem:[%s733_s22 + $0x18] sm:$0xff] }
  0x10   : > { %v236_v11 = vmul.f32 %v647_v0, %v224_v7  ;;  %v233_v16 = vmul.f32 %v647_v0, %v221_v9  ;;  %v234_v17 = vmul.f32 %v647_v0, %v222_v10  ;;  %v219_v30 = vld [vmem:[%s733_s22] sm:$0xff]  ;;  %v220_v31 = vld [vmem:[%s733_s22 + $0x8] sm:$0xff] }
  0x11   : > { %v249_v12 = vadd.f32 %v648_v1, %v237_v5  ;;  %v250_v13 = vadd.f32 %v648_v1, %v238_v6  ;;  %v247_v14 = vadd.f32 %v648_v1, %v235_v8  ;;  %v231_v35 = vmul.f32 %v647_v0, %v219_v30 }
  0x12   : > { %v248_v15 = vadd.f32 %v648_v1, %v236_v11  ;;  %v245_v27 = vadd.f32 %v648_v1, %v233_v16  ;;  %v246_v28 = vadd.f32 %v648_v1, %v234_v17  ;;  %v232_v36 = vmul.f32 %v647_v0, %v220_v31 }
  0x13   : > { %vm257_vm0 = vcmp.ge.f32.partialorder %v249_v12, 0.0  ;;  %vm258_vm1 = vcmp.ge.f32.partialorder %v250_v13, 0.0  ;;  %v265_v18 = vmul.f32 0.01, %v249_v12  ;;  %v266_v19 = vmul.f32 0.01, %v250_v13 }
  0x14   : > { %vm255_vm2 = vcmp.ge.f32.partialorder %v247_v14, 0.0  ;;  %vm256_vm3 = vcmp.ge.f32.partialorder %v248_v15, 0.0  ;;  %v263_v20 = vmul.f32 0.01, %v247_v14  ;;  %v264_v21 = vmul.f32 0.01, %v248_v15 }
  0x15   : > { %v273_v22 = vsel %vm257_vm0, %v249_v12, %v265_v18  ;;  %v274_v23 = vsel %vm258_vm1, %v250_v13, %v266_v19  ;;  %v261_v33 = vmul.f32 0.01, %v245_v27  ;;  %v262_v34 = vmul.f32 0.01, %v246_v28 }
  0x16   : > { %v290_v24 = vpack.c.bf16 %v274_v23, %v273_v22  ;;  %v271_v25 = vsel %vm255_vm2, %v247_v14, %v263_v20  ;;  %v272_v26 = vsel %vm256_vm3, %v248_v15, %v264_v21  ;;  %vm253_vm5 = vcmp.ge.f32.partialorder %v245_v27, 0.0 }
  0x17   : > { %v289_v32 = vpack.c.bf16 %v272_v26, %v271_v25  ;;  %vm254_vm6 = vcmp.ge.f32.partialorder %v246_v28, 0.0  ;;  %v269_v38 = vsel %vm253_vm5, %v245_v27, %v261_v33  ;;  %v243_v40 = vadd.f32 %v648_v1, %v231_v35 }
  0x18   : > { %v314_v29 = vsel %vm291_vm4, %v290_v24, 0  ;;  %v270_v39 = vsel %vm254_vm6, %v246_v28, %v262_v34  ;;  %v244_v41 = vadd.f32 %v648_v1, %v232_v36  ;;  %v279_v50 = vmul.f32 0.25, %v271_v25 }
  0x19   : > { %320 = vmatpush.bf16.xpose.msra.mxu0 %v314_v29  ;;  %631 = vmatpush.bf16.xpose.msra.mxu2 %v314_v29  ;;  %v311_v37 = vsel %vm291_vm4, %v289_v32, 0  ;;  %v288_v42 = vpack.c.bf16 %v270_v39, %v269_v38  ;;  %v259_v43 = vmul.f32 0.01, %v243_v40  ;;  %vm251_vm7 = vcmp.ge.f32.partialorder %v243_v40, 0.0 }
  0x1a   : > { %v260_v44 = vmul.f32 0.01, %v244_v41  ;;  %vm252_vm8 = vcmp.ge.f32.partialorder %v244_v41, 0.0  ;;  %v280_v51 = vmul.f32 0.25, %v272_v26  ;;  %v281_v56 = vmul.f32 0.25, %v273_v22 }
  0x1b   : > { %v308_v45 = vsel %vm291_vm4, %v288_v42, 0  ;;  %v267_v46 = vsel %vm251_vm7, %v243_v40, %v259_v43  ;;  %v282_v57 = vmul.f32 0.25, %v274_v23  ;;  %v277_v58 = vmul.f32 0.25, %v269_v38 }
  0x1c   : > { %v268_v47 = vsel %vm252_vm8, %v244_v41, %v260_v44  ;;  %v275_v52 = vmul.f32 0.25, %v267_v46  ;;  %v285_v55 = vpack.c.bf16 %v280_v51, %v279_v50  ;;  %v278_v59 = vmul.f32 0.25, %v270_v39 }
  0x1d   : > { %v287_v48 = vpack.c.bf16 %v268_v47, %v267_v46  ;;  %v276_v53 = vmul.f32 0.25, %v268_v47  ;;  %v286_v61 = vpack.c.bf16 %v282_v57, %v281_v56  ;;  %v628_v56 = vld [vmem:[%s212_s28 + $0x8] sm:$0xff]  ;;  %v627_v57 = vld [vmem:[%s212_s28] sm:$0xff] }
  0x1e   : > { %v284_v60 = vpack.c.bf16 %v278_v59, %v277_v58 }
  0x1f   : > { %v305_v49 = vsel %vm291_vm4, %v287_v48, 0  ;;  %v283_v54 = vpack.c.bf16 %v276_v53, %v275_v52 }
  0x21   : > { %321 = vmatpush.bf16.xpose.msra.mxu0 %v311_v37  ;;  %632 = vmatpush.bf16.xpose.msra.mxu2 %v311_v37 }
  0x29   : > { %322 = vmatpush.bf16.xpose.msra.mxu0 %v308_v45  ;;  %633 = vmatpush.bf16.xpose.msra.mxu2 %v308_v45 }
  0x31   : > { %323 = vmatpush.bf16.xpose.msra.mxu0 %v305_v49  ;;  %634 = vmatpush.bf16.xpose.msra.mxu2 %v305_v49 }
  0x38   : > { %598 = vmatmul.msk.bf16.vlgmr.msra.gmra.mxu0 %vm291_vm4, %v283_v54  ;;  %600 = vmatmul.msk.bf16.vlgmr.msra.gmra.mxu2 %vm291_vm4, %v285_v55  ;;  %v630_v54 = vld [vmem:[%s212_s28 + $0x18] sm:$0xff]  ;;  %v629_v55 = vld [vmem:[%s212_s28 + $0x10] sm:$0xff] }
  0x39   : > { %635 = vmatpush.bf16.msra.mxu3 %v630_v54  ;;  %486 = vmatpush.bf16.msra.mxu1 %v630_v54 }
  0x3d   : > { %636 = vmatpush.bf16.msra.mxu3 %v629_v55  ;;  %487 = vmatpush.bf16.msra.mxu1 %v629_v55 }
  0x41   : > { %637 = vmatpush.bf16.msra.mxu3 %v628_v56  ;;  %488 = vmatpush.bf16.msra.mxu1 %v628_v56 }
  0x45   : > { %638 = vmatpush.bf16.msra.mxu3 %v627_v57  ;;  %489 = vmatpush.bf16.msra.mxu1 %v627_v57 }
  0x48   : > { %599 = vmatmul.msk.bf16.gmra.mxu0 %vm291_vm4, %v284_v60  ;;  %601 = vmatmul.msk.bf16.gmra.mxu2 %vm291_vm4, %v286_v61 }
  0xb5   : > { %v325_v62 = vpop.f32.mrf.mxu0 }
  0xb6   : > { %v346_v13 = vsel %vm345_vm9, %v325_v62, -inf }
  0xbb   : > { %v335_v63 = vpop.f32.mrf.mxu2 }
  0xbc   : > { %v358_v0 = vsel %vm345_vm9, %v335_v63, -inf }
  0xbd   : > { %359 = vmax.xlane.f32.xlu1 %v358_v0  ;;  %v327_v1 = vpop.f32.mrf.mxu0 }
  0xbe   : > { %v349_v8 = vsel %vm345_vm9, %v327_v1, -inf }
  0xc3   : > { %v337_v2 = vpop.f32.mrf.mxu2 }
  0xc4   : > { %v361_v3 = vsel %vm345_vm9, %v337_v2, -inf }
  0xc5   : > { %362 = vmax.xlane.f32.xlu1 %v361_v3  ;;  %v330_v4 = vpop.f32.mrf.mxu0 }
  0xc6   : > { %v352_v5 = vsel %vm345_vm9, %v330_v4, -inf }
  0xc7   : > { %353 = vmax.xlane.f32.xlu0 %v352_v5 }
  0xcb   : > { %v340_v6 = vpop.f32.mrf.mxu2 }
  0xcc   : > { %v364_v7 = vsel %vm345_vm9, %v340_v6, -inf }
  0xcd   : > { %365 = vmax.xlane.f32.xlu2 %v364_v7  ;;  %350 = vmax.xlane.f32.xlu1 %v349_v8  ;;  %v332_v9 = vpop.f32.mrf.mxu0 }
  0xce   : > { %v355_v10 = vsel %vm345_vm9, %v332_v9, -inf }
  0xcf   : > { %356 = vmax.xlane.f32.xlu0 %v355_v10 }
  0xd3   : > { %v342_v11 = vpop.f32.mrf.mxu2 }
  0xd4   : > { %v367_v12 = vsel %vm345_vm9, %v342_v11, -inf }
  0xd5   : > { %368 = vmax.xlane.f32.xlu2 %v367_v12 }
  0xd7   : > { %347 = vmax.xlane.f32.xlu0 %v346_v13 }
 0x130   : > { %v360_v14 = vpop.xlane.xlu1 %359 }
 0x131   : > { %v374_v15 = vsub.f32 %v335_v63, %v360_v14 }
 0x133   : > { %v386_v16 = vmul.f32 1.442695, %v374_v15 }
 0x135   : > { %649 = vpow2.f32 %v386_v16 }
 0x138   : > { %v363_v17 = vpop.xlane.xlu1 %362 }
 0x139   : > { %v375_v22 = vsub.f32 %v337_v2, %v363_v17 }
 0x13a   : > { %v354_v18 = vpop.xlane.xlu0 %353 }
 0x13b   : > { %v762_v19 = vpop.eup %649  ;;  %v372_v20 = vsub.f32 %v330_v4, %v354_v18  ;;  %v388_v25 = vmul.f32 1.442695, %v375_v22 }
 0x13c   : > { %v406_v21 = vsel %vm345_vm9, %v762_v19, 0.0 }
 0x13d   : > { %v382_v23 = vmul.f32 1.442695, %v372_v20  ;;  %407 = vadd.xlane.f32.xlu1 %v406_v21 }
 0x13f   : > { %651 = vpow2.f32 %v382_v23 }
 0x140   : > { %v366_v24 = vpop.xlane.xlu2 %365  ;;  %653 = vpow2.f32 %v388_v25  ;;  %v351_v35 = vpop.xlane.xlu1 %350 }
 0x141   : > { %v376_v28 = vsub.f32 %v340_v6, %v366_v24  ;;  %v371_v41 = vsub.f32 %v327_v1, %v351_v35 }
 0x142   : > { %v357_v26 = vpop.xlane.xlu0 %356 }
 0x143   : > { %v373_v27 = vsub.f32 %v332_v9, %v357_v26  ;;  %v390_v32 = vmul.f32 1.442695, %v376_v28  ;;  %v380_v45 = vmul.f32 1.442695, %v371_v41 }
 0x145   : > { %v652_v29 = vpop.eup %651  ;;  %v384_v30 = vmul.f32 1.442695, %v373_v27 }
 0x146   : > { %v400_v31 = vsel %vm345_vm9, %v652_v29, 0.0  ;;  %v767_v37 = vpop.eup %653 }
 0x147   : > { %655 = vpow2.f32 %v384_v30  ;;  %401 = vadd.xlane.f32.xlu2 %v400_v31  ;;  %v409_v43 = vsel %vm345_vm9, %v767_v37, 0.0 }
 0x148   : > { %v369_v33 = vpop.xlane.xlu2 %368  ;;  %657 = vpow2.f32 %v390_v32 }
 0x149   : > { %v377_v34 = vsub.f32 %v342_v11, %v369_v33 }
 0x14a   : > { %v348_v36 = vpop.xlane.xlu0 %347 }
 0x14b   : > { %v392_v38 = vmul.f32 1.442695, %v377_v34  ;;  %v370_v39 = vsub.f32 %v325_v62, %v348_v36 }
 0x14d   : > { %v656_v40 = vpop.eup %655  ;;  %659 = vpow2.f32 %v392_v38  ;;  %v378_v42 = vmul.f32 1.442695, %v370_v39 }
 0x14e   : > { %v403_v44 = vsel %vm345_vm9, %v656_v40, 0.0  ;;  %v772_v46 = vpop.eup %657 }
 0x14f   : > { %661 = vpow2.f32 %v378_v42  ;;  %410 = vadd.xlane.f32.xlu2 %v409_v43  ;;  %404 = vadd.xlane.f32.xlu0 %v403_v44  ;;  %v412_v50 = vsel %vm345_vm9, %v772_v46, 0.0 }
 0x150   : > { %663 = vpow2.f32 %v380_v45 }
 0x153   : > { %v774_v47 = vpop.eup %659 }
 0x154   : > { %v415_v48 = vsel %vm345_vm9, %v774_v47, 0.0 }
 0x155   : > { %v662_v49 = vpop.eup %661  ;;  %416 = vadd.xlane.f32.xlu1 %v415_v48 }
 0x156   : > { %v394_v51 = vsel %vm345_vm9, %v662_v49, 0.0  ;;  %v664_v52 = vpop.eup %663 }
 0x157   : > { %413 = vadd.xlane.f32.xlu0 %v412_v50  ;;  %395 = vadd.xlane.f32.xlu2 %v394_v51  ;;  %v397_v53 = vsel %vm345_vm9, %v664_v52, 0.0 }
 0x15f   : > { %398 = vadd.xlane.f32.xlu0 %v397_v53 }
 0x1b0   : > { %v408_v4 = vpop.xlane.xlu1 %407 }
 0x1ba   : > { %v402_v58 = vpop.xlane.xlu2 %401 }
 0x1bb   : > { %665 = vrcp.f32 %v402_v58 }
 0x1c1   : > { %v666_v61 = vpop.eup %665 }
 0x1c2   : > { %v405_v59 = vpop.xlane.xlu0 %404  ;;  %v411_v60 = vpop.xlane.xlu2 %410  ;;  %v428_v0 = vmul.f32 %v666_v61, %v652_v29 }
 0x1c3   : > { %667 = vrcp.f32 %v405_v59 }
 0x1c4   : > { %669 = vrcp.f32 %v411_v60 }
 0x1c8   : > { %v417_v16 = vpop.xlane.xlu1 %416 }
 0x1c9   : > { %v668_v62 = vpop.eup %667 }
 0x1ca   : > { %v414_v63 = vpop.xlane.xlu0 %413  ;;  %v429_v1 = vmul.f32 %v668_v62, %v656_v40  ;;  %v396_v3 = vpop.xlane.xlu2 %395 }
 0x1cb   : > { %671 = vrcp.f32 %v396_v3  ;;  %v670_v6 = vpop.eup %669 }
 0x1cc   : > { %v435_v2 = vpack.c.bf16 %v429_v1, %v428_v0  ;;  %673 = vrcp.f32 %v408_v4  ;;  %v431_v10 = vmul.f32 %v670_v6, %v767_v37 }
 0x1ce   : > { %619 = vmatmul.msk.bf16.vlgmr.msra.gmra.mxu3 %vm345_vm9, %v435_v2 }
 0x1d1   : > { %v672_v7 = vpop.eup %671 }
 0x1d2   : > { %v399_v5 = vpop.xlane.xlu0 %398  ;;  %v674_v8 = vpop.eup %673  ;;  %v426_v11 = vmul.f32 %v672_v7, %v662_v49 }
 0x1d3   : > { %675 = vrcp.f32 %v399_v5  ;;  %v430_v13 = vmul.f32 %v674_v8, %v762_v19 }
 0x1d4   : > { %677 = vrcp.f32 %v414_v63 }
 0x1d5   : > { %v436_v15 = vpack.c.bf16 %v431_v10, %v430_v13  ;;  %679 = vrcp.f32 %v417_v16 }
 0x1d9   : > { %v676_v9 = vpop.eup %675 }
 0x1da   : > { %v427_v12 = vmul.f32 %v676_v9, %v664_v52  ;;  %v678_v17 = vpop.eup %677 }
 0x1db   : > { %v680_v18 = vpop.eup %679  ;;  %v432_v20 = vmul.f32 %v678_v17, %v772_v46 }
 0x1dc   : > { %v434_v14 = vpack.c.bf16 %v427_v12, %v426_v11  ;;  %v433_v21 = vmul.f32 %v680_v18, %v774_v47 }
 0x1de   : > { %618 = vmatmul.msk.bf16.vlgmr.msra.gmra.mxu1 %vm345_vm9, %v434_v14  ;;  %620 = vmatmul.msk.bf16.gmra.mxu3 %vm345_vm9, %v436_v15  ;;  %v437_v22 = vpack.c.bf16 %v433_v21, %v432_v20 }
 0x1ee   : > { %621 = vmatmul.msk.bf16.gmra.mxu3 %vm345_vm9, %v437_v22 }
 0x251   : > { %v496_v19 = vpop.f32.mrf.mxu3 }
 0x252   : > { %514 = vst.msk [vmem:[%s217_s5 + $0x10] sm:$0xff] %vm511_vm10, %v496_v19 }
 0x259   : > { %v498_v23 = vpop.f32.mrf.mxu3 }
 0x25a   : > { %515 = vst.msk [vmem:[%s217_s5 + $0x18] sm:$0xff] %vm511_vm10, %v498_v23 }
 0x25b   : > { %v491_v24 = vpop.f32.mrf.mxu1 }
 0x25c   : > { %512 = vst.msk [vmem:[%s217_s5] sm:$0xff] %vm511_vm10, %v491_v24 }
 0x261   : > { %v501_v25 = vpop.f32.mrf.mxu3 }
 0x262   : > { %516 = vst.msk [vmem:[%s217_s5 + $0x20] sm:$0xff] %vm511_vm10, %v501_v25 }
 0x263   : > { %v493_v26 = vpop.f32.mrf.mxu1 }
 0x264   : > { %513 = vst.msk [vmem:[%s217_s5 + $0x8] sm:$0xff] %vm511_vm10, %v493_v26 }
 0x269   : > { %v503_v27 = vpop.f32.mrf.mxu3 }
 0x26a   : > { %517 = vst.msk [vmem:[%s217_s5 + $0x28] sm:$0xff] %vm511_vm10, %v503_v27 }
 0x271   : > { %v506_v28 = vpop.f32.mrf.mxu3 }
 0x272   : > { %518 = vst.msk [vmem:[%s217_s5 + $0x30] sm:$0xff] %vm511_vm10, %v506_v28 }
 0x279   : > { %v508_v29 = vpop.f32.mrf.mxu3 }
 0x27a   : > { %519 = vst.msk [vmem:[%s217_s5 + $0x38] sm:$0xff] %vm511_vm10, %v508_v29 }
 0x27b PF: > { %s14_s15 = sadd.s32 1, %s687_s15  }
 0x27c   : > { %p11_p4 = scmp.ge.s32.totalorder %s14_s15, 4  }
 0x27e   :  { %13 = sbr.rel (!%p11_p4) target bundleno = 1 (0x1), region = 69 }

// kernel: magic_module_forward.22
= control target key start
LH: loop header
LB: loop body
LE: loop exit
PB: predicated region body
PF: predicated region fallthrough
CT: control target
= control target key end

     0   :  { %vm16_vm0 = vcmask 261120   ;;  %v331_v1 = vmov 0.0   ;;  %s481_s1 = inlined_call_operand.vmem [shape: bf16[32,32], index: 1, kind: input, shape index: {}]   ;;  %s482_s0 = inlined_call_operand.vmem [shape: bf16[128,32], index: 0, kind: input, shape index: {}]   ;;  %s483_s2 = inlined_call_operand.vmem [shape: f32[128,32], index: 2, kind: output, shape index: {}]  }
   0x1   :  { %v323_v0 = vld [vmem:[%s481_s1 + $0x8] sm:$0xff]  ;;  %17 = vst.msk [vmem:[#allocation2] sm:$0xff] %vm16_vm0, %v331_v1  ;;  %v322_v2 = vld [vmem:[%s481_s1] sm:$0xff]  ;;  %v316_v4 = vld [vmem:[%s482_s0 + $0x10] sm:$0xff] }
   0x2   :  { %18 = vst.msk [vmem:[#allocation2 + $0x8] sm:$0xff] %vm16_vm0, %v331_v1  ;;  %152 = vmatpush.bf16.msra.mxu0 %v323_v0  ;;  %324 = vmatpush.bf16.msra.mxu1 %v323_v0  ;;  %v314_v3 = vld [vmem:[%s482_s0] sm:$0xff]  ;;  %v320_v6 = vld [vmem:[%s482_s0 + $0x30] sm:$0xff]  ;;  %v315_v7 = vld [vmem:[%s482_s0 + $0x8] sm:$0xff] }
   0x3   :  { %19 = vst.msk [vmem:[#allocation2 + $0x10] sm:$0xff] %vm16_vm0, %v331_v1  ;;  %325 = vmatpush.bf16.msra.mxu2 %v323_v0  ;;  %326 = vmatpush.bf16.msra.mxu3 %v323_v0  ;;  %v318_v5 = vld [vmem:[%s482_s0 + $0x20] sm:$0xff]  ;;  %v317_v8 = vld [vmem:[%s482_s0 + $0x18] sm:$0xff]  ;;  %v319_v9 = vld [vmem:[%s482_s0 + $0x28] sm:$0xff] }
   0x4   :  { %20 = vst.msk [vmem:[#allocation2 + $0x18] sm:$0xff] %vm16_vm0, %v331_v1  ;;  %v321_v10 = vld [vmem:[%s482_s0 + $0x38] sm:$0xff] }
   0x5   :  { %21 = vst.msk [vmem:[#allocation2 + $0x20] sm:$0xff] %vm16_vm0, %v331_v1 }
   0x6   :  { %22 = vst.msk [vmem:[#allocation2 + $0x28] sm:$0xff] %vm16_vm0, %v331_v1  ;;  %153 = vmatpush.bf16.msra.mxu0 %v322_v2  ;;  %327 = vmatpush.bf16.msra.mxu1 %v322_v2 }
   0x7   :  { %23 = vst.msk [vmem:[#allocation2 + $0x30] sm:$0xff] %vm16_vm0, %v331_v1  ;;  %328 = vmatpush.bf16.msra.mxu2 %v322_v2  ;;  %329 = vmatpush.bf16.msra.mxu3 %v322_v2 }
   0x8   :  { %24 = vst.msk [vmem:[#allocation2 + $0x38] sm:$0xff] %vm16_vm0, %v331_v1  ;;  %v33_v11 = vld [vmem:[#allocation2] sm:$0xff] }
   0x9   :  { %25 = vst.msk [vmem:[#allocation2 + $0x40] sm:$0xff] %vm16_vm0, %v331_v1  ;;  %306 = vmatmul.msk.bf16.vlgmr.msra.gmra.mxu0 %vm16_vm0, %v314_v3  ;;  %308 = vmatmul.msk.bf16.vlgmr.msra.gmra.mxu1 %vm16_vm0, %v316_v4  ;;  %v34_v21 = vld [vmem:[#allocation2 + $0x8] sm:$0xff] }
   0xa   :  { %26 = vst.msk [vmem:[#allocation2 + $0x48] sm:$0xff] %vm16_vm0, %v331_v1  ;;  %310 = vmatmul.msk.bf16.vlgmr.msra.gmra.mxu2 %vm16_vm0, %v318_v5  ;;  %312 = vmatmul.msk.bf16.vlgmr.msra.gmra.mxu3 %vm16_vm0, %v320_v6  ;;  %v35_v40 = vld [vmem:[#allocation2 + $0x10] sm:$0xff] }
   0xb   :  { %27 = vst.msk [vmem:[#allocation2 + $0x50] sm:$0xff] %vm16_vm0, %v331_v1  ;;  %v36_v51 = vld [vmem:[#allocation2 + $0x18] sm:$0xff] }
   0xc   :  { %28 = vst.msk [vmem:[#allocation2 + $0x58] sm:$0xff] %vm16_vm0, %v331_v1  ;;  %v37_v12 = vld [vmem:[#allocation2 + $0x20] sm:$0xff] }
   0xd   :  { %29 = vst.msk [vmem:[#allocation2 + $0x60] sm:$0xff] %vm16_vm0, %v331_v1  ;;  %v38_v24 = vld [vmem:[#allocation2 + $0x28] sm:$0xff] }
   0xe   :  { %30 = vst.msk [vmem:[#allocation2 + $0x68] sm:$0xff] %vm16_vm0, %v331_v1  ;;  %v39_v41 = vld [vmem:[#allocation2 + $0x30] sm:$0xff] }
   0xf   :  { %31 = vst.msk [vmem:[#allocation2 + $0x70] sm:$0xff] %vm16_vm0, %v331_v1  ;;  %v40_v54 = vld [vmem:[#allocation2 + $0x38] sm:$0xff] }
  0x10   :  { %32 = vst.msk [vmem:[#allocation2 + $0x78] sm:$0xff] %vm16_vm0, %v331_v1  ;;  %v41_v17 = vld [vmem:[#allocation2 + $0x40] sm:$0xff] }
  0x11   :  { %v42_v31 = vld [vmem:[#allocation2 + $0x48] sm:$0xff] }
  0x12   :  { %v43_v46 = vld [vmem:[#allocation2 + $0x50] sm:$0xff] }
  0x13   :  { %v44_v61 = vld [vmem:[#allocation2 + $0x58] sm:$0xff] }
  0x14   :  { %v45_v18 = vld [vmem:[#allocation2 + $0x60] sm:$0xff] }
  0x15   :  { %v46_v32 = vld [vmem:[#allocation2 + $0x68] sm:$0xff] }
  0x16   :  { %v47_v48 = vld [vmem:[#allocation2 + $0x70] sm:$0xff] }
  0x17   :  { %v48_v62 = vld [vmem:[#allocation2 + $0x78] sm:$0xff] }
  0x19   :  { %307 = vmatmul.msk.bf16.gmra.mxu0 %vm16_vm0, %v315_v7  ;;  %309 = vmatmul.msk.bf16.gmra.mxu1 %vm16_vm0, %v317_v8 }
  0x1a   :  { %311 = vmatmul.msk.bf16.gmra.mxu2 %vm16_vm0, %v319_v9  ;;  %313 = vmatmul.msk.bf16.gmra.mxu3 %vm16_vm0, %v321_v10 }
  0x86   :  { %v155_v13 = vpop.f32.mrf.mxu0  ;;  %v165_v14 = vpop.f32.mrf.mxu1 }
  0x87   :  { %v195_v15 = vadd.f32 %v155_v13, %v33_v11  ;;  %v199_v16 = vadd.f32 %v165_v14, %v37_v12 }
  0x89   :  { %211 = vst.msk [vmem:[#allocation2] sm:$0xff] %vm16_vm0, %v195_v15 }
  0x8a   :  { %215 = vst.msk [vmem:[#allocation2 + $0x20] sm:$0xff] %vm16_vm0, %v199_v16 }
  0x8d   :  { %v175_v19 = vpop.f32.mrf.mxu2  ;;  %v185_v20 = vpop.f32.mrf.mxu3 }
  0x8e   :  { %v203_v22 = vadd.f32 %v175_v19, %v41_v17  ;;  %v157_v23 = vpop.f32.mrf.mxu0  ;;  %v167_v25 = vpop.f32.mrf.mxu1  ;;  %v207_v26 = vadd.f32 %v185_v20, %v45_v18 }
  0x8f   :  { %v196_v28 = vadd.f32 %v157_v23, %v34_v21  ;;  %v200_v30 = vadd.f32 %v167_v25, %v38_v24 }
  0x90   :  { %v230_v27 = vld [vmem:[#allocation2] sm:$0xff]  ;;  %219 = vst.msk [vmem:[#allocation2 + $0x40] sm:$0xff] %vm16_vm0, %v203_v22 }
  0x91   :  { %246 = vst.msk [vmem:[%s483_s2] sm:$0xff] %vm16_vm0, %v230_v27  ;;  %v234_v29 = vld [vmem:[#allocation2 + $0x20] sm:$0xff] }
  0x92   :  { %250 = vst.msk [vmem:[%s483_s2 + $0x20] sm:$0xff] %vm16_vm0, %v234_v29 }
  0x93   :  { %223 = vst.msk [vmem:[#allocation2 + $0x60] sm:$0xff] %vm16_vm0, %v207_v26 }
  0x94   :  { %212 = vst.msk [vmem:[#allocation2 + $0x8] sm:$0xff] %vm16_vm0, %v196_v28 }
  0x95   :  { %216 = vst.msk [vmem:[#allocation2 + $0x28] sm:$0xff] %vm16_vm0, %v200_v30  ;;  %v177_v33 = vpop.f32.mrf.mxu2  ;;  %v187_v34 = vpop.f32.mrf.mxu3 }
  0x96   :  { %v204_v35 = vadd.f32 %v177_v33, %v42_v31  ;;  %v208_v36 = vadd.f32 %v187_v34, %v46_v32  ;;  %v160_v37 = vpop.f32.mrf.mxu0  ;;  %v170_v38 = vpop.f32.mrf.mxu1 }
  0x97   :  { %v238_v39 = vld [vmem:[#allocation2 + $0x40] sm:$0xff]  ;;  %v197_v43 = vadd.f32 %v160_v37, %v35_v40  ;;  %v201_v45 = vadd.f32 %v170_v38, %v39_v41 }
  0x98   :  { %254 = vst.msk [vmem:[%s483_s2 + $0x40] sm:$0xff] %vm16_vm0, %v238_v39 }
  0x99   :  { %220 = vst.msk [vmem:[#allocation2 + $0x48] sm:$0xff] %vm16_vm0, %v204_v35 }
  0x9a   :  { %v242_v42 = vld [vmem:[#allocation2 + $0x60] sm:$0xff]  ;;  %224 = vst.msk [vmem:[#allocation2 + $0x68] sm:$0xff] %vm16_vm0, %v208_v36 }
  0x9b   :  { %258 = vst.msk [vmem:[%s483_s2 + $0x60] sm:$0xff] %vm16_vm0, %v242_v42  ;;  %v231_v44 = vld [vmem:[#allocation2 + $0x8] sm:$0xff] }
  0x9c   :  { %247 = vst.msk [vmem:[%s483_s2 + $0x8] sm:$0xff] %vm16_vm0, %v231_v44  ;;  %v235_v47 = vld [vmem:[#allocation2 + $0x28] sm:$0xff] }
  0x9d   :  { %251 = vst.msk [vmem:[%s483_s2 + $0x28] sm:$0xff] %vm16_vm0, %v235_v47  ;;  %v180_v49 = vpop.f32.mrf.mxu2  ;;  %v190_v50 = vpop.f32.mrf.mxu3 }
  0x9e   :  { %213 = vst.msk [vmem:[#allocation2 + $0x10] sm:$0xff] %vm16_vm0, %v197_v43  ;;  %v205_v52 = vadd.f32 %v180_v49, %v43_v46  ;;  %v162_v53 = vpop.f32.mrf.mxu0  ;;  %v172_v55 = vpop.f32.mrf.mxu1  ;;  %v209_v56 = vadd.f32 %v190_v50, %v47_v48 }
  0x9f   :  { %217 = vst.msk [vmem:[#allocation2 + $0x30] sm:$0xff] %vm16_vm0, %v201_v45  ;;  %v198_v58 = vadd.f32 %v162_v53, %v36_v51  ;;  %v202_v60 = vadd.f32 %v172_v55, %v40_v54 }
  0xa0   :  { %v239_v57 = vld [vmem:[#allocation2 + $0x48] sm:$0xff]  ;;  %221 = vst.msk [vmem:[#allocation2 + $0x50] sm:$0xff] %vm16_vm0, %v205_v52 }
  0xa1   :  { %255 = vst.msk [vmem:[%s483_s2 + $0x48] sm:$0xff] %vm16_vm0, %v239_v57  ;;  %v243_v59 = vld [vmem:[#allocation2 + $0x68] sm:$0xff] }
  0xa2   :  { %259 = vst.msk [vmem:[%s483_s2 + $0x68] sm:$0xff] %vm16_vm0, %v243_v59 }
  0xa3   :  { %225 = vst.msk [vmem:[#allocation2 + $0x70] sm:$0xff] %vm16_vm0, %v209_v56 }
  0xa4   :  { %214 = vst.msk [vmem:[#allocation2 + $0x18] sm:$0xff] %vm16_vm0, %v198_v58 }
  0xa5   :  { %v232_v63 = vld [vmem:[#allocation2 + $0x10] sm:$0xff]  ;;  %218 = vst.msk [vmem:[#allocation2 + $0x38] sm:$0xff] %vm16_vm0, %v202_v60  ;;  %v182_v0 = vpop.f32.mrf.mxu2  ;;  %v192_v1 = vpop.f32.mrf.mxu3 }
  0xa6   :  { %248 = vst.msk [vmem:[%s483_s2 + $0x10] sm:$0xff] %vm16_vm0, %v232_v63  ;;  %v236_v2 = vld [vmem:[#allocation2 + $0x30] sm:$0xff]  ;;  %v206_v3 = vadd.f32 %v182_v0, %v44_v61  ;;  %v210_v4 = vadd.f32 %v192_v1, %v48_v62 }
  0xa7   :  { %252 = vst.msk [vmem:[%s483_s2 + $0x30] sm:$0xff] %vm16_vm0, %v236_v2  ;;  %v240_v5 = vld [vmem:[#allocation2 + $0x50] sm:$0xff] }
  0xa8   :  { %256 = vst.msk [vmem:[%s483_s2 + $0x50] sm:$0xff] %vm16_vm0, %v240_v5 }
  0xa9   :  { %222 = vst.msk [vmem:[#allocation2 + $0x58] sm:$0xff] %vm16_vm0, %v206_v3 }
  0xaa   :  { %v244_v6 = vld [vmem:[#allocation2 + $0x70] sm:$0xff]  ;;  %226 = vst.msk [vmem:[#allocation2 + $0x78] sm:$0xff] %vm16_vm0, %v210_v4 }
  0xab   :  { %260 = vst.msk [vmem:[%s483_s2 + $0x70] sm:$0xff] %vm16_vm0, %v244_v6  ;;  %v233_v7 = vld [vmem:[#allocation2 + $0x18] sm:$0xff] }
  0xac   :  { %249 = vst.msk [vmem:[%s483_s2 + $0x18] sm:$0xff] %vm16_vm0, %v233_v7  ;;  %v237_v8 = vld [vmem:[#allocation2 + $0x38] sm:$0xff] }
  0xad   :  { %253 = vst.msk [vmem:[%s483_s2 + $0x38] sm:$0xff] %vm16_vm0, %v237_v8 }
  0xb0   :  { %v241_v9 = vld [vmem:[#allocation2 + $0x58] sm:$0xff] }
  0xb1   :  { %257 = vst.msk [vmem:[%s483_s2 + $0x58] sm:$0xff] %vm16_vm0, %v241_v9  ;;  %v245_v10 = vld [vmem:[#allocation2 + $0x78] sm:$0xff] }
  0xb2   :  { %261 = vst.msk [vmem:[%s483_s2 + $0x78] sm:$0xff] %vm16_vm0, %v245_v10 }

// kernel: magic_module_forward.23
= control target key start
LH: loop header
LB: loop body
LE: loop exit
PB: predicated region body
PF: predicated region fallthrough
CT: control target
= control target key end

     0   :  { %s1180_s12 = smov 0   ;;  %s1182_s13 = smov 0   ;;  %s1627_s0 = inlined_call_operand.vmem [shape: bf16[512,32], index: 0, kind: input, shape index: {}]   ;;  %s1628_s1 = inlined_call_operand.vmem [shape: bf16[32,32], index: 1, kind: input, shape index: {}]   ;;  %s1629_s2 = inlined_call_operand.vmem [shape: f32[512,32], index: 2, kind: output, shape index: {0}]   ;;  %s1630_s3 = inlined_call_operand.vmem [shape: f32[2,2,32], index: 3, kind: output, shape index: {1}]  }
   0x1   :  { %s1184_s14 = smov 0  }
   0x2 LB: > { %s26_s15 = sadd.s32 1, %s1153_s13  ;;  %p990_p0 = scmp.ge.s32.totalorder %s1157_s14, 1  ;;  %s1157_s14 = sphi %s1184_s14, %s14_s14   ;;  %s1153_s13 = sphi %s1182_s13, %s1632_s13   ;;  %s1149_s12 = sphi %s1180_s12, %s1631_s12  }
   0x3   : > { %p28_p1 = scmp.ge.s32.totalorder %s26_s15, 2  ;;  %p169_p2 = scmp.lt.s32.totalorder %s1157_s14, 3 }
   0x5   : > { %s1634_s15 = smov (%p28_p1, %s26_s15), 0  ;;  %p170_p3 = pnand %p990_p0, %p169_p2 }
   0x6   : > { %s991_s18 = sshll.u32 (!%p170_p3), %s1149_s12, 5  ;;  %p226_p5 = scmp.lt.s32.totalorder (!%p170_p3), %s1149_s12, 1 }
   0x7   : > { %173 = sbr.rel (%p170_p3) target bundleno = 280 (0x118), region = 28  ;;  %p206_p4 = scmp.lt.s32.totalorder (!%p170_p3), %s991_s18, 63 }
   0xc   : > { %v1103_v0 = vld [vmem:[%s1628_s1 + $0x8] sm:$0xff]  ;;  %v1102_v1 = vld [vmem:[%s1628_s1] sm:$0xff]  ;;  %s1636_s18 = smov (!%p206_p4, %s991_s18), 63  ;;  %vm235_vm0 = vcmask 261120   ;;  %v1159_v10 = vmov 0.0   ;;  %s1638_s12 = smov (!%p226_p5, %s1149_s12), 1 }
   0xd   : > { %483 = vmatpush.bf16.msra.mxu0 %v1103_v0  ;;  %1104 = vmatpush.bf16.msra.mxu1 %v1103_v0  ;;  %s992_s21 = sshll.u32 %s1636_s18, 2  ;;  %236 = vst.msk [vmem:[#allocation2] sm:$0xff] %vm235_vm0, %v1159_v10  ;;  %s994_s25 = sshll.u32 %s1636_s18, 3  ;;  %vm867_vm1 = vcmask 1040384   ;;  %vm869_vm2 = vcmask 254976  }
   0xe   : > { %1105 = vmatpush.bf16.msra.mxu2 %v1103_v0  ;;  %1106 = vmatpush.bf16.msra.mxu3 %v1103_v0  ;;  %s1213_s24 = scalar_lea.vmem %s1627_s0, %s992_s21  ;;  %237 = vst.msk [vmem:[#allocation2 + $0x8] sm:$0xff] %vm235_vm0, %v1159_v10  ;;  %s1285_s28 = scalar_lea.vmem %s1629_s2, %s994_s25 }
   0xf   : > { %v1086_v2 = vld [vmem:[%s1213_s24] sm:$0xff]  ;;  %v1087_v6 = vld [vmem:[%s1213_s24 + $0x8] sm:$0xff]  ;;  %238 = vst.msk [vmem:[#allocation2 + $0x10] sm:$0xff] %vm235_vm0, %v1159_v10  ;;  %v1088_v11 = vld [vmem:[%s1213_s24 + $0x10] sm:$0xff]  ;;  %s995_s29 = sshll.u32 %s1638_s12, 1 }
  0x10   : > { %v1090_v3 = vld [vmem:[%s1213_s24 + $0x20] sm:$0xff]  ;;  %v1091_v7 = vld [vmem:[%s1213_s24 + $0x28] sm:$0xff]  ;;  %239 = vst.msk [vmem:[#allocation2 + $0x18] sm:$0xff] %vm235_vm0, %v1159_v10  ;;  %v1092_v12 = vld [vmem:[%s1213_s24 + $0x30] sm:$0xff]  ;;  %s229_s5 = scalar_lea.vmem %s1630_s3, %s995_s29 }
  0x11   : > { %484 = vmatpush.bf16.msra.mxu0 %v1102_v1  ;;  %1107 = vmatpush.bf16.msra.mxu1 %v1102_v1  ;;  %v1094_v4 = vld [vmem:[%s1213_s24 + $0x40] sm:$0xff]  ;;  %v1095_v8 = vld [vmem:[%s1213_s24 + $0x48] sm:$0xff]  ;;  %240 = vst.msk [vmem:[#allocation2 + $0x20] sm:$0xff] %vm235_vm0, %v1159_v10  ;;  %v1096_v13 = vld [vmem:[%s1213_s24 + $0x50] sm:$0xff] }
  0x12   : > { %1108 = vmatpush.bf16.msra.mxu2 %v1102_v1  ;;  %1109 = vmatpush.bf16.msra.mxu3 %v1102_v1  ;;  %v1098_v5 = vld [vmem:[%s1213_s24 + $0x60] sm:$0xff]  ;;  %v1099_v9 = vld [vmem:[%s1213_s24 + $0x68] sm:$0xff]  ;;  %241 = vst.msk [vmem:[#allocation2 + $0x28] sm:$0xff] %vm235_vm0, %v1159_v10  ;;  %v1100_v14 = vld [vmem:[%s1213_s24 + $0x70] sm:$0xff] }
  0x13   : > { %242 = vst.msk [vmem:[#allocation2 + $0x30] sm:$0xff] %vm235_vm0, %v1159_v10  ;;  %v1089_v15 = vld [vmem:[%s1213_s24 + $0x18] sm:$0xff] }
  0x14   : > { %1068 = vmatmul.msk.bf16.vlgmr.msra.gmra.mxu0 %vm235_vm0, %v1086_v2  ;;  %1072 = vmatmul.msk.bf16.vlgmr.msra.gmra.mxu1 %vm235_vm0, %v1090_v3  ;;  %243 = vst.msk [vmem:[#allocation2 + $0x38] sm:$0xff] %vm235_vm0, %v1159_v10  ;;  %v1093_v16 = vld [vmem:[%s1213_s24 + $0x38] sm:$0xff]  ;;  %v268_v19 = vld [vmem:[#allocation2] sm:$0xff] }
  0x15   : > { %1076 = vmatmul.msk.bf16.vlgmr.msra.gmra.mxu2 %vm235_vm0, %v1094_v4  ;;  %1080 = vmatmul.msk.bf16.vlgmr.msra.gmra.mxu3 %vm235_vm0, %v1098_v5  ;;  %244 = vst.msk [vmem:[#allocation2 + $0x40] sm:$0xff] %vm235_vm0, %v1159_v10  ;;  %v1097_v17 = vld [vmem:[%s1213_s24 + $0x58] sm:$0xff]  ;;  %v269_v26 = vld [vmem:[#allocation2 + $0x8] sm:$0xff] }
  0x16   : > { %245 = vst.msk [vmem:[#allocation2 + $0x48] sm:$0xff] %vm235_vm0, %v1159_v10  ;;  %v1101_v18 = vld [vmem:[%s1213_s24 + $0x78] sm:$0xff]  ;;  %v270_v37 = vld [vmem:[#allocation2 + $0x10] sm:$0xff] }
  0x17   : > { %246 = vst.msk [vmem:[#allocation2 + $0x50] sm:$0xff] %vm235_vm0, %v1159_v10  ;;  %v271_v55 = vld [vmem:[#allocation2 + $0x18] sm:$0xff] }
  0x18   : > { %247 = vst.msk [vmem:[#allocation2 + $0x58] sm:$0xff] %vm235_vm0, %v1159_v10  ;;  %v272_v2 = vld [vmem:[#allocation2 + $0x20] sm:$0xff] }
  0x19   : > { %248 = vst.msk [vmem:[#allocation2 + $0x60] sm:$0xff] %vm235_vm0, %v1159_v10 }
  0x1a   : > { %249 = vst.msk [vmem:[#allocation2 + $0x68] sm:$0xff] %vm235_vm0, %v1159_v10 }
  0x1b   : > { %250 = vst.msk [vmem:[#allocation2 + $0x70] sm:$0xff] %vm235_vm0, %v1159_v10 }
  0x1c   : > { %251 = vst.msk [vmem:[#allocation2 + $0x78] sm:$0xff] %vm235_vm0, %v1159_v10  ;;  %v276_v20 = vld [vmem:[#allocation2 + $0x40] sm:$0xff] }
  0x1d   : > { %252 = vst.msk [vmem:[#allocation2 + $0x80] sm:$0xff] %vm235_vm0, %v1159_v10  ;;  %v277_v27 = vld [vmem:[#allocation2 + $0x48] sm:$0xff] }
  0x1e   : > { %253 = vst.msk [vmem:[#allocation2 + $0x88] sm:$0xff] %vm235_vm0, %v1159_v10  ;;  %v278_v38 = vld [vmem:[#allocation2 + $0x50] sm:$0xff] }
  0x1f   : > { %254 = vst.msk [vmem:[#allocation2 + $0x90] sm:$0xff] %vm235_vm0, %v1159_v10  ;;  %v279_v56 = vld [vmem:[#allocation2 + $0x58] sm:$0xff] }
  0x20   : > { %255 = vst.msk [vmem:[#allocation2 + $0x98] sm:$0xff] %vm235_vm0, %v1159_v10  ;;  %v280_v4 = vld [vmem:[#allocation2 + $0x60] sm:$0xff] }
  0x21   : > { %256 = vst.msk [vmem:[#allocation2 + $0xa0] sm:$0xff] %vm235_vm0, %v1159_v10 }
  0x22   : > { %257 = vst.msk [vmem:[#allocation2 + $0xa8] sm:$0xff] %vm235_vm0, %v1159_v10 }
  0x23   : > { %258 = vst.msk [vmem:[#allocation2 + $0xb0] sm:$0xff] %vm235_vm0, %v1159_v10 }
  0x24   : > { %1069 = vmatmul.msk.bf16.gmra.mxu0 %vm235_vm0, %v1087_v6  ;;  %1073 = vmatmul.msk.bf16.gmra.mxu1 %vm235_vm0, %v1091_v7  ;;  %259 = vst.msk [vmem:[#allocation2 + $0xb8] sm:$0xff] %vm235_vm0, %v1159_v10  ;;  %v284_v25 = vld [vmem:[#allocation2 + $0x80] sm:$0xff] }
  0x25   : > { %1077 = vmatmul.msk.bf16.gmra.mxu2 %vm235_vm0, %v1095_v8  ;;  %1081 = vmatmul.msk.bf16.gmra.mxu3 %vm235_vm0, %v1099_v9  ;;  %260 = vst.msk [vmem:[#allocation2 + $0xc0] sm:$0xff] %vm235_vm0, %v1159_v10  ;;  %v285_v42 = vld [vmem:[#allocation2 + $0x88] sm:$0xff] }
  0x26   : > { %261 = vst.msk [vmem:[#allocation2 + $0xc8] sm:$0xff] %vm235_vm0, %v1159_v10  ;;  %v286_v53 = vld [vmem:[#allocation2 + $0x90] sm:$0xff] }
  0x27   : > { %262 = vst.msk [vmem:[#allocation2 + $0xd0] sm:$0xff] %vm235_vm0, %v1159_v10  ;;  %v287_v9 = vld [vmem:[#allocation2 + $0x98] sm:$0xff] }
  0x28   : > { %263 = vst.msk [vmem:[#allocation2 + $0xd8] sm:$0xff] %vm235_vm0, %v1159_v10 }
  0x29   : > { %264 = vst.msk [vmem:[#allocation2 + $0xe0] sm:$0xff] %vm235_vm0, %v1159_v10 }
  0x2a   : > { %265 = vst.msk [vmem:[#allocation2 + $0xe8] sm:$0xff] %vm235_vm0, %v1159_v10 }
  0x2b   : > { %266 = vst.msk [vmem:[#allocation2 + $0xf0] sm:$0xff] %vm235_vm0, %v1159_v10 }
  0x2c   : > { %267 = vst.msk [vmem:[#allocation2 + $0xf8] sm:$0xff] %vm235_vm0, %v1159_v10  ;;  %v292_v47 = vld [vmem:[#allocation2 + $0xc0] sm:$0xff] }
  0x2d   : > { %v293_v50 = vld [vmem:[#allocation2 + $0xc8] sm:$0xff] }
  0x34   : > { %1070 = vmatmul.msk.bf16.gmra.mxu0 %vm235_vm0, %v1088_v11  ;;  %1074 = vmatmul.msk.bf16.gmra.mxu1 %vm235_vm0, %v1092_v12 }
  0x35   : > { %1078 = vmatmul.msk.bf16.gmra.mxu2 %vm235_vm0, %v1096_v13  ;;  %1082 = vmatmul.msk.bf16.gmra.mxu3 %vm235_vm0, %v1100_v14 }
  0x44   : > { %1071 = vmatmul.msk.bf16.gmra.mxu0 %vm235_vm0, %v1089_v15  ;;  %1075 = vmatmul.msk.bf16.gmra.mxu1 %vm235_vm0, %v1093_v16  ;;  %v294_v15 = vld [vmem:[#allocation2 + $0xd0] sm:$0xff] }
  0x45   : > { %1079 = vmatmul.msk.bf16.gmra.mxu2 %vm235_vm0, %v1097_v17  ;;  %1083 = vmatmul.msk.bf16.gmra.mxu3 %vm235_vm0, %v1101_v18  ;;  %v295_v18 = vld [vmem:[#allocation2 + $0xd8] sm:$0xff] }
  0x91   : > { %v486_v21 = vpop.f32.mrf.mxu0  ;;  %v506_v22 = vpop.f32.mrf.mxu1 }
  0x92   : > { %v566_v23 = vadd.f32 %v486_v21, %v268_v19  ;;  %v574_v24 = vadd.f32 %v506_v22, %v276_v20  ;;  %v288_v21 = vld [vmem:[#allocation2 + $0xa0] sm:$0xff] }
  0x94   : > { %598 = vst.msk [vmem:[#allocation2] sm:$0xff] %vm235_vm0, %v566_v23  ;;  %v273_v23 = vld [vmem:[#allocation2 + $0x28] sm:$0xff] }
  0x95   : > { %606 = vst.msk [vmem:[#allocation2 + $0x40] sm:$0xff] %vm235_vm0, %v574_v24  ;;  %v281_v24 = vld [vmem:[#allocation2 + $0x68] sm:$0xff] }
  0x98   : > { %v526_v28 = vpop.f32.mrf.mxu2  ;;  %v546_v33 = vpop.f32.mrf.mxu3 }
  0x99   : > { %v488_v29 = vpop.f32.mrf.mxu0  ;;  %v508_v30 = vpop.f32.mrf.mxu1  ;;  %v582_v31 = vadd.f32 %v526_v28, %v284_v25  ;;  %v590_v51 = vadd.f32 %v546_v33, %v292_v47 }
  0x9a   : > { %v567_v32 = vadd.f32 %v488_v29, %v269_v26  ;;  %v575_v35 = vadd.f32 %v508_v30, %v277_v27 }
  0x9b   : > { %v1287_v34 = vld [vmem:[#allocation2] sm:$0xff]  ;;  %614 = vst.msk [vmem:[#allocation2 + $0x80] sm:$0xff] %vm235_vm0, %v582_v31 }
  0x9c   : > { %665 = vst.msk [vmem:[%s1285_s28] sm:$0xff] %vm235_vm0, %v1287_v34  ;;  %v1293_v36 = vld [vmem:[#allocation2 + $0x40] sm:$0xff] }
  0x9d   : > { %599 = vst.msk [vmem:[#allocation2 + $0x8] sm:$0xff] %vm235_vm0, %v567_v32 }
  0x9e   : > { %673 = vst.msk [vmem:[%s1285_s28 + $0x40] sm:$0xff] %vm235_vm0, %v1293_v36 }
  0x9f   : > { %607 = vst.msk [vmem:[#allocation2 + $0x48] sm:$0xff] %vm235_vm0, %v575_v35  ;;  %v274_v35 = vld [vmem:[#allocation2 + $0x30] sm:$0xff] }
  0xa0   : > { %v528_v39 = vpop.f32.mrf.mxu2  ;;  %v548_v46 = vpop.f32.mrf.mxu3  ;;  %622 = vst.msk [vmem:[#allocation2 + $0xc0] sm:$0xff] %vm235_vm0, %v590_v51 }
  0xa1   : > { %v491_v40 = vpop.f32.mrf.mxu0  ;;  %v511_v41 = vpop.f32.mrf.mxu1  ;;  %v583_v49 = vadd.f32 %v528_v39, %v285_v42  ;;  %v591_v54 = vadd.f32 %v548_v46, %v293_v50  ;;  %v296_v50 = vld [vmem:[#allocation2 + $0xe0] sm:$0xff] }
  0xa2   : > { %v568_v43 = vadd.f32 %v491_v40, %v270_v37  ;;  %v576_v44 = vadd.f32 %v511_v41, %v278_v38  ;;  %v1300_v45 = vld [vmem:[#allocation2 + $0x80] sm:$0xff]  ;;  %v282_v38 = vld [vmem:[#allocation2 + $0x70] sm:$0xff] }
  0xa3   : > { %681 = vst.msk [vmem:[%s1285_s28 + $0x80] sm:$0xff] %vm235_vm0, %v1300_v45 }
  0xa4   : > { %v1305_v48 = vld [vmem:[#allocation2 + $0x8] sm:$0xff]  ;;  %600 = vst.msk [vmem:[#allocation2 + $0x10] sm:$0xff] %vm235_vm0, %v568_v43 }
  0xa5   : > { %666 = vst.msk [vmem:[%s1285_s28 + $0x8] sm:$0xff] %vm235_vm0, %v1305_v48  ;;  %v289_v43 = vld [vmem:[#allocation2 + $0xa8] sm:$0xff] }
  0xa6   : > { %v1311_v52 = vld [vmem:[#allocation2 + $0x48] sm:$0xff]  ;;  %608 = vst.msk [vmem:[#allocation2 + $0x50] sm:$0xff] %vm235_vm0, %v576_v44 }
  0xa7   : > { %674 = vst.msk [vmem:[%s1285_s28 + $0x48] sm:$0xff] %vm235_vm0, %v1311_v52  ;;  %v1338_v5 = vld [vmem:[#allocation2 + $0xc0] sm:$0xff] }
  0xa8   : > { %615 = vst.msk [vmem:[#allocation2 + $0x88] sm:$0xff] %vm235_vm0, %v583_v49  ;;  %v531_v57 = vpop.f32.mrf.mxu2  ;;  %v551_v62 = vpop.f32.mrf.mxu3 }
  0xa9   : > { %v493_v58 = vpop.f32.mrf.mxu0  ;;  %v513_v59 = vpop.f32.mrf.mxu1  ;;  %v584_v60 = vadd.f32 %v531_v57, %v286_v53  ;;  %623 = vst.msk [vmem:[#allocation2 + $0xc8] sm:$0xff] %vm235_vm0, %v591_v54  ;;  %v592_v19 = vadd.f32 %v551_v62, %v294_v15  ;;  %v297_v53 = vld [vmem:[#allocation2 + $0xe8] sm:$0xff]  ;;  %v698_v62 = vsel %vm235_vm0, %v1305_v48, 0.0 }
  0xaa   : > { %v569_v61 = vadd.f32 %v493_v58, %v271_v55  ;;  %v577_v0 = vadd.f32 %v513_v59, %v279_v56  ;;  %689 = vst.msk [vmem:[%s1285_s28 + $0xc0] sm:$0xff] %vm235_vm0, %v1338_v5  ;;  %v767_v56 = vmul.f32 %v1305_v48, %v1305_v48  ;;  %v766_v58 = vmul.f32 %v1287_v34, %v1287_v34 }
  0xab   : > { %v1320_v63 = vld [vmem:[#allocation2 + $0x10] sm:$0xff]  ;;  %616 = vst.msk [vmem:[#allocation2 + $0x90] sm:$0xff] %vm235_vm0, %v584_v60 }
  0xac   : > { %667 = vst.msk [vmem:[%s1285_s28 + $0x10] sm:$0xff] %vm235_vm0, %v1320_v63  ;;  %v290_v60 = vld [vmem:[#allocation2 + $0xb0] sm:$0xff] }
  0xad   : > { %601 = vst.msk [vmem:[#allocation2 + $0x18] sm:$0xff] %vm235_vm0, %v569_v61  ;;  %v1327_v1 = vld [vmem:[#allocation2 + $0x50] sm:$0xff] }
  0xae   : > { %675 = vst.msk [vmem:[%s1285_s28 + $0x50] sm:$0xff] %vm235_vm0, %v1327_v1 }
  0xaf   : > { %609 = vst.msk [vmem:[#allocation2 + $0x58] sm:$0xff] %vm235_vm0, %v577_v0  ;;  %v1333_v3 = vld [vmem:[#allocation2 + $0x88] sm:$0xff]  ;;  %v768_v0 = vmul.f32 %v1320_v63, %v1320_v63 }
  0xb0   : > { %682 = vst.msk [vmem:[%s1285_s28 + $0x88] sm:$0xff] %vm235_vm0, %v1333_v3  ;;  %v533_v6 = vpop.f32.mrf.mxu2  ;;  %v1343_v10 = vld [vmem:[#allocation2 + $0xc8] sm:$0xff]  ;;  %v553_v14 = vpop.f32.mrf.mxu3 }
  0xb1   : > { %v496_v7 = vpop.f32.mrf.mxu0  ;;  %v516_v8 = vpop.f32.mrf.mxu1  ;;  %690 = vst.msk [vmem:[%s1285_s28 + $0xc8] sm:$0xff] %vm235_vm0, %v1343_v10  ;;  %v585_v17 = vadd.f32 %v533_v6, %v287_v9  ;;  %v593_v22 = vadd.f32 %v553_v14, %v295_v18  ;;  %v283_v6 = vld [vmem:[#allocation2 + $0x78] sm:$0xff]  ;;  %v700_v9 = vsel %vm235_vm0, %v1320_v63, 0.0 }
  0xb2   : > { %v570_v11 = vadd.f32 %v496_v7, %v272_v2  ;;  %v578_v12 = vadd.f32 %v516_v8, %v280_v4  ;;  %v1345_v13 = vld [vmem:[#allocation2 + $0x90] sm:$0xff]  ;;  %624 = vst.msk [vmem:[#allocation2 + $0xd0] sm:$0xff] %vm235_vm0, %v592_v19  ;;  %v275_v2 = vld [vmem:[#allocation2 + $0x38] sm:$0xff]  ;;  %v697_v4 = vsel %vm235_vm0, %v1287_v34, 0.0  ;;  %v799_v8 = vsel %vm235_vm0, %v767_v56, 0.0 }
  0xb3   : > { %683 = vst.msk [vmem:[%s1285_s28 + $0x90] sm:$0xff] %vm235_vm0, %v1345_v13  ;;  %v798_v34 = vsel %vm235_vm0, %v766_v58, 0.0  ;;  %v699_v15 = vadd.f32 %v698_v62, %v697_v4  ;;  %v801_v19 = vsel %vm235_vm0, %v768_v0, 0.0  ;;  %v299_v58 = vld [vmem:[#allocation2 + $0xf8] sm:$0xff] }
  0xb4   : > { %v1353_v16 = vld [vmem:[#allocation2 + $0x18] sm:$0xff]  ;;  %602 = vst.msk [vmem:[#allocation2 + $0x20] sm:$0xff] %vm235_vm0, %v570_v11 }
  0xb5   : > { %668 = vst.msk [vmem:[%s1285_s28 + $0x18] sm:$0xff] %vm235_vm0, %v1353_v16  ;;  %v769_v48 = vmul.f32 %v1353_v16, %v1353_v16  ;;  %v702_v63 = vsel %vm235_vm0, %v1353_v16, 0.0 }
  0xb6   : > { %v1359_v20 = vld [vmem:[#allocation2 + $0x58] sm:$0xff]  ;;  %610 = vst.msk [vmem:[#allocation2 + $0x60] sm:$0xff] %vm235_vm0, %v578_v12 }
  0xb7   : > { %676 = vst.msk [vmem:[%s1285_s28 + $0x58] sm:$0xff] %vm235_vm0, %v1359_v20 }
  0xb8   : > { %617 = vst.msk [vmem:[#allocation2 + $0x98] sm:$0xff] %vm235_vm0, %v585_v17  ;;  %v536_v25 = vpop.f32.mrf.mxu2  ;;  %v556_v30 = vpop.f32.mrf.mxu3 }
  0xb9   : > { %v498_v26 = vpop.f32.mrf.mxu0  ;;  %v518_v27 = vpop.f32.mrf.mxu1  ;;  %v586_v28 = vadd.f32 %v536_v25, %v288_v21  ;;  %625 = vst.msk [vmem:[#allocation2 + $0xd8] sm:$0xff] %vm235_vm0, %v593_v22  ;;  %v1386_v39 = vld [vmem:[#allocation2 + $0xd0] sm:$0xff]  ;;  %v594_v57 = vadd.f32 %v556_v30, %v296_v50  ;;  %v701_v25 = vadd.f32 %v700_v9, %v699_v15 }
  0xba   : > { %v571_v29 = vadd.f32 %v498_v26, %v273_v23  ;;  %v579_v32 = vadd.f32 %v518_v27, %v281_v24  ;;  %691 = vst.msk [vmem:[%s1285_s28 + $0xd0] sm:$0xff] %vm235_vm0, %v1386_v39  ;;  %v800_v24 = vadd.f32 %v799_v8, %v798_v34  ;;  %v803_v26 = vsel %vm235_vm0, %v769_v48, 0.0 }
  0xbb   : > { %v1368_v31 = vld [vmem:[#allocation2 + $0x20] sm:$0xff]  ;;  %618 = vst.msk [vmem:[#allocation2 + $0xa0] sm:$0xff] %vm235_vm0, %v586_v28  ;;  %v703_v30 = vadd.f32 %v702_v63, %v701_v25  ;;  %v775_v34 = vmul.f32 %v1311_v52, %v1311_v52  ;;  %v714_v63 = vsel %vm235_vm0, %v1311_v52, 0.0  ;;  %v777_v25 = vmul.f32 %v1359_v20, %v1359_v20 }
  0xbc   : > { %669 = vst.msk [vmem:[%s1285_s28 + $0x20] sm:$0xff] %vm235_vm0, %v1368_v31  ;;  %v770_v21 = vmul.f32 %v1368_v31, %v1368_v31  ;;  %v704_v27 = vsel %vm235_vm0, %v1368_v31, 0.0 }
  0xbd   : > { %603 = vst.msk [vmem:[#allocation2 + $0x28] sm:$0xff] %vm235_vm0, %v571_v29  ;;  %v1375_v33 = vld [vmem:[#allocation2 + $0x60] sm:$0xff]  ;;  %v802_v29 = vadd.f32 %v801_v19, %v800_v24  ;;  %v716_v24 = vsel %vm235_vm0, %v1327_v1, 0.0 }
  0xbe   : > { %677 = vst.msk [vmem:[%s1285_s28 + $0x60] sm:$0xff] %vm235_vm0, %v1375_v33 }
  0xbf   : > { %611 = vst.msk [vmem:[#allocation2 + $0x68] sm:$0xff] %vm235_vm0, %v579_v32  ;;  %v1381_v37 = vld [vmem:[#allocation2 + $0x98] sm:$0xff] }
  0xc0   : > { %684 = vst.msk [vmem:[%s1285_s28 + $0x98] sm:$0xff] %vm235_vm0, %v1381_v37  ;;  %v538_v40 = vpop.f32.mrf.mxu2  ;;  %v1391_v44 = vld [vmem:[#allocation2 + $0xd8] sm:$0xff]  ;;  %v558_v51 = vpop.f32.mrf.mxu3 }
  0xc1   : > { %v501_v41 = vpop.f32.mrf.mxu0  ;;  %v521_v42 = vpop.f32.mrf.mxu1  ;;  %692 = vst.msk [vmem:[%s1285_s28 + $0xd8] sm:$0xff] %vm235_vm0, %v1391_v44  ;;  %v587_v55 = vadd.f32 %v538_v40, %v289_v43  ;;  %v595_v61 = vadd.f32 %v558_v51, %v297_v53  ;;  %v291_v32 = vld [vmem:[#allocation2 + $0xb8] sm:$0xff] }
  0xc2   : > { %v572_v46 = vadd.f32 %v501_v41, %v274_v35  ;;  %v580_v47 = vadd.f32 %v521_v42, %v282_v38  ;;  %v1393_v49 = vld [vmem:[#allocation2 + $0xa0] sm:$0xff]  ;;  %626 = vst.msk [vmem:[#allocation2 + $0xe0] sm:$0xff] %vm235_vm0, %v594_v57  ;;  %v805_v35 = vsel %vm235_vm0, %v770_v21, 0.0  ;;  %v804_v41 = vadd.f32 %v803_v26, %v802_v29  ;;  %v298_v57 = vld [vmem:[#allocation2 + $0xf0] sm:$0xff] }
  0xc3   : > { %685 = vst.msk [vmem:[%s1285_s28 + $0xa0] sm:$0xff] %vm235_vm0, %v1393_v49  ;;  %v705_v42 = vadd.f32 %v704_v27, %v703_v30  ;;  %v718_v29 = vsel %vm235_vm0, %v1359_v20, 0.0  ;;  %v778_v30 = vmul.f32 %v1375_v33, %v1375_v33 }
  0xc4   : > { %v638_v54 = vld [vmem:[#allocation2 + $0x28] sm:$0xff]  ;;  %604 = vst.msk [vmem:[#allocation2 + $0x30] sm:$0xff] %vm235_vm0, %v572_v46 }
  0xc5   : > { %670 = vst.msk [vmem:[%s1285_s28 + $0x28] sm:$0xff] %vm235_vm0, %v638_v54  ;;  %v771_v28 = vmul.f32 %v638_v54, %v638_v54  ;;  %v706_v38 = vsel %vm235_vm0, %v638_v54, 0.0  ;;  %v806_v54 = vadd.f32 %v805_v35, %v804_v41 }
  0xc6   : > { %v1408_v59 = vld [vmem:[#allocation2 + $0x68] sm:$0xff]  ;;  %612 = vst.msk [vmem:[#allocation2 + $0x70] sm:$0xff] %vm235_vm0, %v580_v47 }
  0xc7   : > { %678 = vst.msk [vmem:[%s1285_s28 + $0x68] sm:$0xff] %vm235_vm0, %v1408_v59  ;;  %v807_v47 = vsel %vm235_vm0, %v771_v28, 0.0  ;;  %v779_v41 = vmul.f32 %v1408_v59, %v1408_v59 }
  0xc8   : > { %619 = vst.msk [vmem:[#allocation2 + $0xa8] sm:$0xff] %vm235_vm0, %v587_v55  ;;  %v541_v7 = vpop.f32.mrf.mxu2  ;;  %v561_v18 = vpop.f32.mrf.mxu3  ;;  %v707_v55 = vadd.f32 %v706_v38, %v705_v42  ;;  %v808_v0 = vadd.f32 %v807_v47, %v806_v54  ;;  %v819_v38 = vsel %vm235_vm0, %v777_v25, 0.0  ;;  %v821_v47 = vsel %vm235_vm0, %v778_v30, 0.0 }
  0xc9   : > { %v503_v11 = vpop.f32.mrf.mxu0  ;;  %v523_v12 = vpop.f32.mrf.mxu1  ;;  %v588_v14 = vadd.f32 %v541_v7, %v290_v60  ;;  %627 = vst.msk [vmem:[#allocation2 + $0xe8] sm:$0xff] %vm235_vm0, %v595_v61  ;;  %v1454_v43 = vld [vmem:[#allocation2 + $0xe0] sm:$0xff]  ;;  %v596_v62 = vadd.f32 %v561_v18, %v298_v57  ;;  %v774_v7 = vmul.f32 %v1293_v36, %v1293_v36 }
  0xca   : > { %v573_v17 = vadd.f32 %v503_v11, %v275_v2  ;;  %v581_v23 = vadd.f32 %v523_v12, %v283_v6  ;;  %693 = vst.msk [vmem:[%s1285_s28 + $0xe0] sm:$0xff] %vm235_vm0, %v1454_v43 }
  0xcb   : > { %v639_v22 = vld [vmem:[#allocation2 + $0x30] sm:$0xff]  ;;  %620 = vst.msk [vmem:[#allocation2 + $0xb0] sm:$0xff] %vm235_vm0, %v588_v14  ;;  %v712_v14 = vsel %vm235_vm0, %v1293_v36, 0.0  ;;  %v813_v19 = vsel %vm235_vm0, %v774_v7, 0.0  ;;  %v776_v36 = vmul.f32 %v1327_v1, %v1327_v1  ;;  %v783_v7 = vmul.f32 %v1333_v3, %v1333_v3 }
  0xcc   : > { %671 = vst.msk [vmem:[%s1285_s28 + $0x30] sm:$0xff] %vm235_vm0, %v639_v22  ;;  %v772_v40 = vmul.f32 %v639_v22, %v639_v22  ;;  %v708_v50 = vsel %vm235_vm0, %v639_v22, 0.0 }
  0xcd   : > { %605 = vst.msk [vmem:[#allocation2 + $0x38] sm:$0xff] %vm235_vm0, %v573_v17  ;;  %v1441_v16 = vld [vmem:[#allocation2 + $0x70] sm:$0xff]  ;;  %v709_v2 = vadd.f32 %v708_v50, %v707_v55  ;;  %v817_v52 = vsel %vm235_vm0, %v776_v36, 0.0  ;;  %v722_v50 = vsel %vm235_vm0, %v1408_v59, 0.0  ;;  %v823_v55 = vsel %vm235_vm0, %v779_v41, 0.0 }
  0xce   : > { %679 = vst.msk [vmem:[%s1285_s28 + $0x70] sm:$0xff] %vm235_vm0, %v1441_v16  ;;  %v809_v61 = vsel %vm235_vm0, %v772_v40, 0.0  ;;  %v720_v40 = vsel %vm235_vm0, %v1375_v33, 0.0  ;;  %v724_v57 = vsel %vm235_vm0, %v1441_v16, 0.0  ;;  %v786_v36 = vmul.f32 %v1393_v49, %v1393_v49 }
  0xcf   : > { %613 = vst.msk [vmem:[#allocation2 + $0x78] sm:$0xff] %vm235_vm0, %v581_v23  ;;  %v1449_v31 = vld [vmem:[#allocation2 + $0xa8] sm:$0xff]  ;;  %v810_v48 = vadd.f32 %v809_v61, %v808_v0  ;;  %v815_v23 = vsel %vm235_vm0, %v775_v34, 0.0  ;;  %v790_v41 = vmul.f32 %v1338_v5, %v1338_v5 }
  0xd0   : > { %686 = vst.msk [vmem:[%s1285_s28 + $0xa8] sm:$0xff] %vm235_vm0, %v1449_v31  ;;  %v543_v46 = vpop.f32.mrf.mxu2  ;;  %v1461_v53 = vld [vmem:[#allocation2 + $0xe8] sm:$0xff]  ;;  %v563_v60 = vpop.f32.mrf.mxu3 }
  0xd1   : > { %v589_v51 = vadd.f32 %v543_v46, %v291_v32  ;;  %694 = vst.msk [vmem:[%s1285_s28 + $0xe8] sm:$0xff] %vm235_vm0, %v1461_v53  ;;  %v597_v6 = vadd.f32 %v563_v60, %v299_v58 }
  0xd2   : > { %v1463_v56 = vld [vmem:[#allocation2 + $0xb0] sm:$0xff]  ;;  %628 = vst.msk [vmem:[#allocation2 + $0xf0] sm:$0xff] %vm235_vm0, %v596_v62  ;;  %v782_v62 = vmul.f32 %v1300_v45, %v1300_v45 }
  0xd3   : > { %687 = vst.msk [vmem:[%s1285_s28 + $0xb0] sm:$0xff] %vm235_vm0, %v1463_v56 }
  0xd4   : > { %v640_v4 = vld [vmem:[#allocation2 + $0x38] sm:$0xff]  ;;  %621 = vst.msk [vmem:[#allocation2 + $0xb8] sm:$0xff] %vm235_vm0, %v589_v51  ;;  %v780_v51 = vmul.f32 %v1441_v16, %v1441_v16 }
  0xd5   : > { %672 = vst.msk [vmem:[%s1285_s28 + $0x38] sm:$0xff] %vm235_vm0, %v640_v4  ;;  %v710_v8 = vsel %vm235_vm0, %v640_v4, 0.0  ;;  %v773_v9 = vmul.f32 %v640_v4, %v640_v4 }
  0xd6   : > { %v711_v11 = vadd.f32 %v710_v8, %v709_v2  ;;  %v648_v12 = vld [vmem:[#allocation2 + $0x78] sm:$0xff]  ;;  %629 = vst.msk [vmem:[#allocation2 + $0xf8] sm:$0xff] %vm235_vm0, %v597_v6  ;;  %v825_v0 = vsel %vm235_vm0, %v780_v51, 0.0  ;;  %v728_v6 = vsel %vm235_vm0, %v1300_v45, 0.0  ;;  %v732_v45 = vsel %vm235_vm0, %v1345_v13, 0.0 }
  0xd7   : > { %v811_v15 = vsel %vm235_vm0, %v773_v9, 0.0  ;;  %680 = vst.msk [vmem:[%s1285_s28 + $0x78] sm:$0xff] %vm235_vm0, %v648_v12  ;;  %v781_v58 = vmul.f32 %v648_v12, %v648_v12  ;;  %v726_v59 = vsel %vm235_vm0, %v648_v12, 0.0  ;;  %v784_v12 = vmul.f32 %v1345_v13, %v1345_v13 }
  0xd8   : > { %v713_v17 = vadd.f32 %v712_v14, %v711_v11  ;;  %v812_v18 = vadd.f32 %v811_v15, %v810_v48  ;;  %v829_v48 = vsel %vm235_vm0, %v782_v62, 0.0  ;;  %v730_v11 = vsel %vm235_vm0, %v1333_v3, 0.0 }
  0xd9   : > { %v1507_v1 = vld [vmem:[#allocation2 + $0xf0] sm:$0xff]  ;;  %v827_v16 = vsel %vm235_vm0, %v781_v58, 0.0  ;;  %v831_v15 = vsel %vm235_vm0, %v783_v7, 0.0  ;;  %v734_v3 = vsel %vm235_vm0, %v1381_v37, 0.0  ;;  %v736_v13 = vsel %vm235_vm0, %v1393_v49, 0.0 }
  0xda   : > { %v715_v21 = vadd.f32 %v714_v63, %v713_v17  ;;  %v814_v22 = vadd.f32 %v813_v19, %v812_v18  ;;  %695 = vst.msk [vmem:[%s1285_s28 + $0xf0] sm:$0xff] %vm235_vm0, %v1507_v1  ;;  %v785_v17 = vmul.f32 %v1381_v37, %v1381_v37  ;;  %v833_v63 = vsel %vm235_vm0, %v784_v12, 0.0 }
  0xdb   : > { %v1497_v26 = vld [vmem:[#allocation2 + $0xb8] sm:$0xff]  ;;  %v738_v37 = vsel %vm235_vm0, %v1449_v31, 0.0  ;;  %v740_v49 = vsel %vm235_vm0, %v1463_v56, 0.0  ;;  %v793_v62 = vmul.f32 %v1391_v44, %v1391_v44  ;;  %v796_v12 = vmul.f32 %v1507_v1, %v1507_v1 }
  0xdc   : > { %v717_v27 = vadd.f32 %v716_v24, %v715_v21  ;;  %v816_v28 = vadd.f32 %v815_v23, %v814_v22  ;;  %688 = vst.msk [vmem:[%s1285_s28 + $0xb8] sm:$0xff] %vm235_vm0, %v1497_v26  ;;  %v835_v23 = vsel %vm235_vm0, %v785_v17, 0.0  ;;  %v787_v24 = vmul.f32 %v1449_v31, %v1449_v31 }
  0xdd   : > { %v1517_v42 = vld [vmem:[#allocation2 + $0xf8] sm:$0xff] }
  0xde   : > { %v818_v32 = vadd.f32 %v817_v52, %v816_v28  ;;  %v719_v35 = vadd.f32 %v718_v29, %v717_v27  ;;  %696 = vst.msk [vmem:[%s1285_s28 + $0xf8] sm:$0xff] %vm235_vm0, %v1517_v42  ;;  %v837_v28 = vsel %vm235_vm0, %v786_v36, 0.0  ;;  %v788_v52 = vmul.f32 %v1463_v56, %v1463_v56 }
  0xdf   : > { %v791_v56 = vmul.f32 %v1343_v10, %v1343_v10 }
  0xe0   : > { %v721_v20 = vadd.f32 %v720_v40, %v719_v35  ;;  %v820_v46 = vadd.f32 %v819_v38, %v818_v32  ;;  %v839_v32 = vsel %vm235_vm0, %v787_v24, 0.0  ;;  %v789_v35 = vmul.f32 %v1497_v26, %v1497_v26 }
  0xe1   : > { %v841_v31 = vsel %vm235_vm0, %v788_v52, 0.0 }
  0xe2   : > { %v723_v54 = vadd.f32 %v722_v50, %v721_v20  ;;  %v822_v33 = vadd.f32 %v821_v47, %v820_v46  ;;  %v742_v20 = vsel %vm235_vm0, %v1497_v26, 0.0  ;;  %v744_v50 = vsel %vm235_vm0, %v1338_v5, 0.0 }
  0xe3   : > { %v843_v51 = vsel %vm235_vm0, %v789_v35, 0.0  ;;  %v792_v26 = vmul.f32 %v1386_v39, %v1386_v39  ;;  %v748_v5 = vsel %vm235_vm0, %v1386_v39, 0.0  ;;  %v752_v39 = vsel %vm235_vm0, %v1454_v43, 0.0 }
  0xe4   : > { %v725_v60 = vadd.f32 %v724_v57, %v723_v54  ;;  %v824_v61 = vadd.f32 %v823_v55, %v822_v33  ;;  %v845_v55 = vsel %vm235_vm0, %v790_v41, 0.0  ;;  %v746_v57 = vsel %vm235_vm0, %v1343_v10, 0.0 }
  0xe5   : > { %v750_v10 = vsel %vm235_vm0, %v1391_v44, 0.0  ;;  %v754_v44 = vsel %vm235_vm0, %v1461_v53, 0.0 }
  0xe6   : > { %v826_v2 = vadd.f32 %v825_v0, %v824_v61  ;;  %v727_v4 = vadd.f32 %v726_v59, %v725_v60  ;;  %v847_v61 = vsel %vm235_vm0, %v791_v56, 0.0 }
  0xe8   : > { %v729_v8 = vadd.f32 %v728_v6, %v727_v4  ;;  %v828_v9 = vadd.f32 %v827_v16, %v826_v2  ;;  %v849_v2 = vsel %vm235_vm0, %v792_v26, 0.0  ;;  %v794_v4 = vmul.f32 %v1454_v43, %v1454_v43 }
  0xe9   : > { %v851_v16 = vsel %vm235_vm0, %v793_v62, 0.0  ;;  %v756_v43 = vsel %vm235_vm0, %v1507_v1, 0.0 }
  0xea   : > { %v731_v14 = vadd.f32 %v730_v11, %v729_v8  ;;  %v830_v34 = vadd.f32 %v829_v48, %v828_v9  ;;  %v795_v8 = vmul.f32 %v1461_v53, %v1461_v53  ;;  %v853_v11 = vsel %vm235_vm0, %v794_v4, 0.0 }
  0xeb   : > { %v758_v53 = vsel %vm235_vm0, %v1517_v42, 0.0 }
  0xec   : > { %v832_v18 = vadd.f32 %v831_v15, %v830_v34  ;;  %v733_v19 = vadd.f32 %v732_v45, %v731_v14  ;;  %v855_v15 = vsel %vm235_vm0, %v795_v8, 0.0  ;;  %v797_v45 = vmul.f32 %v1517_v42, %v1517_v42 }
  0xee   : > { %v735_v21 = vadd.f32 %v734_v3, %v733_v19  ;;  %v834_v22 = vadd.f32 %v833_v63, %v832_v18  ;;  %v857_v19 = vsel %vm235_vm0, %v796_v12, 0.0  ;;  %v859_v36 = vsel %vm235_vm0, %v797_v45, 0.0 }
  0xf0   : > { %v737_v25 = vadd.f32 %v736_v13, %v735_v21  ;;  %v836_v27 = vadd.f32 %v835_v23, %v834_v22 }
  0xf2   : > { %v739_v29 = vadd.f32 %v738_v37, %v737_v25  ;;  %v838_v30 = vadd.f32 %v837_v28, %v836_v27 }
  0xf4   : > { %v840_v38 = vadd.f32 %v839_v32, %v838_v30  ;;  %v741_v40 = vadd.f32 %v740_v49, %v739_v29 }
  0xf6   : > { %v842_v46 = vadd.f32 %v841_v31, %v840_v38  ;;  %v743_v47 = vadd.f32 %v742_v20, %v741_v40 }
  0xf8   : > { %v745_v54 = vadd.f32 %v744_v50, %v743_v47  ;;  %v844_v33 = vadd.f32 %v843_v51, %v842_v46 }
  0xfa   : > { %v747_v58 = vadd.f32 %v746_v57, %v745_v54  ;;  %v846_v60 = vadd.f32 %v845_v55, %v844_v33 }
  0xfc   : > { %v848_v0 = vadd.f32 %v847_v61, %v846_v60  ;;  %v749_v59 = vadd.f32 %v748_v5, %v747_v58 }
  0xfe   : > { %v751_v6 = vadd.f32 %v750_v10, %v749_v59  ;;  %v850_v7 = vadd.f32 %v849_v2, %v848_v0 }
 0x100   : > { %v753_v9 = vadd.f32 %v752_v39, %v751_v6  ;;  %v852_v48 = vadd.f32 %v851_v16, %v850_v7 }
 0x102   : > { %v755_v14 = vadd.f32 %v754_v44, %v753_v9  ;;  %v854_v34 = vadd.f32 %v853_v11, %v852_v48 }
 0x104   : > { %v856_v17 = vadd.f32 %v855_v15, %v854_v34  ;;  %v757_v18 = vadd.f32 %v756_v43, %v755_v14 }
 0x106   : > { %v858_v63 = vadd.f32 %v857_v19, %v856_v17  ;;  %v759_v3 = vadd.f32 %v758_v53, %v757_v18 }
 0x108   : > { %v760_v21 = vrot.slane %v759_v3, 4  ;;  %v860_v22 = vadd.f32 %v859_v36, %v858_v63 }
 0x10a   : > { %v761_v23 = vadd.f32 %v760_v21, %v759_v3  ;;  %v861_v1 = vrot.slane %v860_v22, 4 }
 0x10c   : > { %v762_v13 = vrot.slane %v761_v23, 2  ;;  %v862_v24 = vadd.f32 %v861_v1, %v860_v22 }
 0x10e   : > { %v763_v25 = vadd.f32 %v762_v13, %v761_v23  ;;  %v863_v27 = vrot.slane %v862_v24, 2 }
 0x110   : > { %v764_v28 = vrot.slane %v763_v25, 1  ;;  %v864_v37 = vadd.f32 %v863_v27, %v862_v24 }
 0x112   : > { %v865_v52 = vrot.slane %v864_v37, 1  ;;  %v765_v42 = vadd.f32 %v764_v28, %v763_v25 }
 0x114   : > { %v866_v29 = vadd.f32 %v865_v52, %v864_v37 }
 0x116   : > { %v868_v30 = vsel %vm867_vm1, %v765_v42, %v866_v29 }
 0x117   : > { %870 = vst.msk [vmem:[%s229_s5] sm:$0x3] %vm869_vm2, %v868_v30 }
 0x118 PF: > { %s14_s14 = sadd.s32 1, %s1157_s14   ;;  %s1631_s12 = smov %s1153_s13 }
 0x119   : > { %p11_p6 = scmp.ge.s32.totalorder %s14_s14, 4   ;;  %s1632_s13 = smov %s1634_s15 }
 0x11b   :  { %13 = sbr.rel (!%p11_p6) target bundleno = 2 (0x2), region = 81 }

// kernel: magic_module_forward.24
= control target key start
LH: loop header
LB: loop body
LE: loop exit
PB: predicated region body
PF: predicated region fallthrough
CT: control target
= control target key end

     0   :  { %s512_s12 = smov 0   ;;  %s707_s0 = inlined_call_operand.vmem [shape: f32[512,32], index: 0, kind: input, shape index: {}]   ;;  %s708_s1 = inlined_call_operand.vmem [shape: f32[1,32], index: 1, kind: input, shape index: {}]   ;;  %s709_s2 = inlined_call_operand.vmem [shape: f32[1,32], index: 2, kind: input, shape index: {}]   ;;  %s710_s3 = inlined_call_operand.vmem [shape: f32[512,32], index: 3, kind: output, shape index: {}]  }
   0x1 LB: > { %s463_s13 = sadd.s32 4294967295, %s490_s12   ;;  %p467_p0 = scmp.ge.s32.totalorder %s490_s12, 1  ;;  %s490_s12 = sphi %s512_s12, %s13_s12  }
   0x2   : > { %p138_p1 = scmp.lt.s32.totalorder %s490_s12, 3 }
   0x4   : > { %p139_p2 = pnand %p467_p0, %p138_p1 }
   0x5   : > { %s468_s14 = sshll.u32 (!%p139_p2), %s463_s13, 5 }
   0x6   : > { %142 = sbr.rel (%p139_p2) target bundleno = 59 (0x3b), region = 32  ;;  %p163_p3 = scmp.lt.s32.totalorder (!%p139_p2), %s468_s14, 63 }
   0xb   : > { %s712_s14 = smov (!%p163_p3, %s468_s14), 63  ;;  %v525_v0 = vld [vmem:[%s708_s1] ss:$0 sm:$0xff]  ;;  %vm374_vm0 = vcmask 261120  }
   0xc   : > { %s469_s17 = sshll.u32 %s712_s14, 3  ;;  %v536_v1 = vld [vmem:[%s709_s2] ss:$0 sm:$0xff] }
   0xd   : > { %s531_s20 = scalar_lea.vmem %s707_s0, %s469_s17  ;;  %s564_s25 = scalar_lea.vmem %s710_s3, %s469_s17 }
   0xe   : > { %v174_v2 = vld [vmem:[%s531_s20] sm:$0xff]  ;;  %v175_v3 = vld [vmem:[%s531_s20 + $0x8] sm:$0xff]  ;;  %v176_v4 = vld [vmem:[%s531_s20 + $0x10] sm:$0xff] }
   0xf   : > { %v210_v5 = vmul.f32 %v525_v0, %v174_v2  ;;  %v211_v6 = vmul.f32 %v525_v0, %v175_v3  ;;  %v212_v7 = vmul.f32 %v525_v0, %v176_v4  ;;  %v177_v8 = vld [vmem:[%s531_s20 + $0x18] sm:$0xff]  ;;  %v178_v9 = vld [vmem:[%s531_s20 + $0x20] sm:$0xff]  ;;  %v179_v10 = vld [vmem:[%s531_s20 + $0x28] sm:$0xff] }
  0x10   : > { %v213_v11 = vmul.f32 %v525_v0, %v177_v8  ;;  %v214_v12 = vmul.f32 %v525_v0, %v178_v9  ;;  %v215_v13 = vmul.f32 %v525_v0, %v179_v10  ;;  %v180_v14 = vld [vmem:[%s531_s20 + $0x30] sm:$0xff]  ;;  %v181_v15 = vld [vmem:[%s531_s20 + $0x38] sm:$0xff]  ;;  %v182_v24 = vld [vmem:[%s531_s20 + $0x40] sm:$0xff] }
  0x11   : > { %v246_v16 = vadd.f32 %v536_v1, %v210_v5  ;;  %v247_v17 = vadd.f32 %v536_v1, %v211_v6  ;;  %v248_v18 = vadd.f32 %v536_v1, %v212_v7  ;;  %v216_v19 = vmul.f32 %v525_v0, %v180_v14  ;;  %v183_v32 = vld [vmem:[%s531_s20 + $0x48] sm:$0xff]  ;;  %v184_v33 = vld [vmem:[%s531_s20 + $0x50] sm:$0xff]  ;;  %v185_v34 = vld [vmem:[%s531_s20 + $0x58] sm:$0xff] }
  0x12   : > { %v249_v20 = vadd.f32 %v536_v1, %v213_v11  ;;  %v250_v21 = vadd.f32 %v536_v1, %v214_v12  ;;  %v251_v22 = vadd.f32 %v536_v1, %v215_v13  ;;  %v217_v23 = vmul.f32 %v525_v0, %v181_v15  ;;  %v186_v46 = vld [vmem:[%s531_s20 + $0x60] sm:$0xff]  ;;  %v187_v53 = vld [vmem:[%s531_s20 + $0x68] sm:$0xff]  ;;  %v188_v57 = vld [vmem:[%s531_s20 + $0x70] sm:$0xff] }
  0x13   : > { %vm278_vm1 = vcmp.ge.f32.partialorder %v246_v16, 0.0  ;;  %v310_v25 = vmul.f32 0.01, %v246_v16  ;;  %vm279_vm2 = vcmp.ge.f32.partialorder %v247_v17, 0.0  ;;  %v311_v26 = vmul.f32 0.01, %v247_v17 }
  0x14   : > { %vm280_vm3 = vcmp.ge.f32.partialorder %v248_v18, 0.0  ;;  %v312_v27 = vmul.f32 0.01, %v248_v18  ;;  %vm281_vm4 = vcmp.ge.f32.partialorder %v249_v20, 0.0  ;;  %v313_v28 = vmul.f32 0.01, %v249_v20 }
  0x15   : > { %v342_v29 = vsel %vm278_vm1, %v246_v16, %v310_v25  ;;  %v343_v30 = vsel %vm279_vm2, %v247_v17, %v311_v26  ;;  %vm282_vm5 = vcmp.ge.f32.partialorder %v250_v21, 0.0  ;;  %v314_v31 = vmul.f32 0.01, %v250_v21  ;;  %v189_v58 = vld [vmem:[%s531_s20 + $0x78] sm:$0xff]  ;;  %v190_v61 = vld [vmem:[%s531_s20 + $0x80] sm:$0xff]  ;;  %v191_v7 = vld [vmem:[%s531_s20 + $0x88] sm:$0xff] }
  0x16   : > { %375 = vst.msk [vmem:[%s564_s25] sm:$0xff] %vm374_vm0, %v342_v29  ;;  %v344_v35 = vsel %vm280_vm3, %v248_v18, %v312_v27  ;;  %v345_v36 = vsel %vm281_vm4, %v249_v20, %v313_v28  ;;  %vm283_vm6 = vcmp.ge.f32.partialorder %v251_v22, 0.0  ;;  %v315_v37 = vmul.f32 0.01, %v251_v22  ;;  %v192_v8 = vld [vmem:[%s531_s20 + $0x90] sm:$0xff]  ;;  %v194_v29 = vld [vmem:[%s531_s20 + $0xa0] sm:$0xff] }
  0x17   : > { %376 = vst.msk [vmem:[%s564_s25 + $0x8] sm:$0xff] %vm374_vm0, %v343_v30  ;;  %v346_v38 = vsel %vm282_vm5, %v250_v21, %v314_v31  ;;  %v252_v39 = vadd.f32 %v536_v1, %v216_v19  ;;  %v253_v40 = vadd.f32 %v536_v1, %v217_v23  ;;  %v218_v41 = vmul.f32 %v525_v0, %v182_v24  ;;  %v195_v30 = vld [vmem:[%s531_s20 + $0xa8] sm:$0xff]  ;;  %v196_v31 = vld [vmem:[%s531_s20 + $0xb0] sm:$0xff] }
  0x18   : > { %377 = vst.msk [vmem:[%s564_s25 + $0x10] sm:$0xff] %vm374_vm0, %v344_v35  ;;  %v347_v42 = vsel %vm283_vm6, %v251_v22, %v315_v37  ;;  %v219_v43 = vmul.f32 %v525_v0, %v183_v32  ;;  %v220_v44 = vmul.f32 %v525_v0, %v184_v33  ;;  %v221_v45 = vmul.f32 %v525_v0, %v185_v34  ;;  %v193_v22 = vld [vmem:[%s531_s20 + $0x98] sm:$0xff] }
  0x19   : > { %378 = vst.msk [vmem:[%s564_s25 + $0x18] sm:$0xff] %vm374_vm0, %v345_v36  ;;  %vm284_vm7 = vcmp.ge.f32.partialorder %v252_v39, 0.0  ;;  %v316_v47 = vmul.f32 0.01, %v252_v39  ;;  %vm285_vm8 = vcmp.ge.f32.partialorder %v253_v40, 0.0  ;;  %v254_v48 = vadd.f32 %v536_v1, %v218_v41  ;;  %v197_v35 = vld [vmem:[%s531_s20 + $0xb8] sm:$0xff] }
  0x1a   : > { %379 = vst.msk [vmem:[%s564_s25 + $0x20] sm:$0xff] %vm374_vm0, %v346_v38  ;;  %v317_v49 = vmul.f32 0.01, %v253_v40  ;;  %v255_v50 = vadd.f32 %v536_v1, %v219_v43  ;;  %v256_v51 = vadd.f32 %v536_v1, %v220_v44  ;;  %v257_v52 = vadd.f32 %v536_v1, %v221_v45  ;;  %v198_v36 = vld [vmem:[%s531_s20 + $0xc0] sm:$0xff] }
  0x1b   : > { %380 = vst.msk [vmem:[%s564_s25 + $0x28] sm:$0xff] %vm374_vm0, %v347_v42  ;;  %v348_v54 = vsel %vm284_vm7, %v252_v39, %v316_v47  ;;  %vm286_vm9 = vcmp.ge.f32.partialorder %v254_v48, 0.0  ;;  %v318_v55 = vmul.f32 0.01, %v254_v48  ;;  %v222_v56 = vmul.f32 %v525_v0, %v186_v46 }
  0x1c   : > { %381 = vst.msk [vmem:[%s564_s25 + $0x30] sm:$0xff] %vm374_vm0, %v348_v54  ;;  %v349_v59 = vsel %vm285_vm8, %v253_v40, %v317_v49  ;;  %vm287_vm10 = vcmp.ge.f32.partialorder %v255_v50, 0.0  ;;  %v319_v60 = vmul.f32 0.01, %v255_v50  ;;  %vm288_vm11 = vcmp.ge.f32.partialorder %v256_v51, 0.0  ;;  %v199_v40 = vld [vmem:[%s531_s20 + $0xc8] sm:$0xff] }
  0x1d   : > { %382 = vst.msk [vmem:[%s564_s25 + $0x38] sm:$0xff] %vm374_vm0, %v349_v59  ;;  %v350_v62 = vsel %vm286_vm9, %v254_v48, %v318_v55  ;;  %v320_v63 = vmul.f32 0.01, %v256_v51  ;;  %vm289_vm12 = vcmp.ge.f32.partialorder %v257_v52, 0.0  ;;  %v321_v2 = vmul.f32 0.01, %v257_v52 }
  0x1e   : > { %383 = vst.msk [vmem:[%s564_s25 + $0x40] sm:$0xff] %vm374_vm0, %v350_v62  ;;  %v351_v3 = vsel %vm287_vm10, %v255_v50, %v319_v60  ;;  %v258_v4 = vadd.f32 %v536_v1, %v222_v56  ;;  %v223_v5 = vmul.f32 %v525_v0, %v187_v53  ;;  %v224_v6 = vmul.f32 %v525_v0, %v188_v57  ;;  %v200_v56 = vld [vmem:[%s531_s20 + $0xd0] sm:$0xff]  ;;  %v201_v57 = vld [vmem:[%s531_s20 + $0xd8] sm:$0xff]  ;;  %v202_v62 = vld [vmem:[%s531_s20 + $0xe0] sm:$0xff] }
  0x1f   : > { %384 = vst.msk [vmem:[%s564_s25 + $0x48] sm:$0xff] %vm374_vm0, %v351_v3  ;;  %v352_v9 = vsel %vm288_vm11, %v256_v51, %v320_v63  ;;  %v353_v10 = vsel %vm289_vm12, %v257_v52, %v321_v2  ;;  %v225_v11 = vmul.f32 %v525_v0, %v189_v58  ;;  %v226_v12 = vmul.f32 %v525_v0, %v190_v61  ;;  %v203_v63 = vld [vmem:[%s531_s20 + $0xe8] sm:$0xff] }
  0x20   : > { %385 = vst.msk [vmem:[%s564_s25 + $0x50] sm:$0xff] %vm374_vm0, %v352_v9  ;;  %vm290_vm13 = vcmp.ge.f32.partialorder %v258_v4, 0.0  ;;  %v322_v13 = vmul.f32 0.01, %v258_v4  ;;  %v259_v14 = vadd.f32 %v536_v1, %v223_v5  ;;  %v260_v15 = vadd.f32 %v536_v1, %v224_v6  ;;  %v204_v9 = vld [vmem:[%s531_s20 + $0xf0] sm:$0xff] }
  0x21   : > { %386 = vst.msk [vmem:[%s564_s25 + $0x58] sm:$0xff] %vm374_vm0, %v353_v10  ;;  %v261_v16 = vadd.f32 %v536_v1, %v225_v11  ;;  %v262_v17 = vadd.f32 %v536_v1, %v226_v12  ;;  %v227_v18 = vmul.f32 %v525_v0, %v191_v7  ;;  %v228_v19 = vmul.f32 %v525_v0, %v192_v8 }
  0x22   : > { %v354_v20 = vsel %vm290_vm13, %v258_v4, %v322_v13  ;;  %vm291_vm14 = vcmp.ge.f32.partialorder %v259_v14, 0.0  ;;  %v323_v21 = vmul.f32 0.01, %v259_v14  ;;  %vm292_vm15 = vcmp.ge.f32.partialorder %v260_v15, 0.0 }
  0x23   : > { %387 = vst.msk [vmem:[%s564_s25 + $0x60] sm:$0xff] %vm374_vm0, %v354_v20  ;;  %v324_v23 = vmul.f32 0.01, %v260_v15  ;;  %vm293_vm1 = vcmp.ge.f32.partialorder %v261_v16, 0.0  ;;  %v325_v24 = vmul.f32 0.01, %v261_v16  ;;  %v263_v25 = vadd.f32 %v536_v1, %v227_v18 }
  0x24   : > { %v355_v26 = vsel %vm291_vm14, %v259_v14, %v323_v21  ;;  %vm294_vm2 = vcmp.ge.f32.partialorder %v262_v17, 0.0  ;;  %v326_v27 = vmul.f32 0.01, %v262_v17  ;;  %v264_v28 = vadd.f32 %v536_v1, %v228_v19  ;;  %v205_v14 = vld [vmem:[%s531_s20 + $0xf8] sm:$0xff] }
  0x25   : > { %388 = vst.msk [vmem:[%s564_s25 + $0x68] sm:$0xff] %vm374_vm0, %v355_v26  ;;  %v356_v32 = vsel %vm292_vm15, %v260_v15, %v324_v23  ;;  %v357_v33 = vsel %vm293_vm1, %v261_v16, %v325_v24  ;;  %vm295_vm3 = vcmp.ge.f32.partialorder %v263_v25, 0.0  ;;  %v327_v34 = vmul.f32 0.01, %v263_v25 }
  0x26   : > { %389 = vst.msk [vmem:[%s564_s25 + $0x70] sm:$0xff] %vm374_vm0, %v356_v32  ;;  %v358_v37 = vsel %vm294_vm2, %v262_v17, %v326_v27  ;;  %vm296_vm4 = vcmp.ge.f32.partialorder %v264_v28, 0.0  ;;  %v328_v38 = vmul.f32 0.01, %v264_v28  ;;  %v229_v39 = vmul.f32 %v525_v0, %v193_v22 }
  0x27   : > { %390 = vst.msk [vmem:[%s564_s25 + $0x78] sm:$0xff] %vm374_vm0, %v357_v33  ;;  %v359_v41 = vsel %vm295_vm3, %v263_v25, %v327_v34  ;;  %v230_v42 = vmul.f32 %v525_v0, %v194_v29  ;;  %v231_v43 = vmul.f32 %v525_v0, %v195_v30  ;;  %v232_v44 = vmul.f32 %v525_v0, %v196_v31 }
  0x28   : > { %391 = vst.msk [vmem:[%s564_s25 + $0x80] sm:$0xff] %vm374_vm0, %v358_v37  ;;  %v360_v45 = vsel %vm296_vm4, %v264_v28, %v328_v38  ;;  %v265_v46 = vadd.f32 %v536_v1, %v229_v39  ;;  %v233_v47 = vmul.f32 %v525_v0, %v197_v35  ;;  %v234_v48 = vmul.f32 %v525_v0, %v198_v36 }
  0x29   : > { %392 = vst.msk [vmem:[%s564_s25 + $0x88] sm:$0xff] %vm374_vm0, %v359_v41  ;;  %v266_v49 = vadd.f32 %v536_v1, %v230_v42  ;;  %v267_v50 = vadd.f32 %v536_v1, %v231_v43  ;;  %v268_v51 = vadd.f32 %v536_v1, %v232_v44  ;;  %v235_v52 = vmul.f32 %v525_v0, %v199_v40 }
  0x2a   : > { %393 = vst.msk [vmem:[%s564_s25 + $0x90] sm:$0xff] %vm374_vm0, %v360_v45  ;;  %vm297_vm5 = vcmp.ge.f32.partialorder %v265_v46, 0.0  ;;  %v329_v53 = vmul.f32 0.01, %v265_v46  ;;  %v269_v54 = vadd.f32 %v536_v1, %v233_v47  ;;  %v270_v55 = vadd.f32 %v536_v1, %v234_v48 }
  0x2b   : > { %vm298_vm6 = vcmp.ge.f32.partialorder %v266_v49, 0.0  ;;  %v330_v58 = vmul.f32 0.01, %v266_v49  ;;  %vm299_vm7 = vcmp.ge.f32.partialorder %v267_v50, 0.0  ;;  %v331_v59 = vmul.f32 0.01, %v267_v50 }
  0x2c   : > { %v361_v60 = vsel %vm297_vm5, %v265_v46, %v329_v53  ;;  %vm300_vm8 = vcmp.ge.f32.partialorder %v268_v51, 0.0  ;;  %v332_v61 = vmul.f32 0.01, %v268_v51  ;;  %vm301_vm9 = vcmp.ge.f32.partialorder %v269_v54, 0.0 }
  0x2d   : > { %394 = vst.msk [vmem:[%s564_s25 + $0x98] sm:$0xff] %vm374_vm0, %v361_v60  ;;  %v362_v2 = vsel %vm298_vm6, %v266_v49, %v330_v58  ;;  %v363_v3 = vsel %vm299_vm7, %v267_v50, %v331_v59  ;;  %v333_v4 = vmul.f32 0.01, %v269_v54  ;;  %vm302_vm10 = vcmp.ge.f32.partialorder %v270_v55, 0.0 }
  0x2e   : > { %395 = vst.msk [vmem:[%s564_s25 + $0xa0] sm:$0xff] %vm374_vm0, %v362_v2  ;;  %v364_v5 = vsel %vm300_vm8, %v268_v51, %v332_v61  ;;  %v334_v6 = vmul.f32 0.01, %v270_v55  ;;  %v271_v7 = vadd.f32 %v536_v1, %v235_v52  ;;  %v236_v8 = vmul.f32 %v525_v0, %v200_v56 }
  0x2f   : > { %396 = vst.msk [vmem:[%s564_s25 + $0xa8] sm:$0xff] %vm374_vm0, %v363_v3  ;;  %v365_v10 = vsel %vm301_vm9, %v269_v54, %v333_v4  ;;  %v237_v11 = vmul.f32 %v525_v0, %v201_v57  ;;  %v238_v12 = vmul.f32 %v525_v0, %v202_v62  ;;  %v239_v13 = vmul.f32 %v525_v0, %v203_v63 }
  0x30   : > { %397 = vst.msk [vmem:[%s564_s25 + $0xb0] sm:$0xff] %vm374_vm0, %v364_v5  ;;  %v366_v15 = vsel %vm302_vm10, %v270_v55, %v334_v6  ;;  %vm303_vm11 = vcmp.ge.f32.partialorder %v271_v7, 0.0  ;;  %v335_v16 = vmul.f32 0.01, %v271_v7  ;;  %v272_v17 = vadd.f32 %v536_v1, %v236_v8 }
  0x31   : > { %398 = vst.msk [vmem:[%s564_s25 + $0xb8] sm:$0xff] %vm374_vm0, %v365_v10  ;;  %v273_v18 = vadd.f32 %v536_v1, %v237_v11  ;;  %v274_v19 = vadd.f32 %v536_v1, %v238_v12  ;;  %v275_v20 = vadd.f32 %v536_v1, %v239_v13  ;;  %v240_v21 = vmul.f32 %v525_v0, %v204_v9 }
  0x32   : > { %399 = vst.msk [vmem:[%s564_s25 + $0xc0] sm:$0xff] %vm374_vm0, %v366_v15  ;;  %v367_v22 = vsel %vm303_vm11, %v271_v7, %v335_v16  ;;  %vm304_vm12 = vcmp.ge.f32.partialorder %v272_v17, 0.0  ;;  %v336_v23 = vmul.f32 0.01, %v272_v17  ;;  %v241_v24 = vmul.f32 %v525_v0, %v205_v14 }
  0x33   : > { %400 = vst.msk [vmem:[%s564_s25 + $0xc8] sm:$0xff] %vm374_vm0, %v367_v22  ;;  %vm305_vm13 = vcmp.ge.f32.partialorder %v273_v18, 0.0  ;;  %v337_v25 = vmul.f32 0.01, %v273_v18  ;;  %vm306_vm14 = vcmp.ge.f32.partialorder %v274_v19, 0.0  ;;  %vm307_vm15 = vcmp.ge.f32.partialorder %v275_v20, 0.0 }
  0x34   : > { %v368_v26 = vsel %vm304_vm12, %v272_v17, %v336_v23  ;;  %v338_v27 = vmul.f32 0.01, %v274_v19  ;;  %v339_v28 = vmul.f32 0.01, %v275_v20  ;;  %v276_v29 = vadd.f32 %v536_v1, %v240_v21 }
  0x35   : > { %401 = vst.msk [vmem:[%s564_s25 + $0xd0] sm:$0xff] %vm374_vm0, %v368_v26  ;;  %v369_v30 = vsel %vm305_vm13, %v273_v18, %v337_v25  ;;  %v277_v0 = vadd.f32 %v536_v1, %v241_v24 }
  0x36   : > { %402 = vst.msk [vmem:[%s564_s25 + $0xd8] sm:$0xff] %vm374_vm0, %v369_v30  ;;  %v370_v31 = vsel %vm306_vm14, %v274_v19, %v338_v27  ;;  %v371_v32 = vsel %vm307_vm15, %v275_v20, %v339_v28  ;;  %vm308_vm1 = vcmp.ge.f32.partialorder %v276_v29, 0.0  ;;  %v340_v33 = vmul.f32 0.01, %v276_v29 }
  0x37   : > { %403 = vst.msk [vmem:[%s564_s25 + $0xe0] sm:$0xff] %vm374_vm0, %v370_v31  ;;  %vm309_vm2 = vcmp.ge.f32.partialorder %v277_v0, 0.0  ;;  %v341_v34 = vmul.f32 0.01, %v277_v0 }
  0x38   : > { %404 = vst.msk [vmem:[%s564_s25 + $0xe8] sm:$0xff] %vm374_vm0, %v371_v32  ;;  %v372_v35 = vsel %vm308_vm1, %v276_v29, %v340_v33 }
  0x39   : > { %405 = vst.msk [vmem:[%s564_s25 + $0xf0] sm:$0xff] %vm374_vm0, %v372_v35  ;;  %v373_v36 = vsel %vm309_vm2, %v277_v0, %v341_v34 }
  0x3a   : > { %406 = vst.msk [vmem:[%s564_s25 + $0xf8] sm:$0xff] %vm374_vm0, %v373_v36 }
  0x3b PF: > { %s13_s12 = sadd.s32 1, %s490_s12  }
  0x3c   : > { %p10_p4 = scmp.ge.s32.totalorder %s13_s12, 4  }
  0x3e   :  { %12 = sbr.rel (!%p10_p4) target bundleno = 1 (0x1), region = 62 }

// kernel: magic_module_forward.25
= control target key start
LH: loop header
LB: loop body
LE: loop exit
PB: predicated region body
PF: predicated region fallthrough
CT: control target
= control target key end

     0   :  { %s1224_s12 = smov 0   ;;  %s1226_s13 = smov 0   ;;  %s1680_s0 = inlined_call_operand.vmem [shape: bf16[512,72], index: 0, kind: input, shape index: {}]   ;;  %s1681_s1 = inlined_call_operand.vmem [shape: bf16[72,32], index: 1, kind: input, shape index: {}]   ;;  %s1682_s2 = inlined_call_operand.vmem [shape: f32[512,32], index: 2, kind: output, shape index: {0}]   ;;  %s1683_s3 = inlined_call_operand.vmem [shape: f32[2,2,32], index: 3, kind: output, shape index: {1}]  }
   0x1   :  { %s1228_s14 = smov 0  }
   0x2 LB: > { %s26_s15 = sadd.s32 1, %s1197_s13  ;;  %p1015_p0 = scmp.ge.s32.totalorder %s1201_s14, 1  ;;  %s1201_s14 = sphi %s1228_s14, %s14_s14   ;;  %s1197_s13 = sphi %s1226_s13, %s1685_s13   ;;  %s1193_s12 = sphi %s1224_s12, %s1684_s12  }
   0x3   : > { %p28_p1 = scmp.ge.s32.totalorder %s26_s15, 2  ;;  %p169_p2 = scmp.lt.s32.totalorder %s1201_s14, 3 }
   0x5   : > { %s1687_s15 = smov (%p28_p1, %s26_s15), 0  ;;  %p170_p3 = pnand %p1015_p0, %p169_p2 }
   0x6   : > { %s1016_s18 = sshll.u32 (!%p170_p3), %s1193_s12, 5  ;;  %p226_p5 = scmp.lt.s32.totalorder (!%p170_p3), %s1193_s12, 1 }
   0x7   : > { %173 = sbr.rel (%p170_p3) target bundleno = 297 (0x129), region = 28  ;;  %p206_p4 = scmp.lt.s32.totalorder (!%p170_p3), %s1016_s18, 63 }
   0xc   : > { %v340_v0 = vld [vmem:[%s1681_s1 + $0x20] sm:$0xf]  ;;  %vm497_vm0 = vcmask 1043456   ;;  %v1138_v4 = vld [vmem:[%s1681_s1 + $0x18] sm:$0xff]  ;;  %v1137_v5 = vld [vmem:[%s1681_s1 + $0x10] sm:$0xff]  ;;  %s1689_s18 = smov (!%p206_p4, %s1016_s18), 63 }
   0xd   : > { %v438_v1 = vunpack.c.l.b16 %v340_v0  ;;  %v1136_v6 = vld [vmem:[%s1681_s1 + $0x8] sm:$0xff]  ;;  %s1017_s25 = sshll.u32 %s1689_s18, 2  ;;  %v1135_v7 = vld [vmem:[%s1681_s1] sm:$0xff]  ;;  %vm448_vm1 = vcmask 588800   ;;  %vm235_vm2 = vcmask 261120   ;;  %v1203_v16 = vmov 0.0  }
   0xe   : > { %s1266_s30 = scalar_lea.vmem %s1680_s0, %s1017_s25  ;;  %236 = vst.msk [vmem:[#allocation2] sm:$0xff] %vm235_vm2, %v1203_v16  ;;  %s1019_s4 = sshll.u32 %s1689_s18, 3  ;;  %vm892_vm3 = vcmask 1040384   ;;  %vm894_vm4 = vcmask 254976  }
   0xf   : > { %v443_v2 = vpack.c.b16 %v438_v1, %v438_v1  ;;  %v1119_v8 = vld [vmem:[%s1266_s30] sm:$0xff]  ;;  %v1120_v12 = vld [vmem:[%s1266_s30 + $0x8] sm:$0xff]  ;;  %237 = vst.msk [vmem:[#allocation2 + $0x8] sm:$0xff] %vm235_vm2, %v1203_v16  ;;  %v1121_v17 = vld [vmem:[%s1266_s30 + $0x10] sm:$0xff]  ;;  %s1338_s7 = scalar_lea.vmem %s1682_s2, %s1019_s4  ;;  %s1691_s12 = smov (!%p226_p5, %s1193_s12), 1 }
  0x10   : > { %v1123_v9 = vld [vmem:[%s1266_s30 + $0x20] sm:$0xff]  ;;  %v1124_v13 = vld [vmem:[%s1266_s30 + $0x28] sm:$0xff]  ;;  %238 = vst.msk [vmem:[#allocation2 + $0x10] sm:$0xff] %vm235_vm2, %v1203_v16  ;;  %v1125_v18 = vld [vmem:[%s1266_s30 + $0x30] sm:$0xff]  ;;  %s1020_s8 = sshll.u32 %s1691_s12, 1 }
  0x11   : > { %v499_v3 = vsel %vm497_vm0, %v443_v2, 0  ;;  %v1127_v10 = vld [vmem:[%s1266_s30 + $0x40] sm:$0xff]  ;;  %v1128_v14 = vld [vmem:[%s1266_s30 + $0x48] sm:$0xff]  ;;  %239 = vst.msk [vmem:[#allocation2 + $0x18] sm:$0xff] %vm235_vm2, %v1203_v16  ;;  %v1129_v19 = vld [vmem:[%s1266_s30 + $0x50] sm:$0xff]  ;;  %s229_s11 = scalar_lea.vmem %s1683_s3, %s1020_s8 }
  0x12   : > { %504 = vmatpush.bf16.msra.mxu0 %v499_v3  ;;  %1139 = vmatpush.bf16.msra.mxu1 %v499_v3  ;;  %v1131_v11 = vld [vmem:[%s1266_s30 + $0x60] sm:$0xff]  ;;  %v1132_v15 = vld [vmem:[%s1266_s30 + $0x68] sm:$0xff]  ;;  %240 = vst.msk [vmem:[#allocation2 + $0x20] sm:$0xff] %vm235_vm2, %v1203_v16  ;;  %v1133_v20 = vld [vmem:[%s1266_s30 + $0x70] sm:$0xff] }
  0x13   : > { %1140 = vmatpush.bf16.msra.mxu2 %v499_v3  ;;  %1141 = vmatpush.bf16.msra.mxu3 %v499_v3  ;;  %241 = vst.msk [vmem:[#allocation2 + $0x28] sm:$0xff] %vm235_vm2, %v1203_v16  ;;  %v1122_v21 = vld [vmem:[%s1266_s30 + $0x18] sm:$0xff] }
  0x14   : > { %242 = vst.msk [vmem:[#allocation2 + $0x30] sm:$0xff] %vm235_vm2, %v1203_v16  ;;  %v1126_v22 = vld [vmem:[%s1266_s30 + $0x38] sm:$0xff] }
  0x15   : > { %243 = vst.msk [vmem:[#allocation2 + $0x38] sm:$0xff] %vm235_vm2, %v1203_v16  ;;  %v1130_v23 = vld [vmem:[%s1266_s30 + $0x58] sm:$0xff]  ;;  %v268_v25 = vld [vmem:[#allocation2] sm:$0xff] }
  0x16   : > { %505 = vmatpush.bf16.msra.mxu0 %v1138_v4  ;;  %1142 = vmatpush.bf16.msra.mxu1 %v1138_v4  ;;  %244 = vst.msk [vmem:[#allocation2 + $0x40] sm:$0xff] %vm235_vm2, %v1203_v16  ;;  %v1134_v24 = vld [vmem:[%s1266_s30 + $0x78] sm:$0xff]  ;;  %v269_v32 = vld [vmem:[#allocation2 + $0x8] sm:$0xff] }
  0x17   : > { %1143 = vmatpush.bf16.msra.mxu2 %v1138_v4  ;;  %1144 = vmatpush.bf16.msra.mxu3 %v1138_v4  ;;  %245 = vst.msk [vmem:[#allocation2 + $0x48] sm:$0xff] %vm235_vm2, %v1203_v16  ;;  %v270_v43 = vld [vmem:[#allocation2 + $0x10] sm:$0xff] }
  0x18   : > { %246 = vst.msk [vmem:[#allocation2 + $0x50] sm:$0xff] %vm235_vm2, %v1203_v16  ;;  %v271_v61 = vld [vmem:[#allocation2 + $0x18] sm:$0xff] }
  0x19   : > { %247 = vst.msk [vmem:[#allocation2 + $0x58] sm:$0xff] %vm235_vm2, %v1203_v16 }
  0x1a   : > { %506 = vmatpush.bf16.msra.mxu0 %v1137_v5  ;;  %1145 = vmatpush.bf16.msra.mxu1 %v1137_v5  ;;  %248 = vst.msk [vmem:[#allocation2 + $0x60] sm:$0xff] %vm235_vm2, %v1203_v16 }
  0x1b   : > { %1146 = vmatpush.bf16.msra.mxu2 %v1137_v5  ;;  %1147 = vmatpush.bf16.msra.mxu3 %v1137_v5  ;;  %249 = vst.msk [vmem:[#allocation2 + $0x68] sm:$0xff] %vm235_vm2, %v1203_v16 }
  0x1c   : > { %250 = vst.msk [vmem:[#allocation2 + $0x70] sm:$0xff] %vm235_vm2, %v1203_v16 }
  0x1d   : > { %251 = vst.msk [vmem:[#allocation2 + $0x78] sm:$0xff] %vm235_vm2, %v1203_v16  ;;  %v276_v26 = vld [vmem:[#allocation2 + $0x40] sm:$0xff] }
  0x1e   : > { %507 = vmatpush.bf16.msra.mxu0 %v1136_v6  ;;  %1148 = vmatpush.bf16.msra.mxu1 %v1136_v6  ;;  %252 = vst.msk [vmem:[#allocation2 + $0x80] sm:$0xff] %vm235_vm2, %v1203_v16  ;;  %v277_v33 = vld [vmem:[#allocation2 + $0x48] sm:$0xff] }
  0x1f   : > { %1149 = vmatpush.bf16.msra.mxu2 %v1136_v6  ;;  %1150 = vmatpush.bf16.msra.mxu3 %v1136_v6  ;;  %253 = vst.msk [vmem:[#allocation2 + $0x88] sm:$0xff] %vm235_vm2, %v1203_v16  ;;  %v278_v44 = vld [vmem:[#allocation2 + $0x50] sm:$0xff] }
  0x20   : > { %254 = vst.msk [vmem:[#allocation2 + $0x90] sm:$0xff] %vm235_vm2, %v1203_v16  ;;  %v279_v62 = vld [vmem:[#allocation2 + $0x58] sm:$0xff] }
  0x21   : > { %255 = vst.msk [vmem:[#allocation2 + $0x98] sm:$0xff] %vm235_vm2, %v1203_v16 }
  0x22   : > { %508 = vmatpush.bf16.msra.mxu0 %v1135_v7  ;;  %1151 = vmatpush.bf16.msra.mxu1 %v1135_v7  ;;  %256 = vst.msk [vmem:[#allocation2 + $0xa0] sm:$0xff] %vm235_vm2, %v1203_v16 }
  0x23   : > { %1152 = vmatpush.bf16.msra.mxu2 %v1135_v7  ;;  %1153 = vmatpush.bf16.msra.mxu3 %v1135_v7  ;;  %257 = vst.msk [vmem:[#allocation2 + $0xa8] sm:$0xff] %vm235_vm2, %v1203_v16 }
  0x24   : > { %258 = vst.msk [vmem:[#allocation2 + $0xb0] sm:$0xff] %vm235_vm2, %v1203_v16 }
  0x25   : > { %1101 = vmatmul.msk.bf16.vlgmr.msra.gmra.mxu0 %vm448_vm1, %v1119_v8  ;;  %1105 = vmatmul.msk.bf16.vlgmr.msra.gmra.mxu1 %vm448_vm1, %v1123_v9  ;;  %259 = vst.msk [vmem:[#allocation2 + $0xb8] sm:$0xff] %vm235_vm2, %v1203_v16  ;;  %v284_v31 = vld [vmem:[#allocation2 + $0x80] sm:$0xff] }
  0x26   : > { %1109 = vmatmul.msk.bf16.vlgmr.msra.gmra.mxu2 %vm448_vm1, %v1127_v10  ;;  %1113 = vmatmul.msk.bf16.vlgmr.msra.gmra.mxu3 %vm448_vm1, %v1131_v11  ;;  %260 = vst.msk [vmem:[#allocation2 + $0xc0] sm:$0xff] %vm235_vm2, %v1203_v16  ;;  %v285_v48 = vld [vmem:[#allocation2 + $0x88] sm:$0xff]  ;;  %v272_v8 = vld [vmem:[#allocation2 + $0x20] sm:$0xff] }
  0x27   : > { %261 = vst.msk [vmem:[#allocation2 + $0xc8] sm:$0xff] %vm235_vm2, %v1203_v16  ;;  %v286_v59 = vld [vmem:[#allocation2 + $0x90] sm:$0xff]  ;;  %v280_v10 = vld [vmem:[#allocation2 + $0x60] sm:$0xff] }
  0x28   : > { %262 = vst.msk [vmem:[#allocation2 + $0xd0] sm:$0xff] %vm235_vm2, %v1203_v16 }
  0x29   : > { %263 = vst.msk [vmem:[#allocation2 + $0xd8] sm:$0xff] %vm235_vm2, %v1203_v16 }
  0x2a   : > { %264 = vst.msk [vmem:[#allocation2 + $0xe0] sm:$0xff] %vm235_vm2, %v1203_v16 }
  0x2b   : > { %265 = vst.msk [vmem:[#allocation2 + $0xe8] sm:$0xff] %vm235_vm2, %v1203_v16 }
  0x2c   : > { %266 = vst.msk [vmem:[#allocation2 + $0xf0] sm:$0xff] %vm235_vm2, %v1203_v16 }
  0x2d   : > { %267 = vst.msk [vmem:[#allocation2 + $0xf8] sm:$0xff] %vm235_vm2, %v1203_v16  ;;  %v292_v53 = vld [vmem:[#allocation2 + $0xc0] sm:$0xff] }
  0x2e   : > { %v293_v56 = vld [vmem:[#allocation2 + $0xc8] sm:$0xff] }
  0x35   : > { %1102 = vmatmul.msk.bf16.gmra.mxu0 %vm448_vm1, %v1120_v12  ;;  %1106 = vmatmul.msk.bf16.gmra.mxu1 %vm448_vm1, %v1124_v13 }
  0x36   : > { %1110 = vmatmul.msk.bf16.gmra.mxu2 %vm448_vm1, %v1128_v14  ;;  %1114 = vmatmul.msk.bf16.gmra.mxu3 %vm448_vm1, %v1132_v15  ;;  %v287_v15 = vld [vmem:[#allocation2 + $0x98] sm:$0xff] }
  0x45   : > { %1103 = vmatmul.msk.bf16.gmra.mxu0 %vm448_vm1, %v1121_v17  ;;  %1107 = vmatmul.msk.bf16.gmra.mxu1 %vm448_vm1, %v1125_v18 }
  0x46   : > { %1111 = vmatmul.msk.bf16.gmra.mxu2 %vm448_vm1, %v1129_v19  ;;  %1115 = vmatmul.msk.bf16.gmra.mxu3 %vm448_vm1, %v1133_v20 }
  0x55   : > { %1104 = vmatmul.msk.bf16.gmra.mxu0 %vm448_vm1, %v1122_v21  ;;  %1108 = vmatmul.msk.bf16.gmra.mxu1 %vm448_vm1, %v1126_v22  ;;  %v294_v21 = vld [vmem:[#allocation2 + $0xd0] sm:$0xff] }
  0x56   : > { %1112 = vmatmul.msk.bf16.gmra.mxu2 %vm448_vm1, %v1130_v23  ;;  %1116 = vmatmul.msk.bf16.gmra.mxu3 %vm448_vm1, %v1134_v24  ;;  %v295_v24 = vld [vmem:[#allocation2 + $0xd8] sm:$0xff] }
  0xa2   : > { %v510_v27 = vpop.f32.mrf.mxu0  ;;  %v530_v28 = vpop.f32.mrf.mxu1 }
  0xa3   : > { %v590_v29 = vadd.f32 %v510_v27, %v268_v25  ;;  %v598_v30 = vadd.f32 %v530_v28, %v276_v26  ;;  %v288_v27 = vld [vmem:[#allocation2 + $0xa0] sm:$0xff] }
  0xa5   : > { %623 = vst.msk [vmem:[#allocation2] sm:$0xff] %vm235_vm2, %v590_v29  ;;  %v273_v29 = vld [vmem:[#allocation2 + $0x28] sm:$0xff] }
  0xa6   : > { %631 = vst.msk [vmem:[#allocation2 + $0x40] sm:$0xff] %vm235_vm2, %v598_v30  ;;  %v281_v30 = vld [vmem:[#allocation2 + $0x68] sm:$0xff] }
  0xa9   : > { %v550_v34 = vpop.f32.mrf.mxu2  ;;  %v570_v39 = vpop.f32.mrf.mxu3 }
  0xaa   : > { %v512_v35 = vpop.f32.mrf.mxu0  ;;  %v532_v36 = vpop.f32.mrf.mxu1  ;;  %v606_v37 = vadd.f32 %v550_v34, %v284_v31  ;;  %v614_v57 = vadd.f32 %v570_v39, %v292_v53 }
  0xab   : > { %v591_v38 = vadd.f32 %v512_v35, %v269_v32  ;;  %v599_v41 = vadd.f32 %v532_v36, %v277_v33 }
  0xac   : > { %v1340_v40 = vld [vmem:[#allocation2] sm:$0xff]  ;;  %639 = vst.msk [vmem:[#allocation2 + $0x80] sm:$0xff] %vm235_vm2, %v606_v37 }
  0xad   : > { %690 = vst.msk [vmem:[%s1338_s7] sm:$0xff] %vm235_vm2, %v1340_v40  ;;  %v1346_v42 = vld [vmem:[#allocation2 + $0x40] sm:$0xff] }
  0xae   : > { %624 = vst.msk [vmem:[#allocation2 + $0x8] sm:$0xff] %vm235_vm2, %v591_v38 }
  0xaf   : > { %698 = vst.msk [vmem:[%s1338_s7 + $0x40] sm:$0xff] %vm235_vm2, %v1346_v42 }
  0xb0   : > { %632 = vst.msk [vmem:[#allocation2 + $0x48] sm:$0xff] %vm235_vm2, %v599_v41  ;;  %v274_v41 = vld [vmem:[#allocation2 + $0x30] sm:$0xff] }
  0xb1   : > { %v552_v45 = vpop.f32.mrf.mxu2  ;;  %v572_v52 = vpop.f32.mrf.mxu3  ;;  %647 = vst.msk [vmem:[#allocation2 + $0xc0] sm:$0xff] %vm235_vm2, %v614_v57 }
  0xb2   : > { %v515_v46 = vpop.f32.mrf.mxu0  ;;  %v535_v47 = vpop.f32.mrf.mxu1  ;;  %v607_v55 = vadd.f32 %v552_v45, %v285_v48  ;;  %v615_v60 = vadd.f32 %v572_v52, %v293_v56  ;;  %v296_v56 = vld [vmem:[#allocation2 + $0xe0] sm:$0xff] }
  0xb3   : > { %v592_v49 = vadd.f32 %v515_v46, %v270_v43  ;;  %v600_v50 = vadd.f32 %v535_v47, %v278_v44  ;;  %v1353_v51 = vld [vmem:[#allocation2 + $0x80] sm:$0xff]  ;;  %v282_v44 = vld [vmem:[#allocation2 + $0x70] sm:$0xff] }
  0xb4   : > { %706 = vst.msk [vmem:[%s1338_s7 + $0x80] sm:$0xff] %vm235_vm2, %v1353_v51 }
  0xb5   : > { %v1358_v54 = vld [vmem:[#allocation2 + $0x8] sm:$0xff]  ;;  %625 = vst.msk [vmem:[#allocation2 + $0x10] sm:$0xff] %vm235_vm2, %v592_v49 }
  0xb6   : > { %691 = vst.msk [vmem:[%s1338_s7 + $0x8] sm:$0xff] %vm235_vm2, %v1358_v54  ;;  %v289_v49 = vld [vmem:[#allocation2 + $0xa8] sm:$0xff] }
  0xb7   : > { %v1364_v58 = vld [vmem:[#allocation2 + $0x48] sm:$0xff]  ;;  %633 = vst.msk [vmem:[#allocation2 + $0x50] sm:$0xff] %vm235_vm2, %v600_v50 }
  0xb8   : > { %699 = vst.msk [vmem:[%s1338_s7 + $0x48] sm:$0xff] %vm235_vm2, %v1364_v58  ;;  %v1391_v11 = vld [vmem:[#allocation2 + $0xc0] sm:$0xff] }
  0xb9   : > { %640 = vst.msk [vmem:[#allocation2 + $0x88] sm:$0xff] %vm235_vm2, %v607_v55  ;;  %v555_v63 = vpop.f32.mrf.mxu2  ;;  %v575_v4 = vpop.f32.mrf.mxu3 }
  0xba   : > { %v517_v0 = vpop.f32.mrf.mxu0  ;;  %v537_v1 = vpop.f32.mrf.mxu1  ;;  %v608_v2 = vadd.f32 %v555_v63, %v286_v59  ;;  %648 = vst.msk [vmem:[#allocation2 + $0xc8] sm:$0xff] %vm235_vm2, %v615_v60  ;;  %v616_v25 = vadd.f32 %v575_v4, %v294_v21  ;;  %v297_v59 = vld [vmem:[#allocation2 + $0xe8] sm:$0xff]  ;;  %v723_v4 = vsel %vm235_vm2, %v1358_v54, 0.0 }
  0xbb   : > { %v593_v3 = vadd.f32 %v517_v0, %v271_v61  ;;  %v601_v6 = vadd.f32 %v537_v1, %v279_v62  ;;  %714 = vst.msk [vmem:[%s1338_s7 + $0xc0] sm:$0xff] %vm235_vm2, %v1391_v11  ;;  %v792_v62 = vmul.f32 %v1358_v54, %v1358_v54  ;;  %v791_v0 = vmul.f32 %v1340_v40, %v1340_v40 }
  0xbc   : > { %v1373_v5 = vld [vmem:[#allocation2 + $0x10] sm:$0xff]  ;;  %641 = vst.msk [vmem:[#allocation2 + $0x90] sm:$0xff] %vm235_vm2, %v608_v2 }
  0xbd   : > { %692 = vst.msk [vmem:[%s1338_s7 + $0x10] sm:$0xff] %vm235_vm2, %v1373_v5  ;;  %v290_v2 = vld [vmem:[#allocation2 + $0xb0] sm:$0xff] }
  0xbe   : > { %626 = vst.msk [vmem:[#allocation2 + $0x18] sm:$0xff] %vm235_vm2, %v593_v3  ;;  %v1380_v7 = vld [vmem:[#allocation2 + $0x50] sm:$0xff] }
  0xbf   : > { %700 = vst.msk [vmem:[%s1338_s7 + $0x50] sm:$0xff] %vm235_vm2, %v1380_v7 }
  0xc0   : > { %634 = vst.msk [vmem:[#allocation2 + $0x58] sm:$0xff] %vm235_vm2, %v601_v6  ;;  %v1386_v9 = vld [vmem:[#allocation2 + $0x88] sm:$0xff]  ;;  %v793_v6 = vmul.f32 %v1373_v5, %v1373_v5 }
  0xc1   : > { %707 = vst.msk [vmem:[%s1338_s7 + $0x88] sm:$0xff] %vm235_vm2, %v1386_v9  ;;  %v557_v12 = vpop.f32.mrf.mxu2  ;;  %v1396_v16 = vld [vmem:[#allocation2 + $0xc8] sm:$0xff]  ;;  %v577_v20 = vpop.f32.mrf.mxu3 }
  0xc2   : > { %v520_v13 = vpop.f32.mrf.mxu0  ;;  %v540_v14 = vpop.f32.mrf.mxu1  ;;  %715 = vst.msk [vmem:[%s1338_s7 + $0xc8] sm:$0xff] %vm235_vm2, %v1396_v16  ;;  %v609_v23 = vadd.f32 %v557_v12, %v287_v15  ;;  %v617_v28 = vadd.f32 %v577_v20, %v295_v24  ;;  %v283_v12 = vld [vmem:[#allocation2 + $0x78] sm:$0xff]  ;;  %v725_v15 = vsel %vm235_vm2, %v1373_v5, 0.0 }
  0xc3   : > { %v594_v17 = vadd.f32 %v520_v13, %v272_v8  ;;  %v602_v18 = vadd.f32 %v540_v14, %v280_v10  ;;  %v1398_v19 = vld [vmem:[#allocation2 + $0x90] sm:$0xff]  ;;  %649 = vst.msk [vmem:[#allocation2 + $0xd0] sm:$0xff] %vm235_vm2, %v616_v25  ;;  %v275_v8 = vld [vmem:[#allocation2 + $0x38] sm:$0xff]  ;;  %v722_v10 = vsel %vm235_vm2, %v1340_v40, 0.0  ;;  %v824_v14 = vsel %vm235_vm2, %v792_v62, 0.0 }
  0xc4   : > { %708 = vst.msk [vmem:[%s1338_s7 + $0x90] sm:$0xff] %vm235_vm2, %v1398_v19  ;;  %v823_v40 = vsel %vm235_vm2, %v791_v0, 0.0  ;;  %v724_v21 = vadd.f32 %v723_v4, %v722_v10  ;;  %v826_v25 = vsel %vm235_vm2, %v793_v6, 0.0  ;;  %v299_v0 = vld [vmem:[#allocation2 + $0xf8] sm:$0xff] }
  0xc5   : > { %v1406_v22 = vld [vmem:[#allocation2 + $0x18] sm:$0xff]  ;;  %627 = vst.msk [vmem:[#allocation2 + $0x20] sm:$0xff] %vm235_vm2, %v594_v17 }
  0xc6   : > { %693 = vst.msk [vmem:[%s1338_s7 + $0x18] sm:$0xff] %vm235_vm2, %v1406_v22  ;;  %v794_v54 = vmul.f32 %v1406_v22, %v1406_v22  ;;  %v727_v5 = vsel %vm235_vm2, %v1406_v22, 0.0 }
  0xc7   : > { %v1412_v26 = vld [vmem:[#allocation2 + $0x58] sm:$0xff]  ;;  %635 = vst.msk [vmem:[#allocation2 + $0x60] sm:$0xff] %vm235_vm2, %v602_v18 }
  0xc8   : > { %701 = vst.msk [vmem:[%s1338_s7 + $0x58] sm:$0xff] %vm235_vm2, %v1412_v26 }
  0xc9   : > { %642 = vst.msk [vmem:[#allocation2 + $0x98] sm:$0xff] %vm235_vm2, %v609_v23  ;;  %v560_v31 = vpop.f32.mrf.mxu2  ;;  %v580_v36 = vpop.f32.mrf.mxu3 }
  0xca   : > { %v522_v32 = vpop.f32.mrf.mxu0  ;;  %v542_v33 = vpop.f32.mrf.mxu1  ;;  %v610_v34 = vadd.f32 %v560_v31, %v288_v27  ;;  %650 = vst.msk [vmem:[#allocation2 + $0xd8] sm:$0xff] %vm235_vm2, %v617_v28  ;;  %v1439_v45 = vld [vmem:[#allocation2 + $0xd0] sm:$0xff]  ;;  %v618_v63 = vadd.f32 %v580_v36, %v296_v56  ;;  %v726_v31 = vadd.f32 %v725_v15, %v724_v21 }
  0xcb   : > { %v595_v35 = vadd.f32 %v522_v32, %v273_v29  ;;  %v603_v38 = vadd.f32 %v542_v33, %v281_v30  ;;  %716 = vst.msk [vmem:[%s1338_s7 + $0xd0] sm:$0xff] %vm235_vm2, %v1439_v45  ;;  %v825_v30 = vadd.f32 %v824_v14, %v823_v40  ;;  %v828_v32 = vsel %vm235_vm2, %v794_v54, 0.0 }
  0xcc   : > { %v1421_v37 = vld [vmem:[#allocation2 + $0x20] sm:$0xff]  ;;  %643 = vst.msk [vmem:[#allocation2 + $0xa0] sm:$0xff] %vm235_vm2, %v610_v34  ;;  %v728_v36 = vadd.f32 %v727_v5, %v726_v31  ;;  %v800_v40 = vmul.f32 %v1364_v58, %v1364_v58  ;;  %v739_v5 = vsel %vm235_vm2, %v1364_v58, 0.0  ;;  %v802_v31 = vmul.f32 %v1412_v26, %v1412_v26 }
  0xcd   : > { %694 = vst.msk [vmem:[%s1338_s7 + $0x20] sm:$0xff] %vm235_vm2, %v1421_v37  ;;  %v795_v27 = vmul.f32 %v1421_v37, %v1421_v37  ;;  %v729_v33 = vsel %vm235_vm2, %v1421_v37, 0.0 }
  0xce   : > { %628 = vst.msk [vmem:[#allocation2 + $0x28] sm:$0xff] %vm235_vm2, %v595_v35  ;;  %v1428_v39 = vld [vmem:[#allocation2 + $0x60] sm:$0xff]  ;;  %v827_v35 = vadd.f32 %v826_v25, %v825_v30  ;;  %v741_v30 = vsel %vm235_vm2, %v1380_v7, 0.0 }
  0xcf   : > { %702 = vst.msk [vmem:[%s1338_s7 + $0x60] sm:$0xff] %vm235_vm2, %v1428_v39 }
  0xd0   : > { %636 = vst.msk [vmem:[#allocation2 + $0x68] sm:$0xff] %vm235_vm2, %v603_v38  ;;  %v1434_v43 = vld [vmem:[#allocation2 + $0x98] sm:$0xff] }
  0xd1   : > { %709 = vst.msk [vmem:[%s1338_s7 + $0x98] sm:$0xff] %vm235_vm2, %v1434_v43  ;;  %v562_v46 = vpop.f32.mrf.mxu2  ;;  %v1444_v50 = vld [vmem:[#allocation2 + $0xd8] sm:$0xff]  ;;  %v582_v57 = vpop.f32.mrf.mxu3 }
  0xd2   : > { %v525_v47 = vpop.f32.mrf.mxu0  ;;  %v545_v48 = vpop.f32.mrf.mxu1  ;;  %717 = vst.msk [vmem:[%s1338_s7 + $0xd8] sm:$0xff] %vm235_vm2, %v1444_v50  ;;  %v611_v61 = vadd.f32 %v562_v46, %v289_v49  ;;  %v619_v3 = vadd.f32 %v582_v57, %v297_v59  ;;  %v291_v38 = vld [vmem:[#allocation2 + $0xb8] sm:$0xff] }
  0xd3   : > { %v596_v52 = vadd.f32 %v525_v47, %v274_v41  ;;  %v604_v53 = vadd.f32 %v545_v48, %v282_v44  ;;  %v1446_v55 = vld [vmem:[#allocation2 + $0xa0] sm:$0xff]  ;;  %651 = vst.msk [vmem:[#allocation2 + $0xe0] sm:$0xff] %vm235_vm2, %v618_v63  ;;  %v830_v41 = vsel %vm235_vm2, %v795_v27, 0.0  ;;  %v829_v47 = vadd.f32 %v828_v32, %v827_v35  ;;  %v298_v63 = vld [vmem:[#allocation2 + $0xf0] sm:$0xff] }
  0xd4   : > { %710 = vst.msk [vmem:[%s1338_s7 + $0xa0] sm:$0xff] %vm235_vm2, %v1446_v55  ;;  %v730_v48 = vadd.f32 %v729_v33, %v728_v36  ;;  %v743_v35 = vsel %vm235_vm2, %v1412_v26, 0.0  ;;  %v803_v36 = vmul.f32 %v1428_v39, %v1428_v39 }
  0xd5   : > { %v663_v60 = vld [vmem:[#allocation2 + $0x28] sm:$0xff]  ;;  %629 = vst.msk [vmem:[#allocation2 + $0x30] sm:$0xff] %vm235_vm2, %v596_v52 }
  0xd6   : > { %695 = vst.msk [vmem:[%s1338_s7 + $0x28] sm:$0xff] %vm235_vm2, %v663_v60  ;;  %v796_v34 = vmul.f32 %v663_v60, %v663_v60  ;;  %v731_v44 = vsel %vm235_vm2, %v663_v60, 0.0  ;;  %v831_v60 = vadd.f32 %v830_v41, %v829_v47 }
  0xd7   : > { %v1461_v1 = vld [vmem:[#allocation2 + $0x68] sm:$0xff]  ;;  %637 = vst.msk [vmem:[#allocation2 + $0x70] sm:$0xff] %vm235_vm2, %v604_v53 }
  0xd8   : > { %703 = vst.msk [vmem:[%s1338_s7 + $0x68] sm:$0xff] %vm235_vm2, %v1461_v1  ;;  %v832_v53 = vsel %vm235_vm2, %v796_v34, 0.0  ;;  %v804_v47 = vmul.f32 %v1461_v1, %v1461_v1 }
  0xd9   : > { %644 = vst.msk [vmem:[#allocation2 + $0xa8] sm:$0xff] %vm235_vm2, %v611_v61  ;;  %v565_v13 = vpop.f32.mrf.mxu2  ;;  %v585_v24 = vpop.f32.mrf.mxu3  ;;  %v732_v61 = vadd.f32 %v731_v44, %v730_v48  ;;  %v833_v6 = vadd.f32 %v832_v53, %v831_v60  ;;  %v844_v44 = vsel %vm235_vm2, %v802_v31, 0.0  ;;  %v846_v53 = vsel %vm235_vm2, %v803_v36, 0.0 }
  0xda   : > { %v527_v17 = vpop.f32.mrf.mxu0  ;;  %v547_v18 = vpop.f32.mrf.mxu1  ;;  %v612_v20 = vadd.f32 %v565_v13, %v290_v2  ;;  %652 = vst.msk [vmem:[#allocation2 + $0xe8] sm:$0xff] %vm235_vm2, %v619_v3  ;;  %v1507_v49 = vld [vmem:[#allocation2 + $0xe0] sm:$0xff]  ;;  %v620_v4 = vadd.f32 %v585_v24, %v298_v63  ;;  %v799_v13 = vmul.f32 %v1346_v42, %v1346_v42 }
  0xdb   : > { %v597_v23 = vadd.f32 %v527_v17, %v275_v8  ;;  %v605_v29 = vadd.f32 %v547_v18, %v283_v12  ;;  %718 = vst.msk [vmem:[%s1338_s7 + $0xe0] sm:$0xff] %vm235_vm2, %v1507_v49 }
  0xdc   : > { %v664_v28 = vld [vmem:[#allocation2 + $0x30] sm:$0xff]  ;;  %645 = vst.msk [vmem:[#allocation2 + $0xb0] sm:$0xff] %vm235_vm2, %v612_v20  ;;  %v737_v20 = vsel %vm235_vm2, %v1346_v42, 0.0  ;;  %v838_v25 = vsel %vm235_vm2, %v799_v13, 0.0  ;;  %v801_v42 = vmul.f32 %v1380_v7, %v1380_v7  ;;  %v808_v13 = vmul.f32 %v1386_v9, %v1386_v9 }
  0xdd   : > { %696 = vst.msk [vmem:[%s1338_s7 + $0x30] sm:$0xff] %vm235_vm2, %v664_v28  ;;  %v797_v46 = vmul.f32 %v664_v28, %v664_v28  ;;  %v733_v56 = vsel %vm235_vm2, %v664_v28, 0.0 }
  0xde   : > { %630 = vst.msk [vmem:[#allocation2 + $0x38] sm:$0xff] %vm235_vm2, %v597_v23  ;;  %v1494_v22 = vld [vmem:[#allocation2 + $0x70] sm:$0xff]  ;;  %v734_v8 = vadd.f32 %v733_v56, %v732_v61  ;;  %v842_v58 = vsel %vm235_vm2, %v801_v42, 0.0  ;;  %v747_v56 = vsel %vm235_vm2, %v1461_v1, 0.0  ;;  %v848_v61 = vsel %vm235_vm2, %v804_v47, 0.0 }
  0xdf   : > { %704 = vst.msk [vmem:[%s1338_s7 + $0x70] sm:$0xff] %vm235_vm2, %v1494_v22  ;;  %v834_v3 = vsel %vm235_vm2, %v797_v46, 0.0  ;;  %v745_v46 = vsel %vm235_vm2, %v1428_v39, 0.0  ;;  %v749_v63 = vsel %vm235_vm2, %v1494_v22, 0.0  ;;  %v811_v42 = vmul.f32 %v1446_v55, %v1446_v55 }
  0xe0   : > { %638 = vst.msk [vmem:[#allocation2 + $0x78] sm:$0xff] %vm235_vm2, %v605_v29  ;;  %v1502_v37 = vld [vmem:[#allocation2 + $0xa8] sm:$0xff]  ;;  %v835_v54 = vadd.f32 %v834_v3, %v833_v6  ;;  %v840_v29 = vsel %vm235_vm2, %v800_v40, 0.0  ;;  %v815_v47 = vmul.f32 %v1391_v11, %v1391_v11 }
  0xe1   : > { %711 = vst.msk [vmem:[%s1338_s7 + $0xa8] sm:$0xff] %vm235_vm2, %v1502_v37  ;;  %v567_v52 = vpop.f32.mrf.mxu2  ;;  %v1514_v59 = vld [vmem:[#allocation2 + $0xe8] sm:$0xff]  ;;  %v587_v2 = vpop.f32.mrf.mxu3 }
  0xe2   : > { %v613_v57 = vadd.f32 %v567_v52, %v291_v38  ;;  %719 = vst.msk [vmem:[%s1338_s7 + $0xe8] sm:$0xff] %vm235_vm2, %v1514_v59  ;;  %v621_v12 = vadd.f32 %v587_v2, %v299_v0 }
  0xe3   : > { %v1516_v62 = vld [vmem:[#allocation2 + $0xb0] sm:$0xff]  ;;  %653 = vst.msk [vmem:[#allocation2 + $0xf0] sm:$0xff] %vm235_vm2, %v620_v4  ;;  %v807_v4 = vmul.f32 %v1353_v51, %v1353_v51 }
  0xe4   : > { %712 = vst.msk [vmem:[%s1338_s7 + $0xb0] sm:$0xff] %vm235_vm2, %v1516_v62 }
  0xe5   : > { %v665_v10 = vld [vmem:[#allocation2 + $0x38] sm:$0xff]  ;;  %646 = vst.msk [vmem:[#allocation2 + $0xb8] sm:$0xff] %vm235_vm2, %v613_v57  ;;  %v805_v57 = vmul.f32 %v1494_v22, %v1494_v22 }
  0xe6   : > { %697 = vst.msk [vmem:[%s1338_s7 + $0x38] sm:$0xff] %vm235_vm2, %v665_v10  ;;  %v735_v14 = vsel %vm235_vm2, %v665_v10, 0.0  ;;  %v798_v15 = vmul.f32 %v665_v10, %v665_v10 }
  0xe7   : > { %v736_v17 = vadd.f32 %v735_v14, %v734_v8  ;;  %v673_v18 = vld [vmem:[#allocation2 + $0x78] sm:$0xff]  ;;  %654 = vst.msk [vmem:[#allocation2 + $0xf8] sm:$0xff] %vm235_vm2, %v621_v12  ;;  %v850_v6 = vsel %vm235_vm2, %v805_v57, 0.0  ;;  %v753_v12 = vsel %vm235_vm2, %v1353_v51, 0.0  ;;  %v757_v51 = vsel %vm235_vm2, %v1398_v19, 0.0 }
  0xe8   : > { %v836_v21 = vsel %vm235_vm2, %v798_v15, 0.0  ;;  %705 = vst.msk [vmem:[%s1338_s7 + $0x78] sm:$0xff] %vm235_vm2, %v673_v18  ;;  %v806_v0 = vmul.f32 %v673_v18, %v673_v18  ;;  %v751_v1 = vsel %vm235_vm2, %v673_v18, 0.0  ;;  %v809_v18 = vmul.f32 %v1398_v19, %v1398_v19 }
  0xe9   : > { %v738_v23 = vadd.f32 %v737_v20, %v736_v17  ;;  %v837_v24 = vadd.f32 %v836_v21, %v835_v54  ;;  %v854_v54 = vsel %vm235_vm2, %v807_v4, 0.0  ;;  %v755_v17 = vsel %vm235_vm2, %v1386_v9, 0.0 }
  0xea   : > { %v1560_v7 = vld [vmem:[#allocation2 + $0xf0] sm:$0xff]  ;;  %v852_v22 = vsel %vm235_vm2, %v806_v0, 0.0  ;;  %v856_v21 = vsel %vm235_vm2, %v808_v13, 0.0  ;;  %v759_v9 = vsel %vm235_vm2, %v1434_v43, 0.0  ;;  %v761_v19 = vsel %vm235_vm2, %v1446_v55, 0.0 }
  0xeb   : > { %v740_v27 = vadd.f32 %v739_v5, %v738_v23  ;;  %v839_v28 = vadd.f32 %v838_v25, %v837_v24  ;;  %720 = vst.msk [vmem:[%s1338_s7 + $0xf0] sm:$0xff] %vm235_vm2, %v1560_v7  ;;  %v810_v23 = vmul.f32 %v1434_v43, %v1434_v43  ;;  %v858_v5 = vsel %vm235_vm2, %v809_v18, 0.0 }
  0xec   : > { %v1550_v32 = vld [vmem:[#allocation2 + $0xb8] sm:$0xff]  ;;  %v763_v43 = vsel %vm235_vm2, %v1502_v37, 0.0  ;;  %v765_v55 = vsel %vm235_vm2, %v1516_v62, 0.0  ;;  %v818_v4 = vmul.f32 %v1444_v50, %v1444_v50  ;;  %v821_v18 = vmul.f32 %v1560_v7, %v1560_v7 }
  0xed   : > { %v742_v33 = vadd.f32 %v741_v30, %v740_v27  ;;  %v841_v34 = vadd.f32 %v840_v29, %v839_v28  ;;  %713 = vst.msk [vmem:[%s1338_s7 + $0xb8] sm:$0xff] %vm235_vm2, %v1550_v32  ;;  %v860_v29 = vsel %vm235_vm2, %v810_v23, 0.0  ;;  %v812_v30 = vmul.f32 %v1502_v37, %v1502_v37 }
  0xee   : > { %v1570_v48 = vld [vmem:[#allocation2 + $0xf8] sm:$0xff] }
  0xef   : > { %v843_v38 = vadd.f32 %v842_v58, %v841_v34  ;;  %v744_v41 = vadd.f32 %v743_v35, %v742_v33  ;;  %721 = vst.msk [vmem:[%s1338_s7 + $0xf8] sm:$0xff] %vm235_vm2, %v1570_v48  ;;  %v862_v34 = vsel %vm235_vm2, %v811_v42, 0.0  ;;  %v813_v58 = vmul.f32 %v1516_v62, %v1516_v62 }
  0xf0   : > { %v816_v62 = vmul.f32 %v1396_v16, %v1396_v16 }
  0xf1   : > { %v746_v26 = vadd.f32 %v745_v46, %v744_v41  ;;  %v845_v52 = vadd.f32 %v844_v44, %v843_v38  ;;  %v864_v38 = vsel %vm235_vm2, %v812_v30, 0.0  ;;  %v814_v41 = vmul.f32 %v1550_v32, %v1550_v32 }
  0xf2   : > { %v866_v37 = vsel %vm235_vm2, %v813_v58, 0.0 }
  0xf3   : > { %v748_v60 = vadd.f32 %v747_v56, %v746_v26  ;;  %v847_v39 = vadd.f32 %v846_v53, %v845_v52  ;;  %v767_v26 = vsel %vm235_vm2, %v1550_v32, 0.0  ;;  %v769_v56 = vsel %vm235_vm2, %v1391_v11, 0.0 }
  0xf4   : > { %v868_v57 = vsel %vm235_vm2, %v814_v41, 0.0  ;;  %v817_v32 = vmul.f32 %v1439_v45, %v1439_v45  ;;  %v773_v11 = vsel %vm235_vm2, %v1439_v45, 0.0  ;;  %v777_v45 = vsel %vm235_vm2, %v1507_v49, 0.0 }
  0xf5   : > { %v750_v2 = vadd.f32 %v749_v63, %v748_v60  ;;  %v849_v3 = vadd.f32 %v848_v61, %v847_v39  ;;  %v870_v61 = vsel %vm235_vm2, %v815_v47, 0.0  ;;  %v771_v63 = vsel %vm235_vm2, %v1396_v16, 0.0 }
  0xf6   : > { %v775_v16 = vsel %vm235_vm2, %v1444_v50, 0.0  ;;  %v779_v50 = vsel %vm235_vm2, %v1514_v59, 0.0 }
  0xf7   : > { %v851_v8 = vadd.f32 %v850_v6, %v849_v3  ;;  %v752_v10 = vadd.f32 %v751_v1, %v750_v2  ;;  %v872_v3 = vsel %vm235_vm2, %v816_v62, 0.0 }
  0xf9   : > { %v754_v14 = vadd.f32 %v753_v12, %v752_v10  ;;  %v853_v15 = vadd.f32 %v852_v22, %v851_v8  ;;  %v874_v8 = vsel %vm235_vm2, %v817_v32, 0.0  ;;  %v819_v10 = vmul.f32 %v1507_v49, %v1507_v49 }
  0xfa   : > { %v876_v22 = vsel %vm235_vm2, %v818_v4, 0.0  ;;  %v781_v49 = vsel %vm235_vm2, %v1560_v7, 0.0 }
  0xfb   : > { %v756_v20 = vadd.f32 %v755_v17, %v754_v14  ;;  %v855_v40 = vadd.f32 %v854_v54, %v853_v15  ;;  %v820_v14 = vmul.f32 %v1514_v59, %v1514_v59  ;;  %v878_v17 = vsel %vm235_vm2, %v819_v10, 0.0 }
  0xfc   : > { %v783_v59 = vsel %vm235_vm2, %v1570_v48, 0.0 }
  0xfd   : > { %v857_v24 = vadd.f32 %v856_v21, %v855_v40  ;;  %v758_v25 = vadd.f32 %v757_v51, %v756_v20  ;;  %v880_v21 = vsel %vm235_vm2, %v820_v14, 0.0  ;;  %v822_v51 = vmul.f32 %v1570_v48, %v1570_v48 }
  0xff   : > { %v760_v27 = vadd.f32 %v759_v9, %v758_v25  ;;  %v859_v28 = vadd.f32 %v858_v5, %v857_v24  ;;  %v882_v25 = vsel %vm235_vm2, %v821_v18, 0.0  ;;  %v884_v42 = vsel %vm235_vm2, %v822_v51, 0.0 }
 0x101   : > { %v762_v31 = vadd.f32 %v761_v19, %v760_v27  ;;  %v861_v33 = vadd.f32 %v860_v29, %v859_v28 }
 0x103   : > { %v764_v35 = vadd.f32 %v763_v43, %v762_v31  ;;  %v863_v36 = vadd.f32 %v862_v34, %v861_v33 }
 0x105   : > { %v865_v44 = vadd.f32 %v864_v38, %v863_v36  ;;  %v766_v46 = vadd.f32 %v765_v55, %v764_v35 }
 0x107   : > { %v867_v52 = vadd.f32 %v866_v37, %v865_v44  ;;  %v768_v53 = vadd.f32 %v767_v26, %v766_v46 }
 0x109   : > { %v770_v60 = vadd.f32 %v769_v56, %v768_v53  ;;  %v869_v39 = vadd.f32 %v868_v57, %v867_v52 }
 0x10b   : > { %v772_v0 = vadd.f32 %v771_v63, %v770_v60  ;;  %v871_v2 = vadd.f32 %v870_v61, %v869_v39 }
 0x10d   : > { %v873_v6 = vadd.f32 %v872_v3, %v871_v2  ;;  %v774_v1 = vadd.f32 %v773_v11, %v772_v0 }
 0x10f   : > { %v776_v12 = vadd.f32 %v775_v16, %v774_v1  ;;  %v875_v13 = vadd.f32 %v874_v8, %v873_v6 }
 0x111   : > { %v778_v15 = vadd.f32 %v777_v45, %v776_v12  ;;  %v877_v54 = vadd.f32 %v876_v22, %v875_v13 }
 0x113   : > { %v780_v20 = vadd.f32 %v779_v50, %v778_v15  ;;  %v879_v40 = vadd.f32 %v878_v17, %v877_v54 }
 0x115   : > { %v881_v23 = vadd.f32 %v880_v21, %v879_v40  ;;  %v782_v24 = vadd.f32 %v781_v49, %v780_v20 }
 0x117   : > { %v883_v5 = vadd.f32 %v882_v25, %v881_v23  ;;  %v784_v9 = vadd.f32 %v783_v59, %v782_v24 }
 0x119   : > { %v785_v27 = vrot.slane %v784_v9, 4  ;;  %v885_v28 = vadd.f32 %v884_v42, %v883_v5 }
 0x11b   : > { %v786_v29 = vadd.f32 %v785_v27, %v784_v9  ;;  %v886_v7 = vrot.slane %v885_v28, 4 }
 0x11d   : > { %v787_v19 = vrot.slane %v786_v29, 2  ;;  %v887_v30 = vadd.f32 %v886_v7, %v885_v28 }
 0x11f   : > { %v788_v31 = vadd.f32 %v787_v19, %v786_v29  ;;  %v888_v33 = vrot.slane %v887_v30, 2 }
 0x121   : > { %v789_v34 = vrot.slane %v788_v31, 1  ;;  %v889_v43 = vadd.f32 %v888_v33, %v887_v30 }
 0x123   : > { %v890_v58 = vrot.slane %v889_v43, 1  ;;  %v790_v48 = vadd.f32 %v789_v34, %v788_v31 }
 0x125   : > { %v891_v35 = vadd.f32 %v890_v58, %v889_v43 }
 0x127   : > { %v893_v36 = vsel %vm892_vm3, %v790_v48, %v891_v35 }
 0x128   : > { %895 = vst.msk [vmem:[%s229_s11] sm:$0x3] %vm894_vm4, %v893_v36 }
 0x129 PF: > { %s14_s14 = sadd.s32 1, %s1201_s14   ;;  %s1684_s12 = smov %s1197_s13 }
 0x12a   : > { %p11_p6 = scmp.ge.s32.totalorder %s14_s14, 4   ;;  %s1685_s13 = smov %s1687_s15 }
 0x12c   :  { %13 = sbr.rel (!%p11_p6) target bundleno = 2 (0x2), region = 81 }

// kernel: magic_module_forward.29
= control target key start
LH: loop header
LB: loop body
LE: loop exit
PB: predicated region body
PF: predicated region fallthrough
CT: control target
= control target key end

     0   :  { %s643_s15 = smov 0   ;;  %s849_s0 = inlined_call_operand.vmem [shape: f32[512,128], index: 0, kind: input, shape index: {}]   ;;  %s850_s1 = inlined_call_operand.vmem [shape: f32[512,128], index: 1, kind: input, shape index: {}]   ;;  %s851_s2 = inlined_call_operand.vmem [shape: f32[1,128], index: 2, kind: input, shape index: {}]   ;;  %s852_s3 = inlined_call_operand.vmem [shape: f32[1,128], index: 3, kind: input, shape index: {}]   ;;  %s853_s4 = inlined_call_operand.vmem [shape: f32[512,128], index: 4, kind: output, shape index: {}]  }
   0x1 LB: > { %s587_s16 = sadd.s32 4294967295, %s616_s15   ;;  %p591_p0 = scmp.ge.s32.totalorder %s616_s15, 1  ;;  %s616_s15 = sphi %s643_s15, %s14_s15  }
   0x2   : > { %p174_p1 = scmp.lt.s32.totalorder %s616_s15, 3 }
   0x4   : > { %p175_p2 = pnand %p591_p0, %p174_p1 }
   0x5   : > { %s592_s17 = sshll.u32 (!%p175_p2), %s587_s16, 5 }
   0x6   : > { %178 = sbr.rel (%p175_p2) target bundleno = 69 (0x45), region = 36  ;;  %p206_p3 = scmp.lt.s32.totalorder (!%p175_p2), %s592_s17, 63 }
   0xb   : > { %s855_s17 = smov (!%p206_p3, %s592_s17), 63  ;;  %v654_v0 = vld [vmem:[%s851_s2] ss:$0 sm:$0xff] }
   0xc   : > { %s656_s20 = sshll.u32 %s855_s17, 3  ;;  %v667_v1 = vld [vmem:[%s852_s3] ss:$0 sm:$0xff] }
   0xd   : > { %s662_s23 = scalar_lea.vmem %s850_s1, %s656_s20  ;;  %s675_s28 = scalar_lea.vmem %s849_s0, %s656_s20 }
   0xe   : > { %v223_v2 = vld [vmem:[%s662_s23] sm:$0xff]  ;;  %v224_v3 = vld [vmem:[%s662_s23 + $0x8] sm:$0xff]  ;;  %v225_v6 = vld [vmem:[%s662_s23 + $0x10] sm:$0xff]  ;;  %s700_s5 = scalar_lea.vmem %s853_s4, %s656_s20 }
   0xf   : > { %v259_v4 = vmul.f32 %v654_v0, %v223_v2  ;;  %v260_v5 = vmul.f32 %v654_v0, %v224_v3  ;;  %v261_v7 = vmul.f32 %v654_v0, %v225_v6  ;;  %v226_v8 = vld [vmem:[%s662_s23 + $0x18] sm:$0xff]  ;;  %v227_v9 = vld [vmem:[%s662_s23 + $0x20] sm:$0xff]  ;;  %v228_v14 = vld [vmem:[%s662_s23 + $0x28] sm:$0xff] }
  0x10   : > { %v262_v12 = vmul.f32 %v654_v0, %v226_v8  ;;  %v263_v13 = vmul.f32 %v654_v0, %v227_v9  ;;  %v423_v15 = vld [vmem:[%s675_s28] sm:$0xff]  ;;  %v424_v16 = vld [vmem:[%s675_s28 + $0x8] sm:$0xff]  ;;  %v264_v18 = vmul.f32 %v654_v0, %v228_v14  ;;  %v229_v19 = vld [vmem:[%s662_s23 + $0x30] sm:$0xff] }
  0x11   : > { %v295_v10 = vadd.f32 %v667_v1, %v259_v4  ;;  %v296_v11 = vadd.f32 %v667_v1, %v260_v5  ;;  %v297_v17 = vadd.f32 %v667_v1, %v261_v7  ;;  %v425_v23 = vld [vmem:[%s675_s28 + $0x10] sm:$0xff]  ;;  %v265_v29 = vmul.f32 %v654_v0, %v229_v19  ;;  %v230_v30 = vld [vmem:[%s662_s23 + $0x38] sm:$0xff]  ;;  %v231_v35 = vld [vmem:[%s662_s23 + $0x40] sm:$0xff] }
  0x12   : > { %v298_v24 = vadd.f32 %v667_v1, %v262_v12  ;;  %v299_v25 = vadd.f32 %v667_v1, %v263_v13  ;;  %v300_v28 = vadd.f32 %v667_v1, %v264_v18  ;;  %v426_v34 = vld [vmem:[%s675_s28 + $0x18] sm:$0xff]  ;;  %v232_v36 = vld [vmem:[%s662_s23 + $0x48] sm:$0xff]  ;;  %v427_v40 = vld [vmem:[%s675_s28 + $0x20] sm:$0xff]  ;;  %v266_v44 = vmul.f32 %v654_v0, %v230_v30 }
  0x13   : > { %vm327_vm0 = vcmp.ge.f32.partialorder %v295_v10, 0.0  ;;  %v359_v20 = vmul.f32 0.01, %v295_v10  ;;  %vm328_vm1 = vcmp.ge.f32.partialorder %v296_v11, 0.0  ;;  %v360_v21 = vmul.f32 0.01, %v296_v11 }
  0x14   : > { %vm329_vm2 = vcmp.ge.f32.partialorder %v297_v17, 0.0  ;;  %v361_v22 = vmul.f32 0.01, %v297_v17  ;;  %vm330_vm3 = vcmp.ge.f32.partialorder %v298_v24, 0.0  ;;  %v362_v38 = vmul.f32 0.01, %v298_v24 }
  0x15   : > { %v391_v26 = vsel %vm327_vm0, %v295_v10, %v359_v20  ;;  %v392_v27 = vsel %vm328_vm1, %v296_v11, %v360_v21  ;;  %vm331_vm4 = vcmp.ge.f32.partialorder %v299_v25, 0.0  ;;  %v363_v39 = vmul.f32 0.01, %v299_v25  ;;  %v428_v42 = vld [vmem:[%s675_s28 + $0x28] sm:$0xff]  ;;  %v233_v49 = vld [vmem:[%s662_s23 + $0x50] sm:$0xff]  ;;  %v234_v50 = vld [vmem:[%s662_s23 + $0x58] sm:$0xff] }
  0x16   : > { %v455_v31 = vsub.f32 %v423_v15, %v391_v26  ;;  %v456_v32 = vsub.f32 %v424_v16, %v392_v27  ;;  %v393_v33 = vsel %vm329_vm2, %v297_v17, %v361_v22  ;;  %vm332_vm5 = vcmp.ge.f32.partialorder %v300_v28, 0.0  ;;  %v235_v51 = vld [vmem:[%s662_s23 + $0x60] sm:$0xff]  ;;  %v429_v57 = vld [vmem:[%s675_s28 + $0x30] sm:$0xff]  ;;  %v430_v60 = vld [vmem:[%s675_s28 + $0x38] sm:$0xff] }
  0x17   : > { %v457_v37 = vsub.f32 %v425_v23, %v393_v33  ;;  %v364_v41 = vmul.f32 0.01, %v300_v28  ;;  %v301_v43 = vadd.f32 %v667_v1, %v265_v29  ;;  %v394_v45 = vsel %vm330_vm3, %v298_v24, %v362_v38  ;;  %v431_v61 = vld [vmem:[%s675_s28 + $0x40] sm:$0xff]  ;;  %v432_v63 = vld [vmem:[%s675_s28 + $0x48] sm:$0xff]  ;;  %v237_v19 = vld [vmem:[%s662_s23 + $0x70] sm:$0xff] }
  0x18   : > { %487 = vst [vmem:[%s700_s5] sm:$0xff] %v455_v31  ;;  %v395_v46 = vsel %vm331_vm4, %v299_v25, %v363_v39  ;;  %v267_v47 = vmul.f32 %v654_v0, %v231_v35  ;;  %v268_v48 = vmul.f32 %v654_v0, %v232_v36  ;;  %v458_v52 = vsub.f32 %v426_v34, %v394_v45  ;;  %v236_v7 = vld [vmem:[%s662_s23 + $0x68] sm:$0xff]  ;;  %v238_v20 = vld [vmem:[%s662_s23 + $0x78] sm:$0xff]  ;;  %v433_v24 = vld [vmem:[%s675_s28 + $0x50] sm:$0xff] }
  0x19   : > { %488 = vst [vmem:[%s700_s5 + $0x8] sm:$0xff] %v456_v32  ;;  %v459_v53 = vsub.f32 %v427_v40, %v395_v46  ;;  %v396_v54 = vsel %vm332_vm5, %v300_v28, %v364_v41  ;;  %vm333_vm6 = vcmp.ge.f32.partialorder %v301_v43, 0.0  ;;  %v365_v56 = vmul.f32 0.01, %v301_v43  ;;  %v434_v26 = vld [vmem:[%s675_s28 + $0x58] sm:$0xff]  ;;  %v435_v30 = vld [vmem:[%s675_s28 + $0x60] sm:$0xff] }
  0x1a   : > { %489 = vst [vmem:[%s700_s5 + $0x10] sm:$0xff] %v457_v37  ;;  %v460_v55 = vsub.f32 %v428_v42, %v396_v54  ;;  %v302_v58 = vadd.f32 %v667_v1, %v266_v44  ;;  %v303_v59 = vadd.f32 %v667_v1, %v267_v47  ;;  %v304_v62 = vadd.f32 %v667_v1, %v268_v48  ;;  %v239_v33 = vld [vmem:[%s662_s23 + $0x80] sm:$0xff]  ;;  %v240_v34 = vld [vmem:[%s662_s23 + $0x88] sm:$0xff]  ;;  %v242_v48 = vld [vmem:[%s662_s23 + $0x98] sm:$0xff] }
  0x1b   : > { %490 = vst [vmem:[%s700_s5 + $0x18] sm:$0xff] %v458_v52  ;;  %v269_v2 = vmul.f32 %v654_v0, %v233_v49  ;;  %v270_v3 = vmul.f32 %v654_v0, %v234_v50  ;;  %v271_v4 = vmul.f32 %v654_v0, %v235_v51  ;;  %v397_v5 = vsel %vm333_vm6, %v301_v43, %v365_v56  ;;  %v436_v38 = vld [vmem:[%s675_s28 + $0x68] sm:$0xff]  ;;  %v241_v43 = vld [vmem:[%s662_s23 + $0x90] sm:$0xff]  ;;  %v243_v49 = vld [vmem:[%s662_s23 + $0xa0] sm:$0xff] }
  0x1c   : > { %491 = vst [vmem:[%s700_s5 + $0x20] sm:$0xff] %v459_v53  ;;  %vm334_vm7 = vcmp.ge.f32.partialorder %v302_v58, 0.0  ;;  %v366_v6 = vmul.f32 0.01, %v302_v58  ;;  %vm335_vm8 = vcmp.ge.f32.partialorder %v303_v59, 0.0  ;;  %v461_v8 = vsub.f32 %v429_v57, %v397_v5  ;;  %v244_v50 = vld [vmem:[%s662_s23 + $0xa8] sm:$0xff] }
  0x1d   : > { %492 = vst [vmem:[%s700_s5 + $0x28] sm:$0xff] %v460_v55  ;;  %v367_v9 = vmul.f32 0.01, %v303_v59  ;;  %vm336_vm9 = vcmp.ge.f32.partialorder %v304_v62, 0.0  ;;  %v368_v10 = vmul.f32 0.01, %v304_v62  ;;  %v305_v12 = vadd.f32 %v667_v1, %v269_v2 }
  0x1e   : > { %v398_v11 = vsel %vm334_vm7, %v302_v58, %v366_v6  ;;  %v306_v13 = vadd.f32 %v667_v1, %v270_v3  ;;  %v307_v14 = vadd.f32 %v667_v1, %v271_v4  ;;  %493 = vst [vmem:[%s700_s5 + $0x30] sm:$0xff] %v461_v8  ;;  %v272_v18 = vmul.f32 %v654_v0, %v236_v7  ;;  %v437_v53 = vld [vmem:[%s675_s28 + $0x70] sm:$0xff]  ;;  %v438_v55 = vld [vmem:[%s675_s28 + $0x78] sm:$0xff]  ;;  %v439_v4 = vld [vmem:[%s675_s28 + $0x80] sm:$0xff] }
  0x1f   : > { %v462_v15 = vsub.f32 %v430_v60, %v398_v11  ;;  %v399_v16 = vsel %vm335_vm8, %v303_v59, %v367_v9  ;;  %v400_v17 = vsel %vm336_vm9, %v304_v62, %v368_v10  ;;  %vm337_vm10 = vcmp.ge.f32.partialorder %v305_v12, 0.0  ;;  %v440_v7 = vld [vmem:[%s675_s28 + $0x88] sm:$0xff]  ;;  %v441_v10 = vld [vmem:[%s675_s28 + $0x90] sm:$0xff] }
  0x20   : > { %v463_v21 = vsub.f32 %v431_v61, %v399_v16  ;;  %v464_v22 = vsub.f32 %v432_v63, %v400_v17  ;;  %v369_v23 = vmul.f32 0.01, %v305_v12  ;;  %vm338_vm11 = vcmp.ge.f32.partialorder %v306_v13, 0.0 }
  0x21   : > { %494 = vst [vmem:[%s700_s5 + $0x38] sm:$0xff] %v462_v15  ;;  %v370_v25 = vmul.f32 0.01, %v306_v13  ;;  %vm339_vm12 = vcmp.ge.f32.partialorder %v307_v14, 0.0  ;;  %v308_v27 = vadd.f32 %v667_v1, %v272_v18  ;;  %v371_v29 = vmul.f32 0.01, %v307_v14 }
  0x22   : > { %495 = vst [vmem:[%s700_s5 + $0x40] sm:$0xff] %v463_v21  ;;  %v401_v28 = vsel %vm337_vm10, %v305_v12, %v369_v23  ;;  %v273_v31 = vmul.f32 %v654_v0, %v237_v19  ;;  %v274_v32 = vmul.f32 %v654_v0, %v238_v20  ;;  %v275_v46 = vmul.f32 %v654_v0, %v239_v33  ;;  %v442_v12 = vld [vmem:[%s675_s28 + $0x98] sm:$0xff]  ;;  %v443_v18 = vld [vmem:[%s675_s28 + $0xa0] sm:$0xff]  ;;  %v245_v19 = vld [vmem:[%s662_s23 + $0xb0] sm:$0xff] }
  0x23   : > { %496 = vst [vmem:[%s700_s5 + $0x48] sm:$0xff] %v464_v22  ;;  %v465_v35 = vsub.f32 %v433_v24, %v401_v28  ;;  %v402_v36 = vsel %vm338_vm11, %v306_v13, %v370_v25  ;;  %vm340_vm13 = vcmp.ge.f32.partialorder %v308_v27, 0.0  ;;  %v372_v37 = vmul.f32 0.01, %v308_v27  ;;  %v246_v20 = vld [vmem:[%s662_s23 + $0xb8] sm:$0xff]  ;;  %v444_v23 = vld [vmem:[%s675_s28 + $0xa8] sm:$0xff] }
  0x24   : > { %v466_v39 = vsub.f32 %v434_v26, %v402_v36  ;;  %v403_v40 = vsel %vm339_vm12, %v307_v14, %v371_v29  ;;  %v309_v41 = vadd.f32 %v667_v1, %v273_v31  ;;  %v310_v42 = vadd.f32 %v667_v1, %v274_v32  ;;  %v247_v24 = vld [vmem:[%s662_s23 + $0xc0] sm:$0xff]  ;;  %v248_v32 = vld [vmem:[%s662_s23 + $0xc8] sm:$0xff]  ;;  %v249_v33 = vld [vmem:[%s662_s23 + $0xd0] sm:$0xff] }
  0x25   : > { %497 = vst [vmem:[%s700_s5 + $0x50] sm:$0xff] %v465_v35  ;;  %v467_v44 = vsub.f32 %v435_v30, %v403_v40  ;;  %v404_v45 = vsel %vm340_vm13, %v308_v27, %v372_v37  ;;  %v276_v47 = vmul.f32 %v654_v0, %v240_v34  ;;  %v311_v56 = vadd.f32 %v667_v1, %v275_v46  ;;  %v250_v34 = vld [vmem:[%s662_s23 + $0xd8] sm:$0xff] }
  0x26   : > { %498 = vst [vmem:[%s700_s5 + $0x58] sm:$0xff] %v466_v39  ;;  %v468_v51 = vsub.f32 %v436_v38, %v404_v45  ;;  %vm341_vm14 = vcmp.ge.f32.partialorder %v309_v41, 0.0  ;;  %v373_v52 = vmul.f32 0.01, %v309_v41  ;;  %vm342_vm15 = vcmp.ge.f32.partialorder %v310_v42, 0.0  ;;  %v251_v39 = vld [vmem:[%s662_s23 + $0xe0] sm:$0xff] }
  0x27   : > { %499 = vst [vmem:[%s700_s5 + $0x60] sm:$0xff] %v467_v44  ;;  %v374_v54 = vmul.f32 0.01, %v310_v42  ;;  %v312_v57 = vadd.f32 %v667_v1, %v276_v47  ;;  %v277_v58 = vmul.f32 %v654_v0, %v241_v43  ;;  %v278_v60 = vmul.f32 %v654_v0, %v242_v48  ;;  %v445_v44 = vld [vmem:[%s675_s28 + $0xb0] sm:$0xff]  ;;  %v446_v45 = vld [vmem:[%s675_s28 + $0xb8] sm:$0xff] }
  0x28   : > { %500 = vst [vmem:[%s700_s5 + $0x68] sm:$0xff] %v468_v51  ;;  %v405_v59 = vsel %vm341_vm14, %v309_v41, %v373_v52  ;;  %v279_v61 = vmul.f32 %v654_v0, %v243_v49  ;;  %v280_v62 = vmul.f32 %v654_v0, %v244_v50  ;;  %vm343_vm0 = vcmp.ge.f32.partialorder %v311_v56, 0.0  ;;  %v447_v51 = vld [vmem:[%s675_s28 + $0xc0] sm:$0xff] }
  0x29   : > { %v469_v63 = vsub.f32 %v437_v53, %v405_v59  ;;  %v406_v2 = vsel %vm342_vm15, %v310_v42, %v374_v54  ;;  %v375_v3 = vmul.f32 0.01, %v311_v56  ;;  %vm344_vm1 = vcmp.ge.f32.partialorder %v312_v57, 0.0 }
  0x2a   : > { %v470_v5 = vsub.f32 %v438_v55, %v406_v2  ;;  %v376_v6 = vmul.f32 0.01, %v312_v57  ;;  %v313_v8 = vadd.f32 %v667_v1, %v277_v58  ;;  %v314_v11 = vadd.f32 %v667_v1, %v278_v60  ;;  %v252_v60 = vld [vmem:[%s662_s23 + $0xe8] sm:$0xff]  ;;  %v253_v2 = vld [vmem:[%s662_s23 + $0xf0] sm:$0xff] }
  0x2b   : > { %501 = vst [vmem:[%s700_s5 + $0x70] sm:$0xff] %v469_v63  ;;  %v407_v9 = vsel %vm343_vm0, %v311_v56, %v375_v3  ;;  %v315_v13 = vadd.f32 %v667_v1, %v279_v61  ;;  %v316_v14 = vadd.f32 %v667_v1, %v280_v62  ;;  %v281_v30 = vmul.f32 %v654_v0, %v245_v19 }
  0x2c   : > { %502 = vst [vmem:[%s700_s5 + $0x78] sm:$0xff] %v470_v5  ;;  %v471_v15 = vsub.f32 %v439_v4, %v407_v9  ;;  %v408_v16 = vsel %vm344_vm1, %v312_v57, %v376_v6  ;;  %vm345_vm2 = vcmp.ge.f32.partialorder %v313_v8, 0.0  ;;  %v377_v17 = vmul.f32 0.01, %v313_v8  ;;  %v448_v6 = vld [vmem:[%s675_s28 + $0xc8] sm:$0xff] }
  0x2d   : > { %v472_v21 = vsub.f32 %v440_v7, %v408_v16  ;;  %vm346_vm3 = vcmp.ge.f32.partialorder %v314_v11, 0.0  ;;  %v378_v22 = vmul.f32 0.01, %v314_v11  ;;  %vm347_vm4 = vcmp.ge.f32.partialorder %v315_v13, 0.0  ;;  %v449_v7 = vld [vmem:[%s675_s28 + $0xd0] sm:$0xff]  ;;  %v254_v16 = vld [vmem:[%s662_s23 + $0xf8] sm:$0xff] }
  0x2e   : > { %503 = vst [vmem:[%s700_s5 + $0x80] sm:$0xff] %v471_v15  ;;  %v409_v25 = vsel %vm345_vm2, %v313_v8, %v377_v17  ;;  %v379_v26 = vmul.f32 0.01, %v315_v13  ;;  %vm348_vm5 = vcmp.ge.f32.partialorder %v316_v14, 0.0  ;;  %v380_v27 = vmul.f32 0.01, %v316_v14 }
  0x2f   : > { %504 = vst [vmem:[%s700_s5 + $0x88] sm:$0xff] %v472_v21  ;;  %v473_v28 = vsub.f32 %v441_v10, %v409_v25  ;;  %v410_v29 = vsel %vm346_vm3, %v314_v11, %v378_v22  ;;  %v282_v31 = vmul.f32 %v654_v0, %v246_v20  ;;  %v283_v38 = vmul.f32 %v654_v0, %v247_v24  ;;  %v450_v8 = vld [vmem:[%s675_s28 + $0xd8] sm:$0xff] }
  0x30   : > { %v474_v35 = vsub.f32 %v442_v12, %v410_v29  ;;  %v411_v36 = vsel %vm347_vm4, %v315_v13, %v379_v26  ;;  %v412_v37 = vsel %vm348_vm5, %v316_v14, %v380_v27  ;;  %v317_v42 = vadd.f32 %v667_v1, %v281_v30  ;;  %v451_v14 = vld [vmem:[%s675_s28 + $0xe0] sm:$0xff]  ;;  %v452_v27 = vld [vmem:[%s675_s28 + $0xe8] sm:$0xff]  ;;  %v453_v30 = vld [vmem:[%s675_s28 + $0xf0] sm:$0xff] }
  0x31   : > { %505 = vst [vmem:[%s700_s5 + $0x90] sm:$0xff] %v473_v28  ;;  %v475_v40 = vsub.f32 %v443_v18, %v411_v36  ;;  %v476_v41 = vsub.f32 %v444_v23, %v412_v37  ;;  %v318_v43 = vadd.f32 %v667_v1, %v282_v31  ;;  %v319_v46 = vadd.f32 %v667_v1, %v283_v38  ;;  %v454_v37 = vld [vmem:[%s675_s28 + $0xf8] sm:$0xff] }
  0x32   : > { %506 = vst [vmem:[%s700_s5 + $0x98] sm:$0xff] %v474_v35  ;;  %v284_v47 = vmul.f32 %v654_v0, %v248_v32  ;;  %v285_v48 = vmul.f32 %v654_v0, %v249_v33  ;;  %v286_v49 = vmul.f32 %v654_v0, %v250_v34  ;;  %vm349_vm6 = vcmp.ge.f32.partialorder %v317_v42, 0.0 }
  0x33   : > { %507 = vst [vmem:[%s700_s5 + $0xa0] sm:$0xff] %v475_v40  ;;  %v381_v50 = vmul.f32 0.01, %v317_v42  ;;  %vm350_vm7 = vcmp.ge.f32.partialorder %v318_v43, 0.0  ;;  %v287_v52 = vmul.f32 %v654_v0, %v251_v39  ;;  %v382_v53 = vmul.f32 0.01, %v318_v43 }
  0x34   : > { %508 = vst [vmem:[%s700_s5 + $0xa8] sm:$0xff] %v476_v41  ;;  %vm351_vm8 = vcmp.ge.f32.partialorder %v319_v46, 0.0  ;;  %v383_v54 = vmul.f32 0.01, %v319_v46  ;;  %v320_v55 = vadd.f32 %v667_v1, %v284_v47  ;;  %v321_v57 = vadd.f32 %v667_v1, %v285_v48 }
  0x35   : > { %v413_v56 = vsel %vm349_vm6, %v317_v42, %v381_v50  ;;  %v322_v58 = vadd.f32 %v667_v1, %v286_v49  ;;  %v323_v59 = vadd.f32 %v667_v1, %v287_v52  ;;  %v414_v62 = vsel %vm350_vm7, %v318_v43, %v382_v53 }
  0x36   : > { %v477_v61 = vsub.f32 %v445_v44, %v413_v56  ;;  %v415_v63 = vsel %vm351_vm8, %v319_v46, %v383_v54  ;;  %vm352_vm9 = vcmp.ge.f32.partialorder %v320_v55, 0.0  ;;  %v478_v3 = vsub.f32 %v446_v45, %v414_v62 }
  0x37   : > { %v479_v4 = vsub.f32 %v447_v51, %v415_v63  ;;  %v384_v5 = vmul.f32 0.01, %v320_v55  ;;  %vm353_vm10 = vcmp.ge.f32.partialorder %v321_v57, 0.0  ;;  %v385_v9 = vmul.f32 0.01, %v321_v57 }
  0x38   : > { %509 = vst [vmem:[%s700_s5 + $0xb0] sm:$0xff] %v477_v61  ;;  %vm354_vm11 = vcmp.ge.f32.partialorder %v322_v58, 0.0  ;;  %v386_v10 = vmul.f32 0.01, %v322_v58  ;;  %v288_v11 = vmul.f32 %v654_v0, %v252_v60  ;;  %vm355_vm12 = vcmp.ge.f32.partialorder %v323_v59, 0.0 }
  0x39   : > { %510 = vst [vmem:[%s700_s5 + $0xb8] sm:$0xff] %v478_v3  ;;  %v416_v12 = vsel %vm352_vm9, %v320_v55, %v384_v5  ;;  %v387_v13 = vmul.f32 0.01, %v323_v59  ;;  %v289_v15 = vmul.f32 %v654_v0, %v253_v2  ;;  %v417_v18 = vsel %vm353_vm10, %v321_v57, %v385_v9 }
  0x3a   : > { %511 = vst [vmem:[%s700_s5 + $0xc0] sm:$0xff] %v479_v4  ;;  %v480_v17 = vsub.f32 %v448_v6, %v416_v12  ;;  %v418_v19 = vsel %vm354_vm11, %v322_v58, %v386_v10  ;;  %v324_v20 = vadd.f32 %v667_v1, %v288_v11  ;;  %v481_v21 = vsub.f32 %v449_v7, %v417_v18 }
  0x3b   : > { %v482_v22 = vsub.f32 %v450_v8, %v418_v19  ;;  %v419_v23 = vsel %vm355_vm12, %v323_v59, %v387_v13  ;;  %v325_v24 = vadd.f32 %v667_v1, %v289_v15  ;;  %v290_v28 = vmul.f32 %v654_v0, %v254_v16 }
  0x3c   : > { %512 = vst [vmem:[%s700_s5 + $0xc8] sm:$0xff] %v480_v17  ;;  %v483_v25 = vsub.f32 %v451_v14, %v419_v23  ;;  %vm356_vm13 = vcmp.ge.f32.partialorder %v324_v20, 0.0  ;;  %v388_v26 = vmul.f32 0.01, %v324_v20 }
  0x3d   : > { %513 = vst [vmem:[%s700_s5 + $0xd0] sm:$0xff] %v481_v21  ;;  %vm357_vm14 = vcmp.ge.f32.partialorder %v325_v24, 0.0  ;;  %v389_v29 = vmul.f32 0.01, %v325_v24  ;;  %v326_v32 = vadd.f32 %v667_v1, %v290_v28 }
  0x3e   : > { %514 = vst [vmem:[%s700_s5 + $0xd8] sm:$0xff] %v482_v22  ;;  %v420_v31 = vsel %vm356_vm13, %v324_v20, %v388_v26 }
  0x3f   : > { %515 = vst [vmem:[%s700_s5 + $0xe0] sm:$0xff] %v483_v25  ;;  %v484_v33 = vsub.f32 %v452_v27, %v420_v31  ;;  %v421_v34 = vsel %vm357_vm14, %v325_v24, %v389_v29  ;;  %vm358_vm15 = vcmp.ge.f32.partialorder %v326_v32, 0.0  ;;  %v390_v36 = vmul.f32 0.01, %v326_v32 }
  0x40   : > { %v485_v35 = vsub.f32 %v453_v30, %v421_v34 }
  0x41   : > { %516 = vst [vmem:[%s700_s5 + $0xe8] sm:$0xff] %v484_v33  ;;  %v422_v0 = vsel %vm358_vm15, %v326_v32, %v390_v36 }
  0x42   : > { %517 = vst [vmem:[%s700_s5 + $0xf0] sm:$0xff] %v485_v35  ;;  %v486_v38 = vsub.f32 %v454_v37, %v422_v0 }
  0x44   : > { %518 = vst [vmem:[%s700_s5 + $0xf8] sm:$0xff] %v486_v38 }
  0x45 PF: > { %s14_s15 = sadd.s32 1, %s616_s15  }
  0x46   : > { %p11_p4 = scmp.ge.s32.totalorder %s14_s15, 4  }
  0x48   :  { %13 = sbr.rel (!%p11_p4) target bundleno = 1 (0x1), region = 69 }

// kernel: magic_module_forward.30
= control target key start
LH: loop header
LB: loop body
LE: loop exit
PB: predicated region body
PF: predicated region fallthrough
CT: control target
= control target key end

     0   :  { %s1152_s12 = smov 0   ;;  %s1154_s13 = smov 0   ;;  %s1596_s0 = inlined_call_operand.vmem [shape: bf16[512,8], index: 0, kind: input, shape index: {}]   ;;  %s1597_s1 = inlined_call_operand.vmem [shape: bf16[8,32], index: 1, kind: input, shape index: {}]   ;;  %s1598_s2 = inlined_call_operand.vmem [shape: f32[512,32], index: 2, kind: output, shape index: {0}]   ;;  %s1599_s3 = inlined_call_operand.vmem [shape: f32[2,2,32], index: 3, kind: output, shape index: {1}]  }
   0x1   :  { %s1156_s14 = smov 0  }
   0x2 LB: > { %s26_s15 = sadd.s32 1, %s1125_s13  ;;  %p975_p0 = scmp.ge.s32.totalorder %s1129_s14, 1  ;;  %s1129_s14 = sphi %s1156_s14, %s14_s14   ;;  %s1125_s13 = sphi %s1154_s13, %s1601_s13   ;;  %s1121_s12 = sphi %s1152_s12, %s1600_s12  }
   0x3   : > { %p28_p1 = scmp.ge.s32.totalorder %s26_s15, 2  ;;  %p167_p2 = scmp.lt.s32.totalorder %s1129_s14, 3 }
   0x5   : > { %s1603_s15 = smov (%p28_p1, %s26_s15), 0  ;;  %p168_p3 = pnand %p975_p0, %p167_p2 }
   0x6   : > { %s976_s18 = sshll.u32 (!%p168_p3), %s1121_s12, 5  ;;  %p221_p5 = scmp.lt.s32.totalorder (!%p168_p3), %s1121_s12, 1 }
   0x7   : > { %171 = sbr.rel (%p168_p3) target bundleno = 277 (0x115), region = 28  ;;  %p203_p4 = scmp.lt.s32.totalorder (!%p168_p3), %s976_s18, 63 }
   0xc   : > { %v327_v0 = vld [vmem:[%s1597_s1] sm:$0xf]  ;;  %vm457_vm0 = vcmask 1043456   ;;  %s1605_s18 = smov (!%p203_p4, %s976_s18), 63  ;;  %vm408_vm1 = vcmask 64512   ;;  %vm230_vm2 = vcmask 261120  }
   0xd   : > { %v459_v1 = vsel %vm457_vm0, %v327_v0, 0  ;;  %s977_s19 = sshll.u32 %s1605_s18, 2  ;;  %v1131_v10 = vmov 0.0   ;;  %s979_s23 = sshll.u32 %s1605_s18, 3  ;;  %vm852_vm3 = vcmask 1040384   ;;  %vm854_vm4 = vcmask 254976  }
   0xe   : > { %468 = vmatpush.bf16.msra.mxu0 %v459_v1  ;;  %1079 = vmatpush.bf16.msra.mxu1 %v459_v1  ;;  %s1182_s22 = scalar_lea.vmem %s1596_s0, %s977_s19  ;;  %231 = vst.msk [vmem:[#allocation2] sm:$0xff] %vm230_vm2, %v1131_v10  ;;  %s1254_s26 = scalar_lea.vmem %s1598_s2, %s979_s23 }
   0xf   : > { %1080 = vmatpush.bf16.msra.mxu2 %v459_v1  ;;  %1081 = vmatpush.bf16.msra.mxu3 %v459_v1  ;;  %v1063_v2 = vld [vmem:[%s1182_s22] sm:$0xff]  ;;  %v1064_v6 = vld [vmem:[%s1182_s22 + $0x8] sm:$0xff]  ;;  %232 = vst.msk [vmem:[#allocation2 + $0x8] sm:$0xff] %vm230_vm2, %v1131_v10  ;;  %v1065_v11 = vld [vmem:[%s1182_s22 + $0x10] sm:$0xff]  ;;  %s1607_s12 = smov (!%p221_p5, %s1121_s12), 1 }
  0x10   : > { %v1067_v3 = vld [vmem:[%s1182_s22 + $0x20] sm:$0xff]  ;;  %v1068_v7 = vld [vmem:[%s1182_s22 + $0x28] sm:$0xff]  ;;  %233 = vst.msk [vmem:[#allocation2 + $0x10] sm:$0xff] %vm230_vm2, %v1131_v10  ;;  %v1069_v12 = vld [vmem:[%s1182_s22 + $0x30] sm:$0xff]  ;;  %s980_s27 = sshll.u32 %s1607_s12, 1 }
  0x11   : > { %v1071_v4 = vld [vmem:[%s1182_s22 + $0x40] sm:$0xff]  ;;  %1045 = vmatmul.msk.bf16.vlgmr.msra.gmra.mxu0 %vm408_vm1, %v1063_v2  ;;  %1049 = vmatmul.msk.bf16.vlgmr.msra.gmra.mxu1 %vm408_vm1, %v1067_v3  ;;  %v1072_v8 = vld [vmem:[%s1182_s22 + $0x48] sm:$0xff]  ;;  %234 = vst.msk [vmem:[#allocation2 + $0x18] sm:$0xff] %vm230_vm2, %v1131_v10  ;;  %v1073_v13 = vld [vmem:[%s1182_s22 + $0x50] sm:$0xff]  ;;  %s224_s30 = scalar_lea.vmem %s1599_s3, %s980_s27 }
  0x12   : > { %v1075_v5 = vld [vmem:[%s1182_s22 + $0x60] sm:$0xff]  ;;  %1053 = vmatmul.msk.bf16.vlgmr.msra.gmra.mxu2 %vm408_vm1, %v1071_v4  ;;  %v1076_v9 = vld [vmem:[%s1182_s22 + $0x68] sm:$0xff]  ;;  %235 = vst.msk [vmem:[#allocation2 + $0x20] sm:$0xff] %vm230_vm2, %v1131_v10  ;;  %v1077_v14 = vld [vmem:[%s1182_s22 + $0x70] sm:$0xff] }
  0x13   : > { %1057 = vmatmul.msk.bf16.vlgmr.msra.gmra.mxu3 %vm408_vm1, %v1075_v5  ;;  %236 = vst.msk [vmem:[#allocation2 + $0x28] sm:$0xff] %vm230_vm2, %v1131_v10  ;;  %v1066_v15 = vld [vmem:[%s1182_s22 + $0x18] sm:$0xff] }
  0x14   : > { %237 = vst.msk [vmem:[#allocation2 + $0x30] sm:$0xff] %vm230_vm2, %v1131_v10  ;;  %v1070_v16 = vld [vmem:[%s1182_s22 + $0x38] sm:$0xff] }
  0x15   : > { %238 = vst.msk [vmem:[#allocation2 + $0x38] sm:$0xff] %vm230_vm2, %v1131_v10  ;;  %v1074_v17 = vld [vmem:[%s1182_s22 + $0x58] sm:$0xff]  ;;  %v263_v19 = vld [vmem:[#allocation2] sm:$0xff] }
  0x16   : > { %239 = vst.msk [vmem:[#allocation2 + $0x40] sm:$0xff] %vm230_vm2, %v1131_v10  ;;  %v1078_v18 = vld [vmem:[%s1182_s22 + $0x78] sm:$0xff]  ;;  %v264_v26 = vld [vmem:[#allocation2 + $0x8] sm:$0xff] }
  0x17   : > { %240 = vst.msk [vmem:[#allocation2 + $0x48] sm:$0xff] %vm230_vm2, %v1131_v10  ;;  %v265_v37 = vld [vmem:[#allocation2 + $0x10] sm:$0xff] }
  0x18   : > { %241 = vst.msk [vmem:[#allocation2 + $0x50] sm:$0xff] %vm230_vm2, %v1131_v10  ;;  %v266_v55 = vld [vmem:[#allocation2 + $0x18] sm:$0xff] }
  0x19   : > { %242 = vst.msk [vmem:[#allocation2 + $0x58] sm:$0xff] %vm230_vm2, %v1131_v10  ;;  %v267_v2 = vld [vmem:[#allocation2 + $0x20] sm:$0xff] }
  0x1a   : > { %243 = vst.msk [vmem:[#allocation2 + $0x60] sm:$0xff] %vm230_vm2, %v1131_v10 }
  0x1b   : > { %244 = vst.msk [vmem:[#allocation2 + $0x68] sm:$0xff] %vm230_vm2, %v1131_v10 }
  0x1c   : > { %245 = vst.msk [vmem:[#allocation2 + $0x70] sm:$0xff] %vm230_vm2, %v1131_v10 }
  0x1d   : > { %246 = vst.msk [vmem:[#allocation2 + $0x78] sm:$0xff] %vm230_vm2, %v1131_v10  ;;  %v271_v20 = vld [vmem:[#allocation2 + $0x40] sm:$0xff] }
  0x1e   : > { %247 = vst.msk [vmem:[#allocation2 + $0x80] sm:$0xff] %vm230_vm2, %v1131_v10  ;;  %v272_v27 = vld [vmem:[#allocation2 + $0x48] sm:$0xff] }
  0x1f   : > { %248 = vst.msk [vmem:[#allocation2 + $0x88] sm:$0xff] %vm230_vm2, %v1131_v10  ;;  %v273_v38 = vld [vmem:[#allocation2 + $0x50] sm:$0xff] }
  0x20   : > { %249 = vst.msk [vmem:[#allocation2 + $0x90] sm:$0xff] %vm230_vm2, %v1131_v10  ;;  %v274_v56 = vld [vmem:[#allocation2 + $0x58] sm:$0xff] }
  0x21   : > { %1046 = vmatmul.msk.bf16.gmra.mxu0 %vm408_vm1, %v1064_v6  ;;  %1050 = vmatmul.msk.bf16.gmra.mxu1 %vm408_vm1, %v1068_v7  ;;  %250 = vst.msk [vmem:[#allocation2 + $0x98] sm:$0xff] %vm230_vm2, %v1131_v10  ;;  %v275_v4 = vld [vmem:[#allocation2 + $0x60] sm:$0xff] }
  0x22   : > { %1054 = vmatmul.msk.bf16.gmra.mxu2 %vm408_vm1, %v1072_v8  ;;  %251 = vst.msk [vmem:[#allocation2 + $0xa0] sm:$0xff] %vm230_vm2, %v1131_v10 }
  0x23   : > { %1058 = vmatmul.msk.bf16.gmra.mxu3 %vm408_vm1, %v1076_v9  ;;  %252 = vst.msk [vmem:[#allocation2 + $0xa8] sm:$0xff] %vm230_vm2, %v1131_v10 }
  0x24   : > { %253 = vst.msk [vmem:[#allocation2 + $0xb0] sm:$0xff] %vm230_vm2, %v1131_v10 }
  0x25   : > { %254 = vst.msk [vmem:[#allocation2 + $0xb8] sm:$0xff] %vm230_vm2, %v1131_v10  ;;  %v279_v25 = vld [vmem:[#allocation2 + $0x80] sm:$0xff] }
  0x26   : > { %255 = vst.msk [vmem:[#allocation2 + $0xc0] sm:$0xff] %vm230_vm2, %v1131_v10  ;;  %v280_v42 = vld [vmem:[#allocation2 + $0x88] sm:$0xff] }
  0x27   : > { %256 = vst.msk [vmem:[#allocation2 + $0xc8] sm:$0xff] %vm230_vm2, %v1131_v10  ;;  %v281_v53 = vld [vmem:[#allocation2 + $0x90] sm:$0xff] }
  0x28   : > { %257 = vst.msk [vmem:[#allocation2 + $0xd0] sm:$0xff] %vm230_vm2, %v1131_v10  ;;  %v282_v9 = vld [vmem:[#allocation2 + $0x98] sm:$0xff] }
  0x29   : > { %258 = vst.msk [vmem:[#allocation2 + $0xd8] sm:$0xff] %vm230_vm2, %v1131_v10 }
  0x2a   : > { %259 = vst.msk [vmem:[#allocation2 + $0xe0] sm:$0xff] %vm230_vm2, %v1131_v10 }
  0x2b   : > { %260 = vst.msk [vmem:[#allocation2 + $0xe8] sm:$0xff] %vm230_vm2, %v1131_v10 }
  0x2c   : > { %261 = vst.msk [vmem:[#allocation2 + $0xf0] sm:$0xff] %vm230_vm2, %v1131_v10 }
  0x2d   : > { %262 = vst.msk [vmem:[#allocation2 + $0xf8] sm:$0xff] %vm230_vm2, %v1131_v10  ;;  %v287_v47 = vld [vmem:[#allocation2 + $0xc0] sm:$0xff] }
  0x2e   : > { %v288_v50 = vld [vmem:[#allocation2 + $0xc8] sm:$0xff] }
  0x31   : > { %1047 = vmatmul.msk.bf16.gmra.mxu0 %vm408_vm1, %v1065_v11  ;;  %1051 = vmatmul.msk.bf16.gmra.mxu1 %vm408_vm1, %v1069_v12 }
  0x32   : > { %1055 = vmatmul.msk.bf16.gmra.mxu2 %vm408_vm1, %v1073_v13 }
  0x33   : > { %1059 = vmatmul.msk.bf16.gmra.mxu3 %vm408_vm1, %v1077_v14 }
  0x41   : > { %1048 = vmatmul.msk.bf16.gmra.mxu0 %vm408_vm1, %v1066_v15  ;;  %1052 = vmatmul.msk.bf16.gmra.mxu1 %vm408_vm1, %v1070_v16  ;;  %v289_v15 = vld [vmem:[#allocation2 + $0xd0] sm:$0xff] }
  0x42   : > { %1056 = vmatmul.msk.bf16.gmra.mxu2 %vm408_vm1, %v1074_v17 }
  0x43   : > { %1060 = vmatmul.msk.bf16.gmra.mxu3 %vm408_vm1, %v1078_v18  ;;  %v290_v18 = vld [vmem:[#allocation2 + $0xd8] sm:$0xff] }
  0x8e   : > { %v470_v21 = vpop.f32.mrf.mxu0  ;;  %v490_v22 = vpop.f32.mrf.mxu1 }
  0x8f   : > { %v550_v23 = vadd.f32 %v470_v21, %v263_v19  ;;  %v558_v24 = vadd.f32 %v490_v22, %v271_v20  ;;  %v283_v21 = vld [vmem:[#allocation2 + $0xa0] sm:$0xff] }
  0x91   : > { %583 = vst.msk [vmem:[#allocation2] sm:$0xff] %vm230_vm2, %v550_v23  ;;  %v268_v23 = vld [vmem:[#allocation2 + $0x28] sm:$0xff] }
  0x92   : > { %591 = vst.msk [vmem:[#allocation2 + $0x40] sm:$0xff] %vm230_vm2, %v558_v24  ;;  %v276_v24 = vld [vmem:[#allocation2 + $0x68] sm:$0xff] }
  0x95   : > { %v510_v28 = vpop.f32.mrf.mxu2 }
  0x96   : > { %v472_v29 = vpop.f32.mrf.mxu0  ;;  %v492_v30 = vpop.f32.mrf.mxu1  ;;  %v566_v31 = vadd.f32 %v510_v28, %v279_v25 }
  0x97   : > { %v551_v32 = vadd.f32 %v472_v29, %v264_v26  ;;  %v530_v33 = vpop.f32.mrf.mxu3  ;;  %v559_v35 = vadd.f32 %v492_v30, %v272_v27 }
  0x98   : > { %v1256_v34 = vld [vmem:[#allocation2] sm:$0xff]  ;;  %599 = vst.msk [vmem:[#allocation2 + $0x80] sm:$0xff] %vm230_vm2, %v566_v31  ;;  %v574_v51 = vadd.f32 %v530_v33, %v287_v47 }
  0x99   : > { %650 = vst.msk [vmem:[%s1254_s26] sm:$0xff] %vm230_vm2, %v1256_v34  ;;  %v1262_v36 = vld [vmem:[#allocation2 + $0x40] sm:$0xff] }
  0x9a   : > { %584 = vst.msk [vmem:[#allocation2 + $0x8] sm:$0xff] %vm230_vm2, %v551_v32 }
  0x9b   : > { %658 = vst.msk [vmem:[%s1254_s26 + $0x40] sm:$0xff] %vm230_vm2, %v1262_v36 }
  0x9c   : > { %592 = vst.msk [vmem:[#allocation2 + $0x48] sm:$0xff] %vm230_vm2, %v559_v35  ;;  %v269_v35 = vld [vmem:[#allocation2 + $0x30] sm:$0xff] }
  0x9d   : > { %v512_v39 = vpop.f32.mrf.mxu2  ;;  %607 = vst.msk [vmem:[#allocation2 + $0xc0] sm:$0xff] %vm230_vm2, %v574_v51 }
  0x9e   : > { %v475_v40 = vpop.f32.mrf.mxu0  ;;  %v495_v41 = vpop.f32.mrf.mxu1  ;;  %v567_v49 = vadd.f32 %v512_v39, %v280_v42 }
  0x9f   : > { %v552_v43 = vadd.f32 %v475_v40, %v265_v37  ;;  %v560_v44 = vadd.f32 %v495_v41, %v273_v38  ;;  %v1269_v45 = vld [vmem:[#allocation2 + $0x80] sm:$0xff]  ;;  %v532_v46 = vpop.f32.mrf.mxu3  ;;  %v277_v38 = vld [vmem:[#allocation2 + $0x70] sm:$0xff] }
  0xa0   : > { %666 = vst.msk [vmem:[%s1254_s26 + $0x80] sm:$0xff] %vm230_vm2, %v1269_v45  ;;  %v575_v54 = vadd.f32 %v532_v46, %v288_v50  ;;  %v291_v50 = vld [vmem:[#allocation2 + $0xe0] sm:$0xff] }
  0xa1   : > { %v1274_v48 = vld [vmem:[#allocation2 + $0x8] sm:$0xff]  ;;  %585 = vst.msk [vmem:[#allocation2 + $0x10] sm:$0xff] %vm230_vm2, %v552_v43 }
  0xa2   : > { %651 = vst.msk [vmem:[%s1254_s26 + $0x8] sm:$0xff] %vm230_vm2, %v1274_v48  ;;  %v284_v43 = vld [vmem:[#allocation2 + $0xa8] sm:$0xff] }
  0xa3   : > { %v1280_v52 = vld [vmem:[#allocation2 + $0x48] sm:$0xff]  ;;  %593 = vst.msk [vmem:[#allocation2 + $0x50] sm:$0xff] %vm230_vm2, %v560_v44 }
  0xa4   : > { %659 = vst.msk [vmem:[%s1254_s26 + $0x48] sm:$0xff] %vm230_vm2, %v1280_v52  ;;  %v1307_v5 = vld [vmem:[#allocation2 + $0xc0] sm:$0xff] }
  0xa5   : > { %600 = vst.msk [vmem:[#allocation2 + $0x88] sm:$0xff] %vm230_vm2, %v567_v49  ;;  %v515_v57 = vpop.f32.mrf.mxu2 }
  0xa6   : > { %v477_v58 = vpop.f32.mrf.mxu0  ;;  %v497_v59 = vpop.f32.mrf.mxu1  ;;  %v568_v60 = vadd.f32 %v515_v57, %v281_v53  ;;  %608 = vst.msk [vmem:[#allocation2 + $0xc8] sm:$0xff] %vm230_vm2, %v575_v54  ;;  %v292_v53 = vld [vmem:[#allocation2 + $0xe8] sm:$0xff] }
  0xa7   : > { %v553_v61 = vadd.f32 %v477_v58, %v266_v55  ;;  %v535_v62 = vpop.f32.mrf.mxu3  ;;  %v561_v0 = vadd.f32 %v497_v59, %v274_v56  ;;  %674 = vst.msk [vmem:[%s1254_s26 + $0xc0] sm:$0xff] %vm230_vm2, %v1307_v5  ;;  %v752_v56 = vmul.f32 %v1274_v48, %v1274_v48  ;;  %v751_v58 = vmul.f32 %v1256_v34, %v1256_v34 }
  0xa8   : > { %v1289_v63 = vld [vmem:[#allocation2 + $0x10] sm:$0xff]  ;;  %601 = vst.msk [vmem:[#allocation2 + $0x90] sm:$0xff] %vm230_vm2, %v568_v60  ;;  %v576_v19 = vadd.f32 %v535_v62, %v289_v15  ;;  %v683_v62 = vsel %vm230_vm2, %v1274_v48, 0.0 }
  0xa9   : > { %652 = vst.msk [vmem:[%s1254_s26 + $0x10] sm:$0xff] %vm230_vm2, %v1289_v63  ;;  %v285_v60 = vld [vmem:[#allocation2 + $0xb0] sm:$0xff] }
  0xaa   : > { %586 = vst.msk [vmem:[#allocation2 + $0x18] sm:$0xff] %vm230_vm2, %v553_v61  ;;  %v1296_v1 = vld [vmem:[#allocation2 + $0x50] sm:$0xff] }
  0xab   : > { %660 = vst.msk [vmem:[%s1254_s26 + $0x50] sm:$0xff] %vm230_vm2, %v1296_v1 }
  0xac   : > { %594 = vst.msk [vmem:[#allocation2 + $0x58] sm:$0xff] %vm230_vm2, %v561_v0  ;;  %v1302_v3 = vld [vmem:[#allocation2 + $0x88] sm:$0xff]  ;;  %v753_v0 = vmul.f32 %v1289_v63, %v1289_v63 }
  0xad   : > { %667 = vst.msk [vmem:[%s1254_s26 + $0x88] sm:$0xff] %vm230_vm2, %v1302_v3  ;;  %v517_v6 = vpop.f32.mrf.mxu2  ;;  %v1312_v10 = vld [vmem:[#allocation2 + $0xc8] sm:$0xff] }
  0xae   : > { %v480_v7 = vpop.f32.mrf.mxu0  ;;  %v500_v8 = vpop.f32.mrf.mxu1  ;;  %675 = vst.msk [vmem:[%s1254_s26 + $0xc8] sm:$0xff] %vm230_vm2, %v1312_v10  ;;  %v569_v17 = vadd.f32 %v517_v6, %v282_v9  ;;  %v278_v6 = vld [vmem:[#allocation2 + $0x78] sm:$0xff]  ;;  %v685_v9 = vsel %vm230_vm2, %v1289_v63, 0.0 }
  0xaf   : > { %v554_v11 = vadd.f32 %v480_v7, %v267_v2  ;;  %v562_v12 = vadd.f32 %v500_v8, %v275_v4  ;;  %v1314_v13 = vld [vmem:[#allocation2 + $0x90] sm:$0xff]  ;;  %v537_v14 = vpop.f32.mrf.mxu3  ;;  %609 = vst.msk [vmem:[#allocation2 + $0xd0] sm:$0xff] %vm230_vm2, %v576_v19  ;;  %v270_v2 = vld [vmem:[#allocation2 + $0x38] sm:$0xff]  ;;  %v682_v4 = vsel %vm230_vm2, %v1256_v34, 0.0  ;;  %v784_v8 = vsel %vm230_vm2, %v752_v56, 0.0 }
  0xb0   : > { %668 = vst.msk [vmem:[%s1254_s26 + $0x90] sm:$0xff] %vm230_vm2, %v1314_v13  ;;  %v577_v22 = vadd.f32 %v537_v14, %v290_v18  ;;  %v783_v34 = vsel %vm230_vm2, %v751_v58, 0.0  ;;  %v684_v15 = vadd.f32 %v683_v62, %v682_v4  ;;  %v786_v19 = vsel %vm230_vm2, %v753_v0, 0.0  ;;  %v294_v58 = vld [vmem:[#allocation2 + $0xf8] sm:$0xff] }
  0xb1   : > { %v1322_v16 = vld [vmem:[#allocation2 + $0x18] sm:$0xff]  ;;  %587 = vst.msk [vmem:[#allocation2 + $0x20] sm:$0xff] %vm230_vm2, %v554_v11 }
  0xb2   : > { %653 = vst.msk [vmem:[%s1254_s26 + $0x18] sm:$0xff] %vm230_vm2, %v1322_v16  ;;  %v754_v48 = vmul.f32 %v1322_v16, %v1322_v16  ;;  %v687_v63 = vsel %vm230_vm2, %v1322_v16, 0.0 }
  0xb3   : > { %v1328_v20 = vld [vmem:[#allocation2 + $0x58] sm:$0xff]  ;;  %595 = vst.msk [vmem:[#allocation2 + $0x60] sm:$0xff] %vm230_vm2, %v562_v12 }
  0xb4   : > { %661 = vst.msk [vmem:[%s1254_s26 + $0x58] sm:$0xff] %vm230_vm2, %v1328_v20 }
  0xb5   : > { %602 = vst.msk [vmem:[#allocation2 + $0x98] sm:$0xff] %vm230_vm2, %v569_v17  ;;  %v520_v25 = vpop.f32.mrf.mxu2 }
  0xb6   : > { %v482_v26 = vpop.f32.mrf.mxu0  ;;  %v502_v27 = vpop.f32.mrf.mxu1  ;;  %v570_v28 = vadd.f32 %v520_v25, %v283_v21  ;;  %610 = vst.msk [vmem:[#allocation2 + $0xd8] sm:$0xff] %vm230_vm2, %v577_v22  ;;  %v1355_v39 = vld [vmem:[#allocation2 + $0xd0] sm:$0xff]  ;;  %v686_v25 = vadd.f32 %v685_v9, %v684_v15 }
  0xb7   : > { %v555_v29 = vadd.f32 %v482_v26, %v268_v23  ;;  %v540_v30 = vpop.f32.mrf.mxu3  ;;  %v563_v32 = vadd.f32 %v502_v27, %v276_v24  ;;  %676 = vst.msk [vmem:[%s1254_s26 + $0xd0] sm:$0xff] %vm230_vm2, %v1355_v39  ;;  %v785_v24 = vadd.f32 %v784_v8, %v783_v34  ;;  %v788_v26 = vsel %vm230_vm2, %v754_v48, 0.0 }
  0xb8   : > { %v1337_v31 = vld [vmem:[#allocation2 + $0x20] sm:$0xff]  ;;  %603 = vst.msk [vmem:[#allocation2 + $0xa0] sm:$0xff] %vm230_vm2, %v570_v28  ;;  %v578_v57 = vadd.f32 %v540_v30, %v291_v50  ;;  %v688_v30 = vadd.f32 %v687_v63, %v686_v25  ;;  %v760_v34 = vmul.f32 %v1280_v52, %v1280_v52  ;;  %v699_v63 = vsel %vm230_vm2, %v1280_v52, 0.0 }
  0xb9   : > { %654 = vst.msk [vmem:[%s1254_s26 + $0x20] sm:$0xff] %vm230_vm2, %v1337_v31  ;;  %v755_v21 = vmul.f32 %v1337_v31, %v1337_v31  ;;  %v689_v27 = vsel %vm230_vm2, %v1337_v31, 0.0  ;;  %v762_v25 = vmul.f32 %v1328_v20, %v1328_v20 }
  0xba   : > { %588 = vst.msk [vmem:[#allocation2 + $0x28] sm:$0xff] %vm230_vm2, %v555_v29  ;;  %v1344_v33 = vld [vmem:[#allocation2 + $0x60] sm:$0xff]  ;;  %v787_v29 = vadd.f32 %v786_v19, %v785_v24  ;;  %v701_v24 = vsel %vm230_vm2, %v1296_v1, 0.0 }
  0xbb   : > { %662 = vst.msk [vmem:[%s1254_s26 + $0x60] sm:$0xff] %vm230_vm2, %v1344_v33 }
  0xbc   : > { %596 = vst.msk [vmem:[#allocation2 + $0x68] sm:$0xff] %vm230_vm2, %v563_v32  ;;  %v1350_v37 = vld [vmem:[#allocation2 + $0x98] sm:$0xff] }
  0xbd   : > { %669 = vst.msk [vmem:[%s1254_s26 + $0x98] sm:$0xff] %vm230_vm2, %v1350_v37  ;;  %v522_v40 = vpop.f32.mrf.mxu2  ;;  %v1360_v44 = vld [vmem:[#allocation2 + $0xd8] sm:$0xff] }
  0xbe   : > { %v485_v41 = vpop.f32.mrf.mxu0  ;;  %v505_v42 = vpop.f32.mrf.mxu1  ;;  %677 = vst.msk [vmem:[%s1254_s26 + $0xd8] sm:$0xff] %vm230_vm2, %v1360_v44  ;;  %v571_v55 = vadd.f32 %v522_v40, %v284_v43  ;;  %v286_v32 = vld [vmem:[#allocation2 + $0xb8] sm:$0xff] }
  0xbf   : > { %v556_v46 = vadd.f32 %v485_v41, %v269_v35  ;;  %v564_v47 = vadd.f32 %v505_v42, %v277_v38  ;;  %v1362_v49 = vld [vmem:[#allocation2 + $0xa0] sm:$0xff]  ;;  %v542_v51 = vpop.f32.mrf.mxu3  ;;  %611 = vst.msk [vmem:[#allocation2 + $0xe0] sm:$0xff] %vm230_vm2, %v578_v57  ;;  %v790_v35 = vsel %vm230_vm2, %v755_v21, 0.0  ;;  %v789_v41 = vadd.f32 %v788_v26, %v787_v29  ;;  %v293_v57 = vld [vmem:[#allocation2 + $0xf0] sm:$0xff] }
  0xc0   : > { %670 = vst.msk [vmem:[%s1254_s26 + $0xa0] sm:$0xff] %vm230_vm2, %v1362_v49  ;;  %v579_v61 = vadd.f32 %v542_v51, %v292_v53  ;;  %v690_v42 = vadd.f32 %v689_v27, %v688_v30  ;;  %v703_v29 = vsel %vm230_vm2, %v1328_v20, 0.0  ;;  %v763_v30 = vmul.f32 %v1344_v33, %v1344_v33 }
  0xc1   : > { %v623_v54 = vld [vmem:[#allocation2 + $0x28] sm:$0xff]  ;;  %589 = vst.msk [vmem:[#allocation2 + $0x30] sm:$0xff] %vm230_vm2, %v556_v46 }
  0xc2   : > { %655 = vst.msk [vmem:[%s1254_s26 + $0x28] sm:$0xff] %vm230_vm2, %v623_v54  ;;  %v756_v28 = vmul.f32 %v623_v54, %v623_v54  ;;  %v691_v38 = vsel %vm230_vm2, %v623_v54, 0.0  ;;  %v791_v54 = vadd.f32 %v790_v35, %v789_v41 }
  0xc3   : > { %v1377_v59 = vld [vmem:[#allocation2 + $0x68] sm:$0xff]  ;;  %597 = vst.msk [vmem:[#allocation2 + $0x70] sm:$0xff] %vm230_vm2, %v564_v47 }
  0xc4   : > { %663 = vst.msk [vmem:[%s1254_s26 + $0x68] sm:$0xff] %vm230_vm2, %v1377_v59  ;;  %v792_v47 = vsel %vm230_vm2, %v756_v28, 0.0  ;;  %v764_v41 = vmul.f32 %v1377_v59, %v1377_v59 }
  0xc5   : > { %604 = vst.msk [vmem:[#allocation2 + $0xa8] sm:$0xff] %vm230_vm2, %v571_v55  ;;  %v525_v7 = vpop.f32.mrf.mxu2  ;;  %v692_v55 = vadd.f32 %v691_v38, %v690_v42  ;;  %v793_v0 = vadd.f32 %v792_v47, %v791_v54  ;;  %v804_v38 = vsel %vm230_vm2, %v762_v25, 0.0  ;;  %v806_v47 = vsel %vm230_vm2, %v763_v30, 0.0 }
  0xc6   : > { %v487_v11 = vpop.f32.mrf.mxu0  ;;  %v507_v12 = vpop.f32.mrf.mxu1  ;;  %v572_v14 = vadd.f32 %v525_v7, %v285_v60  ;;  %612 = vst.msk [vmem:[#allocation2 + $0xe8] sm:$0xff] %vm230_vm2, %v579_v61  ;;  %v1423_v43 = vld [vmem:[#allocation2 + $0xe0] sm:$0xff]  ;;  %v759_v7 = vmul.f32 %v1262_v36, %v1262_v36 }
  0xc7   : > { %v557_v17 = vadd.f32 %v487_v11, %v270_v2  ;;  %v545_v18 = vpop.f32.mrf.mxu3  ;;  %v565_v23 = vadd.f32 %v507_v12, %v278_v6  ;;  %678 = vst.msk [vmem:[%s1254_s26 + $0xe0] sm:$0xff] %vm230_vm2, %v1423_v43 }
  0xc8   : > { %v624_v22 = vld [vmem:[#allocation2 + $0x30] sm:$0xff]  ;;  %605 = vst.msk [vmem:[#allocation2 + $0xb0] sm:$0xff] %vm230_vm2, %v572_v14  ;;  %v580_v62 = vadd.f32 %v545_v18, %v293_v57  ;;  %v697_v14 = vsel %vm230_vm2, %v1262_v36, 0.0  ;;  %v798_v19 = vsel %vm230_vm2, %v759_v7, 0.0  ;;  %v761_v36 = vmul.f32 %v1296_v1, %v1296_v1 }
  0xc9   : > { %656 = vst.msk [vmem:[%s1254_s26 + $0x30] sm:$0xff] %vm230_vm2, %v624_v22  ;;  %v757_v40 = vmul.f32 %v624_v22, %v624_v22  ;;  %v693_v50 = vsel %vm230_vm2, %v624_v22, 0.0  ;;  %v768_v7 = vmul.f32 %v1302_v3, %v1302_v3 }
  0xca   : > { %590 = vst.msk [vmem:[#allocation2 + $0x38] sm:$0xff] %vm230_vm2, %v557_v17  ;;  %v1410_v16 = vld [vmem:[#allocation2 + $0x70] sm:$0xff]  ;;  %v694_v2 = vadd.f32 %v693_v50, %v692_v55  ;;  %v802_v52 = vsel %vm230_vm2, %v761_v36, 0.0  ;;  %v707_v50 = vsel %vm230_vm2, %v1377_v59, 0.0  ;;  %v808_v55 = vsel %vm230_vm2, %v764_v41, 0.0 }
  0xcb   : > { %664 = vst.msk [vmem:[%s1254_s26 + $0x70] sm:$0xff] %vm230_vm2, %v1410_v16  ;;  %v794_v61 = vsel %vm230_vm2, %v757_v40, 0.0  ;;  %v705_v40 = vsel %vm230_vm2, %v1344_v33, 0.0  ;;  %v709_v57 = vsel %vm230_vm2, %v1410_v16, 0.0  ;;  %v771_v36 = vmul.f32 %v1362_v49, %v1362_v49 }
  0xcc   : > { %598 = vst.msk [vmem:[#allocation2 + $0x78] sm:$0xff] %vm230_vm2, %v565_v23  ;;  %v1418_v31 = vld [vmem:[#allocation2 + $0xa8] sm:$0xff]  ;;  %v795_v48 = vadd.f32 %v794_v61, %v793_v0  ;;  %v800_v23 = vsel %vm230_vm2, %v760_v34, 0.0  ;;  %v775_v41 = vmul.f32 %v1307_v5, %v1307_v5 }
  0xcd   : > { %671 = vst.msk [vmem:[%s1254_s26 + $0xa8] sm:$0xff] %vm230_vm2, %v1418_v31  ;;  %v527_v46 = vpop.f32.mrf.mxu2  ;;  %v1430_v53 = vld [vmem:[#allocation2 + $0xe8] sm:$0xff] }
  0xce   : > { %v573_v51 = vadd.f32 %v527_v46, %v286_v32  ;;  %679 = vst.msk [vmem:[%s1254_s26 + $0xe8] sm:$0xff] %vm230_vm2, %v1430_v53 }
  0xcf   : > { %v1432_v56 = vld [vmem:[#allocation2 + $0xb0] sm:$0xff]  ;;  %v547_v60 = vpop.f32.mrf.mxu3  ;;  %613 = vst.msk [vmem:[#allocation2 + $0xf0] sm:$0xff] %vm230_vm2, %v580_v62  ;;  %v767_v62 = vmul.f32 %v1269_v45, %v1269_v45 }
  0xd0   : > { %672 = vst.msk [vmem:[%s1254_s26 + $0xb0] sm:$0xff] %vm230_vm2, %v1432_v56  ;;  %v581_v6 = vadd.f32 %v547_v60, %v294_v58 }
  0xd1   : > { %v625_v4 = vld [vmem:[#allocation2 + $0x38] sm:$0xff]  ;;  %606 = vst.msk [vmem:[#allocation2 + $0xb8] sm:$0xff] %vm230_vm2, %v573_v51  ;;  %v765_v51 = vmul.f32 %v1410_v16, %v1410_v16 }
  0xd2   : > { %657 = vst.msk [vmem:[%s1254_s26 + $0x38] sm:$0xff] %vm230_vm2, %v625_v4  ;;  %v695_v8 = vsel %vm230_vm2, %v625_v4, 0.0  ;;  %v758_v9 = vmul.f32 %v625_v4, %v625_v4 }
  0xd3   : > { %v696_v11 = vadd.f32 %v695_v8, %v694_v2  ;;  %v633_v12 = vld [vmem:[#allocation2 + $0x78] sm:$0xff]  ;;  %614 = vst.msk [vmem:[#allocation2 + $0xf8] sm:$0xff] %vm230_vm2, %v581_v6  ;;  %v810_v0 = vsel %vm230_vm2, %v765_v51, 0.0  ;;  %v713_v6 = vsel %vm230_vm2, %v1269_v45, 0.0  ;;  %v717_v45 = vsel %vm230_vm2, %v1314_v13, 0.0 }
  0xd4   : > { %v796_v15 = vsel %vm230_vm2, %v758_v9, 0.0  ;;  %665 = vst.msk [vmem:[%s1254_s26 + $0x78] sm:$0xff] %vm230_vm2, %v633_v12  ;;  %v766_v58 = vmul.f32 %v633_v12, %v633_v12  ;;  %v711_v59 = vsel %vm230_vm2, %v633_v12, 0.0  ;;  %v769_v12 = vmul.f32 %v1314_v13, %v1314_v13 }
  0xd5   : > { %v698_v17 = vadd.f32 %v697_v14, %v696_v11  ;;  %v797_v18 = vadd.f32 %v796_v15, %v795_v48  ;;  %v814_v48 = vsel %vm230_vm2, %v767_v62, 0.0  ;;  %v715_v11 = vsel %vm230_vm2, %v1302_v3, 0.0 }
  0xd6   : > { %v1476_v1 = vld [vmem:[#allocation2 + $0xf0] sm:$0xff]  ;;  %v812_v16 = vsel %vm230_vm2, %v766_v58, 0.0  ;;  %v816_v15 = vsel %vm230_vm2, %v768_v7, 0.0  ;;  %v719_v3 = vsel %vm230_vm2, %v1350_v37, 0.0  ;;  %v721_v13 = vsel %vm230_vm2, %v1362_v49, 0.0 }
  0xd7   : > { %v700_v21 = vadd.f32 %v699_v63, %v698_v17  ;;  %v799_v22 = vadd.f32 %v798_v19, %v797_v18  ;;  %680 = vst.msk [vmem:[%s1254_s26 + $0xf0] sm:$0xff] %vm230_vm2, %v1476_v1  ;;  %v770_v17 = vmul.f32 %v1350_v37, %v1350_v37  ;;  %v818_v63 = vsel %vm230_vm2, %v769_v12, 0.0 }
  0xd8   : > { %v1466_v26 = vld [vmem:[#allocation2 + $0xb8] sm:$0xff]  ;;  %v723_v37 = vsel %vm230_vm2, %v1418_v31, 0.0  ;;  %v725_v49 = vsel %vm230_vm2, %v1432_v56, 0.0  ;;  %v778_v62 = vmul.f32 %v1360_v44, %v1360_v44  ;;  %v781_v12 = vmul.f32 %v1476_v1, %v1476_v1 }
  0xd9   : > { %v702_v27 = vadd.f32 %v701_v24, %v700_v21  ;;  %v801_v28 = vadd.f32 %v800_v23, %v799_v22  ;;  %673 = vst.msk [vmem:[%s1254_s26 + $0xb8] sm:$0xff] %vm230_vm2, %v1466_v26  ;;  %v820_v23 = vsel %vm230_vm2, %v770_v17, 0.0  ;;  %v772_v24 = vmul.f32 %v1418_v31, %v1418_v31 }
  0xda   : > { %v1486_v42 = vld [vmem:[#allocation2 + $0xf8] sm:$0xff] }
  0xdb   : > { %v803_v32 = vadd.f32 %v802_v52, %v801_v28  ;;  %v704_v35 = vadd.f32 %v703_v29, %v702_v27  ;;  %681 = vst.msk [vmem:[%s1254_s26 + $0xf8] sm:$0xff] %vm230_vm2, %v1486_v42  ;;  %v822_v28 = vsel %vm230_vm2, %v771_v36, 0.0  ;;  %v773_v52 = vmul.f32 %v1432_v56, %v1432_v56 }
  0xdc   : > { %v776_v56 = vmul.f32 %v1312_v10, %v1312_v10 }
  0xdd   : > { %v706_v20 = vadd.f32 %v705_v40, %v704_v35  ;;  %v805_v46 = vadd.f32 %v804_v38, %v803_v32  ;;  %v824_v32 = vsel %vm230_vm2, %v772_v24, 0.0  ;;  %v774_v35 = vmul.f32 %v1466_v26, %v1466_v26 }
  0xde   : > { %v826_v31 = vsel %vm230_vm2, %v773_v52, 0.0 }
  0xdf   : > { %v708_v54 = vadd.f32 %v707_v50, %v706_v20  ;;  %v807_v33 = vadd.f32 %v806_v47, %v805_v46  ;;  %v727_v20 = vsel %vm230_vm2, %v1466_v26, 0.0  ;;  %v729_v50 = vsel %vm230_vm2, %v1307_v5, 0.0 }
  0xe0   : > { %v828_v51 = vsel %vm230_vm2, %v774_v35, 0.0  ;;  %v777_v26 = vmul.f32 %v1355_v39, %v1355_v39  ;;  %v733_v5 = vsel %vm230_vm2, %v1355_v39, 0.0  ;;  %v737_v39 = vsel %vm230_vm2, %v1423_v43, 0.0 }
  0xe1   : > { %v710_v60 = vadd.f32 %v709_v57, %v708_v54  ;;  %v809_v61 = vadd.f32 %v808_v55, %v807_v33  ;;  %v830_v55 = vsel %vm230_vm2, %v775_v41, 0.0  ;;  %v731_v57 = vsel %vm230_vm2, %v1312_v10, 0.0 }
  0xe2   : > { %v735_v10 = vsel %vm230_vm2, %v1360_v44, 0.0  ;;  %v739_v44 = vsel %vm230_vm2, %v1430_v53, 0.0 }
  0xe3   : > { %v811_v2 = vadd.f32 %v810_v0, %v809_v61  ;;  %v712_v4 = vadd.f32 %v711_v59, %v710_v60  ;;  %v832_v61 = vsel %vm230_vm2, %v776_v56, 0.0 }
  0xe5   : > { %v714_v8 = vadd.f32 %v713_v6, %v712_v4  ;;  %v813_v9 = vadd.f32 %v812_v16, %v811_v2  ;;  %v834_v2 = vsel %vm230_vm2, %v777_v26, 0.0  ;;  %v779_v4 = vmul.f32 %v1423_v43, %v1423_v43 }
  0xe6   : > { %v836_v16 = vsel %vm230_vm2, %v778_v62, 0.0  ;;  %v741_v43 = vsel %vm230_vm2, %v1476_v1, 0.0 }
  0xe7   : > { %v716_v14 = vadd.f32 %v715_v11, %v714_v8  ;;  %v815_v34 = vadd.f32 %v814_v48, %v813_v9  ;;  %v780_v8 = vmul.f32 %v1430_v53, %v1430_v53  ;;  %v838_v11 = vsel %vm230_vm2, %v779_v4, 0.0 }
  0xe8   : > { %v743_v53 = vsel %vm230_vm2, %v1486_v42, 0.0 }
  0xe9   : > { %v817_v18 = vadd.f32 %v816_v15, %v815_v34  ;;  %v718_v19 = vadd.f32 %v717_v45, %v716_v14  ;;  %v840_v15 = vsel %vm230_vm2, %v780_v8, 0.0  ;;  %v782_v45 = vmul.f32 %v1486_v42, %v1486_v42 }
  0xeb   : > { %v720_v21 = vadd.f32 %v719_v3, %v718_v19  ;;  %v819_v22 = vadd.f32 %v818_v63, %v817_v18  ;;  %v842_v19 = vsel %vm230_vm2, %v781_v12, 0.0  ;;  %v844_v36 = vsel %vm230_vm2, %v782_v45, 0.0 }
  0xed   : > { %v722_v25 = vadd.f32 %v721_v13, %v720_v21  ;;  %v821_v27 = vadd.f32 %v820_v23, %v819_v22 }
  0xef   : > { %v724_v29 = vadd.f32 %v723_v37, %v722_v25  ;;  %v823_v30 = vadd.f32 %v822_v28, %v821_v27 }
  0xf1   : > { %v825_v38 = vadd.f32 %v824_v32, %v823_v30  ;;  %v726_v40 = vadd.f32 %v725_v49, %v724_v29 }
  0xf3   : > { %v827_v46 = vadd.f32 %v826_v31, %v825_v38  ;;  %v728_v47 = vadd.f32 %v727_v20, %v726_v40 }
  0xf5   : > { %v730_v54 = vadd.f32 %v729_v50, %v728_v47  ;;  %v829_v33 = vadd.f32 %v828_v51, %v827_v46 }
  0xf7   : > { %v732_v58 = vadd.f32 %v731_v57, %v730_v54  ;;  %v831_v60 = vadd.f32 %v830_v55, %v829_v33 }
  0xf9   : > { %v833_v0 = vadd.f32 %v832_v61, %v831_v60  ;;  %v734_v59 = vadd.f32 %v733_v5, %v732_v58 }
  0xfb   : > { %v736_v6 = vadd.f32 %v735_v10, %v734_v59  ;;  %v835_v7 = vadd.f32 %v834_v2, %v833_v0 }
  0xfd   : > { %v738_v9 = vadd.f32 %v737_v39, %v736_v6  ;;  %v837_v48 = vadd.f32 %v836_v16, %v835_v7 }
  0xff   : > { %v740_v14 = vadd.f32 %v739_v44, %v738_v9  ;;  %v839_v34 = vadd.f32 %v838_v11, %v837_v48 }
 0x101   : > { %v841_v17 = vadd.f32 %v840_v15, %v839_v34  ;;  %v742_v18 = vadd.f32 %v741_v43, %v740_v14 }
 0x103   : > { %v843_v63 = vadd.f32 %v842_v19, %v841_v17  ;;  %v744_v3 = vadd.f32 %v743_v53, %v742_v18 }
 0x105   : > { %v745_v21 = vrot.slane %v744_v3, 4  ;;  %v845_v22 = vadd.f32 %v844_v36, %v843_v63 }
 0x107   : > { %v746_v23 = vadd.f32 %v745_v21, %v744_v3  ;;  %v846_v1 = vrot.slane %v845_v22, 4 }
 0x109   : > { %v747_v13 = vrot.slane %v746_v23, 2  ;;  %v847_v24 = vadd.f32 %v846_v1, %v845_v22 }
 0x10b   : > { %v748_v25 = vadd.f32 %v747_v13, %v746_v23  ;;  %v848_v27 = vrot.slane %v847_v24, 2 }
 0x10d   : > { %v749_v28 = vrot.slane %v748_v25, 1  ;;  %v849_v37 = vadd.f32 %v848_v27, %v847_v24 }
 0x10f   : > { %v850_v52 = vrot.slane %v849_v37, 1  ;;  %v750_v42 = vadd.f32 %v749_v28, %v748_v25 }
 0x111   : > { %v851_v29 = vadd.f32 %v850_v52, %v849_v37 }
 0x113   : > { %v853_v30 = vsel %vm852_vm3, %v750_v42, %v851_v29 }
 0x114   : > { %855 = vst.msk [vmem:[%s224_s30] sm:$0x3] %vm854_vm4, %v853_v30 }
 0x115 PF: > { %s14_s14 = sadd.s32 1, %s1129_s14   ;;  %s1600_s12 = smov %s1125_s13 }
 0x116   : > { %p11_p6 = scmp.ge.s32.totalorder %s14_s14, 4   ;;  %s1601_s13 = smov %s1603_s15 }
 0x118   :  { %13 = sbr.rel (!%p11_p6) target bundleno = 2 (0x2), region = 81 }

// kernel: magic_module_forward.32
= control target key start
LH: loop header
LB: loop body
LE: loop exit
PB: predicated region body
PF: predicated region fallthrough
CT: control target
= control target key end

     0   :  { %s1563_s12 = smov 0   ;;  %s1565_s13 = smov 0   ;;  %s2067_s0 = inlined_call_operand.vmem [shape: bf16[512,192], index: 0, kind: input, shape index: {}]   ;;  %s2068_s1 = inlined_call_operand.vmem [shape: bf16[192,32], index: 1, kind: input, shape index: {}]   ;;  %s2069_s2 = inlined_call_operand.vmem [shape: f32[512,32], index: 2, kind: output, shape index: {0}]   ;;  %s2070_s3 = inlined_call_operand.vmem [shape: f32[2,2,32], index: 3, kind: output, shape index: {1}]  }
   0x1   :  { %s1567_s14 = smov 0  }
   0x2 LB: > { %s26_s15 = sadd.s32 1, %s1536_s13  ;;  %p1235_p0 = scmp.ge.s32.totalorder %s1540_s14, 1  ;;  %s1540_s14 = sphi %s1567_s14, %s14_s14   ;;  %s1536_s13 = sphi %s1565_s13, %s2072_s13   ;;  %s1532_s12 = sphi %s1563_s12, %s2071_s12  }
   0x3   : > { %p28_p1 = scmp.ge.s32.totalorder %s26_s15, 2  ;;  %p172_p2 = scmp.lt.s32.totalorder %s1540_s14, 3 }
   0x5   : > { %s2074_s15 = smov (%p28_p1, %s26_s15), 0  ;;  %p173_p3 = pnand %p1235_p0, %p172_p2 }
   0x6   : > { %s1236_s20 = sshll.u32 (!%p173_p3), %s1532_s12, 5  ;;  %p234_p5 = scmp.lt.s32.totalorder (!%p173_p3), %s1532_s12, 1 }
   0x7   : > { %176 = sbr.rel (%p173_p3) target bundleno = 354 (0x162), region = 28  ;;  %p212_p4 = scmp.lt.s32.totalorder (!%p173_p3), %s1236_s20, 63 }
   0xc   : > { %v1476_v0 = vld [vmem:[%s2068_s1 + $0x38] sm:$0xff]  ;;  %v1475_v2 = vld [vmem:[%s2068_s1 + $0x30] sm:$0xff]  ;;  %s2076_s20 = smov (!%p212_p4, %s1236_s20), 63  ;;  %v1474_v4 = vld [vmem:[%s2068_s1 + $0x28] sm:$0xff]  ;;  %vm580_vm0 = vcmask 523264   ;;  %vm243_vm1 = vcmask 261120  }
   0xd   : > { %v1480_v1 = vld [vmem:[%s2068_s1 + $0x58] sm:$0xff]  ;;  %629 = vmatpush.bf16.msra.mxu0 %v1476_v0  ;;  %v1479_v3 = vld [vmem:[%s2068_s1 + $0x50] sm:$0xff]  ;;  %1481 = vmatpush.bf16.msra.mxu2 %v1476_v0  ;;  %s1436_s25 = sshll.u32 %s2076_s20, 3  ;;  %v1478_v5 = vld [vmem:[%s2068_s1 + $0x48] sm:$0xff]  ;;  %s2078_s12 = smov (!%p234_p5, %s1532_s12), 1  ;;  %vm1109_vm2 = vcmask 1040384  }
   0xe   : > { %722 = vmatpush.bf16.msra.mxu1 %v1480_v1  ;;  %1489 = vmatpush.bf16.msra.mxu3 %v1480_v1  ;;  %s1610_s5 = scalar_lea.vmem %s2067_s0, %s1436_s25  ;;  %v1473_v6 = vld [vmem:[%s2068_s1 + $0x20] sm:$0xff]  ;;  %v1472_v11 = vld [vmem:[%s2068_s1 + $0x18] sm:$0xff]  ;;  %v1471_v12 = vld [vmem:[%s2068_s1 + $0x10] sm:$0xff]  ;;  %s1750_s26 = scalar_lea.vmem %s2069_s2, %s1436_s25  ;;  %vm1111_vm3 = vcmask 254976  }
   0xf   : > { %v1477_v7 = vld [vmem:[%s2068_s1 + $0x40] sm:$0xff]  ;;  %v1246_v9 = vld [vmem:[%s1610_s5 + $0x8] sm:$0xf0]  ;;  %v1438_v16 = vld [vmem:[%s1610_s5 + $0x4] sm:$0xf0]  ;;  %s1241_s20 = sshll.u32 %s2078_s12, 1 }
  0x10   : > { %v1437_v8 = vld [vmem:[%s1610_s5 + $0x4] sm:$0xf]  ;;  %v1470_v13 = vld [vmem:[%s2068_s1 + $0x8] sm:$0xff]  ;;  %v1244_v15 = vld [vmem:[%s1610_s5] sm:$0xf]  ;;  %s237_s28 = scalar_lea.vmem %s2070_s3, %s1241_s20 }
  0x11   : > { %630 = vmatpush.bf16.msra.mxu0 %v1475_v2  ;;  %1482 = vmatpush.bf16.msra.mxu2 %v1475_v2  ;;  %v1249_v10 = vor.u32 %v1437_v8, %v1246_v9  ;;  %v1469_v14 = vld [vmem:[%s2068_s1] sm:$0xff]  ;;  %v1439_v17 = vld [vmem:[%s1610_s5 + $0x14] sm:$0xf]  ;;  %v1254_v18 = vld [vmem:[%s1610_s5 + $0x18] sm:$0xf0]  ;;  %v1245_v21 = vor.u32 %v1438_v16, %v1244_v15 }
  0x12   : > { %723 = vmatpush.bf16.msra.mxu1 %v1479_v3  ;;  %1490 = vmatpush.bf16.msra.mxu3 %v1479_v3  ;;  %v1308_v19 = vld [vmem:[%s1610_s5 + $0x80] sm:$0xf]  ;;  %v1454_v20 = vld [vmem:[%s1610_s5 + $0x84] sm:$0xf0]  ;;  %v1257_v22 = vor.u32 %v1439_v17, %v1254_v18  ;;  %v1455_v24 = vld [vmem:[%s1610_s5 + $0x94] sm:$0xf] }
  0x13   : > { %v1309_v23 = vor.u32 %v1454_v20, %v1308_v19  ;;  %v1318_v25 = vld [vmem:[%s1610_s5 + $0x98] sm:$0xf0]  ;;  %v1252_v27 = vld [vmem:[%s1610_s5 + $0x10] sm:$0xf]  ;;  %v1440_v28 = vld [vmem:[%s1610_s5 + $0x14] sm:$0xf0] }
  0x14   : > { %v1321_v26 = vor.u32 %v1455_v24, %v1318_v25  ;;  %v1441_v29 = vld [vmem:[%s1610_s5 + $0x24] sm:$0xf]  ;;  %v1262_v30 = vld [vmem:[%s1610_s5 + $0x28] sm:$0xf0]  ;;  %v1316_v31 = vld [vmem:[%s1610_s5 + $0x90] sm:$0xf]  ;;  %v1253_v33 = vor.u32 %v1440_v28, %v1252_v27 }
  0x15   : > { %631 = vmatpush.bf16.msra.mxu0 %v1474_v4  ;;  %1483 = vmatpush.bf16.msra.mxu2 %v1474_v4  ;;  %v1456_v32 = vld [vmem:[%s1610_s5 + $0x94] sm:$0xf0]  ;;  %v1265_v34 = vor.u32 %v1441_v29, %v1262_v30  ;;  %v1457_v36 = vld [vmem:[%s1610_s5 + $0xa4] sm:$0xf]  ;;  %v1326_v37 = vld [vmem:[%s1610_s5 + $0xa8] sm:$0xf0] }
  0x16   : > { %724 = vmatpush.bf16.msra.mxu1 %v1478_v5  ;;  %1491 = vmatpush.bf16.msra.mxu3 %v1478_v5  ;;  %v1317_v35 = vor.u32 %v1456_v32, %v1316_v31  ;;  %v1329_v38 = vor.u32 %v1457_v36, %v1326_v37  ;;  %v1260_v39 = vld [vmem:[%s1610_s5 + $0x20] sm:$0xf]  ;;  %v1442_v40 = vld [vmem:[%s1610_s5 + $0x24] sm:$0xf0]  ;;  %v1443_v41 = vld [vmem:[%s1610_s5 + $0x34] sm:$0xf] }
  0x17   : > { %v1270_v42 = vld [vmem:[%s1610_s5 + $0x38] sm:$0xf0]  ;;  %v1324_v43 = vld [vmem:[%s1610_s5 + $0xa0] sm:$0xf]  ;;  %v1458_v44 = vld [vmem:[%s1610_s5 + $0xa4] sm:$0xf0]  ;;  %v1261_v45 = vor.u32 %v1442_v40, %v1260_v39 }
  0x18   : > { %v1273_v46 = vor.u32 %v1443_v41, %v1270_v42  ;;  %v1325_v47 = vor.u32 %v1458_v44, %v1324_v43  ;;  %v1459_v48 = vld [vmem:[%s1610_s5 + $0xb4] sm:$0xf]  ;;  %v1334_v49 = vld [vmem:[%s1610_s5 + $0xb8] sm:$0xf0]  ;;  %v1268_v51 = vld [vmem:[%s1610_s5 + $0x30] sm:$0xf] }
  0x19   : > { %632 = vmatpush.bf16.msra.mxu0 %v1473_v6  ;;  %1484 = vmatpush.bf16.msra.mxu2 %v1473_v6  ;;  %v1337_v50 = vor.u32 %v1459_v48, %v1334_v49  ;;  %v1444_v52 = vld [vmem:[%s1610_s5 + $0x34] sm:$0xf0]  ;;  %v1445_v53 = vld [vmem:[%s1610_s5 + $0x44] sm:$0xf]  ;;  %v1278_v54 = vld [vmem:[%s1610_s5 + $0x48] sm:$0xf0] }
  0x1a   : > { %725 = vmatpush.bf16.msra.mxu1 %v1477_v7  ;;  %1492 = vmatpush.bf16.msra.mxu3 %v1477_v7  ;;  %v1332_v55 = vld [vmem:[%s1610_s5 + $0xb0] sm:$0xf]  ;;  %v1460_v56 = vld [vmem:[%s1610_s5 + $0xb4] sm:$0xf0]  ;;  %v1269_v57 = vor.u32 %v1444_v52, %v1268_v51  ;;  %v1281_v58 = vor.u32 %v1445_v53, %v1278_v54  ;;  %v1461_v60 = vld [vmem:[%s1610_s5 + $0xc4] sm:$0xf] }
  0x1b   : > { %v1333_v59 = vor.u32 %v1460_v56, %v1332_v55  ;;  %v1342_v61 = vld [vmem:[%s1610_s5 + $0xc8] sm:$0xf0]  ;;  %v1276_v63 = vld [vmem:[%s1610_s5 + $0x40] sm:$0xf]  ;;  %v1446_v0 = vld [vmem:[%s1610_s5 + $0x44] sm:$0xf0] }
  0x1c   : > { %v1345_v62 = vor.u32 %v1461_v60, %v1342_v61  ;;  %v1447_v1 = vld [vmem:[%s1610_s5 + $0x54] sm:$0xf]  ;;  %v1286_v2 = vld [vmem:[%s1610_s5 + $0x58] sm:$0xf0]  ;;  %v1340_v3 = vld [vmem:[%s1610_s5 + $0xc0] sm:$0xf]  ;;  %v1277_v5 = vor.u32 %v1446_v0, %v1276_v63 }
  0x1d   : > { %1418 = vmatmul.msk.bf16.vlgmr.msra.gmra.mxu1 %vm580_vm0, %v1249_v10  ;;  %633 = vmatpush.bf16.msra.mxu0 %v1472_v11  ;;  %v1462_v4 = vld [vmem:[%s1610_s5 + $0xc4] sm:$0xf0]  ;;  %v1289_v6 = vor.u32 %v1447_v1, %v1286_v2  ;;  %v1463_v8 = vld [vmem:[%s1610_s5 + $0xd4] sm:$0xf]  ;;  %v1350_v9 = vld [vmem:[%s1610_s5 + $0xd8] sm:$0xf0] }
  0x1e   : > { %1485 = vmatpush.bf16.msra.mxu2 %v1472_v11  ;;  %1427 = vmatmul.msk.bf16.vlgmr.msra.gmra.mxu3 %vm580_vm0, %v1321_v26  ;;  %v1341_v7 = vor.u32 %v1462_v4, %v1340_v3  ;;  %v1353_v10 = vor.u32 %v1463_v8, %v1350_v9  ;;  %v1284_v11 = vld [vmem:[%s1610_s5 + $0x50] sm:$0xf]  ;;  %v1464_v16 = vld [vmem:[%s1610_s5 + $0xd4] sm:$0xf0]  ;;  %v1465_v20 = vld [vmem:[%s1610_s5 + $0xe4] sm:$0xf] }
  0x1f   : > { %v1348_v15 = vld [vmem:[%s1610_s5 + $0xd0] sm:$0xf]  ;;  %v1292_v24 = vld [vmem:[%s1610_s5 + $0x60] sm:$0xf]  ;;  %v1450_v25 = vld [vmem:[%s1610_s5 + $0x64] sm:$0xf0] }
  0x20   : > { %v1349_v19 = vor.u32 %v1464_v16, %v1348_v15  ;;  %v1451_v26 = vld [vmem:[%s1610_s5 + $0x74] sm:$0xf]  ;;  %v1302_v27 = vld [vmem:[%s1610_s5 + $0x78] sm:$0xf0]  ;;  %v1356_v28 = vld [vmem:[%s1610_s5 + $0xe0] sm:$0xf]  ;;  %v1293_v30 = vor.u32 %v1450_v25, %v1292_v24 }
  0x21   : > { %634 = vmatpush.bf16.msra.mxu0 %v1471_v12  ;;  %v1466_v29 = vld [vmem:[%s1610_s5 + $0xe4] sm:$0xf0]  ;;  %v1305_v31 = vor.u32 %v1451_v26, %v1302_v27  ;;  %v1300_v36 = vld [vmem:[%s1610_s5 + $0x70] sm:$0xf]  ;;  %v1452_v37 = vld [vmem:[%s1610_s5 + $0x74] sm:$0xf0] }
  0x22   : > { %1486 = vmatpush.bf16.msra.mxu2 %v1471_v12  ;;  %v1448_v12 = vld [vmem:[%s1610_s5 + $0x54] sm:$0xf0]  ;;  %v1357_v32 = vor.u32 %v1466_v29, %v1356_v28  ;;  %v1310_v39 = vld [vmem:[%s1610_s5 + $0x88] sm:$0xf0]  ;;  %v1364_v40 = vld [vmem:[%s1610_s5 + $0xf0] sm:$0xf]  ;;  %v1301_v42 = vor.u32 %v1452_v37, %v1300_v36 }
  0x23   : > { %v1285_v17 = vor.u32 %v1448_v12, %v1284_v11  ;;  %v1468_v41 = vld [vmem:[%s1610_s5 + $0xf4] sm:$0xf0] }
  0x25   : > { %635 = vmatpush.bf16.msra.mxu0 %v1470_v13 }
  0x26   : > { %1487 = vmatpush.bf16.msra.mxu2 %v1470_v13  ;;  %v1449_v13 = vld [vmem:[%s1610_s5 + $0x64] sm:$0xf] }
  0x29   : > { %636 = vmatpush.bf16.msra.mxu0 %v1469_v14 }
  0x2a   : > { %1488 = vmatpush.bf16.msra.mxu2 %v1469_v14  ;;  %v1294_v14 = vld [vmem:[%s1610_s5 + $0x68] sm:$0xf0] }
  0x2b   : > { %v1297_v18 = vor.u32 %v1449_v13, %v1294_v14 }
  0x2c   : > { %637 = vmatmul.bf16.vlgmr.msra.gmra.mxu0 %v1245_v21  ;;  %v1358_v21 = vld [vmem:[%s1610_s5 + $0xe8] sm:$0xf0] }
  0x2d   : > { %1419 = vmatmul.msk.bf16.gmra.mxu1 %vm580_vm0, %v1257_v22  ;;  %677 = vmatmul.bf16.vlgmr.msra.gmra.mxu2 %v1309_v23  ;;  %v1361_v22 = vor.u32 %v1465_v20, %v1358_v21  ;;  %v1542_v23 = vmov 0.0  }
  0x2e   : > { %1428 = vmatmul.msk.bf16.gmra.mxu3 %vm580_vm0, %v1329_v38  ;;  %244 = vst.msk [vmem:[#allocation2] sm:$0xff] %vm243_vm1, %v1542_v23  ;;  %v1453_v38 = vld [vmem:[%s1610_s5 + $0x84] sm:$0xf] }
  0x2f   : > { %245 = vst.msk [vmem:[#allocation2 + $0x8] sm:$0xff] %vm243_vm1, %v1542_v23  ;;  %v1313_v43 = vor.u32 %v1453_v38, %v1310_v39 }
  0x30   : > { %246 = vst.msk [vmem:[#allocation2 + $0x10] sm:$0xff] %vm243_vm1, %v1542_v23 }
  0x31   : > { %247 = vst.msk [vmem:[#allocation2 + $0x18] sm:$0xff] %vm243_vm1, %v1542_v23 }
  0x32   : > { %248 = vst.msk [vmem:[#allocation2 + $0x20] sm:$0xff] %vm243_vm1, %v1542_v23 }
  0x33   : > { %249 = vst.msk [vmem:[#allocation2 + $0x28] sm:$0xff] %vm243_vm1, %v1542_v23 }
  0x34   : > { %250 = vst.msk [vmem:[#allocation2 + $0x30] sm:$0xff] %vm243_vm1, %v1542_v23 }
  0x35   : > { %251 = vst.msk [vmem:[#allocation2 + $0x38] sm:$0xff] %vm243_vm1, %v1542_v23 }
  0x36   : > { %252 = vst.msk [vmem:[#allocation2 + $0x40] sm:$0xff] %vm243_vm1, %v1542_v23  ;;  %v277_v53 = vld [vmem:[#allocation2 + $0x8] sm:$0xff] }
  0x37   : > { %253 = vst.msk [vmem:[#allocation2 + $0x48] sm:$0xff] %vm243_vm1, %v1542_v23  ;;  %v278_v61 = vld [vmem:[#allocation2 + $0x10] sm:$0xff] }
  0x38   : > { %254 = vst.msk [vmem:[#allocation2 + $0x50] sm:$0xff] %vm243_vm1, %v1542_v23  ;;  %v279_v13 = vld [vmem:[#allocation2 + $0x18] sm:$0xff] }
  0x39   : > { %255 = vst.msk [vmem:[#allocation2 + $0x58] sm:$0xff] %vm243_vm1, %v1542_v23  ;;  %v280_v29 = vld [vmem:[#allocation2 + $0x20] sm:$0xff] }
  0x3a   : > { %256 = vst.msk [vmem:[#allocation2 + $0x60] sm:$0xff] %vm243_vm1, %v1542_v23 }
  0x3b   : > { %257 = vst.msk [vmem:[#allocation2 + $0x68] sm:$0xff] %vm243_vm1, %v1542_v23 }
  0x3c   : > { %642 = vmatmul.bf16.gmra.mxu0 %v1253_v33  ;;  %v1467_v33 = vld [vmem:[%s1610_s5 + $0xf4] sm:$0xf]  ;;  %258 = vst.msk [vmem:[#allocation2 + $0x70] sm:$0xff] %vm243_vm1, %v1542_v23 }
  0x3d   : > { %1420 = vmatmul.msk.bf16.gmra.mxu1 %vm580_vm0, %v1265_v34  ;;  %682 = vmatmul.bf16.gmra.mxu2 %v1317_v35  ;;  %v1366_v34 = vld [vmem:[%s1610_s5 + $0xf8] sm:$0xf0]  ;;  %259 = vst.msk [vmem:[#allocation2 + $0x78] sm:$0xff] %vm243_vm1, %v1542_v23 }
  0x3e   : > { %1429 = vmatmul.msk.bf16.gmra.mxu3 %vm580_vm0, %v1337_v50  ;;  %v1369_v35 = vor.u32 %v1467_v33, %v1366_v34  ;;  %260 = vst.msk [vmem:[#allocation2 + $0x80] sm:$0xff] %vm243_vm1, %v1542_v23 }
  0x3f   : > { %261 = vst.msk [vmem:[#allocation2 + $0x88] sm:$0xff] %vm243_vm1, %v1542_v23 }
  0x40   : > { %262 = vst.msk [vmem:[#allocation2 + $0x90] sm:$0xff] %vm243_vm1, %v1542_v23 }
  0x41   : > { %263 = vst.msk [vmem:[#allocation2 + $0x98] sm:$0xff] %vm243_vm1, %v1542_v23 }
  0x42   : > { %264 = vst.msk [vmem:[#allocation2 + $0xa0] sm:$0xff] %vm243_vm1, %v1542_v23 }
  0x43   : > { %265 = vst.msk [vmem:[#allocation2 + $0xa8] sm:$0xff] %vm243_vm1, %v1542_v23 }
  0x44   : > { %266 = vst.msk [vmem:[#allocation2 + $0xb0] sm:$0xff] %vm243_vm1, %v1542_v23 }
  0x45   : > { %267 = vst.msk [vmem:[#allocation2 + $0xb8] sm:$0xff] %vm243_vm1, %v1542_v23 }
  0x46   : > { %268 = vst.msk [vmem:[#allocation2 + $0xc0] sm:$0xff] %vm243_vm1, %v1542_v23 }
  0x47   : > { %269 = vst.msk [vmem:[#allocation2 + $0xc8] sm:$0xff] %vm243_vm1, %v1542_v23 }
  0x48   : > { %270 = vst.msk [vmem:[#allocation2 + $0xd0] sm:$0xff] %vm243_vm1, %v1542_v23 }
  0x49   : > { %271 = vst.msk [vmem:[#allocation2 + $0xd8] sm:$0xff] %vm243_vm1, %v1542_v23 }
  0x4a   : > { %272 = vst.msk [vmem:[#allocation2 + $0xe0] sm:$0xff] %vm243_vm1, %v1542_v23 }
  0x4b   : > { %273 = vst.msk [vmem:[#allocation2 + $0xe8] sm:$0xff] %vm243_vm1, %v1542_v23 }
  0x4c   : > { %647 = vmatmul.bf16.gmra.mxu0 %v1261_v45  ;;  %v1365_v45 = vor.u32 %v1468_v41, %v1364_v40  ;;  %274 = vst.msk [vmem:[#allocation2 + $0xf0] sm:$0xff] %vm243_vm1, %v1542_v23 }
  0x4d   : > { %1421 = vmatmul.msk.bf16.gmra.mxu1 %vm580_vm0, %v1273_v46  ;;  %687 = vmatmul.bf16.gmra.mxu2 %v1325_v47  ;;  %275 = vst.msk [vmem:[#allocation2 + $0xf8] sm:$0xff] %vm243_vm1, %v1542_v23  ;;  %v276_v47 = vld [vmem:[#allocation2] sm:$0xff] }
  0x4e   : > { %1430 = vmatmul.msk.bf16.gmra.mxu3 %vm580_vm0, %v1345_v62 }
  0x5c   : > { %652 = vmatmul.bf16.gmra.mxu0 %v1269_v57 }
  0x5d   : > { %1422 = vmatmul.msk.bf16.gmra.mxu1 %vm580_vm0, %v1281_v58  ;;  %692 = vmatmul.bf16.gmra.mxu2 %v1333_v59 }
  0x5e   : > { %1431 = vmatmul.msk.bf16.gmra.mxu3 %vm580_vm0, %v1353_v10  ;;  %v294_v10 = vld [vmem:[#allocation2 + $0x90] sm:$0xff] }
  0x6c   : > { %657 = vmatmul.bf16.gmra.mxu0 %v1277_v5 }
  0x6d   : > { %1423 = vmatmul.msk.bf16.gmra.mxu1 %vm580_vm0, %v1289_v6  ;;  %697 = vmatmul.bf16.gmra.mxu2 %v1341_v7 }
  0x6e   : > { %1432 = vmatmul.msk.bf16.gmra.mxu3 %vm580_vm0, %v1361_v22 }
  0x7c   : > { %662 = vmatmul.bf16.gmra.mxu0 %v1285_v17 }
  0x7d   : > { %1424 = vmatmul.msk.bf16.gmra.mxu1 %vm580_vm0, %v1297_v18  ;;  %702 = vmatmul.bf16.gmra.mxu2 %v1349_v19 }
  0x7e   : > { %1433 = vmatmul.msk.bf16.gmra.mxu3 %vm580_vm0, %v1369_v35 }
  0x8c   : > { %667 = vmatmul.bf16.gmra.mxu0 %v1293_v30 }
  0x8d   : > { %1425 = vmatmul.msk.bf16.gmra.mxu1 %vm580_vm0, %v1305_v31  ;;  %707 = vmatmul.bf16.gmra.mxu2 %v1357_v32  ;;  %v295_v32 = vld [vmem:[#allocation2 + $0x98] sm:$0xff] }
  0x9a   : > { %v727_v44 = vpop.f32.mrf.mxu1 }
  0x9c   : > { %672 = vmatmul.bf16.gmra.mxu0 %v1301_v42 }
  0x9d   : > { %1426 = vmatmul.msk.bf16.gmra.mxu1 %vm580_vm0, %v1313_v43  ;;  %712 = vmatmul.bf16.gmra.mxu2 %v1365_v45 }
  0xa1   : > { %v772_v57 = vpop.f32.mrf.mxu3 }
  0xa2   : > { %v729_v46 = vpop.f32.mrf.mxu1 }
  0xa9   : > { %v638_v48 = vpop.f32.mrf.mxu0  ;;  %v774_v1 = vpop.f32.mrf.mxu3 }
  0xaa   : > { %v732_v49 = vpop.f32.mrf.mxu1  ;;  %v728_v50 = vadd.f32 %v727_v44, %v638_v48  ;;  %v296_v44 = vld [vmem:[#allocation2 + $0xa0] sm:$0xff] }
  0xac   : > { %v807_v51 = vadd.f32 %v728_v50, %v276_v47 }
  0xae   : > { %840 = vst.msk [vmem:[#allocation2] sm:$0xff] %vm243_vm1, %v807_v51 }
  0xb0   : > { %v1743_v52 = vpop.f32.mrf.mxu2 }
  0xb1   : > { %v640_v54 = vpop.f32.mrf.mxu0  ;;  %v777_v19 = vpop.f32.mrf.mxu3 }
  0xb2   : > { %v734_v55 = vpop.f32.mrf.mxu1  ;;  %v730_v56 = vadd.f32 %v729_v46, %v640_v54  ;;  %v281_v46 = vld [vmem:[#allocation2 + $0x28] sm:$0xff] }
  0xb4   : > { %v808_v58 = vadd.f32 %v730_v56, %v277_v53 }
  0xb5   : > { %v875_v59 = vld [vmem:[#allocation2] sm:$0xff] }
  0xb6   : > { %907 = vst.msk [vmem:[%s1750_s26] sm:$0xff] %vm243_vm1, %v875_v59  ;;  %v1008_v3 = vmul.f32 %v875_v59, %v875_v59  ;;  %v939_v5 = vsel %vm243_vm1, %v875_v59, 0.0 }
  0xb7   : > { %841 = vst.msk [vmem:[#allocation2 + $0x8] sm:$0xff] %vm243_vm1, %v808_v58 }
  0xb8   : > { %v1755_v60 = vpop.f32.mrf.mxu2  ;;  %v1040_v11 = vsel %vm243_vm1, %v1008_v3, 0.0 }
  0xb9   : > { %v643_v62 = vpop.f32.mrf.mxu0  ;;  %v779_v35 = vpop.f32.mrf.mxu3 }
  0xba   : > { %v737_v63 = vpop.f32.mrf.mxu1  ;;  %v733_v0 = vadd.f32 %v732_v49, %v643_v62 }
  0xbc   : > { %v809_v2 = vadd.f32 %v733_v0, %v278_v61 }
  0xbe   : > { %v876_v4 = vld [vmem:[#allocation2 + $0x8] sm:$0xff]  ;;  %842 = vst.msk [vmem:[#allocation2 + $0x10] sm:$0xff] %vm243_vm1, %v809_v2 }
  0xbf   : > { %908 = vst.msk [vmem:[%s1750_s26 + $0x8] sm:$0xff] %vm243_vm1, %v876_v4  ;;  %v940_v6 = vsel %vm243_vm1, %v876_v4, 0.0  ;;  %v1009_v7 = vmul.f32 %v876_v4, %v876_v4  ;;  %v297_v4 = vld [vmem:[#allocation2 + $0xa8] sm:$0xff] }
  0xc0   : > { %v941_v8 = vadd.f32 %v940_v6, %v939_v5  ;;  %v683_v9 = vpop.f32.mrf.mxu2 }
  0xc1   : > { %v1041_v12 = vsel %vm243_vm1, %v1009_v7, 0.0  ;;  %v645_v14 = vpop.f32.mrf.mxu0  ;;  %v773_v16 = vadd.f32 %v772_v57, %v683_v9  ;;  %v782_v53 = vpop.f32.mrf.mxu3 }
  0xc2   : > { %v739_v15 = vpop.f32.mrf.mxu1  ;;  %v1042_v17 = vadd.f32 %v1041_v12, %v1040_v11  ;;  %v735_v18 = vadd.f32 %v734_v55, %v645_v14  ;;  %v283_v14 = vld [vmem:[#allocation2 + $0x38] sm:$0xff] }
  0xc3   : > { %v825_v20 = vadd.f32 %v773_v16, %v294_v10 }
  0xc4   : > { %v810_v21 = vadd.f32 %v735_v18, %v279_v13  ;;  %v298_v13 = vld [vmem:[#allocation2 + $0xb0] sm:$0xff] }
  0xc5   : > { %v877_v22 = vld [vmem:[#allocation2 + $0x10] sm:$0xff]  ;;  %858 = vst.msk [vmem:[#allocation2 + $0x90] sm:$0xff] %vm243_vm1, %v825_v20 }
  0xc6   : > { %909 = vst.msk [vmem:[%s1750_s26 + $0x10] sm:$0xff] %vm243_vm1, %v877_v22  ;;  %v942_v23 = vsel %vm243_vm1, %v877_v22, 0.0  ;;  %v1010_v24 = vmul.f32 %v877_v22, %v877_v22 }
  0xc7   : > { %v943_v25 = vadd.f32 %v942_v23, %v941_v8  ;;  %843 = vst.msk [vmem:[#allocation2 + $0x18] sm:$0xff] %vm243_vm1, %v810_v21 }
  0xc8   : > { %v1043_v26 = vsel %vm243_vm1, %v1010_v24, 0.0  ;;  %v685_v27 = vpop.f32.mrf.mxu2 }
  0xc9   : > { %v1044_v28 = vadd.f32 %v1043_v26, %v1042_v17  ;;  %v648_v30 = vpop.f32.mrf.mxu0  ;;  %v775_v33 = vadd.f32 %v774_v1, %v685_v27  ;;  %v282_v1 = vld [vmem:[#allocation2 + $0x30] sm:$0xff]  ;;  %v784_v7 = vpop.f32.mrf.mxu3 }
  0xca   : > { %v742_v31 = vpop.f32.mrf.mxu1  ;;  %v738_v34 = vadd.f32 %v737_v63, %v648_v30 }
  0xcb   : > { %v826_v38 = vadd.f32 %v775_v33, %v295_v32 }
  0xcc   : > { %v811_v36 = vadd.f32 %v738_v34, %v280_v29  ;;  %v1770_v37 = vld [vmem:[#allocation2 + $0x90] sm:$0xff] }
  0xcd   : > { %925 = vst.msk [vmem:[%s1750_s26 + $0x90] sm:$0xff] %vm243_vm1, %v1770_v37 }
  0xce   : > { %v878_v39 = vld [vmem:[#allocation2 + $0x18] sm:$0xff]  ;;  %844 = vst.msk [vmem:[#allocation2 + $0x20] sm:$0xff] %vm243_vm1, %v811_v36 }
  0xcf   : > { %910 = vst.msk [vmem:[%s1750_s26 + $0x18] sm:$0xff] %vm243_vm1, %v878_v39  ;;  %v944_v40 = vsel %vm243_vm1, %v878_v39, 0.0  ;;  %v1011_v41 = vmul.f32 %v878_v39, %v878_v39  ;;  %v285_v39 = vld [vmem:[#allocation2 + $0x48] sm:$0xff] }
  0xd0   : > { %v945_v42 = vadd.f32 %v944_v40, %v943_v25  ;;  %859 = vst.msk [vmem:[#allocation2 + $0x98] sm:$0xff] %vm243_vm1, %v826_v38  ;;  %v688_v43 = vpop.f32.mrf.mxu2  ;;  %v284_v25 = vld [vmem:[#allocation2 + $0x40] sm:$0xff] }
  0xd1   : > { %v1045_v45 = vsel %vm243_vm1, %v1011_v41, 0.0  ;;  %v650_v47 = vpop.f32.mrf.mxu0  ;;  %v778_v49 = vadd.f32 %v777_v19, %v688_v43  ;;  %v787_v19 = vpop.f32.mrf.mxu3  ;;  %v300_v38 = vld [vmem:[#allocation2 + $0xc0] sm:$0xff] }
  0xd2   : > { %v744_v48 = vpop.f32.mrf.mxu1  ;;  %v1046_v50 = vadd.f32 %v1045_v45, %v1044_v28  ;;  %v740_v51 = vadd.f32 %v739_v15, %v650_v47  ;;  %v299_v28 = vld [vmem:[#allocation2 + $0xb8] sm:$0xff] }
  0xd3   : > { %v827_v54 = vadd.f32 %v778_v49, %v296_v44 }
  0xd4   : > { %v812_v55 = vadd.f32 %v740_v51, %v281_v46 }
  0xd5   : > { %v879_v56 = vld [vmem:[#allocation2 + $0x20] sm:$0xff]  ;;  %860 = vst.msk [vmem:[#allocation2 + $0xa0] sm:$0xff] %vm243_vm1, %v827_v54  ;;  %v301_v54 = vld [vmem:[#allocation2 + $0xc8] sm:$0xff] }
  0xd6   : > { %911 = vst.msk [vmem:[%s1750_s26 + $0x20] sm:$0xff] %vm243_vm1, %v879_v56  ;;  %v946_v57 = vsel %vm243_vm1, %v879_v56, 0.0  ;;  %v1012_v58 = vmul.f32 %v879_v56, %v879_v56 }
  0xd7   : > { %v1785_v59 = vadd.f32 %v946_v57, %v945_v42  ;;  %845 = vst.msk [vmem:[#allocation2 + $0x28] sm:$0xff] %vm243_vm1, %v812_v55  ;;  %v1788_v61 = vld [vmem:[#allocation2 + $0x98] sm:$0xff] }
  0xd8   : > { %v1047_v62 = vsel %vm243_vm1, %v1012_v58, 0.0  ;;  %926 = vst.msk [vmem:[%s1750_s26 + $0x98] sm:$0xff] %vm243_vm1, %v1788_v61  ;;  %v690_v63 = vpop.f32.mrf.mxu2 }
  0xd9   : > { %v1794_v0 = vadd.f32 %v1047_v62, %v1046_v50  ;;  %v653_v2 = vpop.f32.mrf.mxu0  ;;  %v780_v5 = vadd.f32 %v779_v35, %v690_v63  ;;  %v286_v50 = vld [vmem:[#allocation2 + $0x50] sm:$0xff] }
  0xda   : > { %v747_v3 = vpop.f32.mrf.mxu1  ;;  %v743_v6 = vadd.f32 %v742_v31, %v653_v2  ;;  %v789_v31 = vpop.f32.mrf.mxu3 }
  0xdb   : > { %v828_v10 = vadd.f32 %v780_v5, %v297_v4  ;;  %v287_v4 = vld [vmem:[#allocation2 + $0x58] sm:$0xff] }
  0xdc   : > { %v813_v8 = vadd.f32 %v743_v6, %v282_v1  ;;  %v1796_v9 = vld [vmem:[#allocation2 + $0xa0] sm:$0xff] }
  0xdd   : > { %927 = vst.msk [vmem:[%s1750_s26 + $0xa0] sm:$0xff] %vm243_vm1, %v1796_v9 }
  0xde   : > { %v1801_v11 = vld [vmem:[#allocation2 + $0x28] sm:$0xff]  ;;  %846 = vst.msk [vmem:[#allocation2 + $0x30] sm:$0xff] %vm243_vm1, %v813_v8 }
  0xdf   : > { %912 = vst.msk [vmem:[%s1750_s26 + $0x28] sm:$0xff] %vm243_vm1, %v1801_v11 }
  0xe0   : > { %861 = vst.msk [vmem:[#allocation2 + $0xa8] sm:$0xff] %vm243_vm1, %v828_v10  ;;  %v693_v12 = vpop.f32.mrf.mxu2 }
  0xe1   : > { %v655_v15 = vpop.f32.mrf.mxu0  ;;  %v783_v17 = vadd.f32 %v782_v53, %v693_v12 }
  0xe2   : > { %v749_v16 = vpop.f32.mrf.mxu1  ;;  %v745_v18 = vadd.f32 %v744_v48, %v655_v15  ;;  %v792_v46 = vpop.f32.mrf.mxu3 }
  0xe3   : > { %v829_v20 = vadd.f32 %v783_v17, %v298_v13  ;;  %v288_v17 = vld [vmem:[#allocation2 + $0x60] sm:$0xff] }
  0xe4   : > { %v814_v21 = vadd.f32 %v745_v18, %v283_v14 }
  0xe5   : > { %v1808_v22 = vld [vmem:[#allocation2 + $0x30] sm:$0xff]  ;;  %862 = vst.msk [vmem:[#allocation2 + $0xb0] sm:$0xff] %vm243_vm1, %v829_v20  ;;  %v303_v20 = vld [vmem:[#allocation2 + $0xd8] sm:$0xff] }
  0xe6   : > { %913 = vst.msk [vmem:[%s1750_s26 + $0x30] sm:$0xff] %vm243_vm1, %v1808_v22 }
  0xe7   : > { %847 = vst.msk [vmem:[#allocation2 + $0x38] sm:$0xff] %vm243_vm1, %v814_v21  ;;  %v1815_v23 = vld [vmem:[#allocation2 + $0xa8] sm:$0xff] }
  0xe8   : > { %928 = vst.msk [vmem:[%s1750_s26 + $0xa8] sm:$0xff] %vm243_vm1, %v1815_v23  ;;  %v695_v24 = vpop.f32.mrf.mxu2 }
  0xe9   : > { %v658_v26 = vpop.f32.mrf.mxu0  ;;  %v785_v29 = vadd.f32 %v784_v7, %v695_v24 }
  0xea   : > { %v752_v27 = vpop.f32.mrf.mxu1  ;;  %v748_v30 = vadd.f32 %v747_v3, %v658_v26  ;;  %v794_v1 = vpop.f32.mrf.mxu3  ;;  %v302_v3 = vld [vmem:[#allocation2 + $0xd0] sm:$0xff] }
  0xeb   : > { %v830_v34 = vadd.f32 %v785_v29, %v299_v28 }
  0xec   : > { %v815_v32 = vadd.f32 %v748_v30, %v284_v25  ;;  %v1820_v33 = vld [vmem:[#allocation2 + $0xb0] sm:$0xff]  ;;  %v304_v30 = vld [vmem:[#allocation2 + $0xe0] sm:$0xff] }
  0xed   : > { %929 = vst.msk [vmem:[%s1750_s26 + $0xb0] sm:$0xff] %vm243_vm1, %v1820_v33 }
  0xee   : > { %v1825_v35 = vld [vmem:[#allocation2 + $0x38] sm:$0xff]  ;;  %848 = vst.msk [vmem:[#allocation2 + $0x40] sm:$0xff] %vm243_vm1, %v815_v32 }
  0xef   : > { %914 = vst.msk [vmem:[%s1750_s26 + $0x38] sm:$0xff] %vm243_vm1, %v1825_v35 }
  0xf0   : > { %863 = vst.msk [vmem:[#allocation2 + $0xb8] sm:$0xff] %vm243_vm1, %v830_v34  ;;  %v698_v36 = vpop.f32.mrf.mxu2 }
  0xf1   : > { %v660_v40 = vpop.f32.mrf.mxu0  ;;  %v788_v42 = vadd.f32 %v787_v19, %v698_v36 }
  0xf2   : > { %v754_v41 = vpop.f32.mrf.mxu1  ;;  %v750_v43 = vadd.f32 %v749_v16, %v660_v40  ;;  %v797_v16 = vpop.f32.mrf.mxu3 }
  0xf3   : > { %v831_v44 = vadd.f32 %v788_v42, %v300_v38 }
  0xf4   : > { %v816_v45 = vadd.f32 %v750_v43, %v285_v39  ;;  %v1013_v43 = vmul.f32 %v1801_v11, %v1801_v11 }
  0xf5   : > { %v1832_v47 = vld [vmem:[#allocation2 + $0x40] sm:$0xff]  ;;  %864 = vst.msk [vmem:[#allocation2 + $0xc0] sm:$0xff] %vm243_vm1, %v831_v44 }
  0xf6   : > { %915 = vst.msk [vmem:[%s1750_s26 + $0x40] sm:$0xff] %vm243_vm1, %v1832_v47 }
  0xf7   : > { %849 = vst.msk [vmem:[#allocation2 + $0x48] sm:$0xff] %vm243_vm1, %v816_v45  ;;  %v1839_v48 = vld [vmem:[#allocation2 + $0xb8] sm:$0xff] }
  0xf8   : > { %930 = vst.msk [vmem:[%s1750_s26 + $0xb8] sm:$0xff] %vm243_vm1, %v1839_v48  ;;  %v700_v49 = vpop.f32.mrf.mxu2 }
  0xf9   : > { %v663_v51 = vpop.f32.mrf.mxu0  ;;  %v790_v55 = vadd.f32 %v789_v31, %v700_v49  ;;  %v289_v31 = vld [vmem:[#allocation2 + $0x68] sm:$0xff]  ;;  %v1014_v49 = vmul.f32 %v1808_v22, %v1808_v22 }
  0xfa   : > { %v757_v53 = vpop.f32.mrf.mxu1  ;;  %v753_v56 = vadd.f32 %v752_v27, %v663_v51  ;;  %v799_v39 = vpop.f32.mrf.mxu3 }
  0xfb   : > { %v832_v62 = vadd.f32 %v790_v55, %v301_v54 }
  0xfc   : > { %v817_v57 = vadd.f32 %v753_v56, %v286_v50  ;;  %v1844_v58 = vld [vmem:[#allocation2 + $0xc0] sm:$0xff]  ;;  %v290_v50 = vld [vmem:[#allocation2 + $0x70] sm:$0xff] }
  0xfd   : > { %931 = vst.msk [vmem:[%s1750_s26 + $0xc0] sm:$0xff] %vm243_vm1, %v1844_v58 }
  0xfe   : > { %v1849_v63 = vld [vmem:[#allocation2 + $0x48] sm:$0xff]  ;;  %850 = vst.msk [vmem:[#allocation2 + $0x50] sm:$0xff] %vm243_vm1, %v817_v57 }
  0xff   : > { %916 = vst.msk [vmem:[%s1750_s26 + $0x48] sm:$0xff] %vm243_vm1, %v1849_v63 }
 0x100   : > { %865 = vst.msk [vmem:[#allocation2 + $0xc8] sm:$0xff] %vm243_vm1, %v832_v62  ;;  %v703_v2 = vpop.f32.mrf.mxu2  ;;  %v305_v62 = vld [vmem:[#allocation2 + $0xe8] sm:$0xff] }
 0x101   : > { %v665_v5 = vpop.f32.mrf.mxu0  ;;  %v793_v7 = vadd.f32 %v792_v46, %v703_v2  ;;  %v948_v46 = vsel %vm243_vm1, %v1801_v11, 0.0  ;;  %v950_v2 = vsel %vm243_vm1, %v1808_v22, 0.0  ;;  %v1015_v11 = vmul.f32 %v1825_v35, %v1825_v35 }
 0x102   : > { %v759_v6 = vpop.f32.mrf.mxu1  ;;  %v755_v8 = vadd.f32 %v754_v41, %v665_v5 }
 0x103   : > { %v833_v10 = vadd.f32 %v793_v7, %v302_v3  ;;  %v949_v3 = vadd.f32 %v948_v46, %v1785_v59  ;;  %v802_v7 = vpop.f32.mrf.mxu3 }
 0x104   : > { %v818_v12 = vadd.f32 %v755_v8, %v287_v4  ;;  %v1051_v8 = vsel %vm243_vm1, %v1014_v49, 0.0 }
 0x105   : > { %v1856_v13 = vld [vmem:[#allocation2 + $0x50] sm:$0xff]  ;;  %866 = vst.msk [vmem:[#allocation2 + $0xd0] sm:$0xff] %vm243_vm1, %v833_v10  ;;  %v1016_v10 = vmul.f32 %v1832_v47, %v1832_v47 }
 0x106   : > { %917 = vst.msk [vmem:[%s1750_s26 + $0x50] sm:$0xff] %vm243_vm1, %v1856_v13 }
 0x107   : > { %851 = vst.msk [vmem:[#allocation2 + $0x58] sm:$0xff] %vm243_vm1, %v818_v12  ;;  %v1863_v14 = vld [vmem:[#allocation2 + $0xc8] sm:$0xff]  ;;  %v951_v12 = vadd.f32 %v950_v2, %v949_v3 }
 0x108   : > { %932 = vst.msk [vmem:[%s1750_s26 + $0xc8] sm:$0xff] %vm243_vm1, %v1863_v14  ;;  %v705_v15 = vpop.f32.mrf.mxu2 }
 0x109   : > { %v668_v18 = vpop.f32.mrf.mxu0  ;;  %v795_v21 = vadd.f32 %v794_v1, %v705_v15  ;;  %v1049_v1 = vsel %vm243_vm1, %v1013_v43, 0.0 }
 0x10a   : > { %v762_v19 = vpop.f32.mrf.mxu1  ;;  %v758_v24 = vadd.f32 %v757_v53, %v668_v18  ;;  %v292_v53 = vld [vmem:[#allocation2 + $0x80] sm:$0xff]  ;;  %v1050_v59 = vadd.f32 %v1049_v1, %v1794_v0  ;;  %v306_v0 = vld [vmem:[#allocation2 + $0xf0] sm:$0xff] }
 0x10b   : > { %v834_v27 = vadd.f32 %v795_v21, %v303_v20  ;;  %v1055_v21 = vsel %vm243_vm1, %v1016_v10, 0.0 }
 0x10c   : > { %v819_v25 = vadd.f32 %v758_v24, %v288_v17  ;;  %v1868_v26 = vld [vmem:[#allocation2 + $0xd0] sm:$0xff]  ;;  %v954_v17 = vsel %vm243_vm1, %v1832_v47, 0.0  ;;  %v1052_v18 = vadd.f32 %v1051_v8, %v1050_v59  ;;  %v956_v24 = vsel %vm243_vm1, %v1849_v63, 0.0  ;;  %v291_v47 = vld [vmem:[#allocation2 + $0x78] sm:$0xff] }
 0x10d   : > { %933 = vst.msk [vmem:[%s1750_s26 + $0xd0] sm:$0xff] %vm243_vm1, %v1868_v26 }
 0x10e   : > { %v1873_v28 = vld [vmem:[#allocation2 + $0x58] sm:$0xff]  ;;  %852 = vst.msk [vmem:[#allocation2 + $0x60] sm:$0xff] %vm243_vm1, %v819_v25  ;;  %v1018_v25 = vmul.f32 %v1856_v13, %v1856_v13 }
 0x10f   : > { %918 = vst.msk [vmem:[%s1750_s26 + $0x58] sm:$0xff] %vm243_vm1, %v1873_v28 }
 0x110   : > { %867 = vst.msk [vmem:[#allocation2 + $0xd8] sm:$0xff] %vm243_vm1, %v834_v27  ;;  %v708_v29 = vpop.f32.mrf.mxu2 }
 0x111   : > { %v670_v32 = vpop.f32.mrf.mxu0  ;;  %v798_v36 = vadd.f32 %v797_v16, %v708_v29  ;;  %v1053_v16 = vsel %vm243_vm1, %v1015_v11, 0.0 }
 0x112   : > { %v764_v34 = vpop.f32.mrf.mxu1  ;;  %v760_v38 = vadd.f32 %v759_v6, %v670_v32 }
 0x113   : > { %v835_v40 = vadd.f32 %v798_v36, %v304_v30 }
 0x114   : > { %v820_v41 = vadd.f32 %v760_v38, %v289_v31  ;;  %v1054_v31 = vadd.f32 %v1053_v16, %v1052_v18  ;;  %v293_v38 = vld [vmem:[#allocation2 + $0x88] sm:$0xff] }
 0x115   : > { %v1880_v42 = vld [vmem:[#allocation2 + $0x60] sm:$0xff]  ;;  %868 = vst.msk [vmem:[#allocation2 + $0xe0] sm:$0xff] %vm243_vm1, %v835_v40 }
 0x116   : > { %919 = vst.msk [vmem:[%s1750_s26 + $0x60] sm:$0xff] %vm243_vm1, %v1880_v42 }
 0x117   : > { %853 = vst.msk [vmem:[#allocation2 + $0x68] sm:$0xff] %vm243_vm1, %v820_v41  ;;  %v1889_v44 = vld [vmem:[#allocation2 + $0xd8] sm:$0xff]  ;;  %v1019_v41 = vmul.f32 %v1873_v28, %v1873_v28 }
 0x118   : > { %934 = vst.msk [vmem:[%s1750_s26 + $0xd8] sm:$0xff] %vm243_vm1, %v1889_v44  ;;  %v710_v45 = vpop.f32.mrf.mxu2 }
 0x119   : > { %v673_v51 = vpop.f32.mrf.mxu0  ;;  %v800_v55 = vadd.f32 %v799_v39, %v710_v45  ;;  %v1056_v45 = vadd.f32 %v1055_v21, %v1054_v31 }
 0x11a   : > { %v767_v54 = vpop.f32.mrf.mxu1  ;;  %v763_v56 = vadd.f32 %v762_v19, %v673_v51 }
 0x11b   : > { %v768_v57 = vadd.f32 %v767_v54, %v1743_v52  ;;  %v952_v52 = vsel %vm243_vm1, %v1825_v35, 0.0  ;;  %v836_v22 = vadd.f32 %v800_v55, %v305_v62  ;;  %v1017_v35 = vmul.f32 %v1849_v63, %v1849_v63  ;;  %v804_v55 = vpop.f32.mrf.mxu3 }
 0x11c   : > { %v821_v4 = vadd.f32 %v763_v56, %v290_v50  ;;  %v1905_v6 = vld [vmem:[#allocation2 + $0xe0] sm:$0xff]  ;;  %v953_v19 = vadd.f32 %v952_v52, %v951_v12  ;;  %v958_v63 = vsel %vm243_vm1, %v1856_v13, 0.0  ;;  %v1059_v50 = vsel %vm243_vm1, %v1018_v25, 0.0 }
 0x11d   : > { %v823_v5 = vadd.f32 %v768_v57, %v292_v53  ;;  %935 = vst.msk [vmem:[%s1750_s26 + $0xe0] sm:$0xff] %vm243_vm1, %v1905_v6  ;;  %v1057_v40 = vsel %vm243_vm1, %v1017_v35, 0.0  ;;  %v1061_v56 = vsel %vm243_vm1, %v1019_v41, 0.0  ;;  %v962_v57 = vsel %vm243_vm1, %v1880_v42, 0.0 }
 0x11e   : > { %v888_v15 = vld [vmem:[#allocation2 + $0x68] sm:$0xff]  ;;  %854 = vst.msk [vmem:[#allocation2 + $0x70] sm:$0xff] %vm243_vm1, %v821_v4  ;;  %v955_v32 = vadd.f32 %v954_v17, %v953_v19  ;;  %v1058_v13 = vadd.f32 %v1057_v40, %v1056_v45  ;;  %v307_v4 = vld [vmem:[#allocation2 + $0xf8] sm:$0xff]  ;;  %v1027_v45 = vmul.f32 %v1788_v61, %v1788_v61 }
 0x11f   : > { %920 = vst.msk [vmem:[%s1750_s26 + $0x68] sm:$0xff] %vm243_vm1, %v888_v15  ;;  %v1021_v62 = vmul.f32 %v888_v15, %v888_v15 }
 0x120   : > { %856 = vst.msk [vmem:[#allocation2 + $0x80] sm:$0xff] %vm243_vm1, %v823_v5  ;;  %v713_v20 = vpop.f32.mrf.mxu2  ;;  %v957_v46 = vadd.f32 %v956_v24, %v955_v32  ;;  %v1060_v1 = vadd.f32 %v1059_v50, %v1058_v13 }
 0x121   : > { %v675_v27 = vpop.f32.mrf.mxu0  ;;  %869 = vst.msk [vmem:[#allocation2 + $0xe8] sm:$0xff] %vm243_vm1, %v836_v22  ;;  %v803_v30 = vadd.f32 %v802_v7, %v713_v20  ;;  %v964_v7 = vsel %vm243_vm1, %v888_v15, 0.0  ;;  %v1065_v22 = vsel %vm243_vm1, %v1021_v62, 0.0 }
 0x122   : > { %v769_v29 = vpop.f32.mrf.mxu1  ;;  %v765_v36 = vadd.f32 %v764_v34, %v675_v27  ;;  %v960_v34 = vsel %vm243_vm1, %v1873_v28, 0.0  ;;  %v959_v54 = vadd.f32 %v958_v63, %v957_v46  ;;  %v1062_v52 = vadd.f32 %v1061_v56, %v1060_v1 }
 0x123   : > { %v770_v39 = vadd.f32 %v769_v29, %v1755_v60  ;;  %v837_v43 = vadd.f32 %v803_v30, %v306_v0  ;;  %v1020_v60 = vmul.f32 %v1880_v42, %v1880_v42  ;;  %v1029_v56 = vmul.f32 %v1815_v23, %v1815_v23 }
 0x124   : > { %v822_v49 = vadd.f32 %v765_v36, %v291_v47  ;;  %v961_v2 = vadd.f32 %v960_v34, %v959_v54  ;;  %v1077_v54 = vsel %vm243_vm1, %v1027_v45, 0.0  ;;  %v1030_v1 = vmul.f32 %v1820_v33, %v1820_v33 }
 0x125   : > { %v889_v51 = vld [vmem:[#allocation2 + $0x70] sm:$0xff]  ;;  %v824_v53 = vadd.f32 %v770_v39, %v293_v38  ;;  %870 = vst.msk [vmem:[#allocation2 + $0xf0] sm:$0xff] %vm243_vm1, %v837_v43  ;;  %v1063_v5 = vsel %vm243_vm1, %v1020_v60, 0.0  ;;  %v1026_v38 = vmul.f32 %v1770_v37, %v1770_v37  ;;  %v974_v43 = vsel %vm243_vm1, %v1770_v37, 0.0 }
 0x126   : > { %921 = vst.msk [vmem:[%s1750_s26 + $0x70] sm:$0xff] %vm243_vm1, %v889_v51  ;;  %v1022_v8 = vmul.f32 %v889_v51, %v889_v51  ;;  %v963_v10 = vadd.f32 %v962_v57, %v961_v2  ;;  %v966_v59 = vsel %vm243_vm1, %v889_v51, 0.0  ;;  %v1064_v16 = vadd.f32 %v1063_v5, %v1062_v52 }
 0x127   : > { %v891_v28 = vld [vmem:[#allocation2 + $0x80] sm:$0xff]  ;;  %855 = vst.msk [vmem:[#allocation2 + $0x78] sm:$0xff] %vm243_vm1, %v822_v49  ;;  %v1075_v60 = vsel %vm243_vm1, %v1026_v38, 0.0  ;;  %v976_v51 = vsel %vm243_vm1, %v1788_v61, 0.0  ;;  %v1028_v37 = vmul.f32 %v1796_v9, %v1796_v9  ;;  %v980_v61 = vsel %vm243_vm1, %v1815_v23, 0.0 }
 0x128   : > { %923 = vst.msk [vmem:[%s1750_s26 + $0x80] sm:$0xff] %vm243_vm1, %v891_v28  ;;  %v1951_v11 = vld [vmem:[#allocation2 + $0xe8] sm:$0xff]  ;;  %v715_v3 = vpop.f32.mrf.mxu2  ;;  %v965_v17 = vadd.f32 %v964_v7, %v963_v10  ;;  %v1067_v15 = vsel %vm243_vm1, %v1022_v8, 0.0  ;;  %v1066_v18 = vadd.f32 %v1065_v22, %v1064_v16  ;;  %v1024_v0 = vmul.f32 %v891_v28, %v891_v28 }
 0x129   : > { %857 = vst.msk [vmem:[#allocation2 + $0x88] sm:$0xff] %vm243_vm1, %v824_v53  ;;  %v805_v42 = vadd.f32 %v804_v55, %v715_v3  ;;  %v970_v29 = vsel %vm243_vm1, %v891_v28, 0.0  ;;  %v978_v55 = vsel %vm243_vm1, %v1796_v9, 0.0  ;;  %v1079_v28 = vsel %vm243_vm1, %v1028_v37, 0.0 }
 0x12a   : > { %936 = vst.msk [vmem:[%s1750_s26 + $0xe8] sm:$0xff] %vm243_vm1, %v1951_v11  ;;  %v967_v19 = vadd.f32 %v966_v59, %v965_v17  ;;  %v1068_v25 = vadd.f32 %v1067_v15, %v1066_v18  ;;  %v1071_v39 = vsel %vm243_vm1, %v1024_v0, 0.0  ;;  %v982_v9 = vsel %vm243_vm1, %v1820_v33, 0.0 }
 0x12b   : > { %v838_v12 = vadd.f32 %v805_v42, %v307_v4  ;;  %v1081_v4 = vsel %vm243_vm1, %v1029_v56, 0.0  ;;  %v1031_v5 = vmul.f32 %v1839_v48, %v1839_v48  ;;  %v1083_v42 = vsel %vm243_vm1, %v1030_v1, 0.0 }
 0x12c   : > { %v1961_v35 = vld [vmem:[#allocation2 + $0xf0] sm:$0xff]  ;;  %v984_v23 = vsel %vm243_vm1, %v1839_v48, 0.0  ;;  %v1032_v52 = vmul.f32 %v1844_v58, %v1844_v58  ;;  %v986_v33 = vsel %vm243_vm1, %v1844_v58, 0.0  ;;  %v988_v48 = vsel %vm243_vm1, %v1863_v14, 0.0 }
 0x12d   : > { %937 = vst.msk [vmem:[%s1750_s26 + $0xf0] sm:$0xff] %vm243_vm1, %v1961_v35  ;;  %v1085_v59 = vsel %vm243_vm1, %v1031_v5, 0.0  ;;  %v1034_v18 = vmul.f32 %v1868_v26, %v1868_v26  ;;  %v990_v58 = vsel %vm243_vm1, %v1868_v26, 0.0  ;;  %v994_v26 = vsel %vm243_vm1, %v1905_v6, 0.0 }
 0x12e   : > { %v890_v20 = vld [vmem:[#allocation2 + $0x78] sm:$0xff]  ;;  %871 = vst.msk [vmem:[#allocation2 + $0xf8] sm:$0xff] %vm243_vm1, %v838_v12  ;;  %v1033_v12 = vmul.f32 %v1863_v14, %v1863_v14  ;;  %v1087_v15 = vsel %vm243_vm1, %v1032_v52, 0.0  ;;  %v992_v14 = vsel %vm243_vm1, %v1889_v44, 0.0 }
 0x12f   : > { %922 = vst.msk [vmem:[%s1750_s26 + $0x78] sm:$0xff] %vm243_vm1, %v890_v20  ;;  %v968_v21 = vsel %vm243_vm1, %v890_v20, 0.0  ;;  %v1023_v24 = vmul.f32 %v890_v20, %v890_v20 }
 0x130   : > { %v969_v47 = vadd.f32 %v968_v21, %v967_v19  ;;  %v892_v27 = vld [vmem:[#allocation2 + $0x88] sm:$0xff]  ;;  %v1089_v0 = vsel %vm243_vm1, %v1033_v12, 0.0  ;;  %v1035_v21 = vmul.f32 %v1889_v44, %v1889_v44  ;;  %v996_v44 = vsel %vm243_vm1, %v1951_v11, 0.0 }
 0x131   : > { %v1069_v30 = vsel %vm243_vm1, %v1023_v24, 0.0  ;;  %924 = vst.msk [vmem:[%s1750_s26 + $0x88] sm:$0xff] %vm243_vm1, %v892_v27  ;;  %v1025_v31 = vmul.f32 %v892_v27, %v892_v27  ;;  %v972_v40 = vsel %vm243_vm1, %v892_v27, 0.0  ;;  %v1036_v27 = vmul.f32 %v1905_v6, %v1905_v6 }
 0x132   : > { %v1070_v32 = vadd.f32 %v1069_v30, %v1068_v25  ;;  %v971_v36 = vadd.f32 %v970_v29, %v969_v47  ;;  %v1091_v47 = vsel %vm243_vm1, %v1034_v18, 0.0  ;;  %v998_v6 = vsel %vm243_vm1, %v1961_v35, 0.0 }
 0x133   : > { %v1073_v46 = vsel %vm243_vm1, %v1025_v31, 0.0  ;;  %v1093_v31 = vsel %vm243_vm1, %v1035_v21, 0.0 }
 0x134   : > { %v973_v63 = vadd.f32 %v972_v40, %v971_v36  ;;  %v1072_v41 = vadd.f32 %v1071_v39, %v1070_v32  ;;  %v1037_v32 = vmul.f32 %v1951_v11, %v1951_v11  ;;  %v1095_v39 = vsel %vm243_vm1, %v1036_v27, 0.0 }
 0x135   : > { %v1984_v49 = vld [vmem:[#allocation2 + $0xf8] sm:$0xff]  ;;  %v1038_v40 = vmul.f32 %v1961_v35, %v1961_v35 }
 0x136   : > { %v975_v50 = vadd.f32 %v974_v43, %v973_v63  ;;  %v1074_v34 = vadd.f32 %v1073_v46, %v1072_v41  ;;  %938 = vst.msk [vmem:[%s1750_s26 + $0xf8] sm:$0xff] %vm243_vm1, %v1984_v49  ;;  %v1097_v43 = vsel %vm243_vm1, %v1037_v32, 0.0  ;;  %v1039_v45 = vmul.f32 %v1984_v49, %v1984_v49 }
 0x137   : > { %v1000_v11 = vsel %vm243_vm1, %v1984_v49, 0.0 }
 0x138   : > { %v977_v53 = vadd.f32 %v976_v51, %v975_v50  ;;  %v1076_v13 = vadd.f32 %v1075_v60, %v1074_v34  ;;  %v1099_v34 = vsel %vm243_vm1, %v1038_v40, 0.0  ;;  %v1101_v37 = vsel %vm243_vm1, %v1039_v45, 0.0 }
 0x13a   : > { %v979_v57 = vadd.f32 %v978_v55, %v977_v53  ;;  %v1078_v62 = vadd.f32 %v1077_v54, %v1076_v13 }
 0x13c   : > { %v981_v2 = vadd.f32 %v980_v61, %v979_v57  ;;  %v1080_v3 = vadd.f32 %v1079_v28, %v1078_v62 }
 0x13e   : > { %v983_v7 = vadd.f32 %v982_v9, %v981_v2  ;;  %v1082_v8 = vadd.f32 %v1081_v4, %v1080_v3 }
 0x140   : > { %v1084_v10 = vadd.f32 %v1083_v42, %v1082_v8  ;;  %v985_v22 = vadd.f32 %v984_v23, %v983_v7 }
 0x142   : > { %v987_v16 = vadd.f32 %v986_v33, %v985_v22  ;;  %v1086_v17 = vadd.f32 %v1085_v59, %v1084_v10 }
 0x144   : > { %v989_v19 = vadd.f32 %v988_v48, %v987_v16  ;;  %v1088_v20 = vadd.f32 %v1087_v15, %v1086_v17 }
 0x146   : > { %v991_v24 = vadd.f32 %v990_v58, %v989_v19  ;;  %v1090_v25 = vadd.f32 %v1089_v0, %v1088_v20 }
 0x148   : > { %v993_v29 = vadd.f32 %v992_v14, %v991_v24  ;;  %v1092_v30 = vadd.f32 %v1091_v47, %v1090_v25 }
 0x14a   : > { %v995_v36 = vadd.f32 %v994_v26, %v993_v29  ;;  %v1094_v38 = vadd.f32 %v1093_v31, %v1092_v30 }
 0x14c   : > { %v1096_v63 = vadd.f32 %v1095_v39, %v1094_v38  ;;  %v997_v41 = vadd.f32 %v996_v44, %v995_v36 }
 0x14e   : > { %v1098_v46 = vadd.f32 %v1097_v43, %v1096_v63  ;;  %v999_v50 = vadd.f32 %v998_v6, %v997_v41 }
 0x150   : > { %v1100_v60 = vadd.f32 %v1099_v34, %v1098_v46  ;;  %v1001_v51 = vadd.f32 %v1000_v11, %v999_v50 }
 0x152   : > { %v1002_v53 = vrot.slane %v1001_v51, 4  ;;  %v1102_v13 = vadd.f32 %v1101_v37, %v1100_v60 }
 0x154   : > { %v1003_v54 = vadd.f32 %v1002_v53, %v1001_v51  ;;  %v1103_v35 = vrot.slane %v1102_v13, 4 }
 0x156   : > { %v1004_v55 = vrot.slane %v1003_v54, 2  ;;  %v1104_v56 = vadd.f32 %v1103_v35, %v1102_v13 }
 0x158   : > { %v1005_v57 = vadd.f32 %v1004_v55, %v1003_v54  ;;  %v1105_v62 = vrot.slane %v1104_v56, 2 }
 0x15a   : > { %v1006_v28 = vrot.slane %v1005_v57, 1  ;;  %v1106_v61 = vadd.f32 %v1105_v62, %v1104_v56 }
 0x15c   : > { %v1107_v1 = vrot.slane %v1106_v61, 1  ;;  %v1007_v49 = vadd.f32 %v1006_v28, %v1005_v57 }
 0x15e   : > { %v1108_v2 = vadd.f32 %v1107_v1, %v1106_v61 }
 0x160   : > { %v1110_v3 = vsel %vm1109_vm2, %v1007_v49, %v1108_v2 }
 0x161   : > { %1112 = vst.msk [vmem:[%s237_s28] sm:$0x3] %vm1111_vm3, %v1110_v3 }
 0x162 PF: > { %s14_s14 = sadd.s32 1, %s1540_s14   ;;  %s2071_s12 = smov %s1536_s13 }
 0x163   : > { %p11_p6 = scmp.ge.s32.totalorder %s14_s14, 4   ;;  %s2072_s13 = smov %s2074_s15 }
 0x165   :  { %13 = sbr.rel (!%p11_p6) target bundleno = 2 (0x2), region = 81 }

// kernel: magic_module_forward.35
= control target key start
LH: loop header
LB: loop body
LE: loop exit
PB: predicated region body
PF: predicated region fallthrough
CT: control target
= control target key end

     0   :  { %8 = vsyncpa [#allocation3], 0  ;;  %s892_s0 = inlined_call_operand.vmem [shape: f32[512,32], index: 0, kind: input, shape index: {}]   ;;  %s893_s1 = inlined_call_operand.vmem [shape: f32[1,32], index: 1, kind: input, shape index: {}]   ;;  %s894_s2 = inlined_call_operand.vmem [shape: f32[1,32], index: 2, kind: input, shape index: {}]   ;;  %s895_s3 = inlined_call_operand.hbm [shape: f32[512,32], index: 3, kind: output, shape index: {}]  }
   0x1   :  { %10 = vsyncpa [#allocation3 + $0x1], 0  ;;  %s625_s12 = smov 0   ;;  %s627_s13 = smov 0  }
   0x2   :  { %s629_s14 = smov 0   ;;  %s631_s15 = smov 0  }
   0x3 LB: > { %s646_s16 = sadd.s32 4294967295, %s601_s15   ;;  %s483_s17 = sadd.s32 4294967294, %s601_s15   ;;  %s601_s15 = sphi %s631_s15, %s901_s15   ;;  %s597_s14 = sphi %s629_s14, %s900_s14   ;;  %s593_s13 = sphi %s627_s13, %s899_s13   ;;  %s589_s12 = sphi %s625_s12, %s898_s12  }
   0x4   : > { %s650_s18 = sadd.s32 1, %s601_s15   ;;  %s91_s19 = sadd.s32 1, %s597_s14 }
   0x5   : > { %s88_s20 = ssub.s32 %s601_s15, %s650_s18  ;;  %p101_p0 = scmp.ne.s32.totalorder %s597_s14, %s593_s13 }
   0x6   : > { %p89_p1 = scmp.eq.s32.totalorder %s88_s20, 0  ;;  %p102_p2 = scmp.eq.s32.totalorder %s646_s16, 1 }
   0x7   : > { %p107_p3 = scmp.ne.s32.totalorder %s593_s13, %s589_s12  ;;  %p108_p4 = scmp.eq.s32.totalorder %s483_s17, 1 }
   0x8   : > { %s661_s21 = scalar_select %p89_p1, %s597_s14, %s91_s19  }
   0x9   : > { %p663_p5 = por %p102_p2, %p101_p0  ;;  %p667_p6 = por %p108_p4, %p107_p3 }
   0xa   : > { %p486_p7 = scmp.ge.s32.totalorder %s601_s15, 1  ;;  %p141_p8 = scmp.lt.s32.totalorder %s601_s15, 3 }
   0xc   : > { %p142_p9 = pnand %p486_p7, %p141_p8 }
   0xd   : > { %s488_s24 = sshll.u32 (!%p142_p9), %s646_s16, 5  ;;  %s162_s27 = sand.u32 (!%p142_p9), 1, %s593_s13  }
   0xe   : > { %145 = sbr.rel (%p142_p9) target bundleno = 70 (0x46), region = 32  ;;  %p166_p10 = scmp.lt.s32.totalorder (!%p142_p9), %s488_s24, 63 }
   0xf   : > { %s695_s7 = sshll.u32 (!%p142_p9), %s162_s27, 8  ;;  %s495_s9 = sshll.u32 (!%p142_p9), %s646_s16, 8 }
  0x10   : > { %s721_s8 = scalar_lea.vmem (!%p142_p9), [#allocation2], %s695_s7  ;;  %s417_s16 = scalar_lea.hbm (!%p142_p9), %s895_s3, %s495_s9 }
  0x11   : > { %s418_s17 = sshll.u32 (!%p142_p9), %s721_s8, 4  ;;  %s420_s19 = sshll.u32 (!%p142_p9), %s417_s16, 4  ;;  %s419_s17 = int_to_ptr.vmem [resolvable:$true] %s418_s17  ;;  %s421_s19 = int_to_ptr.hbm [resolvable:$true] %s420_s19 }
  0x12   : > { %s406_s20 = scalar_lea.sflag (!%p142_p9), [#allocation3], %s162_s27  ;;  %s559_s29 = scalar_lea.hbm (!%p142_p9), %s895_s3, 512 }
  0x13   : > { %s903_s24 = smov (!%p166_p10, %s488_s24), 63  ;;  %v677_v0 = vld [vmem:[%s893_s1] ss:$0 sm:$0xff]  ;;  %vm372_vm0 = vcmask 261120  }
  0x14   : > { %s489_s28 = sshll.u32 %s903_s24, 3  ;;  %v688_v1 = vld [vmem:[%s894_s2] ss:$0 sm:$0xff]  ;;  %s553_s24 = sshra.s32 %s421_s19, 4  ;;  %s554_s24 = int_to_ptr.hbm [resolvable:$true] %s553_s24 }
  0x15   : > { %s683_s4 = scalar_lea.vmem %s892_s0, %s489_s28  ;;  %s555_s25 = scalar_lea.hbm %s554_s24, 256 }
  0x16   : > { %v172_v2 = vld [vmem:[%s683_s4] sm:$0xff]  ;;  %v173_v3 = vld [vmem:[%s683_s4 + $0x8] sm:$0xff]  ;;  %v174_v4 = vld [vmem:[%s683_s4 + $0x10] sm:$0xff]  ;;  %p556_p11 = scmp.ne.s32.totalorder %s554_s24, %s555_s25  ;;  %p560_p0 = scmp.lt.s32.totalorder %s554_s24, %s895_s3 }
  0x17   : > { %v208_v5 = vmul.f32 %v677_v0, %v172_v2  ;;  %v209_v6 = vmul.f32 %v677_v0, %v173_v3  ;;  %v210_v7 = vmul.f32 %v677_v0, %v174_v4  ;;  %v175_v8 = vld [vmem:[%s683_s4 + $0x18] sm:$0xff]  ;;  %v176_v9 = vld [vmem:[%s683_s4 + $0x20] sm:$0xff]  ;;  %v177_v10 = vld [vmem:[%s683_s4 + $0x28] sm:$0xff]  ;;  %p561_p1 = scmp.lt.s32.totalorder %s559_s29, %s555_s25 }
  0x18   : > { %v211_v11 = vmul.f32 %v677_v0, %v175_v8  ;;  %v212_v12 = vmul.f32 %v677_v0, %v176_v9  ;;  %v213_v13 = vmul.f32 %v677_v0, %v177_v10  ;;  %v178_v14 = vld [vmem:[%s683_s4 + $0x30] sm:$0xff]  ;;  %v179_v15 = vld [vmem:[%s683_s4 + $0x38] sm:$0xff]  ;;  %v180_v24 = vld [vmem:[%s683_s4 + $0x40] sm:$0xff]  ;;  %p557_p12 = pnand %p556_p11, %p663_p5 }
  0x19   : > { %v244_v16 = vadd.f32 %v688_v1, %v208_v5  ;;  %v245_v17 = vadd.f32 %v688_v1, %v209_v6  ;;  %v246_v18 = vadd.f32 %v688_v1, %v210_v7  ;;  %v214_v19 = vmul.f32 %v677_v0, %v178_v14  ;;  %v181_v32 = vld [vmem:[%s683_s4 + $0x48] sm:$0xff]  ;;  %v182_v33 = vld [vmem:[%s683_s4 + $0x50] sm:$0xff]  ;;  %v183_v34 = vld [vmem:[%s683_s4 + $0x58] sm:$0xff]  ;;  %p562_p2 = por %p561_p1, %p560_p0 }
  0x1a   : > { %v247_v20 = vadd.f32 %v688_v1, %v211_v11  ;;  %v248_v21 = vadd.f32 %v688_v1, %v212_v12  ;;  %v249_v22 = vadd.f32 %v688_v1, %v213_v13  ;;  %v215_v23 = vmul.f32 %v677_v0, %v179_v15  ;;  %v184_v46 = vld [vmem:[%s683_s4 + $0x60] sm:$0xff]  ;;  %v185_v53 = vld [vmem:[%s683_s4 + $0x68] sm:$0xff]  ;;  %v186_v57 = vld [vmem:[%s683_s4 + $0x70] sm:$0xff]  ;;  %p558_p13 = pneg %p557_p12 }
  0x1b   : > { %vm276_vm1 = vcmp.ge.f32.partialorder %v244_v16, 0.0  ;;  %v308_v25 = vmul.f32 0.01, %v244_v16  ;;  %vm277_vm2 = vcmp.ge.f32.partialorder %v245_v17, 0.0  ;;  %v309_v26 = vmul.f32 0.01, %v245_v17 }
  0x1c   : > { %vm278_vm3 = vcmp.ge.f32.partialorder %v246_v18, 0.0  ;;  %v310_v27 = vmul.f32 0.01, %v246_v18  ;;  %vm279_vm4 = vcmp.ge.f32.partialorder %v247_v20, 0.0  ;;  %v311_v28 = vmul.f32 0.01, %v247_v20  ;;  %p563_p3 = pnand %p562_p2, %p558_p13 }
  0x1d   : > { %v340_v29 = vsel %vm276_vm1, %v244_v16, %v308_v25  ;;  %v341_v30 = vsel %vm277_vm2, %v245_v17, %v309_v26  ;;  %vm280_vm5 = vcmp.ge.f32.partialorder %v248_v21, 0.0  ;;  %v312_v31 = vmul.f32 0.01, %v248_v21  ;;  %v187_v58 = vld [vmem:[%s683_s4 + $0x78] sm:$0xff]  ;;  %v188_v61 = vld [vmem:[%s683_s4 + $0x80] sm:$0xff]  ;;  %v189_v7 = vld [vmem:[%s683_s4 + $0x88] sm:$0xff] }
  0x1e   : > { %373 = vst.msk [vmem:[%s721_s8] sm:$0xff] %vm372_vm0, %v340_v29  ;;  %v342_v35 = vsel %vm278_vm3, %v246_v18, %v310_v27  ;;  %v343_v36 = vsel %vm279_vm4, %v247_v20, %v311_v28  ;;  %vm281_vm6 = vcmp.ge.f32.partialorder %v249_v22, 0.0  ;;  %v313_v37 = vmul.f32 0.01, %v249_v22  ;;  %v190_v8 = vld [vmem:[%s683_s4 + $0x90] sm:$0xff]  ;;  %v192_v29 = vld [vmem:[%s683_s4 + $0xa0] sm:$0xff] }
  0x1f   : > { %374 = vst.msk [vmem:[%s721_s8 + $0x8] sm:$0xff] %vm372_vm0, %v341_v30  ;;  %v344_v38 = vsel %vm280_vm5, %v248_v21, %v312_v31  ;;  %v250_v39 = vadd.f32 %v688_v1, %v214_v19  ;;  %v251_v40 = vadd.f32 %v688_v1, %v215_v23  ;;  %v216_v41 = vmul.f32 %v677_v0, %v180_v24  ;;  %v193_v30 = vld [vmem:[%s683_s4 + $0xa8] sm:$0xff]  ;;  %v194_v31 = vld [vmem:[%s683_s4 + $0xb0] sm:$0xff] }
  0x20   : > { %375 = vst.msk [vmem:[%s721_s8 + $0x10] sm:$0xff] %vm372_vm0, %v342_v35  ;;  %v345_v42 = vsel %vm281_vm6, %v249_v22, %v313_v37  ;;  %v217_v43 = vmul.f32 %v677_v0, %v181_v32  ;;  %v218_v44 = vmul.f32 %v677_v0, %v182_v33  ;;  %v219_v45 = vmul.f32 %v677_v0, %v183_v34  ;;  %v191_v22 = vld [vmem:[%s683_s4 + $0x98] sm:$0xff] }
  0x21   : > { %376 = vst.msk [vmem:[%s721_s8 + $0x18] sm:$0xff] %vm372_vm0, %v343_v36  ;;  %vm282_vm7 = vcmp.ge.f32.partialorder %v250_v39, 0.0  ;;  %v314_v47 = vmul.f32 0.01, %v250_v39  ;;  %vm283_vm8 = vcmp.ge.f32.partialorder %v251_v40, 0.0  ;;  %v252_v48 = vadd.f32 %v688_v1, %v216_v41  ;;  %v195_v35 = vld [vmem:[%s683_s4 + $0xb8] sm:$0xff] }
  0x22   : > { %377 = vst.msk [vmem:[%s721_s8 + $0x20] sm:$0xff] %vm372_vm0, %v344_v38  ;;  %v315_v49 = vmul.f32 0.01, %v251_v40  ;;  %v253_v50 = vadd.f32 %v688_v1, %v217_v43  ;;  %v254_v51 = vadd.f32 %v688_v1, %v218_v44  ;;  %v255_v52 = vadd.f32 %v688_v1, %v219_v45  ;;  %v196_v36 = vld [vmem:[%s683_s4 + $0xc0] sm:$0xff] }
  0x23   : > { %378 = vst.msk [vmem:[%s721_s8 + $0x28] sm:$0xff] %vm372_vm0, %v345_v42  ;;  %v346_v54 = vsel %vm282_vm7, %v250_v39, %v314_v47  ;;  %vm284_vm9 = vcmp.ge.f32.partialorder %v252_v48, 0.0  ;;  %v316_v55 = vmul.f32 0.01, %v252_v48  ;;  %v220_v56 = vmul.f32 %v677_v0, %v184_v46 }
  0x24   : > { %379 = vst.msk [vmem:[%s721_s8 + $0x30] sm:$0xff] %vm372_vm0, %v346_v54  ;;  %v347_v59 = vsel %vm283_vm8, %v251_v40, %v315_v49  ;;  %vm285_vm10 = vcmp.ge.f32.partialorder %v253_v50, 0.0  ;;  %v317_v60 = vmul.f32 0.01, %v253_v50  ;;  %vm286_vm11 = vcmp.ge.f32.partialorder %v254_v51, 0.0  ;;  %v197_v40 = vld [vmem:[%s683_s4 + $0xc8] sm:$0xff] }
  0x25   : > { %380 = vst.msk [vmem:[%s721_s8 + $0x38] sm:$0xff] %vm372_vm0, %v347_v59  ;;  %v348_v62 = vsel %vm284_vm9, %v252_v48, %v316_v55  ;;  %v318_v63 = vmul.f32 0.01, %v254_v51  ;;  %vm287_vm12 = vcmp.ge.f32.partialorder %v255_v52, 0.0  ;;  %v319_v2 = vmul.f32 0.01, %v255_v52 }
  0x26   : > { %381 = vst.msk [vmem:[%s721_s8 + $0x40] sm:$0xff] %vm372_vm0, %v348_v62  ;;  %v349_v3 = vsel %vm285_vm10, %v253_v50, %v317_v60  ;;  %v256_v4 = vadd.f32 %v688_v1, %v220_v56  ;;  %v221_v5 = vmul.f32 %v677_v0, %v185_v53  ;;  %v222_v6 = vmul.f32 %v677_v0, %v186_v57  ;;  %v198_v56 = vld [vmem:[%s683_s4 + $0xd0] sm:$0xff]  ;;  %v199_v57 = vld [vmem:[%s683_s4 + $0xd8] sm:$0xff]  ;;  %v200_v62 = vld [vmem:[%s683_s4 + $0xe0] sm:$0xff] }
  0x27   : > { %382 = vst.msk [vmem:[%s721_s8 + $0x48] sm:$0xff] %vm372_vm0, %v349_v3  ;;  %v350_v9 = vsel %vm286_vm11, %v254_v51, %v318_v63  ;;  %v351_v10 = vsel %vm287_vm12, %v255_v52, %v319_v2  ;;  %v223_v11 = vmul.f32 %v677_v0, %v187_v58  ;;  %v224_v12 = vmul.f32 %v677_v0, %v188_v61  ;;  %v201_v63 = vld [vmem:[%s683_s4 + $0xe8] sm:$0xff] }
  0x28   : > { %383 = vst.msk [vmem:[%s721_s8 + $0x50] sm:$0xff] %vm372_vm0, %v350_v9  ;;  %vm288_vm13 = vcmp.ge.f32.partialorder %v256_v4, 0.0  ;;  %v320_v13 = vmul.f32 0.01, %v256_v4  ;;  %v257_v14 = vadd.f32 %v688_v1, %v221_v5  ;;  %v258_v15 = vadd.f32 %v688_v1, %v222_v6  ;;  %v202_v9 = vld [vmem:[%s683_s4 + $0xf0] sm:$0xff] }
  0x29   : > { %384 = vst.msk [vmem:[%s721_s8 + $0x58] sm:$0xff] %vm372_vm0, %v351_v10  ;;  %v259_v16 = vadd.f32 %v688_v1, %v223_v11  ;;  %v260_v17 = vadd.f32 %v688_v1, %v224_v12  ;;  %v225_v18 = vmul.f32 %v677_v0, %v189_v7  ;;  %v226_v19 = vmul.f32 %v677_v0, %v190_v8 }
  0x2a   : > { %v352_v20 = vsel %vm288_vm13, %v256_v4, %v320_v13  ;;  %vm289_vm14 = vcmp.ge.f32.partialorder %v257_v14, 0.0  ;;  %v321_v21 = vmul.f32 0.01, %v257_v14  ;;  %vm290_vm15 = vcmp.ge.f32.partialorder %v258_v15, 0.0 }
  0x2b   : > { %385 = vst.msk [vmem:[%s721_s8 + $0x60] sm:$0xff] %vm372_vm0, %v352_v20  ;;  %v322_v23 = vmul.f32 0.01, %v258_v15  ;;  %vm291_vm1 = vcmp.ge.f32.partialorder %v259_v16, 0.0  ;;  %v323_v24 = vmul.f32 0.01, %v259_v16  ;;  %v261_v25 = vadd.f32 %v688_v1, %v225_v18 }
  0x2c   : > { %v353_v26 = vsel %vm289_vm14, %v257_v14, %v321_v21  ;;  %vm292_vm2 = vcmp.ge.f32.partialorder %v260_v17, 0.0  ;;  %v324_v27 = vmul.f32 0.01, %v260_v17  ;;  %v262_v28 = vadd.f32 %v688_v1, %v226_v19  ;;  %v203_v14 = vld [vmem:[%s683_s4 + $0xf8] sm:$0xff] }
  0x2d   : > { %386 = vst.msk [vmem:[%s721_s8 + $0x68] sm:$0xff] %vm372_vm0, %v353_v26  ;;  %v354_v32 = vsel %vm290_vm15, %v258_v15, %v322_v23  ;;  %v355_v33 = vsel %vm291_vm1, %v259_v16, %v323_v24  ;;  %vm293_vm3 = vcmp.ge.f32.partialorder %v261_v25, 0.0  ;;  %v325_v34 = vmul.f32 0.01, %v261_v25 }
  0x2e   : > { %387 = vst.msk [vmem:[%s721_s8 + $0x70] sm:$0xff] %vm372_vm0, %v354_v32  ;;  %v356_v37 = vsel %vm292_vm2, %v260_v17, %v324_v27  ;;  %vm294_vm4 = vcmp.ge.f32.partialorder %v262_v28, 0.0  ;;  %v326_v38 = vmul.f32 0.01, %v262_v28  ;;  %v227_v39 = vmul.f32 %v677_v0, %v191_v22 }
  0x2f   : > { %388 = vst.msk [vmem:[%s721_s8 + $0x78] sm:$0xff] %vm372_vm0, %v355_v33  ;;  %v357_v41 = vsel %vm293_vm3, %v261_v25, %v325_v34  ;;  %v228_v42 = vmul.f32 %v677_v0, %v192_v29  ;;  %v229_v43 = vmul.f32 %v677_v0, %v193_v30  ;;  %v230_v44 = vmul.f32 %v677_v0, %v194_v31 }
  0x30   : > { %389 = vst.msk [vmem:[%s721_s8 + $0x80] sm:$0xff] %vm372_vm0, %v356_v37  ;;  %v358_v45 = vsel %vm294_vm4, %v262_v28, %v326_v38  ;;  %v263_v46 = vadd.f32 %v688_v1, %v227_v39  ;;  %v231_v47 = vmul.f32 %v677_v0, %v195_v35  ;;  %v232_v48 = vmul.f32 %v677_v0, %v196_v36 }
  0x31   : > { %390 = vst.msk [vmem:[%s721_s8 + $0x88] sm:$0xff] %vm372_vm0, %v357_v41  ;;  %v264_v49 = vadd.f32 %v688_v1, %v228_v42  ;;  %v265_v50 = vadd.f32 %v688_v1, %v229_v43  ;;  %v266_v51 = vadd.f32 %v688_v1, %v230_v44  ;;  %v233_v52 = vmul.f32 %v677_v0, %v197_v40 }
  0x32   : > { %391 = vst.msk [vmem:[%s721_s8 + $0x90] sm:$0xff] %vm372_vm0, %v358_v45  ;;  %vm295_vm5 = vcmp.ge.f32.partialorder %v263_v46, 0.0  ;;  %v327_v53 = vmul.f32 0.01, %v263_v46  ;;  %v267_v54 = vadd.f32 %v688_v1, %v231_v47  ;;  %v268_v55 = vadd.f32 %v688_v1, %v232_v48 }
  0x33   : > { %vm296_vm6 = vcmp.ge.f32.partialorder %v264_v49, 0.0  ;;  %v328_v58 = vmul.f32 0.01, %v264_v49  ;;  %vm297_vm7 = vcmp.ge.f32.partialorder %v265_v50, 0.0  ;;  %v329_v59 = vmul.f32 0.01, %v265_v50 }
  0x34   : > { %v359_v60 = vsel %vm295_vm5, %v263_v46, %v327_v53  ;;  %vm298_vm8 = vcmp.ge.f32.partialorder %v266_v51, 0.0  ;;  %v330_v61 = vmul.f32 0.01, %v266_v51  ;;  %vm299_vm9 = vcmp.ge.f32.partialorder %v267_v54, 0.0 }
  0x35   : > { %392 = vst.msk [vmem:[%s721_s8 + $0x98] sm:$0xff] %vm372_vm0, %v359_v60  ;;  %v360_v2 = vsel %vm296_vm6, %v264_v49, %v328_v58  ;;  %v361_v3 = vsel %vm297_vm7, %v265_v50, %v329_v59  ;;  %v331_v4 = vmul.f32 0.01, %v267_v54  ;;  %vm300_vm10 = vcmp.ge.f32.partialorder %v268_v55, 0.0 }
  0x36   : > { %393 = vst.msk [vmem:[%s721_s8 + $0xa0] sm:$0xff] %vm372_vm0, %v360_v2  ;;  %v362_v5 = vsel %vm298_vm8, %v266_v51, %v330_v61  ;;  %v332_v6 = vmul.f32 0.01, %v268_v55  ;;  %v269_v7 = vadd.f32 %v688_v1, %v233_v52  ;;  %v234_v8 = vmul.f32 %v677_v0, %v198_v56 }
  0x37   : > { %394 = vst.msk [vmem:[%s721_s8 + $0xa8] sm:$0xff] %vm372_vm0, %v361_v3  ;;  %v363_v10 = vsel %vm299_vm9, %v267_v54, %v331_v4  ;;  %v235_v11 = vmul.f32 %v677_v0, %v199_v57  ;;  %v236_v12 = vmul.f32 %v677_v0, %v200_v62  ;;  %v237_v13 = vmul.f32 %v677_v0, %v201_v63 }
  0x38   : > { %395 = vst.msk [vmem:[%s721_s8 + $0xb0] sm:$0xff] %vm372_vm0, %v362_v5  ;;  %v364_v15 = vsel %vm300_vm10, %v268_v55, %v332_v6  ;;  %vm301_vm11 = vcmp.ge.f32.partialorder %v269_v7, 0.0  ;;  %v333_v16 = vmul.f32 0.01, %v269_v7  ;;  %v270_v17 = vadd.f32 %v688_v1, %v234_v8 }
  0x39   : > { %396 = vst.msk [vmem:[%s721_s8 + $0xb8] sm:$0xff] %vm372_vm0, %v363_v10  ;;  %v271_v18 = vadd.f32 %v688_v1, %v235_v11  ;;  %v272_v19 = vadd.f32 %v688_v1, %v236_v12  ;;  %v273_v20 = vadd.f32 %v688_v1, %v237_v13  ;;  %v238_v21 = vmul.f32 %v677_v0, %v202_v9 }
  0x3a   : > { %397 = vst.msk [vmem:[%s721_s8 + $0xc0] sm:$0xff] %vm372_vm0, %v364_v15  ;;  %v365_v22 = vsel %vm301_vm11, %v269_v7, %v333_v16  ;;  %vm302_vm12 = vcmp.ge.f32.partialorder %v270_v17, 0.0  ;;  %v334_v23 = vmul.f32 0.01, %v270_v17  ;;  %v239_v24 = vmul.f32 %v677_v0, %v203_v14 }
  0x3b   : > { %398 = vst.msk [vmem:[%s721_s8 + $0xc8] sm:$0xff] %vm372_vm0, %v365_v22  ;;  %vm303_vm13 = vcmp.ge.f32.partialorder %v271_v18, 0.0  ;;  %v335_v25 = vmul.f32 0.01, %v271_v18  ;;  %vm304_vm14 = vcmp.ge.f32.partialorder %v272_v19, 0.0  ;;  %vm305_vm15 = vcmp.ge.f32.partialorder %v273_v20, 0.0 }
  0x3c   : > { %v366_v26 = vsel %vm302_vm12, %v270_v17, %v334_v23  ;;  %v336_v27 = vmul.f32 0.01, %v272_v19  ;;  %v337_v28 = vmul.f32 0.01, %v273_v20  ;;  %v274_v29 = vadd.f32 %v688_v1, %v238_v21 }
  0x3d   : > { %399 = vst.msk [vmem:[%s721_s8 + $0xd0] sm:$0xff] %vm372_vm0, %v366_v26  ;;  %v367_v0 = vsel %vm303_vm13, %v271_v18, %v335_v25  ;;  %v275_v30 = vadd.f32 %v688_v1, %v239_v24 }
  0x3e   : > { %400 = vst.msk [vmem:[%s721_s8 + $0xd8] sm:$0xff] %vm372_vm0, %v367_v0  ;;  %v368_v31 = vsel %vm304_vm14, %v272_v19, %v336_v27  ;;  %v369_v32 = vsel %vm305_vm15, %v273_v20, %v337_v28  ;;  %vm306_vm1 = vcmp.ge.f32.partialorder %v274_v29, 0.0  ;;  %v338_v33 = vmul.f32 0.01, %v274_v29 }
  0x3f   : > { %401 = vst.msk [vmem:[%s721_s8 + $0xe0] sm:$0xff] %vm372_vm0, %v368_v31  ;;  %vm307_vm2 = vcmp.ge.f32.partialorder %v275_v30, 0.0  ;;  %v339_v34 = vmul.f32 0.01, %v275_v30 }
  0x40   : > { %402 = vst.msk [vmem:[%s721_s8 + $0xe8] sm:$0xff] %vm372_vm0, %v369_v32  ;;  %v370_v35 = vsel %vm306_vm1, %v274_v29, %v338_v33 }
  0x41   : > { %403 = vst.msk [vmem:[%s721_s8 + $0xf0] sm:$0xff] %vm372_vm0, %v370_v35  ;;  %v371_v1 = vsel %vm307_vm2, %v275_v30, %v339_v34 }
  0x42   : > { %404 = vst.msk [vmem:[%s721_s8 + $0xf8] sm:$0xff] %vm372_vm0, %v371_v1 }
  0x43   : > { %566 = shalt.err (!%p563_p3)
}
  0x44   : > { %s603_s27 = smov 128   ;;  %s604_s5 = smov 8  }
  0x45   : > { %496 = dma.vmem_to_hbm [thread:$0]  (%p663_p5), %s419_s17, 4096, %s421_s19, %s406_s20, %s603_s27, %s603_s27, %s604_s5  }
  0x46 PF: > { %p502_p4 = scmp.ge.s32.totalorder %s601_s15, 2  ;;  %s435_s6 = sand.u32 1, %s589_s12  }
  0x47   : > { %s436_s7 = scalar_lea.sflag [#allocation3], %s435_s6 }
  0x48   : > { %p499_p7 = pnand %p502_p4, %p667_p6 }
  0x4a   : > { %p500_p8 = pneg %p499_p7 }
  0x4c   : > { %584 = dma.done.wait (%p500_p8), %s436_s7, 4096  }
  0x4d   : > { %586 = vsyncadd (%p500_p8), %s436_s7, 4294963200  ;;  %p13_p9 = scmp.ge.s32.totalorder %s650_s18, 4   ;;  %s898_s12 = smov %s593_s13 }
  0x4e   : > { %s899_s13 = smov %s597_s14  ;;  %s900_s14 = smov %s661_s21 }
  0x4f   : > { %s901_s15 = smov %s650_s18  ;;  %15 = sbr.rel (!%p13_p9) target bundleno = 3 (0x3), region = 67 }
  0x54   :  { %442 = vsyncpa [#allocation3], 1 }
  0x55   :  { %444 = vsyncpa [#allocation3 + $0x1], 1 }

// kernel: magic_module_forward.34
= control target key start
LH: loop header
LB: loop body
LE: loop exit
PB: predicated region body
PF: predicated region fallthrough
CT: control target
= control target key end

     0   :  { %s1942_s12 = smov 0   ;;  %s1944_s13 = smov 0   ;;  %s2495_s0 = inlined_call_operand.vmem [shape: bf16[512,288], index: 0, kind: input, shape index: {}]   ;;  %s2496_s1 = inlined_call_operand.vmem [shape: bf16[288,32], index: 1, kind: input, shape index: {}]   ;;  %s2497_s2 = inlined_call_operand.vmem [shape: f32[512,32], index: 2, kind: output, shape index: {0}]   ;;  %s2498_s3 = inlined_call_operand.vmem [shape: f32[2,2,32], index: 3, kind: output, shape index: {1}]  }
   0x1   :  { %s1946_s14 = smov 0  }
   0x2 LB: > { %s26_s15 = sadd.s32 1, %s1915_s13  ;;  %p1499_p0 = scmp.ge.s32.totalorder %s1919_s14, 1  ;;  %s1919_s14 = sphi %s1946_s14, %s14_s14   ;;  %s1915_s13 = sphi %s1944_s13, %s2500_s13   ;;  %s1911_s12 = sphi %s1942_s12, %s2499_s12  }
   0x3   : > { %p28_p1 = scmp.ge.s32.totalorder %s26_s15, 2  ;;  %p172_p2 = scmp.lt.s32.totalorder %s1919_s14, 3 }
   0x5   : > { %s2502_s15 = smov (%p28_p1, %s26_s15), 0  ;;  %p173_p3 = pnand %p1499_p0, %p172_p2 }
   0x6   : > { %s1500_s22 = sshll.u32 (!%p173_p3), %s1911_s12, 5  ;;  %p234_p5 = scmp.lt.s32.totalorder (!%p173_p3), %s1911_s12, 1 }
   0x7   : > { %176 = sbr.rel (%p173_p3) target bundleno = 410 (0x19a), region = 28  ;;  %p212_p4 = scmp.lt.s32.totalorder (!%p173_p3), %s1500_s22, 63 }
   0xc   : > { %v1842_v0 = vld [vmem:[%s2496_s1 + $0x38] sm:$0xff]  ;;  %v1973_v2 = vld [vmem:[%s2496_s1 + $0x88] sm:$0xff]  ;;  %v1841_v3 = vld [vmem:[%s2496_s1 + $0x30] sm:$0xff]  ;;  %s2504_s22 = smov (!%p212_p4, %s1500_s22), 63  ;;  %vm243_vm0 = vcmask 261120   ;;  %s2506_s12 = smov (!%p234_p5, %s1911_s12), 1 }
   0xd   : > { %v1968_v1 = vld [vmem:[%s2496_s1 + $0x78] sm:$0xff]  ;;  %805 = vmatpush.bf16.msra.mxu0 %v1842_v0  ;;  %1853 = vmatpush.bf16.msra.mxu3 %v1842_v0  ;;  %v1849_v4 = vld [vmem:[%s2496_s1 + $0x70] sm:$0xff]  ;;  %v1987_v5 = vld [vmem:[%s2496_s1 + $0x80] sm:$0xff]  ;;  %s1871_s29 = smul.u32 12, %s2504_s22  ;;  %s1503_s8 = sshll.u32 %s2504_s22, 3  ;;  %vm1373_vm1 = vcmask 1040384  }
   0xe   : > { %894 = vmatpush.bf16.msra.mxu1 %v1968_v1  ;;  %989 = vmatpush.bf16.msra.mxu2 %v1973_v2  ;;  %v1840_v6 = vld [vmem:[%s2496_s1 + $0x28] sm:$0xff]  ;;  %v1839_v11 = vld [vmem:[%s2496_s1 + $0x20] sm:$0xff]  ;;  %v1838_v13 = vld [vmem:[%s2496_s1 + $0x18] sm:$0xff]  ;;  %s2199_s16 = scalar_lea.vmem %s2497_s2, %s1503_s8  ;;  %s1504_s22 = sshll.u32 %s2506_s12, 1  ;;  %vm1375_vm2 = vcmask 254976  }
   0xf   : > { %v1848_v7 = vld [vmem:[%s2496_s1 + $0x68] sm:$0xff]  ;;  %s2002_s9 = scalar_lea.vmem %s2495_s0, %s1871_s29  ;;  %v1847_v12 = vld [vmem:[%s2496_s1 + $0x60] sm:$0xff]  ;;  %v1846_v14 = vld [vmem:[%s2496_s1 + $0x58] sm:$0xff]  ;;  %s237_s18 = scalar_lea.vmem %s2498_s3, %s1504_s22 }
  0x10   : > { %v1515_v8 = vld [vmem:[%s2002_s9 + $0x8] sm:$0xf]  ;;  %v1789_v9 = vld [vmem:[%s2002_s9 + $0x10] sm:$0xf0]  ;;  %v1527_v17 = vld [vmem:[%s2002_s9 + $0x20] sm:$0xf] }
  0x11   : > { %806 = vmatpush.bf16.msra.mxu0 %v1841_v3  ;;  %1854 = vmatpush.bf16.msra.mxu3 %v1841_v3  ;;  %v1516_v10 = vor.u32 %v1789_v9, %v1515_v8  ;;  %v1837_v15 = vld [vmem:[%s2496_s1 + $0x10] sm:$0xff]  ;;  %v1792_v18 = vld [vmem:[%s2002_s9 + $0x28] sm:$0xf0]  ;;  %v1835_v22 = vld [vmem:[%s2496_s1] sm:$0xff] }
  0x12   : > { %895 = vmatpush.bf16.msra.mxu1 %v1849_v4  ;;  %990 = vmatpush.bf16.msra.mxu2 %v1987_v5  ;;  %v1845_v16 = vld [vmem:[%s2496_s1 + $0x50] sm:$0xff]  ;;  %v1836_v19 = vld [vmem:[%s2496_s1 + $0x8] sm:$0xff]  ;;  %v1528_v21 = vor.u32 %v1792_v18, %v1527_v17  ;;  %v1507_v23 = vld [vmem:[%s2002_s9] sm:$0xf] }
  0x13   : > { %v1844_v20 = vld [vmem:[%s2496_s1 + $0x48] sm:$0xff]  ;;  %v1651_v25 = vld [vmem:[%s2002_s9 + $0x120] sm:$0xf]  ;;  %v1787_v28 = vld [vmem:[%s2002_s9 + $0x4] sm:$0xf] }
  0x14   : > { %v1788_v24 = vld [vmem:[%s2002_s9 + $0x8] sm:$0xf0]  ;;  %v1843_v27 = vld [vmem:[%s2496_s1 + $0x40] sm:$0xff]  ;;  %v1509_v29 = vld [vmem:[%s2002_s9 + $0xc] sm:$0xf0] }
  0x15   : > { %807 = vmatpush.bf16.msra.mxu0 %v1840_v6  ;;  %1855 = vmatpush.bf16.msra.mxu3 %v1840_v6  ;;  %v1824_v26 = vld [vmem:[%s2002_s9 + $0x128] sm:$0xf0]  ;;  %v1508_v30 = vor.u32 %v1788_v24, %v1507_v23  ;;  %v1512_v32 = vor.u32 %v1787_v28, %v1509_v29  ;;  %v1539_v33 = vld [vmem:[%s2002_s9 + $0x38] sm:$0xf]  ;;  %v1795_v34 = vld [vmem:[%s2002_s9 + $0x40] sm:$0xf0] }
  0x16   : > { %896 = vmatpush.bf16.msra.mxu1 %v1848_v7  ;;  %1769 = vmatmul.msk.bf16.vlgmr.msra.gmra.mxu2 %vm243_vm0, %v1516_v10  ;;  %v1652_v31 = vor.u32 %v1824_v26, %v1651_v25  ;;  %v1540_v35 = vor.u32 %v1795_v34, %v1539_v33  ;;  %v1519_v36 = vld [vmem:[%s2002_s9 + $0x18] sm:$0xf]  ;;  %v1791_v37 = vld [vmem:[%s2002_s9 + $0x20] sm:$0xf0]  ;;  %v1790_v40 = vld [vmem:[%s2002_s9 + $0x1c] sm:$0xf] }
  0x17   : > { %v1663_v38 = vld [vmem:[%s2002_s9 + $0x138] sm:$0xf]  ;;  %v1827_v39 = vld [vmem:[%s2002_s9 + $0x140] sm:$0xf0]  ;;  %v1521_v41 = vld [vmem:[%s2002_s9 + $0x24] sm:$0xf0]  ;;  %v1520_v42 = vor.u32 %v1791_v37, %v1519_v36 }
  0x18   : > { %v1664_v43 = vor.u32 %v1827_v39, %v1663_v38  ;;  %v1524_v44 = vor.u32 %v1790_v40, %v1521_v41  ;;  %v1551_v45 = vld [vmem:[%s2002_s9 + $0x50] sm:$0xf]  ;;  %v1798_v46 = vld [vmem:[%s2002_s9 + $0x58] sm:$0xf0]  ;;  %v1793_v52 = vld [vmem:[%s2002_s9 + $0x34] sm:$0xf] }
  0x19   : > { %808 = vmatpush.bf16.msra.mxu0 %v1839_v11  ;;  %1856 = vmatpush.bf16.msra.mxu3 %v1839_v11  ;;  %v1552_v47 = vor.u32 %v1798_v46, %v1551_v45  ;;  %v1531_v48 = vld [vmem:[%s2002_s9 + $0x30] sm:$0xf]  ;;  %v1794_v49 = vld [vmem:[%s2002_s9 + $0x38] sm:$0xf0]  ;;  %v1533_v53 = vld [vmem:[%s2002_s9 + $0x3c] sm:$0xf0] }
  0x1a   : > { %897 = vmatpush.bf16.msra.mxu1 %v1847_v12  ;;  %v1675_v50 = vld [vmem:[%s2002_s9 + $0x150] sm:$0xf]  ;;  %v1830_v51 = vld [vmem:[%s2002_s9 + $0x158] sm:$0xf0]  ;;  %v1532_v54 = vor.u32 %v1794_v49, %v1531_v48  ;;  %v1536_v56 = vor.u32 %v1793_v52, %v1533_v53  ;;  %v1563_v57 = vld [vmem:[%s2002_s9 + $0x68] sm:$0xf] }
  0x1b   : > { %v1676_v55 = vor.u32 %v1830_v51, %v1675_v50  ;;  %v1801_v58 = vld [vmem:[%s2002_s9 + $0x70] sm:$0xf0]  ;;  %v1543_v60 = vld [vmem:[%s2002_s9 + $0x48] sm:$0xf]  ;;  %v1796_v0 = vld [vmem:[%s2002_s9 + $0x4c] sm:$0xf] }
  0x1c   : > { %v1564_v59 = vor.u32 %v1801_v58, %v1563_v57  ;;  %v1797_v61 = vld [vmem:[%s2002_s9 + $0x50] sm:$0xf0]  ;;  %v1687_v62 = vld [vmem:[%s2002_s9 + $0x168] sm:$0xf]  ;;  %v1804_v6 = vld [vmem:[%s2002_s9 + $0x88] sm:$0xf0] }
  0x1d   : > { %809 = vmatpush.bf16.msra.mxu0 %v1838_v13  ;;  %1857 = vmatpush.bf16.msra.mxu3 %v1838_v13  ;;  %v1833_v63 = vld [vmem:[%s2002_s9 + $0x170] sm:$0xf0]  ;;  %v1555_v8 = vld [vmem:[%s2002_s9 + $0x60] sm:$0xf]  ;;  %v1800_v9 = vld [vmem:[%s2002_s9 + $0x68] sm:$0xf0] }
  0x1e   : > { %898 = vmatpush.bf16.msra.mxu1 %v1846_v14  ;;  %v1688_v3 = vor.u32 %v1833_v63, %v1687_v62  ;;  %v1823_v10 = vld [vmem:[%s2002_s9 + $0x124] sm:$0xf]  ;;  %v1653_v11 = vld [vmem:[%s2002_s9 + $0x12c] sm:$0xf0]  ;;  %v1587_v17 = vld [vmem:[%s2002_s9 + $0x98] sm:$0xf] }
  0x1f   : > { %v1557_v13 = vld [vmem:[%s2002_s9 + $0x6c] sm:$0xf0]  ;;  %v1807_v18 = vld [vmem:[%s2002_s9 + $0xa0] sm:$0xf0]  ;;  %v1665_v23 = vld [vmem:[%s2002_s9 + $0x144] sm:$0xf0] }
  0x20   : > { %v1802_v24 = vld [vmem:[%s2002_s9 + $0x7c] sm:$0xf]  ;;  %v1569_v25 = vld [vmem:[%s2002_s9 + $0x84] sm:$0xf0]  ;;  %v1599_v29 = vld [vmem:[%s2002_s9 + $0xb0] sm:$0xf] }
  0x21   : > { %810 = vmatpush.bf16.msra.mxu0 %v1837_v15  ;;  %1858 = vmatpush.bf16.msra.mxu3 %v1837_v15  ;;  %v1656_v15 = vor.u32 %v1823_v10, %v1653_v11  ;;  %v1572_v28 = vor.u32 %v1802_v24, %v1569_v25  ;;  %v1806_v33 = vld [vmem:[%s2002_s9 + $0x98] sm:$0xf0]  ;;  %v1829_v34 = vld [vmem:[%s2002_s9 + $0x154] sm:$0xf]  ;;  %v1581_v37 = vld [vmem:[%s2002_s9 + $0x9c] sm:$0xf0] }
  0x22   : > { %899 = vmatpush.bf16.msra.mxu1 %v1845_v16  ;;  %v1805_v36 = vld [vmem:[%s2002_s9 + $0x94] sm:$0xf]  ;;  %v1921_v38 = vmov 0.0   ;;  %v1591_v45 = vld [vmem:[%s2002_s9 + $0xa8] sm:$0xf] }
  0x23   : > { %244 = vst.msk [vmem:[#allocation2] sm:$0xff] %vm243_vm0, %v1921_v38  ;;  %v1584_v41 = vor.u32 %v1805_v36, %v1581_v37  ;;  %v1809_v46 = vld [vmem:[%s2002_s9 + $0xb0] sm:$0xf0]  ;;  %v1689_v48 = vld [vmem:[%s2002_s9 + $0x174] sm:$0xf0] }
  0x24   : > { %245 = vst.msk [vmem:[#allocation2 + $0x8] sm:$0xff] %vm243_vm0, %v1921_v38  ;;  %v1808_v49 = vld [vmem:[%s2002_s9 + $0xac] sm:$0xf]  ;;  %v1593_v50 = vld [vmem:[%s2002_s9 + $0xb4] sm:$0xf0]  ;;  %v1592_v51 = vor.u32 %v1809_v46, %v1591_v45 }
  0x25   : > { %811 = vmatpush.bf16.msra.mxu0 %v1836_v19  ;;  %1859 = vmatpush.bf16.msra.mxu3 %v1836_v19  ;;  %v1588_v19 = vor.u32 %v1807_v18, %v1587_v17  ;;  %246 = vst.msk [vmem:[#allocation2 + $0x10] sm:$0xff] %vm243_vm0, %v1921_v38  ;;  %v1831_v62 = vld [vmem:[%s2002_s9 + $0x160] sm:$0xf0]  ;;  %v1834_v24 = vld [vmem:[%s2002_s9 + $0x178] sm:$0xf0] }
  0x26   : > { %900 = vmatpush.bf16.msra.mxu1 %v1844_v20  ;;  %1770 = vmatmul.msk.bf16.gmra.mxu2 %vm243_vm0, %v1528_v21  ;;  %v1803_v21 = vld [vmem:[%s2002_s9 + $0x80] sm:$0xf0]  ;;  %247 = vst.msk [vmem:[#allocation2 + $0x18] sm:$0xff] %vm243_vm0, %v1921_v38  ;;  %v1814_v25 = vld [vmem:[%s2002_s9 + $0xdc] sm:$0xf] }
  0x27   : > { %248 = vst.msk [vmem:[#allocation2 + $0x20] sm:$0xff] %vm243_vm0, %v1921_v38  ;;  %v1811_v63 = vld [vmem:[%s2002_s9 + $0xc4] sm:$0xf] }
  0x28   : > { %249 = vst.msk [vmem:[#allocation2 + $0x28] sm:$0xff] %vm243_vm0, %v1921_v38 }
  0x29   : > { %812 = vmatpush.bf16.msra.mxu0 %v1835_v22  ;;  %1860 = vmatpush.bf16.msra.mxu3 %v1835_v22  ;;  %v1826_v22 = vld [vmem:[%s2002_s9 + $0x13c] sm:$0xf]  ;;  %250 = vst.msk [vmem:[#allocation2 + $0x30] sm:$0xff] %vm243_vm0, %v1921_v38 }
  0x2a   : > { %901 = vmatpush.bf16.msra.mxu1 %v1843_v27  ;;  %251 = vst.msk [vmem:[#allocation2 + $0x38] sm:$0xff] %vm243_vm0, %v1921_v38 }
  0x2b   : > { %252 = vst.msk [vmem:[#allocation2 + $0x40] sm:$0xff] %vm243_vm0, %v1921_v38 }
  0x2c   : > { %813 = vmatmul.bf16.vlgmr.msra.gmra.mxu0 %v1508_v30  ;;  %873 = vmatmul.bf16.vlgmr.msra.gmra.mxu3 %v1652_v31  ;;  %v1810_v30 = vld [vmem:[%s2002_s9 + $0xb8] sm:$0xf0]  ;;  %253 = vst.msk [vmem:[#allocation2 + $0x48] sm:$0xff] %vm243_vm0, %v1921_v38  ;;  %v278_v37 = vld [vmem:[#allocation2 + $0x10] sm:$0xff] }
  0x2d   : > { %1861 = vmatpush.bf16.msrb.mxu3 %v1968_v1  ;;  %902 = vmatmul.bf16.vlgmr.msra.gmra.mxu1 %v1512_v32  ;;  %v1545_v1 = vld [vmem:[%s2002_s9 + $0x54] sm:$0xf0]  ;;  %v1600_v31 = vor.u32 %v1810_v30, %v1599_v29  ;;  %v1579_v32 = vld [vmem:[%s2002_s9 + $0x90] sm:$0xf]  ;;  %254 = vst.msk [vmem:[#allocation2 + $0x50] sm:$0xff] %vm243_vm0, %v1921_v38 }
  0x2e   : > { %v1580_v39 = vor.u32 %v1806_v33, %v1579_v32  ;;  %255 = vst.msk [vmem:[#allocation2 + $0x58] sm:$0xff] %vm243_vm0, %v1921_v38 }
  0x2f   : > { %256 = vst.msk [vmem:[#allocation2 + $0x60] sm:$0xff] %vm243_vm0, %v1921_v38 }
  0x30   : > { %257 = vst.msk [vmem:[#allocation2 + $0x68] sm:$0xff] %vm243_vm0, %v1921_v38 }
  0x31   : > { %1862 = vmatpush.bf16.msrb.mxu3 %v1849_v4  ;;  %v1548_v4 = vor.u32 %v1796_v0, %v1545_v1  ;;  %258 = vst.msk [vmem:[#allocation2 + $0x70] sm:$0xff] %vm243_vm0, %v1921_v38  ;;  %v1605_v0 = vld [vmem:[%s2002_s9 + $0xcc] sm:$0xf0] }
  0x32   : > { %259 = vst.msk [vmem:[#allocation2 + $0x78] sm:$0xff] %vm243_vm0, %v1921_v38 }
  0x33   : > { %260 = vst.msk [vmem:[#allocation2 + $0x80] sm:$0xff] %vm243_vm0, %v1921_v38 }
  0x34   : > { %261 = vst.msk [vmem:[#allocation2 + $0x88] sm:$0xff] %vm243_vm0, %v1921_v38 }
  0x35   : > { %1863 = vmatpush.bf16.msrb.mxu3 %v1848_v7  ;;  %262 = vst.msk [vmem:[#allocation2 + $0x90] sm:$0xff] %vm243_vm0, %v1921_v38 }
  0x36   : > { %1771 = vmatmul.msk.bf16.gmra.mxu2 %vm243_vm0, %v1540_v35  ;;  %v1677_v35 = vld [vmem:[%s2002_s9 + $0x15c] sm:$0xf0]  ;;  %263 = vst.msk [vmem:[#allocation2 + $0x98] sm:$0xff] %vm243_vm0, %v1921_v38 }
  0x37   : > { %v1680_v40 = vor.u32 %v1829_v34, %v1677_v35  ;;  %264 = vst.msk [vmem:[#allocation2 + $0xa0] sm:$0xff] %vm243_vm0, %v1921_v38 }
  0x38   : > { %265 = vst.msk [vmem:[#allocation2 + $0xa8] sm:$0xff] %vm243_vm0, %v1921_v38 }
  0x39   : > { %1864 = vmatpush.bf16.msrb.mxu3 %v1847_v12  ;;  %v1799_v12 = vld [vmem:[%s2002_s9 + $0x64] sm:$0xf]  ;;  %266 = vst.msk [vmem:[#allocation2 + $0xb0] sm:$0xff] %vm243_vm0, %v1921_v38 }
  0x3a   : > { %267 = vst.msk [vmem:[#allocation2 + $0xb8] sm:$0xff] %vm243_vm0, %v1921_v38 }
  0x3b   : > { %268 = vst.msk [vmem:[#allocation2 + $0xc0] sm:$0xff] %vm243_vm0, %v1921_v38 }
  0x3c   : > { %818 = vmatmul.bf16.gmra.mxu0 %v1520_v42  ;;  %878 = vmatmul.bf16.gmra.mxu3 %v1664_v43  ;;  %v1611_v42 = vld [vmem:[%s2002_s9 + $0xc8] sm:$0xf]  ;;  %v1813_v43 = vld [vmem:[%s2002_s9 + $0xd0] sm:$0xf0]  ;;  %269 = vst.msk [vmem:[#allocation2 + $0xc8] sm:$0xff] %vm243_vm0, %v1921_v38 }
  0x3d   : > { %1865 = vmatpush.bf16.msrb.mxu3 %v1846_v14  ;;  %907 = vmatmul.bf16.gmra.mxu1 %v1524_v44  ;;  %v1556_v14 = vor.u32 %v1800_v9, %v1555_v8  ;;  %v1612_v44 = vor.u32 %v1813_v43, %v1611_v42  ;;  %270 = vst.msk [vmem:[#allocation2 + $0xd0] sm:$0xff] %vm243_vm0, %v1921_v38  ;;  %v276_v8 = vld [vmem:[#allocation2] sm:$0xff]  ;;  %v1822_v42 = vld [vmem:[%s2002_s9 + $0x118] sm:$0xf0] }
  0x3e   : > { %271 = vst.msk [vmem:[#allocation2 + $0xd8] sm:$0xff] %vm243_vm0, %v1921_v38 }
  0x3f   : > { %272 = vst.msk [vmem:[#allocation2 + $0xe0] sm:$0xff] %vm243_vm0, %v1921_v38 }
  0x40   : > { %273 = vst.msk [vmem:[#allocation2 + $0xe8] sm:$0xff] %vm243_vm0, %v1921_v38 }
  0x41   : > { %1866 = vmatpush.bf16.msrb.mxu3 %v1845_v16  ;;  %v1560_v16 = vor.u32 %v1799_v12, %v1557_v13  ;;  %274 = vst.msk [vmem:[#allocation2 + $0xf0] sm:$0xff] %vm243_vm0, %v1921_v38  ;;  %v1635_v12 = vld [vmem:[%s2002_s9 + $0xf8] sm:$0xf]  ;;  %v1819_v13 = vld [vmem:[%s2002_s9 + $0x100] sm:$0xf0] }
  0x42   : > { %275 = vst.msk [vmem:[#allocation2 + $0xf8] sm:$0xff] %vm243_vm0, %v1921_v38  ;;  %v1636_v17 = vor.u32 %v1819_v13, %v1635_v12 }
  0x45   : > { %1867 = vmatpush.bf16.msrb.mxu3 %v1844_v20  ;;  %v1567_v20 = vld [vmem:[%s2002_s9 + $0x78] sm:$0xf] }
  0x46   : > { %1772 = vmatmul.msk.bf16.gmra.mxu2 %vm243_vm0, %v1552_v47  ;;  %v1568_v26 = vor.u32 %v1803_v21, %v1567_v20  ;;  %v1832_v47 = vld [vmem:[%s2002_s9 + $0x16c] sm:$0xf]  ;;  %v1615_v20 = vld [vmem:[%s2002_s9 + $0xd8] sm:$0xf] }
  0x47   : > { %v1692_v52 = vor.u32 %v1832_v47, %v1689_v48 }
  0x49   : > { %1868 = vmatpush.bf16.msrb.mxu3 %v1843_v27  ;;  %v1668_v27 = vor.u32 %v1826_v22, %v1665_v23  ;;  %v1815_v22 = vld [vmem:[%s2002_s9 + $0xe0] sm:$0xf0]  ;;  %v1695_v23 = vld [vmem:[%s2002_s9 + $0x170] sm:$0xf] }
  0x4a   : > { %v1616_v30 = vor.u32 %v1815_v22, %v1615_v20 }
  0x4c   : > { %823 = vmatmul.bf16.gmra.mxu0 %v1532_v54  ;;  %883 = vmatmul.bf16.gmra.mxu3 %v1676_v55  ;;  %v1596_v54 = vor.u32 %v1808_v49, %v1593_v50  ;;  %v1623_v55 = vld [vmem:[%s2002_s9 + $0xe0] sm:$0xf] }
  0x4d   : > { %1869 = vmatpush.bf16.msra.mxu3 %v1973_v2  ;;  %912 = vmatmul.bf16.gmra.mxu1 %v1536_v56  ;;  %v1544_v2 = vor.u32 %v1797_v61, %v1543_v60  ;;  %v1816_v56 = vld [vmem:[%s2002_s9 + $0xe8] sm:$0xf0]  ;;  %v1683_v61 = vld [vmem:[%s2002_s9 + $0x158] sm:$0xf] }
  0x4e   : > { %v1624_v58 = vor.u32 %v1816_v56, %v1623_v55  ;;  %v1812_v60 = vld [vmem:[%s2002_s9 + $0xc8] sm:$0xf0]  ;;  %v279_v56 = vld [vmem:[#allocation2 + $0x18] sm:$0xff] }
  0x51   : > { %1870 = vmatpush.bf16.msra.mxu3 %v1987_v5  ;;  %v1575_v5 = vld [vmem:[%s2002_s9 + $0x80] sm:$0xf] }
  0x52   : > { %v1576_v7 = vor.u32 %v1804_v6, %v1575_v5  ;;  %v1608_v5 = vor.u32 %v1811_v63, %v1605_v0 }
  0x56   : > { %1773 = vmatmul.msk.bf16.gmra.mxu2 %vm243_vm0, %v1564_v59  ;;  %v1603_v59 = vld [vmem:[%s2002_s9 + $0xc0] sm:$0xf] }
  0x57   : > { %v1604_v1 = vor.u32 %v1812_v60, %v1603_v59  ;;  %v1627_v59 = vld [vmem:[%s2002_s9 + $0xf0] sm:$0xf]  ;;  %v1818_v60 = vld [vmem:[%s2002_s9 + $0xf8] sm:$0xf0] }
  0x5c   : > { %828 = vmatmul.bf16.gmra.mxu0 %v1544_v2  ;;  %888 = vmatmul.bf16.gmra.mxu3 %v1688_v3  ;;  %v1684_v2 = vor.u32 %v1831_v62, %v1683_v61  ;;  %v1817_v61 = vld [vmem:[%s2002_s9 + $0xf4] sm:$0xf]  ;;  %v1629_v62 = vld [vmem:[%s2002_s9 + $0xfc] sm:$0xf0] }
  0x5d   : > { %917 = vmatmul.bf16.gmra.mxu1 %v1548_v4 }
  0x66   : > { %1774 = vmatmul.msk.bf16.gmra.mxu2 %vm243_vm0, %v1576_v7 }
  0x6c   : > { %833 = vmatmul.bf16.gmra.mxu0 %v1556_v14  ;;  %962 = vmatmul.bf16.vlgmr.msrb.gmra.mxu3 %v1656_v15 }
  0x6d   : > { %922 = vmatmul.bf16.gmra.mxu1 %v1560_v16 }
  0x76   : > { %1775 = vmatmul.msk.bf16.gmra.mxu2 %vm243_vm0, %v1588_v19  ;;  %v277_v19 = vld [vmem:[#allocation2 + $0x8] sm:$0xff] }
  0x7c   : > { %838 = vmatmul.bf16.gmra.mxu0 %v1568_v26  ;;  %967 = vmatmul.bf16.gmra.mxu3 %v1668_v27  ;;  %v1617_v26 = vld [vmem:[%s2002_s9 + $0xe4] sm:$0xf0] }
  0x7d   : > { %927 = vmatmul.bf16.gmra.mxu1 %v1572_v28  ;;  %v1620_v34 = vor.u32 %v1814_v25, %v1617_v26 }
  0x86   : > { %1776 = vmatmul.msk.bf16.gmra.mxu2 %vm243_vm0, %v1600_v31  ;;  %v1696_v31 = vor.u32 %v1834_v24, %v1695_v23 }
  0x8c   : > { %843 = vmatmul.bf16.gmra.mxu0 %v1580_v39  ;;  %972 = vmatmul.bf16.gmra.mxu3 %v1680_v40 }
  0x8d   : > { %932 = vmatmul.bf16.gmra.mxu1 %v1584_v41  ;;  %v1647_v41 = vld [vmem:[%s2002_s9 + $0x110] sm:$0xf] }
  0x96   : > { %1777 = vmatmul.msk.bf16.gmra.mxu2 %vm243_vm0, %v1612_v44 }
  0x99   : > { %v992_v53 = vpop.f32.mrf.mxu2 }
  0x9c   : > { %848 = vmatmul.bf16.gmra.mxu0 %v1592_v51  ;;  %977 = vmatmul.bf16.gmra.mxu3 %v1692_v52  ;;  %v1648_v51 = vor.u32 %v1822_v42, %v1647_v41 }
  0x9d   : > { %937 = vmatmul.bf16.gmra.mxu1 %v1596_v54 }
  0xa1   : > { %v994_v57 = vpop.f32.mrf.mxu2 }
  0xa6   : > { %1778 = vmatmul.msk.bf16.gmra.mxu2 %vm243_vm0, %v1624_v58 }
  0xa9   : > { %v997_v3 = vpop.f32.mrf.mxu2  ;;  %v814_v4 = vpop.f32.mrf.mxu0 }
  0xaa   : > { %v903_v6 = vpop.f32.mrf.mxu1 }
  0xab   : > { %v904_v7 = vadd.f32 %v903_v6, %v814_v4 }
  0xac   : > { %853 = vmatmul.bf16.gmra.mxu0 %v1604_v1  ;;  %1783 = vmatmul.msk.bf16.vlgmr.msra.gmra.mxu3 %vm243_vm0, %v1684_v2  ;;  %v1628_v2 = vor.u32 %v1818_v60, %v1627_v59 }
  0xad   : > { %v993_v9 = vadd.f32 %v992_v53, %v904_v7  ;;  %942 = vmatmul.bf16.gmra.mxu1 %v1608_v5  ;;  %v1632_v7 = vor.u32 %v1817_v61, %v1629_v62 }
  0xaf   : > { %v1072_v10 = vadd.f32 %v993_v9, %v276_v8  ;;  %v2186_v11 = vpop.f32.mrf.mxu3 }
  0xb1   : > { %1104 = vst.msk [vmem:[#allocation2] sm:$0xff] %vm243_vm0, %v1072_v10  ;;  %v999_v14 = vpop.f32.mrf.mxu2  ;;  %v816_v15 = vpop.f32.mrf.mxu0 }
  0xb2   : > { %v905_v16 = vpop.f32.mrf.mxu1 }
  0xb3   : > { %v906_v18 = vadd.f32 %v905_v16, %v816_v15 }
  0xb5   : > { %v995_v21 = vadd.f32 %v994_v57, %v906_v18  ;;  %v1659_v18 = vld [vmem:[%s2002_s9 + $0x128] sm:$0xf] }
  0xb6   : > { %1779 = vmatmul.msk.bf16.gmra.mxu2 %vm243_vm0, %v1636_v17 }
  0xb7   : > { %v1073_v27 = vadd.f32 %v995_v21, %v277_v19  ;;  %v2204_v28 = vpop.f32.mrf.mxu3  ;;  %v1825_v19 = vld [vmem:[%s2002_s9 + $0x130] sm:$0xf0] }
  0xb8   : > { %v1139_v29 = vld [vmem:[#allocation2] sm:$0xff]  ;;  %v1660_v26 = vor.u32 %v1825_v19, %v1659_v18 }
  0xb9   : > { %1171 = vst.msk [vmem:[%s2199_s16] sm:$0xff] %vm243_vm0, %v1139_v29  ;;  %v1002_v32 = vpop.f32.mrf.mxu2  ;;  %v819_v33 = vpop.f32.mrf.mxu0  ;;  %v1272_v43 = vmul.f32 %v1139_v29, %v1139_v29  ;;  %v1203_v47 = vsel %vm243_vm0, %v1139_v29, 0.0 }
  0xba   : > { %1105 = vst.msk [vmem:[#allocation2 + $0x8] sm:$0xff] %vm243_vm0, %v1073_v27  ;;  %v908_v35 = vpop.f32.mrf.mxu1 }
  0xbb   : > { %v909_v36 = vadd.f32 %v908_v35, %v819_v33  ;;  %v1304_v54 = vsel %vm243_vm0, %v1272_v43, 0.0  ;;  %v1821_v35 = vld [vmem:[%s2002_s9 + $0x110] sm:$0xf0] }
  0xbc   : > { %858 = vmatmul.bf16.gmra.mxu0 %v1616_v30  ;;  %1784 = vmatmul.msk.bf16.gmra.mxu3 %vm243_vm0, %v1696_v31  ;;  %v281_v31 = vld [vmem:[#allocation2 + $0x28] sm:$0xff] }
  0xbd   : > { %v998_v38 = vadd.f32 %v997_v3, %v909_v36  ;;  %947 = vmatmul.bf16.gmra.mxu1 %v1620_v34  ;;  %v1639_v34 = vld [vmem:[%s2002_s9 + $0x108] sm:$0xf]  ;;  %v1820_v36 = vld [vmem:[%s2002_s9 + $0x10c] sm:$0xf] }
  0xbe   : > { %v1640_v42 = vor.u32 %v1821_v35, %v1639_v34 }
  0xbf   : > { %v1074_v39 = vadd.f32 %v998_v38, %v278_v37  ;;  %v2210_v40 = vpop.f32.mrf.mxu3  ;;  %v1641_v37 = vld [vmem:[%s2002_s9 + $0x114] sm:$0xf0] }
  0xc1   : > { %v1140_v44 = vld [vmem:[#allocation2 + $0x8] sm:$0xff]  ;;  %1106 = vst.msk [vmem:[#allocation2 + $0x10] sm:$0xff] %vm243_vm0, %v1074_v39  ;;  %v1004_v45 = vpop.f32.mrf.mxu2  ;;  %v821_v46 = vpop.f32.mrf.mxu0 }
  0xc2   : > { %1172 = vst.msk [vmem:[%s2199_s16 + $0x8] sm:$0xff] %vm243_vm0, %v1140_v44  ;;  %v1204_v48 = vsel %vm243_vm0, %v1140_v44, 0.0  ;;  %v1273_v49 = vmul.f32 %v1140_v44, %v1140_v44  ;;  %v910_v50 = vpop.f32.mrf.mxu1 }
  0xc3   : > { %v1205_v52 = vadd.f32 %v1204_v48, %v1203_v47  ;;  %v911_v53 = vadd.f32 %v910_v50, %v821_v46  ;;  %v1644_v47 = vor.u32 %v1820_v36, %v1641_v37 }
  0xc4   : > { %v1305_v55 = vsel %vm243_vm0, %v1273_v49, 0.0 }
  0xc5   : > { %v1306_v57 = vadd.f32 %v1305_v55, %v1304_v54  ;;  %v1000_v58 = vadd.f32 %v999_v14, %v911_v53  ;;  %v280_v14 = vld [vmem:[#allocation2 + $0x20] sm:$0xff]  ;;  %v282_v53 = vld [vmem:[#allocation2 + $0x30] sm:$0xff] }
  0xc6   : > { %1780 = vmatmul.msk.bf16.gmra.mxu2 %vm243_vm0, %v1648_v51 }
  0xc7   : > { %v1075_v63 = vadd.f32 %v1000_v58, %v279_v56  ;;  %v2226_v0 = vpop.f32.mrf.mxu3  ;;  %v1828_v58 = vld [vmem:[%s2002_s9 + $0x148] sm:$0xf0] }
  0xc8   : > { %v1141_v1 = vld [vmem:[#allocation2 + $0x10] sm:$0xff] }
  0xc9   : > { %1173 = vst.msk [vmem:[%s2199_s16 + $0x10] sm:$0xff] %vm243_vm0, %v1141_v1  ;;  %v1206_v3 = vsel %vm243_vm0, %v1141_v1, 0.0  ;;  %v1274_v4 = vmul.f32 %v1141_v1, %v1141_v1  ;;  %v1007_v5 = vpop.f32.mrf.mxu2  ;;  %v824_v6 = vpop.f32.mrf.mxu0 }
  0xca   : > { %v1207_v8 = vadd.f32 %v1206_v3, %v1205_v52  ;;  %1107 = vst.msk [vmem:[#allocation2 + $0x18] sm:$0xff] %vm243_vm0, %v1075_v63  ;;  %v913_v9 = vpop.f32.mrf.mxu1 }
  0xcb   : > { %v1307_v10 = vsel %vm243_vm0, %v1274_v4, 0.0  ;;  %v914_v12 = vadd.f32 %v913_v9, %v824_v6  ;;  %v283_v6 = vld [vmem:[#allocation2 + $0x38] sm:$0xff] }
  0xcc   : > { %v1308_v13 = vadd.f32 %v1307_v10, %v1306_v57  ;;  %863 = vmatmul.bf16.gmra.mxu0 %v1628_v2  ;;  %v1671_v57 = vld [vmem:[%s2002_s9 + $0x140] sm:$0xf] }
  0xcd   : > { %v1003_v15 = vadd.f32 %v1002_v32, %v914_v12  ;;  %952 = vmatmul.bf16.gmra.mxu1 %v1632_v7  ;;  %v1672_v2 = vor.u32 %v1828_v58, %v1671_v57 }
  0xcf   : > { %v1076_v16 = vadd.f32 %v1003_v15, %v280_v14  ;;  %v2233_v17 = vpop.f32.mrf.mxu3 }
  0xd1   : > { %v1142_v20 = vld [vmem:[#allocation2 + $0x18] sm:$0xff]  ;;  %1108 = vst.msk [vmem:[#allocation2 + $0x20] sm:$0xff] %vm243_vm0, %v1076_v16  ;;  %v1009_v21 = vpop.f32.mrf.mxu2  ;;  %v826_v22 = vpop.f32.mrf.mxu0 }
  0xd2   : > { %1174 = vst.msk [vmem:[%s2199_s16 + $0x18] sm:$0xff] %vm243_vm0, %v1142_v20  ;;  %v1208_v23 = vsel %vm243_vm0, %v1142_v20, 0.0  ;;  %v1275_v24 = vmul.f32 %v1142_v20, %v1142_v20  ;;  %v915_v25 = vpop.f32.mrf.mxu1 }
  0xd3   : > { %v1209_v27 = vadd.f32 %v1208_v23, %v1207_v8  ;;  %v916_v29 = vadd.f32 %v915_v25, %v826_v22  ;;  %v284_v23 = vld [vmem:[#allocation2 + $0x40] sm:$0xff] }
  0xd4   : > { %v1309_v30 = vsel %vm243_vm0, %v1275_v24, 0.0 }
  0xd5   : > { %v1310_v32 = vadd.f32 %v1309_v30, %v1308_v13  ;;  %v1005_v33 = vadd.f32 %v1004_v45, %v916_v29 }
  0xd6   : > { %1781 = vmatmul.msk.bf16.gmra.mxu2 %vm243_vm0, %v1660_v26 }
  0xd7   : > { %v1077_v38 = vadd.f32 %v1005_v33, %v281_v31  ;;  %v2247_v39 = vpop.f32.mrf.mxu3 }
  0xd8   : > { %v1143_v41 = vld [vmem:[#allocation2 + $0x20] sm:$0xff] }
  0xd9   : > { %1175 = vst.msk [vmem:[%s2199_s16 + $0x20] sm:$0xff] %vm243_vm0, %v1143_v41  ;;  %v1210_v43 = vsel %vm243_vm0, %v1143_v41, 0.0  ;;  %v1276_v44 = vmul.f32 %v1143_v41, %v1143_v41  ;;  %v1012_v46 = vpop.f32.mrf.mxu2  ;;  %v829_v45 = vpop.f32.mrf.mxu0 }
  0xda   : > { %v1211_v48 = vadd.f32 %v1210_v43, %v1209_v27  ;;  %1109 = vst.msk [vmem:[#allocation2 + $0x28] sm:$0xff] %vm243_vm0, %v1077_v38  ;;  %v918_v49 = vpop.f32.mrf.mxu1  ;;  %v285_v38 = vld [vmem:[#allocation2 + $0x48] sm:$0xff] }
  0xdb   : > { %v1311_v50 = vsel %vm243_vm0, %v1276_v44, 0.0  ;;  %v919_v51 = vadd.f32 %v918_v49, %v829_v45 }
  0xdc   : > { %v1312_v52 = vadd.f32 %v1311_v50, %v1310_v32  ;;  %868 = vmatmul.bf16.gmra.mxu0 %v1640_v42 }
  0xdd   : > { %v1008_v54 = vadd.f32 %v1007_v5, %v919_v51  ;;  %957 = vmatmul.bf16.gmra.mxu1 %v1644_v47 }
  0xdf   : > { %v1078_v55 = vadd.f32 %v1008_v54, %v282_v53  ;;  %v2254_v56 = vpop.f32.mrf.mxu3 }
  0xe1   : > { %v1144_v59 = vld [vmem:[#allocation2 + $0x28] sm:$0xff]  ;;  %1110 = vst.msk [vmem:[#allocation2 + $0x30] sm:$0xff] %vm243_vm0, %v1078_v55  ;;  %v1014_v60 = vpop.f32.mrf.mxu2  ;;  %v831_v61 = vpop.f32.mrf.mxu0  ;;  %v286_v55 = vld [vmem:[#allocation2 + $0x50] sm:$0xff] }
  0xe2   : > { %1176 = vst.msk [vmem:[%s2199_s16 + $0x28] sm:$0xff] %vm243_vm0, %v1144_v59  ;;  %v1212_v62 = vsel %vm243_vm0, %v1144_v59, 0.0  ;;  %v1277_v63 = vmul.f32 %v1144_v59, %v1144_v59  ;;  %v920_v1 = vpop.f32.mrf.mxu1 }
  0xe3   : > { %v1213_v3 = vadd.f32 %v1212_v62, %v1211_v48  ;;  %v921_v4 = vadd.f32 %v920_v1, %v831_v61 }
  0xe4   : > { %v1313_v5 = vsel %vm243_vm0, %v1277_v63, 0.0 }
  0xe5   : > { %v1314_v7 = vadd.f32 %v1313_v5, %v1312_v52  ;;  %v1010_v8 = vadd.f32 %v1009_v21, %v921_v4 }
  0xe6   : > { %1782 = vmatmul.msk.bf16.gmra.mxu2 %vm243_vm0, %v1672_v2 }
  0xe7   : > { %v1079_v9 = vadd.f32 %v1010_v8, %v283_v6  ;;  %v2264_v10 = vpop.f32.mrf.mxu3  ;;  %v287_v6 = vld [vmem:[#allocation2 + $0x58] sm:$0xff] }
  0xe8   : > { %v1145_v12 = vld [vmem:[#allocation2 + $0x30] sm:$0xff] }
  0xe9   : > { %1177 = vst.msk [vmem:[%s2199_s16 + $0x30] sm:$0xff] %vm243_vm0, %v1145_v12  ;;  %v1214_v13 = vsel %vm243_vm0, %v1145_v12, 0.0  ;;  %v1278_v14 = vmul.f32 %v1145_v12, %v1145_v12  ;;  %v1017_v15 = vpop.f32.mrf.mxu2  ;;  %v834_v16 = vpop.f32.mrf.mxu0 }
  0xea   : > { %v1215_v18 = vadd.f32 %v1214_v13, %v1213_v3  ;;  %1111 = vst.msk [vmem:[#allocation2 + $0x38] sm:$0xff] %vm243_vm0, %v1079_v9  ;;  %v923_v19 = vpop.f32.mrf.mxu1 }
  0xeb   : > { %v1315_v20 = vsel %vm243_vm0, %v1278_v14, 0.0  ;;  %v924_v21 = vadd.f32 %v923_v19, %v834_v16 }
  0xec   : > { %v1316_v22 = vadd.f32 %v1315_v20, %v1314_v7 }
  0xed   : > { %v1013_v24 = vadd.f32 %v1012_v46, %v924_v21 }
  0xef   : > { %v1080_v25 = vadd.f32 %v1013_v24, %v284_v23  ;;  %v963_v26 = vpop.f32.mrf.mxu3  ;;  %v288_v24 = vld [vmem:[#allocation2 + $0x60] sm:$0xff] }
  0xf0   : > { %v2272_v27 = vadd.f32 %v963_v26, %v2186_v11 }
  0xf1   : > { %v1146_v29 = vld [vmem:[#allocation2 + $0x38] sm:$0xff]  ;;  %1112 = vst.msk [vmem:[#allocation2 + $0x40] sm:$0xff] %vm243_vm0, %v1080_v25  ;;  %v1019_v30 = vpop.f32.mrf.mxu2  ;;  %v836_v31 = vpop.f32.mrf.mxu0 }
  0xf2   : > { %1178 = vst.msk [vmem:[%s2199_s16 + $0x38] sm:$0xff] %vm243_vm0, %v1146_v29  ;;  %v1216_v32 = vsel %vm243_vm0, %v1146_v29, 0.0  ;;  %v1279_v33 = vmul.f32 %v1146_v29, %v1146_v29  ;;  %v925_v34 = vpop.f32.mrf.mxu1 }
  0xf3   : > { %v1217_v35 = vadd.f32 %v1216_v32, %v1215_v18  ;;  %v926_v36 = vadd.f32 %v925_v34, %v836_v31 }
  0xf4   : > { %v1317_v37 = vsel %vm243_vm0, %v1279_v33, 0.0 }
  0xf5   : > { %v1318_v41 = vadd.f32 %v1317_v37, %v1316_v22  ;;  %v1015_v11 = vadd.f32 %v1014_v60, %v926_v36 }
  0xf7   : > { %v1081_v42 = vadd.f32 %v1015_v11, %v285_v38  ;;  %v965_v43 = vpop.f32.mrf.mxu3  ;;  %v289_v38 = vld [vmem:[#allocation2 + $0x68] sm:$0xff] }
  0xf8   : > { %v1147_v44 = vld [vmem:[#allocation2 + $0x40] sm:$0xff]  ;;  %v2280_v46 = vadd.f32 %v965_v43, %v2204_v28 }
  0xf9   : > { %1179 = vst.msk [vmem:[%s2199_s16 + $0x40] sm:$0xff] %vm243_vm0, %v1147_v44  ;;  %v1218_v45 = vsel %vm243_vm0, %v1147_v44, 0.0  ;;  %v1280_v47 = vmul.f32 %v1147_v44, %v1147_v44  ;;  %v1022_v48 = vpop.f32.mrf.mxu2  ;;  %v839_v49 = vpop.f32.mrf.mxu0 }
  0xfa   : > { %v1219_v50 = vadd.f32 %v1218_v45, %v1217_v35  ;;  %1113 = vst.msk [vmem:[#allocation2 + $0x48] sm:$0xff] %vm243_vm0, %v1081_v42  ;;  %v928_v51 = vpop.f32.mrf.mxu1 }
  0xfb   : > { %v1319_v52 = vsel %vm243_vm0, %v1280_v47, 0.0  ;;  %v929_v53 = vadd.f32 %v928_v51, %v839_v49 }
  0xfc   : > { %v1320_v54 = vadd.f32 %v1319_v52, %v1318_v41 }
  0xfd   : > { %v1018_v57 = vadd.f32 %v1017_v15, %v929_v53 }
  0xff   : > { %v1082_v28 = vadd.f32 %v1018_v57, %v286_v55  ;;  %v968_v58 = vpop.f32.mrf.mxu3  ;;  %v290_v55 = vld [vmem:[#allocation2 + $0x70] sm:$0xff] }
 0x100   : > { %v2288_v59 = vadd.f32 %v968_v58, %v2210_v40 }
 0x101   : > { %v1148_v60 = vld [vmem:[#allocation2 + $0x48] sm:$0xff]  ;;  %1114 = vst.msk [vmem:[#allocation2 + $0x50] sm:$0xff] %vm243_vm0, %v1082_v28  ;;  %v1024_v61 = vpop.f32.mrf.mxu2  ;;  %v841_v62 = vpop.f32.mrf.mxu0 }
 0x102   : > { %1180 = vst.msk [vmem:[%s2199_s16 + $0x48] sm:$0xff] %vm243_vm0, %v1148_v60  ;;  %v1220_v63 = vsel %vm243_vm0, %v1148_v60, 0.0  ;;  %v1281_v1 = vmul.f32 %v1148_v60, %v1148_v60  ;;  %v930_v2 = vpop.f32.mrf.mxu1 }
 0x103   : > { %v1221_v3 = vadd.f32 %v1220_v63, %v1219_v50  ;;  %v931_v4 = vadd.f32 %v930_v2, %v841_v62 }
 0x104   : > { %v1321_v5 = vsel %vm243_vm0, %v1281_v1, 0.0 }
 0x105   : > { %v1322_v7 = vadd.f32 %v1321_v5, %v1320_v54  ;;  %v1020_v40 = vadd.f32 %v1019_v30, %v931_v4 }
 0x107   : > { %v1083_v8 = vadd.f32 %v1020_v40, %v287_v6  ;;  %v970_v9 = vpop.f32.mrf.mxu3  ;;  %v291_v6 = vld [vmem:[#allocation2 + $0x78] sm:$0xff] }
 0x108   : > { %v1149_v12 = vld [vmem:[#allocation2 + $0x50] sm:$0xff]  ;;  %v2296_v13 = vadd.f32 %v970_v9, %v2226_v0 }
 0x109   : > { %1181 = vst.msk [vmem:[%s2199_s16 + $0x50] sm:$0xff] %vm243_vm0, %v1149_v12  ;;  %v1222_v14 = vsel %vm243_vm0, %v1149_v12, 0.0  ;;  %v1282_v15 = vmul.f32 %v1149_v12, %v1149_v12  ;;  %v1027_v16 = vpop.f32.mrf.mxu2  ;;  %v844_v18 = vpop.f32.mrf.mxu0 }
 0x10a   : > { %v1223_v19 = vadd.f32 %v1222_v14, %v1221_v3  ;;  %1115 = vst.msk [vmem:[#allocation2 + $0x58] sm:$0xff] %vm243_vm0, %v1083_v8  ;;  %v933_v20 = vpop.f32.mrf.mxu1 }
 0x10b   : > { %v1323_v21 = vsel %vm243_vm0, %v1282_v15, 0.0  ;;  %v934_v22 = vadd.f32 %v933_v20, %v844_v18 }
 0x10c   : > { %v1324_v23 = vadd.f32 %v1323_v21, %v1322_v7 }
 0x10d   : > { %v1023_v25 = vadd.f32 %v1022_v48, %v934_v22 }
 0x10f   : > { %v1084_v0 = vadd.f32 %v1023_v25, %v288_v24  ;;  %v973_v26 = vpop.f32.mrf.mxu3 }
 0x110   : > { %v974_v21 = vadd.f32 %v973_v26, %v2233_v17  ;;  %v293_v17 = vld [vmem:[#allocation2 + $0x88] sm:$0xff] }
 0x111   : > { %v1150_v29 = vld [vmem:[#allocation2 + $0x58] sm:$0xff]  ;;  %1116 = vst.msk [vmem:[#allocation2 + $0x60] sm:$0xff] %vm243_vm0, %v1084_v0  ;;  %v1029_v30 = vpop.f32.mrf.mxu2  ;;  %v846_v31 = vpop.f32.mrf.mxu0 }
 0x112   : > { %1182 = vst.msk [vmem:[%s2199_s16 + $0x58] sm:$0xff] %vm243_vm0, %v1150_v29  ;;  %v1224_v32 = vsel %vm243_vm0, %v1150_v29, 0.0  ;;  %v1283_v33 = vmul.f32 %v1150_v29, %v1150_v29  ;;  %v935_v34 = vpop.f32.mrf.mxu1 }
 0x113   : > { %v1225_v35 = vadd.f32 %v1224_v32, %v1223_v19  ;;  %v936_v36 = vadd.f32 %v935_v34, %v846_v31  ;;  %v292_v19 = vld [vmem:[#allocation2 + $0x80] sm:$0xff] }
 0x114   : > { %v1325_v37 = vsel %vm243_vm0, %v1283_v33, 0.0 }
 0x115   : > { %v1326_v41 = vadd.f32 %v1325_v37, %v1324_v23  ;;  %v1025_v11 = vadd.f32 %v1024_v61, %v936_v36  ;;  %v304_v23 = vld [vmem:[#allocation2 + $0xe0] sm:$0xff]  ;;  %v305_v36 = vld [vmem:[#allocation2 + $0xe8] sm:$0xff] }
 0x117   : > { %v1085_v42 = vadd.f32 %v1025_v11, %v289_v38  ;;  %v975_v43 = vpop.f32.mrf.mxu3 }
 0x118   : > { %v1151_v44 = vld [vmem:[#allocation2 + $0x60] sm:$0xff]  ;;  %v976_v34 = vadd.f32 %v975_v43, %v2247_v39  ;;  %v294_v39 = vld [vmem:[#allocation2 + $0x90] sm:$0xff] }
 0x119   : > { %1183 = vst.msk [vmem:[%s2199_s16 + $0x60] sm:$0xff] %vm243_vm0, %v1151_v44  ;;  %v1226_v45 = vsel %vm243_vm0, %v1151_v44, 0.0  ;;  %v1284_v47 = vmul.f32 %v1151_v44, %v1151_v44  ;;  %v1032_v48 = vpop.f32.mrf.mxu2  ;;  %v849_v49 = vpop.f32.mrf.mxu0 }
 0x11a   : > { %v1227_v50 = vadd.f32 %v1226_v45, %v1225_v35  ;;  %1117 = vst.msk [vmem:[#allocation2 + $0x68] sm:$0xff] %vm243_vm0, %v1085_v42  ;;  %v938_v51 = vpop.f32.mrf.mxu1 }
 0x11b   : > { %v1327_v52 = vsel %vm243_vm0, %v1284_v47, 0.0  ;;  %v939_v53 = vadd.f32 %v938_v51, %v849_v49  ;;  %v306_v51 = vld [vmem:[#allocation2 + $0xf0] sm:$0xff] }
 0x11c   : > { %v1328_v54 = vadd.f32 %v1327_v52, %v1326_v41 }
 0x11d   : > { %v1028_v57 = vadd.f32 %v1027_v16, %v939_v53 }
 0x11f   : > { %v1086_v28 = vadd.f32 %v1028_v57, %v290_v55  ;;  %v978_v58 = vpop.f32.mrf.mxu3 }
 0x120   : > { %v979_v49 = vadd.f32 %v978_v58, %v2254_v56  ;;  %v295_v56 = vld [vmem:[#allocation2 + $0x98] sm:$0xff] }
 0x121   : > { %v1152_v60 = vld [vmem:[#allocation2 + $0x68] sm:$0xff]  ;;  %1118 = vst.msk [vmem:[#allocation2 + $0x70] sm:$0xff] %vm243_vm0, %v1086_v28  ;;  %v1034_v61 = vpop.f32.mrf.mxu2  ;;  %v851_v62 = vpop.f32.mrf.mxu0 }
 0x122   : > { %1184 = vst.msk [vmem:[%s2199_s16 + $0x68] sm:$0xff] %vm243_vm0, %v1152_v60  ;;  %v1228_v63 = vsel %vm243_vm0, %v1152_v60, 0.0  ;;  %v1285_v1 = vmul.f32 %v1152_v60, %v1152_v60  ;;  %v940_v2 = vpop.f32.mrf.mxu1 }
 0x123   : > { %v2317_v3 = vadd.f32 %v1228_v63, %v1227_v50  ;;  %v941_v4 = vadd.f32 %v940_v2, %v851_v62  ;;  %v307_v2 = vld [vmem:[#allocation2 + $0xf8] sm:$0xff] }
 0x124   : > { %v1329_v5 = vsel %vm243_vm0, %v1285_v1, 0.0 }
 0x125   : > { %v2320_v7 = vadd.f32 %v1329_v5, %v1328_v54  ;;  %v1030_v40 = vadd.f32 %v1029_v30, %v941_v4 }
 0x127   : > { %v1087_v8 = vadd.f32 %v1030_v40, %v291_v6  ;;  %v980_v9 = vpop.f32.mrf.mxu3 }
 0x128   : > { %v2322_v12 = vld [vmem:[#allocation2 + $0x70] sm:$0xff]  ;;  %v981_v63 = vadd.f32 %v980_v9, %v2264_v10  ;;  %v296_v9 = vld [vmem:[#allocation2 + $0xa0] sm:$0xff] }
 0x129   : > { %1185 = vst.msk [vmem:[%s2199_s16 + $0x70] sm:$0xff] %vm243_vm0, %v2322_v12  ;;  %v1037_v14 = vpop.f32.mrf.mxu2  ;;  %v854_v15 = vpop.f32.mrf.mxu0 }
 0x12a   : > { %1119 = vst.msk [vmem:[#allocation2 + $0x78] sm:$0xff] %vm243_vm0, %v1087_v8  ;;  %v943_v16 = vpop.f32.mrf.mxu1 }
 0x12b   : > { %v944_v18 = vadd.f32 %v943_v16, %v854_v15 }
 0x12d   : > { %v1033_v20 = vadd.f32 %v1032_v48, %v944_v18 }
 0x12f   : > { %v1088_v22 = vadd.f32 %v1033_v20, %v292_v19  ;;  %v1062_v24 = vpop.f32.mrf.mxu3 }
 0x130   : > { %v1063_v25 = vadd.f32 %v1062_v24, %v974_v21 }
 0x131   : > { %v2329_v0 = vld [vmem:[#allocation2 + $0x78] sm:$0xff]  ;;  %1120 = vst.msk [vmem:[#allocation2 + $0x80] sm:$0xff] %vm243_vm0, %v1088_v22  ;;  %v1039_v29 = vpop.f32.mrf.mxu2  ;;  %v856_v30 = vpop.f32.mrf.mxu0 }
 0x132   : > { %1186 = vst.msk [vmem:[%s2199_s16 + $0x78] sm:$0xff] %vm243_vm0, %v2329_v0  ;;  %v1100_v31 = vadd.f32 %v1063_v25, %v304_v23  ;;  %v945_v32 = vpop.f32.mrf.mxu1 }
 0x133   : > { %v946_v33 = vadd.f32 %v945_v32, %v856_v30 }
 0x134   : > { %1132 = vst.msk [vmem:[#allocation2 + $0xe0] sm:$0xff] %vm243_vm0, %v1100_v31 }
 0x135   : > { %v1035_v26 = vadd.f32 %v1034_v61, %v946_v33  ;;  %v300_v33 = vld [vmem:[#allocation2 + $0xc0] sm:$0xff] }
 0x137   : > { %v1089_v35 = vadd.f32 %v1035_v26, %v293_v17  ;;  %v1064_v37 = vpop.f32.mrf.mxu3 }
 0x138   : > { %v2337_v38 = vld [vmem:[#allocation2 + $0x80] sm:$0xff]  ;;  %v1065_v41 = vadd.f32 %v1064_v37, %v976_v34  ;;  %v1286_v37 = vmul.f32 %v2322_v12, %v2322_v12 }
 0x139   : > { %1187 = vst.msk [vmem:[%s2199_s16 + $0x80] sm:$0xff] %vm243_vm0, %v2337_v38  ;;  %v1042_v11 = vpop.f32.mrf.mxu2  ;;  %v859_v42 = vpop.f32.mrf.mxu0 }
 0x13a   : > { %1121 = vst.msk [vmem:[#allocation2 + $0x88] sm:$0xff] %vm243_vm0, %v1089_v35  ;;  %v1101_v44 = vadd.f32 %v1065_v41, %v305_v36  ;;  %v948_v45 = vpop.f32.mrf.mxu1 }
 0x13b   : > { %v2343_v47 = vld [vmem:[#allocation2 + $0xe0] sm:$0xff]  ;;  %v949_v48 = vadd.f32 %v948_v45, %v859_v42  ;;  %v1287_v45 = vmul.f32 %v2329_v0, %v2329_v0 }
 0x13c   : > { %1199 = vst.msk [vmem:[%s2199_s16 + $0xe0] sm:$0xff] %vm243_vm0, %v2343_v47 }
 0x13d   : > { %1133 = vst.msk [vmem:[#allocation2 + $0xe8] sm:$0xff] %vm243_vm0, %v1101_v44  ;;  %v1038_v43 = vadd.f32 %v1037_v14, %v949_v48  ;;  %v1230_v44 = vsel %vm243_vm0, %v2322_v12, 0.0  ;;  %v301_v12 = vld [vmem:[#allocation2 + $0xc8] sm:$0xff] }
 0x13f   : > { %v1090_v50 = vadd.f32 %v1038_v43, %v294_v39  ;;  %v1067_v52 = vpop.f32.mrf.mxu3  ;;  %v1232_v39 = vsel %vm243_vm0, %v2329_v0, 0.0  ;;  %v1288_v43 = vmul.f32 %v2337_v38, %v2337_v38 }
 0x140   : > { %v1068_v53 = vadd.f32 %v1067_v52, %v979_v49  ;;  %v1231_v49 = vadd.f32 %v1230_v44, %v2317_v3 }
 0x141   : > { %v2350_v54 = vld [vmem:[#allocation2 + $0x88] sm:$0xff]  ;;  %1122 = vst.msk [vmem:[#allocation2 + $0x90] sm:$0xff] %vm243_vm0, %v1090_v50  ;;  %v1044_v55 = vpop.f32.mrf.mxu2  ;;  %v861_v57 = vpop.f32.mrf.mxu0 }
 0x142   : > { %1188 = vst.msk [vmem:[%s2199_s16 + $0x88] sm:$0xff] %vm243_vm0, %v2350_v54  ;;  %v1102_v28 = vadd.f32 %v1068_v53, %v306_v51  ;;  %v950_v60 = vpop.f32.mrf.mxu1  ;;  %v1333_v53 = vsel %vm243_vm0, %v1287_v45, 0.0 }
 0x143   : > { %v951_v61 = vadd.f32 %v950_v60, %v861_v57  ;;  %v1289_v57 = vmul.f32 %v2350_v54, %v2350_v54  ;;  %v1233_v60 = vadd.f32 %v1232_v39, %v1231_v49  ;;  %v303_v39 = vld [vmem:[#allocation2 + $0xd8] sm:$0xff] }
 0x144   : > { %v2356_v62 = vld [vmem:[#allocation2 + $0xe8] sm:$0xff]  ;;  %1134 = vst.msk [vmem:[#allocation2 + $0xf0] sm:$0xff] %vm243_vm0, %v1102_v28 }
 0x145   : > { %1200 = vst.msk [vmem:[%s2199_s16 + $0xe8] sm:$0xff] %vm243_vm0, %v2356_v62  ;;  %v1040_v58 = vadd.f32 %v1039_v29, %v951_v61  ;;  %v297_v29 = vld [vmem:[#allocation2 + $0xa8] sm:$0xff] }
 0x147   : > { %v1091_v1 = vadd.f32 %v1040_v58, %v295_v56  ;;  %v1069_v4 = vpop.f32.mrf.mxu3  ;;  %v1335_v56 = vsel %vm243_vm0, %v1288_v43, 0.0  ;;  %v1236_v58 = vsel %vm243_vm0, %v2350_v54, 0.0 }
 0x148   : > { %v2363_v5 = vld [vmem:[#allocation2 + $0x90] sm:$0xff]  ;;  %v1070_v6 = vadd.f32 %v1069_v4, %v981_v63 }
 0x149   : > { %1189 = vst.msk [vmem:[%s2199_s16 + $0x90] sm:$0xff] %vm243_vm0, %v2363_v5  ;;  %v1047_v40 = vpop.f32.mrf.mxu2  ;;  %v864_v8 = vpop.f32.mrf.mxu0 }
 0x14a   : > { %1123 = vst.msk [vmem:[#allocation2 + $0x98] sm:$0xff] %vm243_vm0, %v1091_v1  ;;  %v1103_v14 = vadd.f32 %v1070_v6, %v307_v2  ;;  %v953_v15 = vpop.f32.mrf.mxu1  ;;  %v299_v1 = vld [vmem:[#allocation2 + $0xb8] sm:$0xff] }
 0x14b   : > { %v2369_v16 = vld [vmem:[#allocation2 + $0xf0] sm:$0xff]  ;;  %v954_v10 = vadd.f32 %v953_v15, %v864_v8 }
 0x14c   : > { %1201 = vst.msk [vmem:[%s2199_s16 + $0xf0] sm:$0xff] %vm243_vm0, %v2369_v16 }
 0x14d   : > { %1135 = vst.msk [vmem:[#allocation2 + $0xf8] sm:$0xff] %vm243_vm0, %v1103_v14  ;;  %v1043_v18 = vadd.f32 %v1042_v11, %v954_v10  ;;  %v298_v11 = vld [vmem:[#allocation2 + $0xb0] sm:$0xff] }
 0x14f   : > { %v1092_v19 = vadd.f32 %v1043_v18, %v296_v9 }
 0x151   : > { %v2375_v20 = vld [vmem:[#allocation2 + $0x98] sm:$0xff]  ;;  %1124 = vst.msk [vmem:[#allocation2 + $0xa0] sm:$0xff] %vm243_vm0, %v1092_v19  ;;  %v1049_v21 = vpop.f32.mrf.mxu2  ;;  %v866_v22 = vpop.f32.mrf.mxu0 }
 0x152   : > { %1190 = vst.msk [vmem:[%s2199_s16 + $0x98] sm:$0xff] %vm243_vm0, %v2375_v20  ;;  %v955_v23 = vpop.f32.mrf.mxu1  ;;  %v1291_v8 = vmul.f32 %v2375_v20, %v2375_v20  ;;  %v1240_v9 = vsel %vm243_vm0, %v2375_v20, 0.0 }
 0x153   : > { %v956_v24 = vadd.f32 %v955_v23, %v866_v22 }
 0x154   : > { %v2381_v25 = vld [vmem:[#allocation2 + $0xf8] sm:$0xff] }
 0x155   : > { %1202 = vst.msk [vmem:[%s2199_s16 + $0xf8] sm:$0xff] %vm243_vm0, %v2381_v25  ;;  %v1045_v30 = vadd.f32 %v1044_v55, %v956_v24  ;;  %v1234_v55 = vsel %vm243_vm0, %v2337_v38, 0.0  ;;  %v1290_v38 = vmul.f32 %v2363_v5, %v2363_v5  ;;  %v1341_v24 = vsel %vm243_vm0, %v1291_v8, 0.0 }
 0x156   : > { %v1235_v4 = vadd.f32 %v1234_v55, %v1233_v60 }
 0x157   : > { %v1093_v31 = vadd.f32 %v1045_v30, %v297_v29  ;;  %v1339_v10 = vsel %vm243_vm0, %v1290_v38, 0.0 }
 0x158   : > { %v1159_v32 = vld [vmem:[#allocation2 + $0xa0] sm:$0xff]  ;;  %v1237_v14 = vadd.f32 %v1236_v58, %v1235_v4 }
 0x159   : > { %1191 = vst.msk [vmem:[%s2199_s16 + $0xa0] sm:$0xff] %vm243_vm0, %v1159_v32  ;;  %v1052_v17 = vpop.f32.mrf.mxu2  ;;  %v869_v26 = vpop.f32.mrf.mxu0  ;;  %v1292_v18 = vmul.f32 %v1159_v32, %v1159_v32  ;;  %v1242_v29 = vsel %vm243_vm0, %v1159_v32, 0.0 }
 0x15a   : > { %1125 = vst.msk [vmem:[#allocation2 + $0xa8] sm:$0xff] %vm243_vm0, %v1093_v31  ;;  %v1053_v34 = vadd.f32 %v1052_v17, %v2272_v27  ;;  %v958_v35 = vpop.f32.mrf.mxu1  ;;  %v1331_v27 = vsel %vm243_vm0, %v1286_v37, 0.0 }
 0x15b   : > { %v959_v36 = vadd.f32 %v958_v35, %v869_v26  ;;  %v1332_v3 = vadd.f32 %v1331_v27, %v2320_v7  ;;  %v1238_v7 = vsel %vm243_vm0, %v2363_v5, 0.0  ;;  %v302_v5 = vld [vmem:[#allocation2 + $0xd0] sm:$0xff]  ;;  %v1343_v17 = vsel %vm243_vm0, %v1292_v18, 0.0 }
 0x15c   : > { %v1096_v41 = vadd.f32 %v1053_v34, %v300_v33  ;;  %v1239_v22 = vadd.f32 %v1238_v7, %v1237_v14  ;;  %v1300_v7 = vmul.f32 %v2343_v47, %v2343_v47 }
 0x15d   : > { %v1048_v42 = vadd.f32 %v1047_v40, %v959_v36  ;;  %v1334_v2 = vadd.f32 %v1333_v53, %v1332_v3  ;;  %v1337_v40 = vsel %vm243_vm0, %v1289_v57, 0.0 }
 0x15e   : > { %1128 = vst.msk [vmem:[#allocation2 + $0xc0] sm:$0xff] %vm243_vm0, %v1096_v41  ;;  %v1241_v20 = vadd.f32 %v1240_v9, %v1239_v22  ;;  %v1301_v9 = vmul.f32 %v2356_v62, %v2356_v62  ;;  %v1359_v22 = vsel %vm243_vm0, %v1300_v7, 0.0 }
 0x15f   : > { %v1094_v48 = vadd.f32 %v1048_v42, %v298_v11  ;;  %v1336_v54 = vadd.f32 %v1335_v56, %v1334_v2 }
 0x160   : > { %v1243_v37 = vadd.f32 %v1242_v29, %v1241_v20 }
 0x161   : > { %v1160_v50 = vld [vmem:[#allocation2 + $0xa8] sm:$0xff]  ;;  %1126 = vst.msk [vmem:[#allocation2 + $0xb0] sm:$0xff] %vm243_vm0, %v1094_v48  ;;  %v1054_v51 = vpop.f32.mrf.mxu2  ;;  %v871_v52 = vpop.f32.mrf.mxu0 }
 0x162   : > { %1192 = vst.msk [vmem:[%s2199_s16 + $0xa8] sm:$0xff] %vm243_vm0, %v1160_v50  ;;  %v1055_v0 = vadd.f32 %v1054_v51, %v2280_v46  ;;  %v960_v28 = vpop.f32.mrf.mxu1  ;;  %v1293_v30 = vmul.f32 %v1160_v50, %v1160_v50  ;;  %v1244_v26 = vsel %vm243_vm0, %v1160_v50, 0.0 }
 0x163   : > { %v961_v61 = vadd.f32 %v960_v28, %v871_v52 }
 0x164   : > { %v1097_v63 = vadd.f32 %v1055_v0, %v301_v12  ;;  %v1345_v41 = vsel %vm243_vm0, %v1293_v30, 0.0  ;;  %v1262_v30 = vsel %vm243_vm0, %v2369_v16, 0.0 }
 0x165   : > { %v1163_v6 = vld [vmem:[#allocation2 + $0xc0] sm:$0xff]  ;;  %v1050_v46 = vadd.f32 %v1049_v21, %v961_v61  ;;  %v1338_v21 = vadd.f32 %v1337_v40, %v1336_v54 }
 0x166   : > { %1195 = vst.msk [vmem:[%s2199_s16 + $0xc0] sm:$0xff] %vm243_vm0, %v1163_v6  ;;  %v1296_v51 = vmul.f32 %v1163_v6, %v1163_v6  ;;  %v1250_v0 = vsel %vm243_vm0, %v1163_v6, 0.0 }
 0x167   : > { %1129 = vst.msk [vmem:[#allocation2 + $0xc8] sm:$0xff] %vm243_vm0, %v1097_v63  ;;  %v1095_v15 = vadd.f32 %v1050_v46, %v299_v1  ;;  %v1340_v33 = vadd.f32 %v1339_v10, %v1338_v21  ;;  %v1258_v10 = vsel %vm243_vm0, %v2343_v47, 0.0  ;;  %v1361_v47 = vsel %vm243_vm0, %v1301_v9, 0.0 }
 0x168   : > { %v1161_v19 = vld [vmem:[#allocation2 + $0xb0] sm:$0xff]  ;;  %v1351_v61 = vsel %vm243_vm0, %v1296_v51, 0.0 }
 0x169   : > { %1193 = vst.msk [vmem:[%s2199_s16 + $0xb0] sm:$0xff] %vm243_vm0, %v1161_v19  ;;  %v1057_v23 = vpop.f32.mrf.mxu2  ;;  %v1294_v34 = vmul.f32 %v1161_v19, %v1161_v19  ;;  %v1342_v36 = vadd.f32 %v1341_v24, %v1340_v33  ;;  %v1246_v32 = vsel %vm243_vm0, %v1161_v19, 0.0 }
 0x16a   : > { %1127 = vst.msk [vmem:[#allocation2 + $0xb8] sm:$0xff] %vm243_vm0, %v1095_v15  ;;  %v1058_v31 = vadd.f32 %v1057_v23, %v2288_v59  ;;  %v1245_v59 = vadd.f32 %v1244_v26, %v1243_v37  ;;  %v1302_v23 = vmul.f32 %v2369_v16, %v2369_v16 }
 0x16b   : > { %v1344_v42 = vadd.f32 %v1343_v17, %v1342_v36  ;;  %v1347_v44 = vsel %vm243_vm0, %v1294_v34, 0.0 }
 0x16c   : > { %v1098_v35 = vadd.f32 %v1058_v31, %v302_v5  ;;  %v1247_v48 = vadd.f32 %v1246_v32, %v1245_v59  ;;  %v1260_v5 = vsel %vm243_vm0, %v2356_v62, 0.0  ;;  %v1303_v31 = vmul.f32 %v2381_v25, %v2381_v25 }
 0x16d   : > { %v1346_v45 = vadd.f32 %v1345_v41, %v1344_v42  ;;  %v1363_v17 = vsel %vm243_vm0, %v1302_v23, 0.0  ;;  %v1264_v62 = vsel %vm243_vm0, %v2381_v25, 0.0 }
 0x16e   : > { %v1164_v11 = vld [vmem:[#allocation2 + $0xc8] sm:$0xff]  ;;  %1130 = vst.msk [vmem:[#allocation2 + $0xd0] sm:$0xff] %vm243_vm0, %v1098_v35  ;;  %v1365_v35 = vsel %vm243_vm0, %v1303_v31, 0.0 }
 0x16f   : > { %1196 = vst.msk [vmem:[%s2199_s16 + $0xc8] sm:$0xff] %vm243_vm0, %v1164_v11  ;;  %v1348_v52 = vadd.f32 %v1347_v44, %v1346_v45  ;;  %v1297_v56 = vmul.f32 %v1164_v11, %v1164_v11  ;;  %v1252_v58 = vsel %vm243_vm0, %v1164_v11, 0.0 }
 0x171   : > { %v1162_v27 = vld [vmem:[#allocation2 + $0xb8] sm:$0xff]  ;;  %v1059_v43 = vpop.f32.mrf.mxu2  ;;  %v1353_v1 = vsel %vm243_vm0, %v1297_v56, 0.0 }
 0x172   : > { %1194 = vst.msk [vmem:[%s2199_s16 + $0xb8] sm:$0xff] %vm243_vm0, %v1162_v27  ;;  %v1248_v49 = vsel %vm243_vm0, %v1162_v27, 0.0  ;;  %v1295_v50 = vmul.f32 %v1162_v27, %v1162_v27  ;;  %v1060_v12 = vadd.f32 %v1059_v43, %v2296_v13 }
 0x173   : > { %v1249_v53 = vadd.f32 %v1248_v49, %v1247_v48 }
 0x174   : > { %v1349_v55 = vsel %vm243_vm0, %v1295_v50, 0.0  ;;  %v1099_v57 = vadd.f32 %v1060_v12, %v303_v39 }
 0x175   : > { %v1350_v28 = vadd.f32 %v1349_v55, %v1348_v52  ;;  %v1165_v3 = vld [vmem:[#allocation2 + $0xd0] sm:$0xff]  ;;  %v1251_v60 = vadd.f32 %v1250_v0, %v1249_v53 }
 0x176   : > { %1197 = vst.msk [vmem:[%s2199_s16 + $0xd0] sm:$0xff] %vm243_vm0, %v1165_v3  ;;  %v1298_v38 = vmul.f32 %v1165_v3, %v1165_v3  ;;  %v1254_v2 = vsel %vm243_vm0, %v1165_v3, 0.0 }
 0x177   : > { %1131 = vst.msk [vmem:[#allocation2 + $0xd8] sm:$0xff] %vm243_vm0, %v1099_v57  ;;  %v1352_v13 = vadd.f32 %v1351_v61, %v1350_v28  ;;  %v1253_v63 = vadd.f32 %v1252_v58, %v1251_v60 }
 0x178   : > { %v1355_v6 = vsel %vm243_vm0, %v1298_v38, 0.0 }
 0x179   : > { %v1354_v4 = vadd.f32 %v1353_v1, %v1352_v13  ;;  %v1255_v46 = vadd.f32 %v1254_v2, %v1253_v63 }
 0x17b   : > { %v1356_v14 = vadd.f32 %v1355_v6, %v1354_v4 }
 0x17e   : > { %v1166_v40 = vld [vmem:[#allocation2 + $0xd8] sm:$0xff] }
 0x17f   : > { %1198 = vst.msk [vmem:[%s2199_s16 + $0xd8] sm:$0xff] %vm243_vm0, %v1166_v40  ;;  %v1256_v8 = vsel %vm243_vm0, %v1166_v40, 0.0  ;;  %v1299_v54 = vmul.f32 %v1166_v40, %v1166_v40 }
 0x180   : > { %v1257_v15 = vadd.f32 %v1256_v8, %v1255_v46 }
 0x181   : > { %v1357_v18 = vsel %vm243_vm0, %v1299_v54, 0.0 }
 0x182   : > { %v1259_v19 = vadd.f32 %v1258_v10, %v1257_v15  ;;  %v1358_v21 = vadd.f32 %v1357_v18, %v1356_v14 }
 0x184   : > { %v1261_v24 = vadd.f32 %v1260_v5, %v1259_v19  ;;  %v1360_v29 = vadd.f32 %v1359_v22, %v1358_v21 }
 0x186   : > { %v1263_v33 = vadd.f32 %v1262_v30, %v1261_v24  ;;  %v1362_v20 = vadd.f32 %v1361_v47, %v1360_v29 }
 0x188   : > { %v1265_v26 = vadd.f32 %v1264_v62, %v1263_v33  ;;  %v1364_v34 = vadd.f32 %v1363_v17, %v1362_v20 }
 0x18a   : > { %v1266_v36 = vrot.slane %v1265_v26, 4  ;;  %v1366_v37 = vadd.f32 %v1365_v35, %v1364_v34 }
 0x18c   : > { %v1267_v41 = vadd.f32 %v1266_v36, %v1265_v26  ;;  %v1367_v16 = vrot.slane %v1366_v37, 4 }
 0x18e   : > { %v1268_v32 = vrot.slane %v1267_v41, 2  ;;  %v1368_v11 = vadd.f32 %v1367_v16, %v1366_v37 }
 0x190   : > { %v1269_v42 = vadd.f32 %v1268_v32, %v1267_v41  ;;  %v1369_v59 = vrot.slane %v1368_v11, 2 }
 0x192   : > { %v1270_v44 = vrot.slane %v1269_v42, 1  ;;  %v1370_v45 = vadd.f32 %v1369_v59, %v1368_v11 }
 0x194   : > { %v1371_v48 = vrot.slane %v1370_v45, 1  ;;  %v1271_v25 = vadd.f32 %v1270_v44, %v1269_v42 }
 0x196   : > { %v1372_v27 = vadd.f32 %v1371_v48, %v1370_v45 }
 0x198   : > { %v1374_v39 = vsel %vm1373_vm1, %v1271_v25, %v1372_v27 }
 0x199   : > { %1376 = vst.msk [vmem:[%s237_s18] sm:$0x3] %vm1375_vm2, %v1374_v39 }
 0x19a PF: > { %s14_s14 = sadd.s32 1, %s1919_s14   ;;  %s2499_s12 = smov %s1915_s13 }
 0x19b   : > { %p11_p6 = scmp.ge.s32.totalorder %s14_s14, 4   ;;  %s2500_s13 = smov %s2502_s15 }
 0x19d   :  { %13 = sbr.rel (!%p11_p6) target bundleno = 2 (0x2), region = 81 }

</bundles_post_ra>
